<compile_context>
chip_gen: v7x
topology: tpu7x:2x2x1
jax: 0.10.0
libtpu: 0.0.40
codegen_flags: <defaults>
</compile_context>

<pallas_src>
import numpy as np

import jax
import jax.numpy as jnp
from jax.experimental import pallas as pl
from jax.experimental.pallas import tpu as pltpu

_EPS = 1e-5
_CH = 64          # stem width (conv1 output and both BasicBlocks)


# ---------------------------------------------------------------------------
# In-kernel BatchNorm (train mode, biased variance) + ReLU + mask
# ---------------------------------------------------------------------------
def _bn_act_mask(y, gamma, beta, mask, count, residual=None):
    """One-pass masked sum / sum-of-squares BN (f32), optional residual add,
    ReLU, and a final re-mask so pad/junk rows of the flat layout stay zero.
    NOTE: one-pass variance can lose precision when mean^2 >> var; accepted
    tolerance vs. a f32 PyTorch reference (clamped at 0 before rsqrt)."""
    ym = y * mask
    s = jnp.sum(ym, axis=0, keepdims=True)
    ss = jnp.sum(ym * y, axis=0, keepdims=True)
    inv_n = 1.0 / count
    mean = s * inv_n
    var = jnp.maximum(ss * inv_n - mean * mean, 0.0)
    out = (y - mean) * jax.lax.rsqrt(var + _EPS) * gamma + beta
    if residual is not None:
        out = out + residual
    out = jnp.maximum(out, 0.0)
    return out * mask


# ---------------------------------------------------------------------------
# Fused frontend kernel builder (all geometry is static / trace-time Python)
# ---------------------------------------------------------------------------
def _make_frontend_kernel(N, Hs, Ws, Ho, Wo, Hq, Wq):
    # conv1 geometry (on the space-to-depth input of spatial size Hs x Ws)
    R1 = N * Hs * Ws
    Q1 = R1 - (3 * Ws + 3)
    n1_valid = float(N * Ho * Wo)
    P = Ws                         # head pad rows in the y1/maxpool scratch
    T1 = R1 + 2 * Ws               # y1 scratch rows (head + tail pad)

    # BasicBlock geometry (spatial Hq x Wq, 3x3 convs, pad 1, stride 1)
    Wpb = Wq + 2
    Rb = N * (Hq + 2) * Wpb
    OFFb = Wpb + 1
    Qb = Rb - 2 * OFFb
    tapsb = [ki * Wpb + kj for ki in range(3) for kj in range(3)]
    nb_valid = float(N * Hq * Wq)

    geom = dict(R1=R1, Q1=Q1, T1=T1, Wpb=Wpb, Rb=Rb, OFFb=OFFb, Qb=Qb)

    def kernel(xs_ref, w1_ref, g1_ref, b1_ref, m1_ref,
               w11_ref, g11_ref, b11_ref, w12_ref, g12_ref, b12_ref,
               w21_ref, g21_ref, b21_ref, w22_ref, g22_ref, b22_ref,
               mb_ref, o_ref,
               y1_ref, xb1_ref, xb2_ref, htmp_ref, pk1_ref, pkb_ref):
        f32 = jnp.float32
        bf16 = jnp.bfloat16

        # ------------------------------------------------------------------
        # One-time zeroing of pad regions ONLY (no repeated full-buffer fills)
        # ------------------------------------------------------------------
        y1_ref[0:P, :] = jnp.zeros((P, _CH), f32)
        y1_ref[P + Q1:T1, :] = jnp.zeros((T1 - P - Q1, _CH), f32)
        xb1_ref[...] = jnp.zeros_like(xb1_ref)     # pooled rows overwrite interior
        xb2_ref[0:OFFb, :] = jnp.zeros((OFFb, _CH), bf16)
        xb2_ref[OFFb + Qb:Rb, :] = jnp.zeros((OFFb, _CH), bf16)
        htmp_ref[0:OFFb, :] = jnp.zeros((OFFb, _CH), bf16)
        htmp_ref[OFFb + Qb:Rb, :] = jnp.zeros((OFFb, _CH), bf16)

        # ------------------------------------------------------------------
        # conv1: 7x7/stride-2 expressed on the s2d+colfold input, packed to a
        # (Q1, 192) bf16 im2col scratch -> ONE wide-K matmul (K=192)
        # ------------------------------------------------------------------
        for a in range(4):
            pk1_ref[:, a * 48:(a + 1) * 48] = xs_ref[a * Ws:a * Ws + Q1, :]
        y1 = jnp.dot(pk1_ref[...], w1_ref[...],
                     preferred_element_type=jnp.float32)
        y1 = _bn_act_mask(y1, g1_ref[...], b1_ref[...], m1_ref[...], n1_valid)
        y1_ref[P:P + Q1, :] = y1

        # ------------------------------------------------------------------
        # maxpool 3x3/stride-2/pad-1, vectorized (pad value 0 is exact since
        # the input is post-ReLU and junk rows/cols are masked to zero):
        #   horizontal max of 3 shifted slabs, vertical max of 3 (+/-Ws)
        #   shifted slabs, then a stride-2 subsample written as (Wq,64)
        #   blocks into block1's zero-padded flat input layout.
        # ------------------------------------------------------------------
        hm = jnp.maximum(jnp.maximum(y1_ref[P - 1:P - 1 + R1, :],
                                     y1_ref[P:P + R1, :]),
                         y1_ref[P + 1:P + 1 + R1, :])
        y1_ref[P:P + R1, :] = hm
        vm = jnp.maximum(jnp.maximum(y1_ref[P - Ws:P - Ws + R1, :],
                                     y1_ref[P:P + R1, :]),
                         y1_ref[P + Ws:P + Ws + R1, :])
        y1_ref[P:P + R1, :] = vm
        for n in range(N):
            for py in range(Hq):
                src = P + n * Hs * Ws + (2 * py) * Ws
                dst = n * (Hq + 2) * Wpb + (py + 1) * Wpb + 1
                pooled = y1_ref[pl.ds(src, Wq, stride=2), :]
                xb1_ref[dst:dst + Wq, :] = pooled.astype(bf16)

        # ------------------------------------------------------------------
        # BasicBlocks: each 3x3 conv packs its 9 taps into a (Qb, 576) bf16
        # scratch and does ONE K=576 matmul (accumulation inside the MXU).
        # ------------------------------------------------------------------
        def conv3x3(src_ref, w_ref):
            for t, sh in enumerate(tapsb):
                pkb_ref[:, t * _CH:(t + 1) * _CH] = src_ref[sh:sh + Qb, :]
            return jnp.dot(pkb_ref[...], w_ref[...],
                           preferred_element_type=jnp.float32)

        mb = mb_ref[...]

        # ---- block 1 -----------------------------------------------------
        h = conv3x3(xb1_ref, w11_ref)
        h = _bn_act_mask(h, g11_ref[...], b11_ref[...], mb, nb_valid)
        htmp_ref[OFFb:OFFb + Qb, :] = h.astype(bf16)
        y = conv3x3(htmp_ref, w12_ref)
        res = xb1_ref[OFFb:OFFb + Qb, :].astype(f32)
        y = _bn_act_mask(y, g12_ref[...], b12_ref[...], mb, nb_valid,
                         residual=res)
        xb2_ref[OFFb:OFFb + Qb, :] = y.astype(bf16)

        # ---- block 2 -----------------------------------------------------
        h = conv3x3(xb2_ref, w21_ref)
        h = _bn_act_mask(h, g21_ref[...], b21_ref[...], mb, nb_valid)
        htmp_ref[OFFb:OFFb + Qb, :] = h.astype(bf16)
        y = conv3x3(htmp_ref, w22_ref)
        res = xb2_ref[OFFb:OFFb + Qb, :].astype(f32)
        y = _bn_act_mask(y, g22_ref[...], b22_ref[...], mb, nb_valid,
                         residual=res)

        # ---- trimmed writeback: only the N*Hq*Wq valid rows leave VMEM ----
        # TODO(synk): pack lane-dense as (N*Hq, Wq*64) for real resolutions.
        for n in range(N):
            for py in range(Hq):
                r = n * (Hq + 2) * Wpb + (py + 1) * Wpb + 1 - OFFb
                d = (n * Hq + py) * Wq
                o_ref[d:d + Wq, :] = y[r:r + Wq, :]

    return kernel, geom


# ---------------------------------------------------------------------------
# Trace-time constants: validity masks for the padded-flat layouts
# ---------------------------------------------------------------------------
def _conv1_mask(N, Hs, Ws, Ho, Wo, Q1):
    q = np.arange(Q1)
    rem = q % (Hs * Ws)
    oy, ox = rem // Ws, rem % Ws
    return ((oy < Ho) & (ox < Wo)).astype(np.float32).reshape(Q1, 1)


def _block_mask(N, Hq, Wq, Wpb, OFFb, Qb):
    q = np.arange(Qb) + OFFb
    rem = q % ((Hq + 2) * Wpb)
    y, x = rem // Wpb, rem % Wpb
    m = (y >= 1) & (y <= Hq) & (x >= 1) & (x <= Wq)
    return m.astype(np.float32).reshape(Qb, 1)


# ---------------------------------------------------------------------------
# Parameter init (deterministic, kaiming-ish) in kernel-native layouts
# ---------------------------------------------------------------------------
def _conv1_weight_s2d(key):
    """7x7x3x64 weight, zero-padded to 8x8 and re-indexed for the
    space-to-depth(2) + column-fold formulation -> (192, 64) bf16,
    row order (a, b, di, dj, c)."""
    fan_in = 7 * 7 * 3
    w7 = jax.random.normal(key, (7, 7, 3, _CH), jnp.float32)
    w7 = w7 * np.sqrt(2.0 / fan_in)
    w8 = jnp.zeros((8, 8, 3, _CH), jnp.float32).at[:7, :7].set(w7)
    w = w8.reshape(4, 2, 4, 2, 3, _CH).transpose(0, 2, 1, 3, 4, 5)
    return w.reshape(192, _CH).astype(jnp.bfloat16)


def _conv3x3_weight(key):
    fan_in = 3 * 3 * _CH
    w = jax.random.normal(key, (3, 3, _CH, _CH), jnp.float32)
    w = w * np.sqrt(2.0 / fan_in)
    return w.reshape(9 * _CH, _CH).astype(jnp.bfloat16)   # rows = (ki,kj,cin)


def init_params(key):
    ks = jax.random.split(key, 5)
    ones = jnp.ones((1, _CH), jnp.float32)
    zeros = jnp.zeros((1, _CH), jnp.float32)

    def blk(k1, k2):
        return {"w1": _conv3x3_weight(k1), "g1": ones, "b1": zeros,
                "w2": _conv3x3_weight(k2), "g2": ones, "b2": zeros}

    return {"conv1_w": _conv1_weight_s2d(ks[0]), "bn1_g": ones, "bn1_b": zeros,
            "block1": blk(ks[1], ks[2]), "block2": blk(ks[3], ks[4])}


# ---------------------------------------------------------------------------
# Forward pass
# ---------------------------------------------------------------------------
def _full_spec(shape):
    nd = len(shape)
    return pl.BlockSpec(shape, lambda i, _nd=nd: (0,) * _nd)


def _padded_bytes(shape, dtype):
    """Rough VMEM footprint of a buffer after (sublane, lane) tiling."""
    item = jnp.dtype(dtype).itemsize
    sub_tile = {4: 8, 2: 16, 1: 32}.get(item, 8)
    lanes = ((shape[-1] + 127) // 128) * 128
    subs = ((shape[-2] + sub_tile - 1) // sub_tile) * sub_tile
    lead = int(np.prod(shape[:-2])) if len(shape) > 2 else 1
    return int(lead * subs * lanes * item)


@jax.jit
def frontend_forward(x_nchw, params):
    N, Cin, H, W = x_nchw.shape
    assert Cin == 3 and H % 2 == 0 and W % 2 == 0
    Hs, Ws = (H + 6) // 2, (W + 6) // 2          # space-to-depth spatial dims
    Ho, Wo = Hs - 3, Ws - 3                      # conv1 output spatial dims
    Hq, Wq = (Ho - 1) // 2 + 1, (Wo - 1) // 2 + 1  # maxpool / block dims

    kernel, g = _make_frontend_kernel(N, Hs, Ws, Ho, Wo, Hq, Wq)
    Q1, T1, Wpb, Rb, OFFb, Qb = (g["Q1"], g["T1"], g["Wpb"], g["Rb"],
                                 g["OFFb"], g["Qb"])

    # Layout prep in plain JAX (~1x traffic): NCHW -> NHWC, zero-pad by 3,
    # space-to-depth(2) (12 ch), fold the 4 column taps into channels (48 ch,
    # bf16) so the kernel only packs the 4 remaining row taps (K=192).
    x = jnp.transpose(x_nchw, (0, 2, 3, 1)).astype(jnp.float32)
    xpad = jnp.pad(x, ((0, 0), (3, 3), (3, 3), (0, 0)))
    xs12 = xpad.reshape(N, Hs, 2, Ws, 2, 3).transpose(0, 1, 3, 2, 4, 5)
    xs12 = xs12.reshape(N, Hs, Ws, 12)
    xs12p = jnp.pad(xs12, ((0, 0), (0, 0), (0, 3), (0, 0)))
    xs48 = jnp.concatenate([xs12p[:, :, b:b + Ws, :] for b in range(4)],
                           axis=3)
    xs = xs48.reshape(N * Hs * Ws, 48).astype(jnp.bfloat16)

    m1 = jnp.asarray(_conv1_mask(N, Hs, Ws, Ho, Wo, Q1))
    mb = jnp.asarray(_block_mask(N, Hq, Wq, Wpb, OFFb, Qb))

    b1, b2 = params["block1"], params["block2"]
    inputs = [xs, params["conv1_w"], params["bn1_g"], params["bn1_b"], m1,
              b1["w1"], b1["g1"], b1["b1"], b1["w2"], b1["g2"], b1["b2"],
              b2["w1"], b2["g1"], b2["b1"], b2["w2"], b2["g2"], b2["b2"],
              mb]

    out_shape = (N * Hq * Wq, _CH)
    scratch_specs = [
        pltpu.VMEM((T1, _CH), jnp.float32),      # conv1 out / maxpool slabs
        pltpu.VMEM((Rb, _CH), jnp.bfloat16),     # block1 input (pooled)
        pltpu.VMEM((Rb, _CH), jnp.bfloat16),     # block2 input
        pltpu.VMEM((Rb, _CH), jnp.bfloat16),     # mid-block staging
        pltpu.VMEM((Q1, 192), jnp.bfloat16),     # conv1 packed-K LHS
        pltpu.VMEM((Qb, 9 * _CH), jnp.bfloat16), # 3x3-conv packed-K LHS
    ]

    # Explicit VMEM budget derived from the actual buffer sizes (with slack).
    scratch_sizes = [((T1, _CH), jnp.float32)] + \
                    [((Rb, _CH), jnp.bfloat16)] * 3 + \
                    [((Q1, 192), jnp.bfloat16), ((Qb, 9 * _CH), jnp.bfloat16)]
    total = (2 * sum(_padded_bytes(a.shape, a.dtype) for a in inputs)
             + 2 * _padded_bytes(out_shape, jnp.float32)
             + sum(_padded_bytes(s, d) for s, d in scratch_sizes))
    vmem_limit = int(min(128 * 1024 * 1024,
                         max(2 * total + (16 << 20), 32 << 20)))

    out_flat = pl.pallas_call(
        kernel,
        out_shape=jax.ShapeDtypeStruct(out_shape, jnp.float32),
        grid=(1,),
        in_specs=[_full_spec(a.shape) for a in inputs],
        out_specs=_full_spec(out_shape),
        scratch_shapes=scratch_specs,
        compiler_params=pltpu.CompilerParams(
            dimension_semantics=("arbitrary",),
            vmem_limit_bytes=vmem_limit),
    )(*inputs)

    # trimmed valid rows -> NHWC -> NCHW
    y = out_flat.reshape(N, Hq, Wq, _CH)
    return jnp.transpose(y, (0, 3, 1, 2))


if __name__ == "__main__":
    key = jax.random.PRNGKey(0)
    k_param, k_x = jax.random.split(key)
    params = init_params(k_param)

    x = jax.random.normal(k_x, (2, 3, 16, 16), jnp.float32)      # NCHW input

    out = frontend_forward(x, params)
    out = jax.block_until_ready(out)

    assert out.shape == (2, 64, 4, 4), out.shape
    assert bool(jnp.all(jnp.isfinite(out)))
    print("KERNEL_OK")
</pallas_src>

<mosaic_0001>
module attributes {stable_mosaic.version = 11 : i64} {
  func.func @kernel(%arg0: i32, %arg1: memref<242x48xbf16, #tpu.memory_space<vmem>>, %arg2: memref<192x64xbf16, #tpu.memory_space<vmem>>, %arg3: memref<1x64xf32, #tpu.memory_space<vmem>>, %arg4: memref<1x64xf32, #tpu.memory_space<vmem>>, %arg5: memref<206x1xf32, #tpu.memory_space<vmem>>, %arg6: memref<576x64xbf16, #tpu.memory_space<vmem>>, %arg7: memref<1x64xf32, #tpu.memory_space<vmem>>, %arg8: memref<1x64xf32, #tpu.memory_space<vmem>>, %arg9: memref<576x64xbf16, #tpu.memory_space<vmem>>, %arg10: memref<1x64xf32, #tpu.memory_space<vmem>>, %arg11: memref<1x64xf32, #tpu.memory_space<vmem>>, %arg12: memref<576x64xbf16, #tpu.memory_space<vmem>>, %arg13: memref<1x64xf32, #tpu.memory_space<vmem>>, %arg14: memref<1x64xf32, #tpu.memory_space<vmem>>, %arg15: memref<576x64xbf16, #tpu.memory_space<vmem>>, %arg16: memref<1x64xf32, #tpu.memory_space<vmem>>, %arg17: memref<1x64xf32, #tpu.memory_space<vmem>>, %arg18: memref<58x1xf32, #tpu.memory_space<vmem>>, %arg19: memref<32x64xf32, #tpu.memory_space<vmem>>, %arg20: memref<264x64xf32, #tpu.memory_space<vmem>>, %arg21: memref<72x64xbf16, #tpu.memory_space<vmem>>, %arg22: memref<72x64xbf16, #tpu.memory_space<vmem>>, %arg23: memref<72x64xbf16, #tpu.memory_space<vmem>>, %arg24: memref<206x192xbf16, #tpu.memory_space<vmem>>, %arg25: memref<58x576xbf16, #tpu.memory_space<vmem>>) attributes {dimension_semantics = [#tpu.dimension_semantics<arbitrary>], iteration_bounds = array<i64: 1>, scalar_prefetch = 0 : i64, scratch_operands = 6 : i64, tpu.core_type = #tpu.core_type<tc>, window_params = [{pipeline_mode = #tpu.pipeline_mode<synchronous>, transform_indices = @transform_0, window_bounds = array<i64: 242, 48>}, {pipeline_mode = #tpu.pipeline_mode<synchronous>, transform_indices = @transform_1, window_bounds = array<i64: 192, 64>}, {pipeline_mode = #tpu.pipeline_mode<synchronous>, transform_indices = @transform_2, window_bounds = array<i64: 1, 64>}, {pipeline_mode = #tpu.pipeline_mode<synchronous>, transform_indices = @transform_3, window_bounds = array<i64: 1, 64>}, {pipeline_mode = #tpu.pipeline_mode<synchronous>, transform_indices = @transform_4, window_bounds = array<i64: 206, 1>}, {pipeline_mode = #tpu.pipeline_mode<synchronous>, transform_indices = @transform_5, window_bounds = array<i64: 576, 64>}, {pipeline_mode = #tpu.pipeline_mode<synchronous>, transform_indices = @transform_6, window_bounds = array<i64: 1, 64>}, {pipeline_mode = #tpu.pipeline_mode<synchronous>, transform_indices = @transform_7, window_bounds = array<i64: 1, 64>}, {pipeline_mode = #tpu.pipeline_mode<synchronous>, transform_indices = @transform_8, window_bounds = array<i64: 576, 64>}, {pipeline_mode = #tpu.pipeline_mode<synchronous>, transform_indices = @transform_9, window_bounds = array<i64: 1, 64>}, {pipeline_mode = #tpu.pipeline_mode<synchronous>, transform_indices = @transform_10, window_bounds = array<i64: 1, 64>}, {pipeline_mode = #tpu.pipeline_mode<synchronous>, transform_indices = @transform_11, window_bounds = array<i64: 576, 64>}, {pipeline_mode = #tpu.pipeline_mode<synchronous>, transform_indices = @transform_12, window_bounds = array<i64: 1, 64>}, {pipeline_mode = #tpu.pipeline_mode<synchronous>, transform_indices = @transform_13, window_bounds = array<i64: 1, 64>}, {pipeline_mode = #tpu.pipeline_mode<synchronous>, transform_indices = @transform_14, window_bounds = array<i64: 576, 64>}, {pipeline_mode = #tpu.pipeline_mode<synchronous>, transform_indices = @transform_15, window_bounds = array<i64: 1, 64>}, {pipeline_mode = #tpu.pipeline_mode<synchronous>, transform_indices = @transform_16, window_bounds = array<i64: 1, 64>}, {pipeline_mode = #tpu.pipeline_mode<synchronous>, transform_indices = @transform_17, window_bounds = array<i64: 58, 1>}, {pipeline_mode = #tpu.pipeline_mode<synchronous>, transform_indices = @transform_18, window_bounds = array<i64: 32, 64>}]} {
    %cst = arith.constant 0.000000e+00 : f32
    %0 = vector.broadcast %cst : f32 to vector<11x64xf32>
    %c0 = arith.constant 0 : index
    %c0_0 = arith.constant 0 : index
    %1 = vector.load %arg20[%c0, %c0_0] : memref<264x64xf32, #tpu.memory_space<vmem>>, vector<11x64xf32>
    tpu.vector_store %arg20[%c0, %c0_0], %0 {strides = array<i32>} : memref<264x64xf32, #tpu.memory_space<vmem>>, vector<11x64xf32>,
    %cst_1 = arith.constant 0.000000e+00 : f32
    %2 = vector.broadcast %cst_1 : f32 to vector<47x64xf32>
    %c217 = arith.constant 217 : index
    %c0_2 = arith.constant 0 : index
    %3 = vector.load %arg20[%c217, %c0_2] : memref<264x64xf32, #tpu.memory_space<vmem>>, vector<47x64xf32>
    tpu.vector_store %arg20[%c217, %c0_2], %2 {strides = array<i32>} : memref<264x64xf32, #tpu.memory_space<vmem>>, vector<47x64xf32>,
    %cst_3 = arith.constant 0.000000e+00 : bf16
    %4 = vector.broadcast %cst_3 : bf16 to vector<72x64xbf16>
    %c0_4 = arith.constant 0 : index
    %c0_5 = arith.constant 0 : index
    %5 = vector.load %arg21[%c0_4, %c0_5] : memref<72x64xbf16, #tpu.memory_space<vmem>>, vector<72x64xbf16>
    tpu.vector_store %arg21[%c0_4, %c0_5], %4 {strides = array<i32>} : memref<72x64xbf16, #tpu.memory_space<vmem>>, vector<72x64xbf16>,
    %cst_6 = arith.constant 0.000000e+00 : bf16
    %6 = vector.broadcast %cst_6 : bf16 to vector<7x64xbf16>
    %c0_7 = arith.constant 0 : index
    %c0_8 = arith.constant 0 : index
    %7 = vector.load %arg22[%c0_7, %c0_8] : memref<72x64xbf16, #tpu.memory_space<vmem>>, vector<7x64xbf16>
    tpu.vector_store %arg22[%c0_7, %c0_8], %6 {strides = array<i32>} : memref<72x64xbf16, #tpu.memory_space<vmem>>, vector<7x64xbf16>,
    %cst_9 = arith.constant 0.000000e+00 : bf16
    %8 = vector.broadcast %cst_9 : bf16 to vector<7x64xbf16>
    %c65 = arith.constant 65 : index
    %c0_10 = arith.constant 0 : index
    %9 = vector.load %arg22[%c65, %c0_10] : memref<72x64xbf16, #tpu.memory_space<vmem>>, vector<7x64xbf16>
    tpu.vector_store %arg22[%c65, %c0_10], %8 {strides = array<i32>} : memref<72x64xbf16, #tpu.memory_space<vmem>>, vector<7x64xbf16>,
    %cst_11 = arith.constant 0.000000e+00 : bf16
    %10 = vector.broadcast %cst_11 : bf16 to vector<7x64xbf16>
    %c0_12 = arith.constant 0 : index
    %c0_13 = arith.constant 0 : index
    %11 = vector.load %arg23[%c0_12, %c0_13] : memref<72x64xbf16, #tpu.memory_space<vmem>>, vector<7x64xbf16>
    tpu.vector_store %arg23[%c0_12, %c0_13], %10 {strides = array<i32>} : memref<72x64xbf16, #tpu.memory_space<vmem>>, vector<7x64xbf16>,
    %cst_14 = arith.constant 0.000000e+00 : bf16
    %12 = vector.broadcast %cst_14 : bf16 to vector<7x64xbf16>
    %c65_15 = arith.constant 65 : index
    %c0_16 = arith.constant 0 : index
    %13 = vector.load %arg23[%c65_15, %c0_16] : memref<72x64xbf16, #tpu.memory_space<vmem>>, vector<7x64xbf16>
    tpu.vector_store %arg23[%c65_15, %c0_16], %12 {strides = array<i32>} : memref<72x64xbf16, #tpu.memory_space<vmem>>, vector<7x64xbf16>,
    %c0_17 = arith.constant 0 : index
    %c0_18 = arith.constant 0 : index
    %14 = vector.load %arg1[%c0_17, %c0_18] : memref<242x48xbf16, #tpu.memory_space<vmem>>, vector<206x48xbf16>
    %c0_19 = arith.constant 0 : index
    %c0_20 = arith.constant 0 : index
    %15 = vector.load %arg24[%c0_19, %c0_20] : memref<206x192xbf16, #tpu.memory_space<vmem>>, vector<206x48xbf16>
    tpu.vector_store %arg24[%c0_19, %c0_20], %14 {strides = array<i32>} : memref<206x192xbf16, #tpu.memory_space<vmem>>, vector<206x48xbf16>,
    %c11 = arith.constant 11 : index
    %c0_21 = arith.constant 0 : index
    %16 = vector.load %arg1[%c11, %c0_21] : memref<242x48xbf16, #tpu.memory_space<vmem>>, vector<206x48xbf16>
    %c0_22 = arith.constant 0 : index
    %c48 = arith.constant 48 : index
    %17 = vector.load %arg24[%c0_22, %c48] : memref<206x192xbf16, #tpu.memory_space<vmem>>, vector<206x48xbf16>
    tpu.vector_store %arg24[%c0_22, %c48], %16 {strides = array<i32>} : memref<206x192xbf16, #tpu.memory_space<vmem>>, vector<206x48xbf16>,
    %c22 = arith.constant 22 : index
    %c0_23 = arith.constant 0 : index
    %18 = vector.load %arg1[%c22, %c0_23] : memref<242x48xbf16, #tpu.memory_space<vmem>>, vector<206x48xbf16>
    %c0_24 = arith.constant 0 : index
    %c96 = arith.constant 96 : index
    %19 = vector.load %arg24[%c0_24, %c96] : memref<206x192xbf16, #tpu.memory_space<vmem>>, vector<206x48xbf16>
    tpu.vector_store %arg24[%c0_24, %c96], %18 {strides = array<i32>} : memref<206x192xbf16, #tpu.memory_space<vmem>>, vector<206x48xbf16>,
    %c33 = arith.constant 33 : index
    %c0_25 = arith.constant 0 : index
    %20 = vector.load %arg1[%c33, %c0_25] : memref<242x48xbf16, #tpu.memory_space<vmem>>, vector<206x48xbf16>
    %c0_26 = arith.constant 0 : index
    %c144 = arith.constant 144 : index
    %21 = vector.load %arg24[%c0_26, %c144] : memref<206x192xbf16, #tpu.memory_space<vmem>>, vector<206x48xbf16>
    tpu.vector_store %arg24[%c0_26, %c144], %20 {strides = array<i32>} : memref<206x192xbf16, #tpu.memory_space<vmem>>, vector<206x48xbf16>,
    %c0_27 = arith.constant 0 : index
    %c0_28 = arith.constant 0 : index
    %22 = vector.load %arg24[%c0_27, %c0_28] : memref<206x192xbf16, #tpu.memory_space<vmem>>, vector<206x192xbf16>
    %c0_29 = arith.constant 0 : index
    %c0_30 = arith.constant 0 : index
    %23 = vector.load %arg2[%c0_29, %c0_30] : memref<192x64xbf16, #tpu.memory_space<vmem>>, vector<192x64xbf16>
    %cst_31 = arith.constant dense<0.000000e+00> : vector<206x64xf32>
    %24 = tpu.matmul %22, %23, %cst_31 {dimension_numbers = #tpu.dot_dimension_numbers<[1], [0], [0], [1], [0, 0, 1, 1], [], []>} : vector<206x192xbf16>, vector<192x64xbf16>, vector<206x64xf32> -> vector<206x64xf32>
    %c0_32 = arith.constant 0 : index
    %c0_33 = arith.constant 0 : index
    %25 = vector.load %arg3[%c0_32, %c0_33] : memref<1x64xf32, #tpu.memory_space<vmem>>, vector<1x64xf32>
    %c0_34 = arith.constant 0 : index
    %c0_35 = arith.constant 0 : index
    %26 = vector.load %arg4[%c0_34, %c0_35] : memref<1x64xf32, #tpu.memory_space<vmem>>, vector<1x64xf32>
    %c0_36 = arith.constant 0 : index
    %c0_37 = arith.constant 0 : index
    %27 = vector.load %arg5[%c0_36, %c0_37] : memref<206x1xf32, #tpu.memory_space<vmem>>, vector<206x1xf32>
    %28 = vector.broadcast %27 : vector<206x1xf32> to vector<206x64xf32>
    %29 = arith.mulf %24, %28 : vector<206x64xf32>
    %cst_38 = arith.constant dense<0.000000e+00> : vector<64xf32>
    %30 = vector.multi_reduction <add>, %29, %cst_38 [0] : vector<206x64xf32> to vector<64xf32>
    %31 = vector.shape_cast %30 : vector<64xf32> to vector<1x64xf32>
    %32 = arith.mulf %29, %24 : vector<206x64xf32>
    %cst_39 = arith.constant dense<0.000000e+00> : vector<64xf32>
    %33 = vector.multi_reduction <add>, %32, %cst_39 [0] : vector<206x64xf32> to vector<64xf32>
    %34 = vector.shape_cast %33 : vector<64xf32> to vector<1x64xf32>
    %cst_40 = arith.constant 7.812500e-03 : f32
    %35 = vector.broadcast %cst_40 : f32 to vector<1x64xf32>
    %36 = arith.mulf %31, %35 : vector<1x64xf32>
    %cst_41 = arith.constant 7.812500e-03 : f32
    %37 = vector.broadcast %cst_41 : f32 to vector<1x64xf32>
    %38 = arith.mulf %34, %37 : vector<1x64xf32>
    %39 = arith.mulf %36, %36 : vector<1x64xf32>
    %40 = arith.subf %38, %39 : vector<1x64xf32>
    %cst_42 = arith.constant 0.000000e+00 : f32
    %41 = vector.broadcast %cst_42 : f32 to vector<1x64xf32>
    %42 = arith.maximumf %40, %41 : vector<1x64xf32>
    %43 = vector.broadcast %36 : vector<1x64xf32> to vector<206x64xf32>
    %44 = arith.subf %24, %43 : vector<206x64xf32>
    %cst_43 = arith.constant 9.99999974E-6 : f32
    %45 = vector.broadcast %cst_43 : f32 to vector<1x64xf32>
    %46 = arith.addf %42, %45 : vector<1x64xf32>
    %47 = math.rsqrt %46 : vector<1x64xf32>
    %48 = vector.broadcast %47 : vector<1x64xf32> to vector<206x64xf32>
    %49 = arith.mulf %44, %48 : vector<206x64xf32>
    %50 = vector.broadcast %25 : vector<1x64xf32> to vector<206x64xf32>
    %51 = arith.mulf %49, %50 : vector<206x64xf32>
    %52 = vector.broadcast %26 : vector<1x64xf32> to vector<206x64xf32>
    %53 = arith.addf %51, %52 : vector<206x64xf32>
    %cst_44 = arith.constant 0.000000e+00 : f32
    %54 = vector.broadcast %cst_44 : f32 to vector<206x64xf32>
    %55 = arith.maximumf %53, %54 : vector<206x64xf32>
    %56 = vector.broadcast %27 : vector<206x1xf32> to vector<206x64xf32>
    %57 = arith.mulf %55, %56 : vector<206x64xf32>
    %c11_45 = arith.constant 11 : index
    %c0_46 = arith.constant 0 : index
    %58 = vector.load %arg20[%c11_45, %c0_46] : memref<264x64xf32, #tpu.memory_space<vmem>>, vector<206x64xf32>
    tpu.vector_store %arg20[%c11_45, %c0_46], %57 {strides = array<i32>} : memref<264x64xf32, #tpu.memory_space<vmem>>, vector<206x64xf32>,
    %c10 = arith.constant 10 : index
    %c0_47 = arith.constant 0 : index
    %59 = vector.load %arg20[%c10, %c0_47] : memref<264x64xf32, #tpu.memory_space<vmem>>, vector<242x64xf32>
    %c11_48 = arith.constant 11 : index
    %c0_49 = arith.constant 0 : index
    %60 = vector.load %arg20[%c11_48, %c0_49] : memref<264x64xf32, #tpu.memory_space<vmem>>, vector<242x64xf32>
    %61 = arith.maximumf %59, %60 : vector<242x64xf32>
    %c12 = arith.constant 12 : index
    %c0_50 = arith.constant 0 : index
    %62 = vector.load %arg20[%c12, %c0_50] : memref<264x64xf32, #tpu.memory_space<vmem>>, vector<242x64xf32>
    %63 = arith.maximumf %61, %62 : vector<242x64xf32>
    %c11_51 = arith.constant 11 : index
    %c0_52 = arith.constant 0 : index
    %64 = vector.load %arg20[%c11_51, %c0_52] : memref<264x64xf32, #tpu.memory_space<vmem>>, vector<242x64xf32>
    tpu.vector_store %arg20[%c11_51, %c0_52], %63 {strides = array<i32>} : memref<264x64xf32, #tpu.memory_space<vmem>>, vector<242x64xf32>,
    %c0_53 = arith.constant 0 : index
    %c0_54 = arith.constant 0 : index
    %65 = vector.load %arg20[%c0_53, %c0_54] : memref<264x64xf32, #tpu.memory_space<vmem>>, vector<242x64xf32>
    %c11_55 = arith.constant 11 : index
    %c0_56 = arith.constant 0 : index
    %66 = vector.load %arg20[%c11_55, %c0_56] : memref<264x64xf32, #tpu.memory_space<vmem>>, vector<242x64xf32>
    %67 = arith.maximumf %65, %66 : vector<242x64xf32>
    %c22_57 = arith.constant 22 : index
    %c0_58 = arith.constant 0 : index
    %68 = vector.load %arg20[%c22_57, %c0_58] : memref<264x64xf32, #tpu.memory_space<vmem>>, vector<242x64xf32>
    %69 = arith.maximumf %67, %68 : vector<242x64xf32>
    %c11_59 = arith.constant 11 : index
    %c0_60 = arith.constant 0 : index
    %70 = vector.load %arg20[%c11_59, %c0_60] : memref<264x64xf32, #tpu.memory_space<vmem>>, vector<242x64xf32>
    tpu.vector_store %arg20[%c11_59, %c0_60], %69 {strides = array<i32>} : memref<264x64xf32, #tpu.memory_space<vmem>>, vector<242x64xf32>,
    %c11_61 = arith.constant 11 : index
    %c0_62 = arith.constant 0 : index
    %71 = tpu.strided_load %arg20[%c11_61, %c0_62] {strides = array<i32: 2, 1>} : memref<264x64xf32, #tpu.memory_space<vmem>>, vector<4x64xf32>
    %72 = arith.truncf %71 : vector<4x64xf32> to vector<4x64xbf16>
    %c7 = arith.constant 7 : index
    %c0_63 = arith.constant 0 : index
    %73 = vector.load %arg21[%c7, %c0_63] : memref<72x64xbf16, #tpu.memory_space<vmem>>, vector<4x64xbf16>
    tpu.vector_store %arg21[%c7, %c0_63], %72 {strides = array<i32>} : memref<72x64xbf16, #tpu.memory_space<vmem>>, vector<4x64xbf16>,
    %c33_64 = arith.constant 33 : index
    %c0_65 = arith.constant 0 : index
    %74 = tpu.strided_load %arg20[%c33_64, %c0_65] {strides = array<i32: 2, 1>} : memref<264x64xf32, #tpu.memory_space<vmem>>, vector<4x64xf32>
    %75 = arith.truncf %74 : vector<4x64xf32> to vector<4x64xbf16>
    %c13 = arith.constant 13 : index
    %c0_66 = arith.constant 0 : index
    %76 = vector.load %arg21[%c13, %c0_66] : memref<72x64xbf16, #tpu.memory_space<vmem>>, vector<4x64xbf16>
    tpu.vector_store %arg21[%c13, %c0_66], %75 {strides = array<i32>} : memref<72x64xbf16, #tpu.memory_space<vmem>>, vector<4x64xbf16>,
    %c55 = arith.constant 55 : index
    %c0_67 = arith.constant 0 : index
    %77 = tpu.strided_load %arg20[%c55, %c0_67] {strides = array<i32: 2, 1>} : memref<264x64xf32, #tpu.memory_space<vmem>>, vector<4x64xf32>
    %78 = arith.truncf %77 : vector<4x64xf32> to vector<4x64xbf16>
    %c19 = arith.constant 19 : index
    %c0_68 = arith.constant 0 : index
    %79 = vector.load %arg21[%c19, %c0_68] : memref<72x64xbf16, #tpu.memory_space<vmem>>, vector<4x64xbf16>
    tpu.vector_store %arg21[%c19, %c0_68], %78 {strides = array<i32>} : memref<72x64xbf16, #tpu.memory_space<vmem>>, vector<4x64xbf16>,
    %c77 = arith.constant 77 : index
    %c0_69 = arith.constant 0 : index
    %80 = tpu.strided_load %arg20[%c77, %c0_69] {strides = array<i32: 2, 1>} : memref<264x64xf32, #tpu.memory_space<vmem>>, vector<4x64xf32>
    %81 = arith.truncf %80 : vector<4x64xf32> to vector<4x64xbf16>
    %c25 = arith.constant 25 : index
    %c0_70 = arith.constant 0 : index
    %82 = vector.load %arg21[%c25, %c0_70] : memref<72x64xbf16, #tpu.memory_space<vmem>>, vector<4x64xbf16>
    tpu.vector_store %arg21[%c25, %c0_70], %81 {strides = array<i32>} : memref<72x64xbf16, #tpu.memory_space<vmem>>, vector<4x64xbf16>,
    %c132 = arith.constant 132 : index
    %c0_71 = arith.constant 0 : index
    %83 = tpu.strided_load %arg20[%c132, %c0_71] {strides = array<i32: 2, 1>} : memref<264x64xf32, #tpu.memory_space<vmem>>, vector<4x64xf32>
    %84 = arith.truncf %83 : vector<4x64xf32> to vector<4x64xbf16>
    %c43 = arith.constant 43 : index
    %c0_72 = arith.constant 0 : index
    %85 = vector.load %arg21[%c43, %c0_72] : memref<72x64xbf16, #tpu.memory_space<vmem>>, vector<4x64xbf16>
    tpu.vector_store %arg21[%c43, %c0_72], %84 {strides = array<i32>} : memref<72x64xbf16, #tpu.memory_space<vmem>>, vector<4x64xbf16>,
    %c154 = arith.constant 154 : index
    %c0_73 = arith.constant 0 : index
    %86 = tpu.strided_load %arg20[%c154, %c0_73] {strides = array<i32: 2, 1>} : memref<264x64xf32, #tpu.memory_space<vmem>>, vector<4x64xf32>
    %87 = arith.truncf %86 : vector<4x64xf32> to vector<4x64xbf16>
    %c49 = arith.constant 49 : index
    %c0_74 = arith.constant 0 : index
    %88 = vector.load %arg21[%c49, %c0_74] : memref<72x64xbf16, #tpu.memory_space<vmem>>, vector<4x64xbf16>
    tpu.vector_store %arg21[%c49, %c0_74], %87 {strides = array<i32>} : memref<72x64xbf16, #tpu.memory_space<vmem>>, vector<4x64xbf16>,
    %c176 = arith.constant 176 : index
    %c0_75 = arith.constant 0 : index
    %89 = tpu.strided_load %arg20[%c176, %c0_75] {strides = array<i32: 2, 1>} : memref<264x64xf32, #tpu.memory_space<vmem>>, vector<4x64xf32>
    %90 = arith.truncf %89 : vector<4x64xf32> to vector<4x64xbf16>
    %c55_76 = arith.constant 55 : index
    %c0_77 = arith.constant 0 : index
    %91 = vector.load %arg21[%c55_76, %c0_77] : memref<72x64xbf16, #tpu.memory_space<vmem>>, vector<4x64xbf16>
    tpu.vector_store %arg21[%c55_76, %c0_77], %90 {strides = array<i32>} : memref<72x64xbf16, #tpu.memory_space<vmem>>, vector<4x64xbf16>,
    %c198 = arith.constant 198 : index
    %c0_78 = arith.constant 0 : index
    %92 = tpu.strided_load %arg20[%c198, %c0_78] {strides = array<i32: 2, 1>} : memref<264x64xf32, #tpu.memory_space<vmem>>, vector<4x64xf32>
    %93 = arith.truncf %92 : vector<4x64xf32> to vector<4x64xbf16>
    %c61 = arith.constant 61 : index
    %c0_79 = arith.constant 0 : index
    %94 = vector.load %arg21[%c61, %c0_79] : memref<72x64xbf16, #tpu.memory_space<vmem>>, vector<4x64xbf16>
    tpu.vector_store %arg21[%c61, %c0_79], %93 {strides = array<i32>} : memref<72x64xbf16, #tpu.memory_space<vmem>>, vector<4x64xbf16>,
    %c0_80 = arith.constant 0 : index
    %c0_81 = arith.constant 0 : index
    %95 = vector.load %arg18[%c0_80, %c0_81] : memref<58x1xf32, #tpu.memory_space<vmem>>, vector<58x1xf32>
    %c0_82 = arith.constant 0 : index
    %c0_83 = arith.constant 0 : index
    %96 = vector.load %arg21[%c0_82, %c0_83] : memref<72x64xbf16, #tpu.memory_space<vmem>>, vector<58x64xbf16>
    %c0_84 = arith.constant 0 : index
    %c0_85 = arith.constant 0 : index
    %97 = vector.load %arg25[%c0_84, %c0_85] : memref<58x576xbf16, #tpu.memory_space<vmem>>, vector<58x64xbf16>
    tpu.vector_store %arg25[%c0_84, %c0_85], %96 {strides = array<i32>} : memref<58x576xbf16, #tpu.memory_space<vmem>>, vector<58x64xbf16>,
    %c1 = arith.constant 1 : index
    %c0_86 = arith.constant 0 : index
    %98 = vector.load %arg21[%c1, %c0_86] : memref<72x64xbf16, #tpu.memory_space<vmem>>, vector<58x64xbf16>
    %c0_87 = arith.constant 0 : index
    %c64 = arith.constant 64 : index
    %99 = vector.load %arg25[%c0_87, %c64] : memref<58x576xbf16, #tpu.memory_space<vmem>>, vector<58x64xbf16>
    tpu.vector_store %arg25[%c0_87, %c64], %98 {strides = array<i32>} : memref<58x576xbf16, #tpu.memory_space<vmem>>, vector<58x64xbf16>,
    %c2 = arith.constant 2 : index
    %c0_88 = arith.constant 0 : index
    %100 = vector.load %arg21[%c2, %c0_88] : memref<72x64xbf16, #tpu.memory_space<vmem>>, vector<58x64xbf16>
    %c0_89 = arith.constant 0 : index
    %c128 = arith.constant 128 : index
    %101 = vector.load %arg25[%c0_89, %c128] : memref<58x576xbf16, #tpu.memory_space<vmem>>, vector<58x64xbf16>
    tpu.vector_store %arg25[%c0_89, %c128], %100 {strides = array<i32>} : memref<58x576xbf16, #tpu.memory_space<vmem>>, vector<58x64xbf16>,
    %c6 = arith.constant 6 : index
    %c0_90 = arith.constant 0 : index
    %102 = vector.load %arg21[%c6, %c0_90] : memref<72x64xbf16, #tpu.memory_space<vmem>>, vector<58x64xbf16>
    %c0_91 = arith.constant 0 : index
    %c192 = arith.constant 192 : index
    %103 = vector.load %arg25[%c0_91, %c192] : memref<58x576xbf16, #tpu.memory_space<vmem>>, vector<58x64xbf16>
    tpu.vector_store %arg25[%c0_91, %c192], %102 {strides = array<i32>} : memref<58x576xbf16, #tpu.memory_space<vmem>>, vector<58x64xbf16>,
    %c7_92 = arith.constant 7 : index
    %c0_93 = arith.constant 0 : index
    %104 = vector.load %arg21[%c7_92, %c0_93] : memref<72x64xbf16, #tpu.memory_space<vmem>>, vector<58x64xbf16>
    %c0_94 = arith.constant 0 : index
    %c256 = arith.constant 256 : index
    %105 = vector.load %arg25[%c0_94, %c256] : memref<58x576xbf16, #tpu.memory_space<vmem>>, vector<58x64xbf16>
    tpu.vector_store %arg25[%c0_94, %c256], %104 {strides = array<i32>} : memref<58x576xbf16, #tpu.memory_space<vmem>>, vector<58x64xbf16>,
    %c8 = arith.constant 8 : index
    %c0_95 = arith.constant 0 : index
    %106 = vector.load %arg21[%c8, %c0_95] : memref<72x64xbf16, #tpu.memory_space<vmem>>, vector<58x64xbf16>
    %c0_96 = arith.constant 0 : index
    %c320 = arith.constant 320 : index
    %107 = vector.load %arg25[%c0_96, %c320] : memref<58x576xbf16, #tpu.memory_space<vmem>>, vector<58x64xbf16>
    tpu.vector_store %arg25[%c0_96, %c320], %106 {strides = array<i32>} : memref<58x576xbf16, #tpu.memory_space<vmem>>, vector<58x64xbf16>,
    %c12_97 = arith.constant 12 : index
    %c0_98 = arith.constant 0 : index
    %108 = vector.load %arg21[%c12_97, %c0_98] : memref<72x64xbf16, #tpu.memory_space<vmem>>, vector<58x64xbf16>
    %c0_99 = arith.constant 0 : index
    %c384 = arith.constant 384 : index
    %109 = vector.load %arg25[%c0_99, %c384] : memref<58x576xbf16, #tpu.memory_space<vmem>>, vector<58x64xbf16>
    tpu.vector_store %arg25[%c0_99, %c384], %108 {strides = array<i32>} : memref<58x576xbf16, #tpu.memory_space<vmem>>, vector<58x64xbf16>,
    %c13_100 = arith.constant 13 : index
    %c0_101 = arith.constant 0 : index
    %110 = vector.load %arg21[%c13_100, %c0_101] : memref<72x64xbf16, #tpu.memory_space<vmem>>, vector<58x64xbf16>
    %c0_102 = arith.constant 0 : index
    %c448 = arith.constant 448 : index
    %111 = vector.load %arg25[%c0_102, %c448] : memref<58x576xbf16, #tpu.memory_space<vmem>>, vector<58x64xbf16>
    tpu.vector_store %arg25[%c0_102, %c448], %110 {strides = array<i32>} : memref<58x576xbf16, #tpu.memory_space<vmem>>, vector<58x64xbf16>,
    %c14 = arith.constant 14 : index
    %c0_103 = arith.constant 0 : index
    %112 = vector.load %arg21[%c14, %c0_103] : memref<72x64xbf16, #tpu.memory_space<vmem>>, vector<58x64xbf16>
    %c0_104 = arith.constant 0 : index
    %c512 = arith.constant 512 : index
    %113 = vector.load %arg25[%c0_104, %c512] : memref<58x576xbf16, #tpu.memory_space<vmem>>, vector<58x64xbf16>
    tpu.vector_store %arg25[%c0_104, %c512], %112 {strides = array<i32>} : memref<58x576xbf16, #tpu.memory_space<vmem>>, vector<58x64xbf16>,
    %c0_105 = arith.constant 0 : index
    %c0_106 = arith.constant 0 : index
    %114 = vector.load %arg25[%c0_105, %c0_106] : memref<58x576xbf16, #tpu.memory_space<vmem>>, vector<58x576xbf16>
    %c0_107 = arith.constant 0 : index
    %c0_108 = arith.constant 0 : index
    %115 = vector.load %arg6[%c0_107, %c0_108] : memref<576x64xbf16, #tpu.memory_space<vmem>>, vector<576x64xbf16>
    %cst_109 = arith.constant dense<0.000000e+00> : vector<58x64xf32>
    %116 = tpu.matmul %114, %115, %cst_109 {dimension_numbers = #tpu.dot_dimension_numbers<[1], [0], [0], [1], [0, 0, 1, 1], [], []>} : vector<58x576xbf16>, vector<576x64xbf16>, vector<58x64xf32> -> vector<58x64xf32>
    %c0_110 = arith.constant 0 : index
    %c0_111 = arith.constant 0 : index
    %117 = vector.load %arg7[%c0_110, %c0_111] : memref<1x64xf32, #tpu.memory_space<vmem>>, vector<1x64xf32>
    %c0_112 = arith.constant 0 : index
    %c0_113 = arith.constant 0 : index
    %118 = vector.load %arg8[%c0_112, %c0_113] : memref<1x64xf32, #tpu.memory_space<vmem>>, vector<1x64xf32>
    %119 = vector.broadcast %95 : vector<58x1xf32> to vector<58x64xf32>
    %120 = arith.mulf %116, %119 : vector<58x64xf32>
    %cst_114 = arith.constant dense<0.000000e+00> : vector<64xf32>
    %121 = vector.multi_reduction <add>, %120, %cst_114 [0] : vector<58x64xf32> to vector<64xf32>
    %122 = vector.shape_cast %121 : vector<64xf32> to vector<1x64xf32>
    %123 = arith.mulf %120, %116 : vector<58x64xf32>
    %cst_115 = arith.constant dense<0.000000e+00> : vector<64xf32>
    %124 = vector.multi_reduction <add>, %123, %cst_115 [0] : vector<58x64xf32> to vector<64xf32>
    %125 = vector.shape_cast %124 : vector<64xf32> to vector<1x64xf32>
    %cst_116 = arith.constant 3.125000e-02 : f32
    %126 = vector.broadcast %cst_116 : f32 to vector<1x64xf32>
    %127 = arith.mulf %122, %126 : vector<1x64xf32>
    %cst_117 = arith.constant 3.125000e-02 : f32
    %128 = vector.broadcast %cst_117 : f32 to vector<1x64xf32>
    %129 = arith.mulf %125, %128 : vector<1x64xf32>
    %130 = arith.mulf %127, %127 : vector<1x64xf32>
    %131 = arith.subf %129, %130 : vector<1x64xf32>
    %cst_118 = arith.constant 0.000000e+00 : f32
    %132 = vector.broadcast %cst_118 : f32 to vector<1x64xf32>
    %133 = arith.maximumf %131, %132 : vector<1x64xf32>
    %134 = vector.broadcast %127 : vector<1x64xf32> to vector<58x64xf32>
    %135 = arith.subf %116, %134 : vector<58x64xf32>
    %cst_119 = arith.constant 9.99999974E-6 : f32
    %136 = vector.broadcast %cst_119 : f32 to vector<1x64xf32>
    %137 = arith.addf %133, %136 : vector<1x64xf32>
    %138 = math.rsqrt %137 : vector<1x64xf32>
    %139 = vector.broadcast %138 : vector<1x64xf32> to vector<58x64xf32>
    %140 = arith.mulf %135, %139 : vector<58x64xf32>
    %141 = vector.broadcast %117 : vector<1x64xf32> to vector<58x64xf32>
    %142 = arith.mulf %140, %141 : vector<58x64xf32>
    %143 = vector.broadcast %118 : vector<1x64xf32> to vector<58x64xf32>
    %144 = arith.addf %142, %143 : vector<58x64xf32>
    %cst_120 = arith.constant 0.000000e+00 : f32
    %145 = vector.broadcast %cst_120 : f32 to vector<58x64xf32>
    %146 = arith.maximumf %144, %145 : vector<58x64xf32>
    %147 = vector.broadcast %95 : vector<58x1xf32> to vector<58x64xf32>
    %148 = arith.mulf %146, %147 : vector<58x64xf32>
    %149 = arith.truncf %148 : vector<58x64xf32> to vector<58x64xbf16>
    %c7_121 = arith.constant 7 : index
    %c0_122 = arith.constant 0 : index
    %150 = vector.load %arg23[%c7_121, %c0_122] : memref<72x64xbf16, #tpu.memory_space<vmem>>, vector<58x64xbf16>
    tpu.vector_store %arg23[%c7_121, %c0_122], %149 {strides = array<i32>} : memref<72x64xbf16, #tpu.memory_space<vmem>>, vector<58x64xbf16>,
    %c0_123 = arith.constant 0 : index
    %c0_124 = arith.constant 0 : index
    %151 = vector.load %arg23[%c0_123, %c0_124] : memref<72x64xbf16, #tpu.memory_space<vmem>>, vector<58x64xbf16>
    %c0_125 = arith.constant 0 : index
    %c0_126 = arith.constant 0 : index
    %152 = vector.load %arg25[%c0_125, %c0_126] : memref<58x576xbf16, #tpu.memory_space<vmem>>, vector<58x64xbf16>
    tpu.vector_store %arg25[%c0_125, %c0_126], %151 {strides = array<i32>} : memref<58x576xbf16, #tpu.memory_space<vmem>>, vector<58x64xbf16>,
    %c1_127 = arith.constant 1 : index
    %c0_128 = arith.constant 0 : index
    %153 = vector.load %arg23[%c1_127, %c0_128] : memref<72x64xbf16, #tpu.memory_space<vmem>>, vector<58x64xbf16>
    %c0_129 = arith.constant 0 : index
    %c64_130 = arith.constant 64 : index
    %154 = vector.load %arg25[%c0_129, %c64_130] : memref<58x576xbf16, #tpu.memory_space<vmem>>, vector<58x64xbf16>
    tpu.vector_store %arg25[%c0_129, %c64_130], %153 {strides = array<i32>} : memref<58x576xbf16, #tpu.memory_space<vmem>>, vector<58x64xbf16>,
    %c2_131 = arith.constant 2 : index
    %c0_132 = arith.constant 0 : index
    %155 = vector.load %arg23[%c2_131, %c0_132] : memref<72x64xbf16, #tpu.memory_space<vmem>>, vector<58x64xbf16>
    %c0_133 = arith.constant 0 : index
    %c128_134 = arith.constant 128 : index
    %156 = vector.load %arg25[%c0_133, %c128_134] : memref<58x576xbf16, #tpu.memory_space<vmem>>, vector<58x64xbf16>
    tpu.vector_store %arg25[%c0_133, %c128_134], %155 {strides = array<i32>} : memref<58x576xbf16, #tpu.memory_space<vmem>>, vector<58x64xbf16>,
    %c6_135 = arith.constant 6 : index
    %c0_136 = arith.constant 0 : index
    %157 = vector.load %arg23[%c6_135, %c0_136] : memref<72x64xbf16, #tpu.memory_space<vmem>>, vector<58x64xbf16>
    %c0_137 = arith.constant 0 : index
    %c192_138 = arith.constant 192 : index
    %158 = vector.load %arg25[%c0_137, %c192_138] : memref<58x576xbf16, #tpu.memory_space<vmem>>, vector<58x64xbf16>
    tpu.vector_store %arg25[%c0_137, %c192_138], %157 {strides = array<i32>} : memref<58x576xbf16, #tpu.memory_space<vmem>>, vector<58x64xbf16>,
    %c7_139 = arith.constant 7 : index
    %c0_140 = arith.constant 0 : index
    %159 = vector.load %arg23[%c7_139, %c0_140] : memref<72x64xbf16, #tpu.memory_space<vmem>>, vector<58x64xbf16>
    %c0_141 = arith.constant 0 : index
    %c256_142 = arith.constant 256 : index
    %160 = vector.load %arg25[%c0_141, %c256_142] : memref<58x576xbf16, #tpu.memory_space<vmem>>, vector<58x64xbf16>
    tpu.vector_store %arg25[%c0_141, %c256_142], %159 {strides = array<i32>} : memref<58x576xbf16, #tpu.memory_space<vmem>>, vector<58x64xbf16>,
    %c8_143 = arith.constant 8 : index
    %c0_144 = arith.constant 0 : index
    %161 = vector.load %arg23[%c8_143, %c0_144] : memref<72x64xbf16, #tpu.memory_space<vmem>>, vector<58x64xbf16>
    %c0_145 = arith.constant 0 : index
    %c320_146 = arith.constant 320 : index
    %162 = vector.load %arg25[%c0_145, %c320_146] : memref<58x576xbf16, #tpu.memory_space<vmem>>, vector<58x64xbf16>
    tpu.vector_store %arg25[%c0_145, %c320_146], %161 {strides = array<i32>} : memref<58x576xbf16, #tpu.memory_space<vmem>>, vector<58x64xbf16>,
    %c12_147 = arith.constant 12 : index
    %c0_148 = arith.constant 0 : index
    %163 = vector.load %arg23[%c12_147, %c0_148] : memref<72x64xbf16, #tpu.memory_space<vmem>>, vector<58x64xbf16>
    %c0_149 = arith.constant 0 : index
    %c384_150 = arith.constant 384 : index
    %164 = vector.load %arg25[%c0_149, %c384_150] : memref<58x576xbf16, #tpu.memory_space<vmem>>, vector<58x64xbf16>
    tpu.vector_store %arg25[%c0_149, %c384_150], %163 {strides = array<i32>} : memref<58x576xbf16, #tpu.memory_space<vmem>>, vector<58x64xbf16>,
    %c13_151 = arith.constant 13 : index
    %c0_152 = arith.constant 0 : index
    %165 = vector.load %arg23[%c13_151, %c0_152] : memref<72x64xbf16, #tpu.memory_space<vmem>>, vector<58x64xbf16>
    %c0_153 = arith.constant 0 : index
    %c448_154 = arith.constant 448 : index
    %166 = vector.load %arg25[%c0_153, %c448_154] : memref<58x576xbf16, #tpu.memory_space<vmem>>, vector<58x64xbf16>
    tpu.vector_store %arg25[%c0_153, %c448_154], %165 {strides = array<i32>} : memref<58x576xbf16, #tpu.memory_space<vmem>>, vector<58x64xbf16>,
    %c14_155 = arith.constant 14 : index
    %c0_156 = arith.constant 0 : index
    %167 = vector.load %arg23[%c14_155, %c0_156] : memref<72x64xbf16, #tpu.memory_space<vmem>>, vector<58x64xbf16>
    %c0_157 = arith.constant 0 : index
    %c512_158 = arith.constant 512 : index
    %168 = vector.load %arg25[%c0_157, %c512_158] : memref<58x576xbf16, #tpu.memory_space<vmem>>, vector<58x64xbf16>
    tpu.vector_store %arg25[%c0_157, %c512_158], %167 {strides = array<i32>} : memref<58x576xbf16, #tpu.memory_space<vmem>>, vector<58x64xbf16>,
    %c0_159 = arith.constant 0 : index
    %c0_160 = arith.constant 0 : index
    %169 = vector.load %arg25[%c0_159, %c0_160] : memref<58x576xbf16, #tpu.memory_space<vmem>>, vector<58x576xbf16>
    %c0_161 = arith.constant 0 : index
    %c0_162 = arith.constant 0 : index
    %170 = vector.load %arg9[%c0_161, %c0_162] : memref<576x64xbf16, #tpu.memory_space<vmem>>, vector<576x64xbf16>
    %cst_163 = arith.constant dense<0.000000e+00> : vector<58x64xf32>
    %171 = tpu.matmul %169, %170, %cst_163 {dimension_numbers = #tpu.dot_dimension_numbers<[1], [0], [0], [1], [0, 0, 1, 1], [], []>} : vector<58x576xbf16>, vector<576x64xbf16>, vector<58x64xf32> -> vector<58x64xf32>
    %c7_164 = arith.constant 7 : index
    %c0_165 = arith.constant 0 : index
    %172 = vector.load %arg21[%c7_164, %c0_165] : memref<72x64xbf16, #tpu.memory_space<vmem>>, vector<58x64xbf16>
    %173 = arith.extf %172 : vector<58x64xbf16> to vector<58x64xf32>
    %c0_166 = arith.constant 0 : index
    %c0_167 = arith.constant 0 : index
    %174 = vector.load %arg10[%c0_166, %c0_167] : memref<1x64xf32, #tpu.memory_space<vmem>>, vector<1x64xf32>
    %c0_168 = arith.constant 0 : index
    %c0_169 = arith.constant 0 : index
    %175 = vector.load %arg11[%c0_168, %c0_169] : memref<1x64xf32, #tpu.memory_space<vmem>>, vector<1x64xf32>
    %176 = vector.broadcast %95 : vector<58x1xf32> to vector<58x64xf32>
    %177 = arith.mulf %171, %176 : vector<58x64xf32>
    %cst_170 = arith.constant dense<0.000000e+00> : vector<64xf32>
    %178 = vector.multi_reduction <add>, %177, %cst_170 [0] : vector<58x64xf32> to vector<64xf32>
    %179 = vector.shape_cast %178 : vector<64xf32> to vector<1x64xf32>
    %180 = arith.mulf %177, %171 : vector<58x64xf32>
    %cst_171 = arith.constant dense<0.000000e+00> : vector<64xf32>
    %181 = vector.multi_reduction <add>, %180, %cst_171 [0] : vector<58x64xf32> to vector<64xf32>
    %182 = vector.shape_cast %181 : vector<64xf32> to vector<1x64xf32>
    %cst_172 = arith.constant 3.125000e-02 : f32
    %183 = vector.broadcast %cst_172 : f32 to vector<1x64xf32>
    %184 = arith.mulf %179, %183 : vector<1x64xf32>
    %cst_173 = arith.constant 3.125000e-02 : f32
    %185 = vector.broadcast %cst_173 : f32 to vector<1x64xf32>
    %186 = arith.mulf %182, %185 : vector<1x64xf32>
    %187 = arith.mulf %184, %184 : vector<1x64xf32>
    %188 = arith.subf %186, %187 : vector<1x64xf32>
    %cst_174 = arith.constant 0.000000e+00 : f32
    %189 = vector.broadcast %cst_174 : f32 to vector<1x64xf32>
    %190 = arith.maximumf %188, %189 : vector<1x64xf32>
    %191 = vector.broadcast %184 : vector<1x64xf32> to vector<58x64xf32>
    %192 = arith.subf %171, %191 : vector<58x64xf32>
    %cst_175 = arith.constant 9.99999974E-6 : f32
    %193 = vector.broadcast %cst_175 : f32 to vector<1x64xf32>
    %194 = arith.addf %190, %193 : vector<1x64xf32>
    %195 = math.rsqrt %194 : vector<1x64xf32>
    %196 = vector.broadcast %195 : vector<1x64xf32> to vector<58x64xf32>
    %197 = arith.mulf %192, %196 : vector<58x64xf32>
    %198 = vector.broadcast %174 : vector<1x64xf32> to vector<58x64xf32>
    %199 = arith.mulf %197, %198 : vector<58x64xf32>
    %200 = vector.broadcast %175 : vector<1x64xf32> to vector<58x64xf32>
    %201 = arith.addf %199, %200 : vector<58x64xf32>
    %202 = arith.addf %201, %173 : vector<58x64xf32>
    %cst_176 = arith.constant 0.000000e+00 : f32
    %203 = vector.broadcast %cst_176 : f32 to vector<58x64xf32>
    %204 = arith.maximumf %202, %203 : vector<58x64xf32>
    %205 = vector.broadcast %95 : vector<58x1xf32> to vector<58x64xf32>
    %206 = arith.mulf %204, %205 : vector<58x64xf32>
    %207 = arith.truncf %206 : vector<58x64xf32> to vector<58x64xbf16>
    %c7_177 = arith.constant 7 : index
    %c0_178 = arith.constant 0 : index
    %208 = vector.load %arg22[%c7_177, %c0_178] : memref<72x64xbf16, #tpu.memory_space<vmem>>, vector<58x64xbf16>
    tpu.vector_store %arg22[%c7_177, %c0_178], %207 {strides = array<i32>} : memref<72x64xbf16, #tpu.memory_space<vmem>>, vector<58x64xbf16>,
    %c0_179 = arith.constant 0 : index
    %c0_180 = arith.constant 0 : index
    %209 = vector.load %arg22[%c0_179, %c0_180] : memref<72x64xbf16, #tpu.memory_space<vmem>>, vector<58x64xbf16>
    %c0_181 = arith.constant 0 : index
    %c0_182 = arith.constant 0 : index
    %210 = vector.load %arg25[%c0_181, %c0_182] : memref<58x576xbf16, #tpu.memory_space<vmem>>, vector<58x64xbf16>
    tpu.vector_store %arg25[%c0_181, %c0_182], %209 {strides = array<i32>} : memref<58x576xbf16, #tpu.memory_space<vmem>>, vector<58x64xbf16>,
    %c1_183 = arith.constant 1 : index
    %c0_184 = arith.constant 0 : index
    %211 = vector.load %arg22[%c1_183, %c0_184] : memref<72x64xbf16, #tpu.memory_space<vmem>>, vector<58x64xbf16>
    %c0_185 = arith.constant 0 : index
    %c64_186 = arith.constant 64 : index
    %212 = vector.load %arg25[%c0_185, %c64_186] : memref<58x576xbf16, #tpu.memory_space<vmem>>, vector<58x64xbf16>
    tpu.vector_store %arg25[%c0_185, %c64_186], %211 {strides = array<i32>} : memref<58x576xbf16, #tpu.memory_space<vmem>>, vector<58x64xbf16>,
    %c2_187 = arith.constant 2 : index
    %c0_188 = arith.constant 0 : index
    %213 = vector.load %arg22[%c2_187, %c0_188] : memref<72x64xbf16, #tpu.memory_space<vmem>>, vector<58x64xbf16>
    %c0_189 = arith.constant 0 : index
    %c128_190 = arith.constant 128 : index
    %214 = vector.load %arg25[%c0_189, %c128_190] : memref<58x576xbf16, #tpu.memory_space<vmem>>, vector<58x64xbf16>
    tpu.vector_store %arg25[%c0_189, %c128_190], %213 {strides = array<i32>} : memref<58x576xbf16, #tpu.memory_space<vmem>>, vector<58x64xbf16>,
    %c6_191 = arith.constant 6 : index
    %c0_192 = arith.constant 0 : index
    %215 = vector.load %arg22[%c6_191, %c0_192] : memref<72x64xbf16, #tpu.memory_space<vmem>>, vector<58x64xbf16>
    %c0_193 = arith.constant 0 : index
    %c192_194 = arith.constant 192 : index
    %216 = vector.load %arg25[%c0_193, %c192_194] : memref<58x576xbf16, #tpu.memory_space<vmem>>, vector<58x64xbf16>
    tpu.vector_store %arg25[%c0_193, %c192_194], %215 {strides = array<i32>} : memref<58x576xbf16, #tpu.memory_space<vmem>>, vector<58x64xbf16>,
    %c7_195 = arith.constant 7 : index
    %c0_196 = arith.constant 0 : index
    %217 = vector.load %arg22[%c7_195, %c0_196] : memref<72x64xbf16, #tpu.memory_space<vmem>>, vector<58x64xbf16>
    %c0_197 = arith.constant 0 : index
    %c256_198 = arith.constant 256 : index
    %218 = vector.load %arg25[%c0_197, %c256_198] : memref<58x576xbf16, #tpu.memory_space<vmem>>, vector<58x64xbf16>
    tpu.vector_store %arg25[%c0_197, %c256_198], %217 {strides = array<i32>} : memref<58x576xbf16, #tpu.memory_space<vmem>>, vector<58x64xbf16>,
    %c8_199 = arith.constant 8 : index
    %c0_200 = arith.constant 0 : index
    %219 = vector.load %arg22[%c8_199, %c0_200] : memref<72x64xbf16, #tpu.memory_space<vmem>>, vector<58x64xbf16>
    %c0_201 = arith.constant 0 : index
    %c320_202 = arith.constant 320 : index
    %220 = vector.load %arg25[%c0_201, %c320_202] : memref<58x576xbf16, #tpu.memory_space<vmem>>, vector<58x64xbf16>
    tpu.vector_store %arg25[%c0_201, %c320_202], %219 {strides = array<i32>} : memref<58x576xbf16, #tpu.memory_space<vmem>>, vector<58x64xbf16>,
    %c12_203 = arith.constant 12 : index
    %c0_204 = arith.constant 0 : index
    %221 = vector.load %arg22[%c12_203, %c0_204] : memref<72x64xbf16, #tpu.memory_space<vmem>>, vector<58x64xbf16>
    %c0_205 = arith.constant 0 : index
    %c384_206 = arith.constant 384 : index
    %222 = vector.load %arg25[%c0_205, %c384_206] : memref<58x576xbf16, #tpu.memory_space<vmem>>, vector<58x64xbf16>
    tpu.vector_store %arg25[%c0_205, %c384_206], %221 {strides = array<i32>} : memref<58x576xbf16, #tpu.memory_space<vmem>>, vector<58x64xbf16>,
    %c13_207 = arith.constant 13 : index
    %c0_208 = arith.constant 0 : index
    %223 = vector.load %arg22[%c13_207, %c0_208] : memref<72x64xbf16, #tpu.memory_space<vmem>>, vector<58x64xbf16>
    %c0_209 = arith.constant 0 : index
    %c448_210 = arith.constant 448 : index
    %224 = vector.load %arg25[%c0_209, %c448_210] : memref<58x576xbf16, #tpu.memory_space<vmem>>, vector<58x64xbf16>
    tpu.vector_store %arg25[%c0_209, %c448_210], %223 {strides = array<i32>} : memref<58x576xbf16, #tpu.memory_space<vmem>>, vector<58x64xbf16>,
    %c14_211 = arith.constant 14 : index
    %c0_212 = arith.constant 0 : index
    %225 = vector.load %arg22[%c14_211, %c0_212] : memref<72x64xbf16, #tpu.memory_space<vmem>>, vector<58x64xbf16>
    %c0_213 = arith.constant 0 : index
    %c512_214 = arith.constant 512 : index
    %226 = vector.load %arg25[%c0_213, %c512_214] : memref<58x576xbf16, #tpu.memory_space<vmem>>, vector<58x64xbf16>
    tpu.vector_store %arg25[%c0_213, %c512_214], %225 {strides = array<i32>} : memref<58x576xbf16, #tpu.memory_space<vmem>>, vector<58x64xbf16>,
    %c0_215 = arith.constant 0 : index
    %c0_216 = arith.constant 0 : index
    %227 = vector.load %arg25[%c0_215, %c0_216] : memref<58x576xbf16, #tpu.memory_space<vmem>>, vector<58x576xbf16>
    %c0_217 = arith.constant 0 : index
    %c0_218 = arith.constant 0 : index
    %228 = vector.load %arg12[%c0_217, %c0_218] : memref<576x64xbf16, #tpu.memory_space<vmem>>, vector<576x64xbf16>
    %cst_219 = arith.constant dense<0.000000e+00> : vector<58x64xf32>
    %229 = tpu.matmul %227, %228, %cst_219 {dimension_numbers = #tpu.dot_dimension_numbers<[1], [0], [0], [1], [0, 0, 1, 1], [], []>} : vector<58x576xbf16>, vector<576x64xbf16>, vector<58x64xf32> -> vector<58x64xf32>
    %c0_220 = arith.constant 0 : index
    %c0_221 = arith.constant 0 : index
    %230 = vector.load %arg13[%c0_220, %c0_221] : memref<1x64xf32, #tpu.memory_space<vmem>>, vector<1x64xf32>
    %c0_222 = arith.constant 0 : index
    %c0_223 = arith.constant 0 : index
    %231 = vector.load %arg14[%c0_222, %c0_223] : memref<1x64xf32, #tpu.memory_space<vmem>>, vector<1x64xf32>
    %232 = vector.broadcast %95 : vector<58x1xf32> to vector<58x64xf32>
    %233 = arith.mulf %229, %232 : vector<58x64xf32>
    %cst_224 = arith.constant dense<0.000000e+00> : vector<64xf32>
    %234 = vector.multi_reduction <add>, %233, %cst_224 [0] : vector<58x64xf32> to vector<64xf32>
    %235 = vector.shape_cast %234 : vector<64xf32> to vector<1x64xf32>
    %236 = arith.mulf %233, %229 : vector<58x64xf32>
    %cst_225 = arith.constant dense<0.000000e+00> : vector<64xf32>
    %237 = vector.multi_reduction <add>, %236, %cst_225 [0] : vector<58x64xf32> to vector<64xf32>
    %238 = vector.shape_cast %237 : vector<64xf32> to vector<1x64xf32>
    %cst_226 = arith.constant 3.125000e-02 : f32
    %239 = vector.broadcast %cst_226 : f32 to vector<1x64xf32>
    %240 = arith.mulf %235, %239 : vector<1x64xf32>
    %cst_227 = arith.constant 3.125000e-02 : f32
    %241 = vector.broadcast %cst_227 : f32 to vector<1x64xf32>
    %242 = arith.mulf %238, %241 : vector<1x64xf32>
    %243 = arith.mulf %240, %240 : vector<1x64xf32>
    %244 = arith.subf %242, %243 : vector<1x64xf32>
    %cst_228 = arith.constant 0.000000e+00 : f32
    %245 = vector.broadcast %cst_228 : f32 to vector<1x64xf32>
    %246 = arith.maximumf %244, %245 : vector<1x64xf32>
    %247 = vector.broadcast %240 : vector<1x64xf32> to vector<58x64xf32>
    %248 = arith.subf %229, %247 : vector<58x64xf32>
    %cst_229 = arith.constant 9.99999974E-6 : f32
    %249 = vector.broadcast %cst_229 : f32 to vector<1x64xf32>
    %250 = arith.addf %246, %249 : vector<1x64xf32>
    %251 = math.rsqrt %250 : vector<1x64xf32>
    %252 = vector.broadcast %251 : vector<1x64xf32> to vector<58x64xf32>
    %253 = arith.mulf %248, %252 : vector<58x64xf32>
    %254 = vector.broadcast %230 : vector<1x64xf32> to vector<58x64xf32>
    %255 = arith.mulf %253, %254 : vector<58x64xf32>
    %256 = vector.broadcast %231 : vector<1x64xf32> to vector<58x64xf32>
    %257 = arith.addf %255, %256 : vector<58x64xf32>
    %cst_230 = arith.constant 0.000000e+00 : f32
    %258 = vector.broadcast %cst_230 : f32 to vector<58x64xf32>
    %259 = arith.maximumf %257, %258 : vector<58x64xf32>
    %260 = vector.broadcast %95 : vector<58x1xf32> to vector<58x64xf32>
    %261 = arith.mulf %259, %260 : vector<58x64xf32>
    %262 = arith.truncf %261 : vector<58x64xf32> to vector<58x64xbf16>
    %c7_231 = arith.constant 7 : index
    %c0_232 = arith.constant 0 : index
    %263 = vector.load %arg23[%c7_231, %c0_232] : memref<72x64xbf16, #tpu.memory_space<vmem>>, vector<58x64xbf16>
    tpu.vector_store %arg23[%c7_231, %c0_232], %262 {strides = array<i32>} : memref<72x64xbf16, #tpu.memory_space<vmem>>, vector<58x64xbf16>,
    %c0_233 = arith.constant 0 : index
    %c0_234 = arith.constant 0 : index
    %264 = vector.load %arg23[%c0_233, %c0_234] : memref<72x64xbf16, #tpu.memory_space<vmem>>, vector<58x64xbf16>
    %c0_235 = arith.constant 0 : index
    %c0_236 = arith.constant 0 : index
    %265 = vector.load %arg25[%c0_235, %c0_236] : memref<58x576xbf16, #tpu.memory_space<vmem>>, vector<58x64xbf16>
    tpu.vector_store %arg25[%c0_235, %c0_236], %264 {strides = array<i32>} : memref<58x576xbf16, #tpu.memory_space<vmem>>, vector<58x64xbf16>,
    %c1_237 = arith.constant 1 : index
    %c0_238 = arith.constant 0 : index
    %266 = vector.load %arg23[%c1_237, %c0_238] : memref<72x64xbf16, #tpu.memory_space<vmem>>, vector<58x64xbf16>
    %c0_239 = arith.constant 0 : index
    %c64_240 = arith.constant 64 : index
    %267 = vector.load %arg25[%c0_239, %c64_240] : memref<58x576xbf16, #tpu.memory_space<vmem>>, vector<58x64xbf16>
    tpu.vector_store %arg25[%c0_239, %c64_240], %266 {strides = array<i32>} : memref<58x576xbf16, #tpu.memory_space<vmem>>, vector<58x64xbf16>,
    %c2_241 = arith.constant 2 : index
    %c0_242 = arith.constant 0 : index
    %268 = vector.load %arg23[%c2_241, %c0_242] : memref<72x64xbf16, #tpu.memory_space<vmem>>, vector<58x64xbf16>
    %c0_243 = arith.constant 0 : index
    %c128_244 = arith.constant 128 : index
    %269 = vector.load %arg25[%c0_243, %c128_244] : memref<58x576xbf16, #tpu.memory_space<vmem>>, vector<58x64xbf16>
    tpu.vector_store %arg25[%c0_243, %c128_244], %268 {strides = array<i32>} : memref<58x576xbf16, #tpu.memory_space<vmem>>, vector<58x64xbf16>,
    %c6_245 = arith.constant 6 : index
    %c0_246 = arith.constant 0 : index
    %270 = vector.load %arg23[%c6_245, %c0_246] : memref<72x64xbf16, #tpu.memory_space<vmem>>, vector<58x64xbf16>
    %c0_247 = arith.constant 0 : index
    %c192_248 = arith.constant 192 : index
    %271 = vector.load %arg25[%c0_247, %c192_248] : memref<58x576xbf16, #tpu.memory_space<vmem>>, vector<58x64xbf16>
    tpu.vector_store %arg25[%c0_247, %c192_248], %270 {strides = array<i32>} : memref<58x576xbf16, #tpu.memory_space<vmem>>, vector<58x64xbf16>,
    %c7_249 = arith.constant 7 : index
    %c0_250 = arith.constant 0 : index
    %272 = vector.load %arg23[%c7_249, %c0_250] : memref<72x64xbf16, #tpu.memory_space<vmem>>, vector<58x64xbf16>
    %c0_251 = arith.constant 0 : index
    %c256_252 = arith.constant 256 : index
    %273 = vector.load %arg25[%c0_251, %c256_252] : memref<58x576xbf16, #tpu.memory_space<vmem>>, vector<58x64xbf16>
    tpu.vector_store %arg25[%c0_251, %c256_252], %272 {strides = array<i32>} : memref<58x576xbf16, #tpu.memory_space<vmem>>, vector<58x64xbf16>,
    %c8_253 = arith.constant 8 : index
    %c0_254 = arith.constant 0 : index
    %274 = vector.load %arg23[%c8_253, %c0_254] : memref<72x64xbf16, #tpu.memory_space<vmem>>, vector<58x64xbf16>
    %c0_255 = arith.constant 0 : index
    %c320_256 = arith.constant 320 : index
    %275 = vector.load %arg25[%c0_255, %c320_256] : memref<58x576xbf16, #tpu.memory_space<vmem>>, vector<58x64xbf16>
    tpu.vector_store %arg25[%c0_255, %c320_256], %274 {strides = array<i32>} : memref<58x576xbf16, #tpu.memory_space<vmem>>, vector<58x64xbf16>,
    %c12_257 = arith.constant 12 : index
    %c0_258 = arith.constant 0 : index
    %276 = vector.load %arg23[%c12_257, %c0_258] : memref<72x64xbf16, #tpu.memory_space<vmem>>, vector<58x64xbf16>
    %c0_259 = arith.constant 0 : index
    %c384_260 = arith.constant 384 : index
    %277 = vector.load %arg25[%c0_259, %c384_260] : memref<58x576xbf16, #tpu.memory_space<vmem>>, vector<58x64xbf16>
    tpu.vector_store %arg25[%c0_259, %c384_260], %276 {strides = array<i32>} : memref<58x576xbf16, #tpu.memory_space<vmem>>, vector<58x64xbf16>,
    %c13_261 = arith.constant 13 : index
    %c0_262 = arith.constant 0 : index
    %278 = vector.load %arg23[%c13_261, %c0_262] : memref<72x64xbf16, #tpu.memory_space<vmem>>, vector<58x64xbf16>
    %c0_263 = arith.constant 0 : index
    %c448_264 = arith.constant 448 : index
    %279 = vector.load %arg25[%c0_263, %c448_264] : memref<58x576xbf16, #tpu.memory_space<vmem>>, vector<58x64xbf16>
    tpu.vector_store %arg25[%c0_263, %c448_264], %278 {strides = array<i32>} : memref<58x576xbf16, #tpu.memory_space<vmem>>, vector<58x64xbf16>,
    %c14_265 = arith.constant 14 : index
    %c0_266 = arith.constant 0 : index
    %280 = vector.load %arg23[%c14_265, %c0_266] : memref<72x64xbf16, #tpu.memory_space<vmem>>, vector<58x64xbf16>
    %c0_267 = arith.constant 0 : index
    %c512_268 = arith.constant 512 : index
    %281 = vector.load %arg25[%c0_267, %c512_268] : memref<58x576xbf16, #tpu.memory_space<vmem>>, vector<58x64xbf16>
    tpu.vector_store %arg25[%c0_267, %c512_268], %280 {strides = array<i32>} : memref<58x576xbf16, #tpu.memory_space<vmem>>, vector<58x64xbf16>,
    %c0_269 = arith.constant 0 : index
    %c0_270 = arith.constant 0 : index
    %282 = vector.load %arg25[%c0_269, %c0_270] : memref<58x576xbf16, #tpu.memory_space<vmem>>, vector<58x576xbf16>
    %c0_271 = arith.constant 0 : index
    %c0_272 = arith.constant 0 : index
    %283 = vector.load %arg15[%c0_271, %c0_272] : memref<576x64xbf16, #tpu.memory_space<vmem>>, vector<576x64xbf16>
    %cst_273 = arith.constant dense<0.000000e+00> : vector<58x64xf32>
    %284 = tpu.matmul %282, %283, %cst_273 {dimension_numbers = #tpu.dot_dimension_numbers<[1], [0], [0], [1], [0, 0, 1, 1], [], []>} : vector<58x576xbf16>, vector<576x64xbf16>, vector<58x64xf32> -> vector<58x64xf32>
    %c7_274 = arith.constant 7 : index
    %c0_275 = arith.constant 0 : index
    %285 = vector.load %arg22[%c7_274, %c0_275] : memref<72x64xbf16, #tpu.memory_space<vmem>>, vector<58x64xbf16>
    %286 = arith.extf %285 : vector<58x64xbf16> to vector<58x64xf32>
    %c0_276 = arith.constant 0 : index
    %c0_277 = arith.constant 0 : index
    %287 = vector.load %arg16[%c0_276, %c0_277] : memref<1x64xf32, #tpu.memory_space<vmem>>, vector<1x64xf32>
    %c0_278 = arith.constant 0 : index
    %c0_279 = arith.constant 0 : index
    %288 = vector.load %arg17[%c0_278, %c0_279] : memref<1x64xf32, #tpu.memory_space<vmem>>, vector<1x64xf32>
    %289 = vector.broadcast %95 : vector<58x1xf32> to vector<58x64xf32>
    %290 = arith.mulf %284, %289 : vector<58x64xf32>
    %cst_280 = arith.constant dense<0.000000e+00> : vector<64xf32>
    %291 = vector.multi_reduction <add>, %290, %cst_280 [0] : vector<58x64xf32> to vector<64xf32>
    %292 = vector.shape_cast %291 : vector<64xf32> to vector<1x64xf32>
    %293 = arith.mulf %290, %284 : vector<58x64xf32>
    %cst_281 = arith.constant dense<0.000000e+00> : vector<64xf32>
    %294 = vector.multi_reduction <add>, %293, %cst_281 [0] : vector<58x64xf32> to vector<64xf32>
    %295 = vector.shape_cast %294 : vector<64xf32> to vector<1x64xf32>
    %cst_282 = arith.constant 3.125000e-02 : f32
    %296 = vector.broadcast %cst_282 : f32 to vector<1x64xf32>
    %297 = arith.mulf %292, %296 : vector<1x64xf32>
    %cst_283 = arith.constant 3.125000e-02 : f32
    %298 = vector.broadcast %cst_283 : f32 to vector<1x64xf32>
    %299 = arith.mulf %295, %298 : vector<1x64xf32>
    %300 = arith.mulf %297, %297 : vector<1x64xf32>
    %301 = arith.subf %299, %300 : vector<1x64xf32>
    %cst_284 = arith.constant 0.000000e+00 : f32
    %302 = vector.broadcast %cst_284 : f32 to vector<1x64xf32>
    %303 = arith.maximumf %301, %302 : vector<1x64xf32>
    %304 = vector.broadcast %297 : vector<1x64xf32> to vector<58x64xf32>
    %305 = arith.subf %284, %304 : vector<58x64xf32>
    %cst_285 = arith.constant 9.99999974E-6 : f32
    %306 = vector.broadcast %cst_285 : f32 to vector<1x64xf32>
    %307 = arith.addf %303, %306 : vector<1x64xf32>
    %308 = math.rsqrt %307 : vector<1x64xf32>
    %309 = vector.broadcast %308 : vector<1x64xf32> to vector<58x64xf32>
    %310 = arith.mulf %305, %309 : vector<58x64xf32>
    %311 = vector.broadcast %287 : vector<1x64xf32> to vector<58x64xf32>
    %312 = arith.mulf %310, %311 : vector<58x64xf32>
    %313 = vector.broadcast %288 : vector<1x64xf32> to vector<58x64xf32>
    %314 = arith.addf %312, %313 : vector<58x64xf32>
    %315 = arith.addf %314, %286 : vector<58x64xf32>
    %cst_286 = arith.constant 0.000000e+00 : f32
    %316 = vector.broadcast %cst_286 : f32 to vector<58x64xf32>
    %317 = arith.maximumf %315, %316 : vector<58x64xf32>
    %318 = vector.broadcast %95 : vector<58x1xf32> to vector<58x64xf32>
    %319 = arith.mulf %317, %318 : vector<58x64xf32>
    %320 = vector.extract_strided_slice %319 {offsets = [0, 0], sizes = [4, 64], strides = [1, 1]} : vector<58x64xf32> to vector<4x64xf32>
    %c0_287 = arith.constant 0 : index
    %c0_288 = arith.constant 0 : index
    %321 = vector.load %arg19[%c0_287, %c0_288] : memref<32x64xf32, #tpu.memory_space<vmem>>, vector<4x64xf32>
    tpu.vector_store %arg19[%c0_287, %c0_288], %320 {strides = array<i32>} : memref<32x64xf32, #tpu.memory_space<vmem>>, vector<4x64xf32>,
    %322 = vector.extract_strided_slice %319 {offsets = [6, 0], sizes = [4, 64], strides = [1, 1]} : vector<58x64xf32> to vector<4x64xf32>
    %c4 = arith.constant 4 : index
    %c0_289 = arith.constant 0 : index
    %323 = vector.load %arg19[%c4, %c0_289] : memref<32x64xf32, #tpu.memory_space<vmem>>, vector<4x64xf32>
    tpu.vector_store %arg19[%c4, %c0_289], %322 {strides = array<i32>} : memref<32x64xf32, #tpu.memory_space<vmem>>, vector<4x64xf32>,
    %324 = vector.extract_strided_slice %319 {offsets = [12, 0], sizes = [4, 64], strides = [1, 1]} : vector<58x64xf32> to vector<4x64xf32>
    %c8_290 = arith.constant 8 : index
    %c0_291 = arith.constant 0 : index
    %325 = vector.load %arg19[%c8_290, %c0_291] : memref<32x64xf32, #tpu.memory_space<vmem>>, vector<4x64xf32>
    tpu.vector_store %arg19[%c8_290, %c0_291], %324 {strides = array<i32>} : memref<32x64xf32, #tpu.memory_space<vmem>>, vector<4x64xf32>,
    %326 = vector.extract_strided_slice %319 {offsets = [18, 0], sizes = [4, 64], strides = [1, 1]} : vector<58x64xf32> to vector<4x64xf32>
    %c12_292 = arith.constant 12 : index
    %c0_293 = arith.constant 0 : index
    %327 = vector.load %arg19[%c12_292, %c0_293] : memref<32x64xf32, #tpu.memory_space<vmem>>, vector<4x64xf32>
    tpu.vector_store %arg19[%c12_292, %c0_293], %326 {strides = array<i32>} : memref<32x64xf32, #tpu.memory_space<vmem>>, vector<4x64xf32>,
    %328 = vector.extract_strided_slice %319 {offsets = [36, 0], sizes = [4, 64], strides = [1, 1]} : vector<58x64xf32> to vector<4x64xf32>
    %c16 = arith.constant 16 : index
    %c0_294 = arith.constant 0 : index
    %329 = vector.load %arg19[%c16, %c0_294] : memref<32x64xf32, #tpu.memory_space<vmem>>, vector<4x64xf32>
    tpu.vector_store %arg19[%c16, %c0_294], %328 {strides = array<i32>} : memref<32x64xf32, #tpu.memory_space<vmem>>, vector<4x64xf32>,
    %330 = vector.extract_strided_slice %319 {offsets = [42, 0], sizes = [4, 64], strides = [1, 1]} : vector<58x64xf32> to vector<4x64xf32>
    %c20 = arith.constant 20 : index
    %c0_295 = arith.constant 0 : index
    %331 = vector.load %arg19[%c20, %c0_295] : memref<32x64xf32, #tpu.memory_space<vmem>>, vector<4x64xf32>
    tpu.vector_store %arg19[%c20, %c0_295], %330 {strides = array<i32>} : memref<32x64xf32, #tpu.memory_space<vmem>>, vector<4x64xf32>,
    %332 = vector.extract_strided_slice %319 {offsets = [48, 0], sizes = [4, 64], strides = [1, 1]} : vector<58x64xf32> to vector<4x64xf32>
    %c24 = arith.constant 24 : index
    %c0_296 = arith.constant 0 : index
    %333 = vector.load %arg19[%c24, %c0_296] : memref<32x64xf32, #tpu.memory_space<vmem>>, vector<4x64xf32>
    tpu.vector_store %arg19[%c24, %c0_296], %332 {strides = array<i32>} : memref<32x64xf32, #tpu.memory_space<vmem>>, vector<4x64xf32>,
    %334 = vector.extract_strided_slice %319 {offsets = [54, 0], sizes = [4, 64], strides = [1, 1]} : vector<58x64xf32> to vector<4x64xf32>
    %c28 = arith.constant 28 : index
    %c0_297 = arith.constant 0 : index
    %335 = vector.load %arg19[%c28, %c0_297] : memref<32x64xf32, #tpu.memory_space<vmem>>, vector<4x64xf32>
    tpu.vector_store %arg19[%c28, %c0_297], %334 {strides = array<i32>} : memref<32x64xf32, #tpu.memory_space<vmem>>, vector<4x64xf32>,
    return
  }
  func.func @transform_0(%arg0: i32) -> (i32, i32) {
    %c0_i32 = arith.constant 0 : i32
    %c0_i32_0 = arith.constant 0 : i32
    %c0_i32_1 = arith.constant 0 : i32
    return %c0_i32, %c0_i32_0 : i32, i32
  }
  func.func @transform_1(%arg0: i32) -> (i32, i32) {
    %c0_i32 = arith.constant 0 : i32
    %c0_i32_0 = arith.constant 0 : i32
    %c0_i32_1 = arith.constant 0 : i32
    return %c0_i32, %c0_i32_0 : i32, i32
  }
  func.func @transform_2(%arg0: i32) -> (i32, i32) {
    %c0_i32 = arith.constant 0 : i32
    %c0_i32_0 = arith.constant 0 : i32
    %c0_i32_1 = arith.constant 0 : i32
    return %c0_i32, %c0_i32_0 : i32, i32
  }
  func.func @transform_3(%arg0: i32) -> (i32, i32) {
    %c0_i32 = arith.constant 0 : i32
    %c0_i32_0 = arith.constant 0 : i32
    %c0_i32_1 = arith.constant 0 : i32
    return %c0_i32, %c0_i32_0 : i32, i32
  }
  func.func @transform_4(%arg0: i32) -> (i32, i32) {
    %c0_i32 = arith.constant 0 : i32
    %c0_i32_0 = arith.constant 0 : i32
    %c0_i32_1 = arith.constant 0 : i32
    return %c0_i32, %c0_i32_0 : i32, i32
  }
  func.func @transform_5(%arg0: i32) -> (i32, i32) {
    %c0_i32 = arith.constant 0 : i32
    %c0_i32_0 = arith.constant 0 : i32
    %c0_i32_1 = arith.constant 0 : i32
    return %c0_i32, %c0_i32_0 : i32, i32
  }
  func.func @transform_6(%arg0: i32) -> (i32, i32) {
    %c0_i32 = arith.constant 0 : i32
    %c0_i32_0 = arith.constant 0 : i32
    %c0_i32_1 = arith.constant 0 : i32
    return %c0_i32, %c0_i32_0 : i32, i32
  }
  func.func @transform_7(%arg0: i32) -> (i32, i32) {
    %c0_i32 = arith.constant 0 : i32
    %c0_i32_0 = arith.constant 0 : i32
    %c0_i32_1 = arith.constant 0 : i32
    return %c0_i32, %c0_i32_0 : i32, i32
  }
  func.func @transform_8(%arg0: i32) -> (i32, i32) {
    %c0_i32 = arith.constant 0 : i32
    %c0_i32_0 = arith.constant 0 : i32
    %c0_i32_1 = arith.constant 0 : i32
    return %c0_i32, %c0_i32_0 : i32, i32
  }
  func.func @transform_9(%arg0: i32) -> (i32, i32) {
    %c0_i32 = arith.constant 0 : i32
    %c0_i32_0 = arith.constant 0 : i32
    %c0_i32_1 = arith.constant 0 : i32
    return %c0_i32, %c0_i32_0 : i32, i32
  }
  func.func @transform_10(%arg0: i32) -> (i32, i32) {
    %c0_i32 = arith.constant 0 : i32
    %c0_i32_0 = arith.constant 0 : i32
    %c0_i32_1 = arith.constant 0 : i32
    return %c0_i32, %c0_i32_0 : i32, i32
  }
  func.func @transform_11(%arg0: i32) -> (i32, i32) {
    %c0_i32 = arith.constant 0 : i32
    %c0_i32_0 = arith.constant 0 : i32
    %c0_i32_1 = arith.constant 0 : i32
    return %c0_i32, %c0_i32_0 : i32, i32
  }
  func.func @transform_12(%arg0: i32) -> (i32, i32) {
    %c0_i32 = arith.constant 0 : i32
    %c0_i32_0 = arith.constant 0 : i32
    %c0_i32_1 = arith.constant 0 : i32
    return %c0_i32, %c0_i32_0 : i32, i32
  }
  func.func @transform_13(%arg0: i32) -> (i32, i32) {
    %c0_i32 = arith.constant 0 : i32
    %c0_i32_0 = arith.constant 0 : i32
    %c0_i32_1 = arith.constant 0 : i32
    return %c0_i32, %c0_i32_0 : i32, i32
  }
  func.func @transform_14(%arg0: i32) -> (i32, i32) {
    %c0_i32 = arith.constant 0 : i32
    %c0_i32_0 = arith.constant 0 : i32
    %c0_i32_1 = arith.constant 0 : i32
    return %c0_i32, %c0_i32_0 : i32, i32
  }
  func.func @transform_15(%arg0: i32) -> (i32, i32) {
    %c0_i32 = arith.constant 0 : i32
    %c0_i32_0 = arith.constant 0 : i32
    %c0_i32_1 = arith.constant 0 : i32
    return %c0_i32, %c0_i32_0 : i32, i32
  }
  func.func @transform_16(%arg0: i32) -> (i32, i32) {
    %c0_i32 = arith.constant 0 : i32
    %c0_i32_0 = arith.constant 0 : i32
    %c0_i32_1 = arith.constant 0 : i32
    return %c0_i32, %c0_i32_0 : i32, i32
  }
  func.func @transform_17(%arg0: i32) -> (i32, i32) {
    %c0_i32 = arith.constant 0 : i32
    %c0_i32_0 = arith.constant 0 : i32
    %c0_i32_1 = arith.constant 0 : i32
    return %c0_i32, %c0_i32_0 : i32, i32
  }
  func.func @transform_18(%arg0: i32) -> (i32, i32) {
    %c0_i32 = arith.constant 0 : i32
    %c0_i32_0 = arith.constant 0 : i32
    %c0_i32_1 = arith.constant 0 : i32
    return %c0_i32, %c0_i32_0 : i32, i32
  }
}

</mosaic_0001>

<bundles_post_ra>
// kernel: frontend_forward.1
= control target key start
LH: loop header
LB: loop body
LE: loop exit
PB: predicated region body
PF: predicated region fallthrough
CT: control target
= control target key end

     0   :  { %s14456_s0 = inlined_call_operand.vmem [shape: bf16[242,48], index: 0, kind: input, shape index: {}]   ;;  %s14457_s1 = inlined_call_operand.vmem [shape: bf16[192,64], index: 1, kind: input, shape index: {}]   ;;  %s14458_s2 = inlined_call_operand.vmem [shape: f32[1,64], index: 2, kind: input, shape index: {}]   ;;  %s14459_s3 = inlined_call_operand.vmem [shape: f32[1,64], index: 3, kind: input, shape index: {}]   ;;  %s14460_s4 = inlined_call_operand.vmem [shape: f32[206,1], index: 4, kind: input, shape index: {}]   ;;  %s14461_s5 = inlined_call_operand.vmem [shape: bf16[576,64], index: 5, kind: input, shape index: {}]   ;;  %s14462_s6 = inlined_call_operand.vmem [shape: f32[1,64], index: 6, kind: input, shape index: {}]   ;;  %s14463_s7 = inlined_call_operand.vmem [shape: f32[1,64], index: 7, kind: input, shape index: {}]   ;;  %s14464_s8 = inlined_call_operand.vmem [shape: bf16[576,64], index: 8, kind: input, shape index: {}]   ;;  %s14465_s9 = inlined_call_operand.vmem [shape: f32[1,64], index: 9, kind: input, shape index: {}]   ;;  %s14466_s10 = inlined_call_operand.vmem [shape: f32[1,64], index: 10, kind: input, shape index: {}]   ;;  %s14467_s11 = inlined_call_operand.vmem [shape: bf16[576,64], index: 11, kind: input, shape index: {}]   ;;  %s14468_s12 = inlined_call_operand.vmem [shape: f32[1,64], index: 12, kind: input, shape index: {}]   ;;  %s14469_s13 = inlined_call_operand.vmem [shape: f32[1,64], index: 13, kind: input, shape index: {}]   ;;  %s14470_s14 = inlined_call_operand.vmem [shape: bf16[576,64], index: 14, kind: input, shape index: {}]   ;;  %s14471_s15 = inlined_call_operand.vmem [shape: f32[1,64], index: 15, kind: input, shape index: {}]   ;;  %s14472_s16 = inlined_call_operand.vmem [shape: f32[1,64], index: 16, kind: input, shape index: {}]   ;;  %s14473_s17 = inlined_call_operand.vmem [shape: f32[58,1], index: 17, kind: input, shape index: {}]   ;;  %s14474_s18 = inlined_call_operand.hbm [shape: f32[32,64], index: 18, kind: output, shape index: {}]  }
   0x1   :  { %14501 = sst [smem:[#allocation27_spill]] %s14456_s0 }
   0x2   :  { %14502 = sst [smem:[#allocation28_spill]] %s14457_s1 }
   0x3   :  { %14503 = sst [smem:[#allocation29_spill]] %s14458_s2 }
   0x4   :  { %s14504_s29 = sld [smem:[#allocation27_spill]]  ;;  %vm14493_vm0 = vcmask 1040384   ;;  %vm608_vm1 = vcmask 1044484   ;;  %v14505_v2 = vmov 0  ;;  %vm180_vm3 = vsmask.f32 2304 }
   0x5   :  { %vm10084_vm2 = vmor %vm14493_vm0, %vm608_vm1  ;;  %vm181_vm4 = vsmask.f32 6416  ;;  %s9973_s23 = smov 96   ;;  %vm14494_vm5 = vsmask.f32 3328  ;;  %v14510_v47 = vmov 0 }
   0x6   :  { %v14506_v2 = vsel %vm10084_vm2, 4294967295, %v14505_v2  ;;  %vm878_vm6 = vsmask.f32 7440  ;;  %vm10117_vm7 = vmor %vm180_vm3, %vm181_vm4  ;;  %s9974_s25 = smov 48   ;;  %s9975_s0 = smov 16   ;;  %vm125_vm9 = vcmask 388096  }
   0x7   :  { %14507 = vst [vmem:[#allocation11_spill] sm:$0xff] %v14506_v2  ;;  %vm10131_vm8 = vmor %vm14494_vm5, %vm878_vm6  ;;  %s14513_s26 = sld [smem:[#allocation28_spill]]  ;;  %vm767_vm10 = vcmask 785408   ;;  %vm820_vm11 = vcmask 1044224   ;;  %vm821_vm12 = vcmask 130052   ;;  %vm525_vm13 = vcmask 781696  }
   0x8   :  { %v14511_v47 = vsel %vm10131_vm8, 4294967295, %v14510_v47  ;;  %vm1217_vm14 = vcmask 519296   ;;  %vm10911_vm15 = vmor %vm821_vm12, %vm820_vm11  ;;  %vm14497_vm1 = vcmask 523264   ;;  %vm151_vm3 = vcmask 387072  }
   0x9   :  { %14512 = vst [vmem:[#allocation12_spill] sm:$0xff] %v14511_v47 }
   0xa   :  { %v553_v0 = vld [vmem:[%s14504_s29 + $0x8] sm:$0x8]  ;;  %v554_v1 = vld [vmem:[%s14504_s29 + $0xc] sm:$0xf]  ;;  %v555_v5 = vld [vmem:[%s14504_s29 + $0x10] sm:$0xf] }
   0xb   :  { %v8837_v3 = vrot.slane %v553_v0, 11  ;;  %v612_v4 = vrot.slane %v554_v1, 7  ;;  %v615_v6 = vrot.slane %v555_v5, 7  ;;  %v153_v7 = vld [vmem:[%s14504_s29 + $0x4] sm:$0xe] }
   0xc   :  { %v154_v8 = vld [vmem:[%s14504_s29 + $0x8] sm:$0xf]  ;;  %v184_v11 = vshrl.u32 %v153_v7, 16  ;;  %v187_v12 = vshll.u32 %v153_v7, 16  ;;  %v852_v15 = vld [vmem:[%s14504_s29 + $0x10] sm:$0xf] }
   0xd   :  { %v613_v9 = vsel %vm10084_vm2, %v8837_v3, %v612_v4  ;;  %v614_v10 = vrot.slane %v612_v4, 4  ;;  %v193_v13 = vshrl.u32 %v154_v8, 16  ;;  %v196_v14 = vshll.u32 %v154_v8, 16  ;;  %v853_v17 = vld [vmem:[%s14504_s29 + $0x14] sm:$0xf] }
   0xe   :  { %689 = vrot.lane.b32.xlu0 %v613_v9, %s9973_s23  ;;  %v186_v18 = vrot.slane %v184_v11, 5  ;;  %v189_v19 = vrot.slane %v187_v12, 6  ;;  %v155_v22 = vld [vmem:[%s14504_s29 + $0xc] sm:$0xf]  ;;  %v881_v23 = vshrl.u32 %v852_v15, 16  ;;  %v884_v24 = vshll.u32 %v852_v15, 16 }
   0xf   :  { %v616_v16 = vsel %vm10084_vm2, %v614_v10, %v615_v6  ;;  %v195_v20 = vrot.slane %v193_v13, 5  ;;  %v198_v21 = vrot.slane %v196_v14, 6  ;;  %v890_v25 = vshll.u32 %v853_v17, 16  ;;  %v854_v31 = vld [vmem:[%s14504_s29 + $0x18] sm:$0xf] }
  0x10   :  { %v894_v26 = vshrl.u32 %v853_v17, 16  ;;  %v190_v27 = vor.u32 %v189_v19, %v186_v18  ;;  %v203_v29 = vshrl.u32 %v155_v22, 16  ;;  %v206_v30 = vshll.u32 %v155_v22, 16  ;;  %v156_v36 = vld [vmem:[%s14504_s29 + $0x10] sm:$0xf] }
  0x11   :  { %v199_v28 = vor.u32 %v198_v21, %v195_v20  ;;  %v883_v33 = vrot.slane %v881_v23, 4  ;;  %v886_v34 = vrot.slane %v884_v24, 5  ;;  %v892_v35 = vrot.slane %v890_v25, 5  ;;  %v556_v41 = vld [vmem:[%s14504_s29 + $0x14] sm:$0xf] }
  0x12   :  { %691 = vrot.lane.b32.xlu0 %v616_v16, %s9973_s23  ;;  %v191_v37 = vrot.slane %v190_v27, 4  ;;  %v205_v39 = vrot.slane %v203_v29, 5  ;;  %v208_v40 = vrot.slane %v206_v30, 6  ;;  %v617_v43 = vrot.slane %v615_v6, 4  ;;  %v557_v51 = vld [vmem:[%s14504_s29 + $0x18] sm:$0xf] }
  0x13   :  { %v201_v38 = vrot.slane %v199_v28, 4  ;;  %v887_v42 = vor.u32 %v886_v34, %v883_v33  ;;  %v896_v44 = vrot.slane %v894_v26, 4  ;;  %v900_v45 = vshll.u32 %v854_v31, 16  ;;  %v855_v56 = vld [vmem:[%s14504_s29 + $0x1c] sm:$0xf] }
  0x14   :  { %v200_v46 = vsel %vm10117_vm7, %v191_v37, %v199_v28  ;;  %v209_v48 = vor.u32 %v208_v40, %v205_v39  ;;  %v904_v49 = vshrl.u32 %v854_v31, 16  ;;  %v213_v50 = vshrl.u32 %v156_v36, 16  ;;  %v157_v61 = vld [vmem:[%s14504_s29 + $0x14] sm:$0xf]  ;;  %v856_v13 = vld [vmem:[%s14504_s29 + $0x20] sm:$0xf] }
  0x15   :  { %447 = vrot.lane.b32.xlu1 %v200_v46, %s9974_s25  ;;  %v888_v52 = vrot.slane %v887_v42, 4  ;;  %v618_v53 = vrot.slane %v556_v41, 7  ;;  %v897_v54 = vor.u32 %v896_v44, %v892_v35  ;;  %v902_v55 = vrot.slane %v900_v45, 5  ;;  %v158_v17 = vld [vmem:[%s14504_s29 + $0x18] sm:$0xf] }
  0x16   :  { %v210_v57 = vsel %vm10117_vm7, %v201_v38, %v209_v48  ;;  %v211_v58 = vrot.slane %v209_v48, 4  ;;  %v215_v59 = vrot.slane %v213_v50, 5  ;;  %v216_v60 = vshll.u32 %v156_v36, 16  ;;  %v558_v26 = vld [vmem:[%s14504_s29 + $0x1c] sm:$0xf] }
  0x17   :  { %v893_v62 = vsel %vm10131_vm8, %v888_v52, %v892_v35  ;;  %v898_v63 = vrot.slane %v897_v54, 4  ;;  %v620_v0 = vrot.slane %v618_v53, 4  ;;  %v621_v1 = vrot.slane %v557_v51, 7  ;;  %v159_v30 = vld [vmem:[%s14504_s29 + $0x1c] sm:$0xf] }
  0x18   :  { %1139 = vrot.lane.b32.xlu0 %v893_v62, %s9975_s0  ;;  %v218_v3 = vrot.slane %v216_v60, 6  ;;  %v906_v4 = vrot.slane %v904_v49, 4  ;;  %v910_v5 = vshll.u32 %v855_v56, 16  ;;  %v914_v6 = vshrl.u32 %v855_v56, 16  ;;  %v857_v35 = vld [vmem:[%s14504_s29 + $0x24] sm:$0xf] }
  0x19   :  { %449 = vrot.lane.b32.xlu1 %v210_v57, %s9974_s25  ;;  %v619_v7 = vsel %vm10084_vm2, %v617_v43, %v618_v53  ;;  %v223_v8 = vshrl.u32 %v157_v61, 16  ;;  %v226_v9 = vshll.u32 %v157_v61, 16  ;;  %v903_v10 = vsel %vm10131_vm8, %v898_v63, %v902_v55  ;;  %v559_v45 = vld [vmem:[%s14504_s29 + $0x20] sm:$0xf]  ;;  %v858_v54 = vld [vmem:[%s14504_s29 + $0x28] sm:$0xf] }
  0x1a   :  { %v219_v11 = vor.u32 %v218_v3, %v215_v59  ;;  %v907_v12 = vor.u32 %v906_v4, %v902_v55  ;;  %v916_v16 = vrot.slane %v914_v6, 4  ;;  %v622_v19 = vsel %vm10084_vm2, %v620_v0, %v621_v1  ;;  %v160_v59 = vld [vmem:[%s14504_s29 + $0x20] sm:$0xf]  ;;  %v560_v3 = vld [vmem:[%s14504_s29 + $0x24] sm:$0xf] }
  0x1b   :  { %v225_v14 = vrot.slane %v223_v8, 5  ;;  %v228_v15 = vrot.slane %v226_v9, 6  ;;  %v912_v20 = vrot.slane %v910_v5, 5  ;;  %v920_v23 = vshll.u32 %v856_v13, 16  ;;  %v161_v9 = vld [vmem:[%s14504_s29 + $0x24] sm:$0xf] }
  0x1c   :  { %693 = vrot.lane.b32.xlu0 %v619_v7, %s9973_s23  ;;  %v220_v18 = vsel %vm10117_vm7, %v211_v58, %v219_v11  ;;  %v908_v21 = vrot.slane %v907_v12, 4  ;;  %v221_v22 = vrot.slane %v219_v11, 4  ;;  %v924_v24 = vshrl.u32 %v856_v13, 16 }
  0x1d   :  { %1141 = vrot.lane.b32.xlu1 %v903_v10, %s9975_s0  ;;  %v229_v25 = vor.u32 %v228_v15, %v225_v14  ;;  %v917_v27 = vor.u32 %v916_v16, %v912_v20  ;;  %v233_v28 = vshrl.u32 %v158_v17, 16  ;;  %v236_v29 = vshll.u32 %v158_v17, 16  ;;  %v859_v17 = vld [vmem:[%s14504_s29 + $0x2c] sm:$0xf] }
  0x1e   :  { %v623_v31 = vrot.slane %v621_v1, 4  ;;  %v926_v36 = vrot.slane %v924_v24, 4  ;;  %v913_v37 = vsel %vm10131_vm8, %v908_v21, %v912_v20  ;;  %v624_v38 = vrot.slane %v558_v26, 7  ;;  %v561_v20 = vld [vmem:[%s14504_s29 + $0x28] sm:$0xf] }
  0x1f   :  { %v235_v33 = vrot.slane %v233_v28, 5  ;;  %v238_v34 = vrot.slane %v236_v29, 6  ;;  %v922_v39 = vrot.slane %v920_v23, 5  ;;  %v243_v40 = vshrl.u32 %v159_v30, 16 }
  0x20   :  { %451 = vrot.lane.b32.xlu0 %v220_v18, %s9974_s25  ;;  %v230_v41 = vsel %vm10117_vm7, %v221_v22, %v229_v25  ;;  %v918_v42 = vrot.slane %v917_v27, 4  ;;  %v934_v43 = vshrl.u32 %v857_v35, 16  ;;  %v246_v44 = vshll.u32 %v159_v30, 16 }
  0x21   :  { %695 = vrot.lane.b32.xlu1 %v622_v19, %s9973_s23  ;;  %v930_v46 = vshll.u32 %v857_v35, 16  ;;  %v231_v48 = vrot.slane %v229_v25, 4  ;;  %v239_v49 = vor.u32 %v238_v34, %v235_v33  ;;  %v927_v50 = vor.u32 %v926_v36, %v922_v39 }
  0x22   :  { %v625_v51 = vsel %vm10084_vm2, %v623_v31, %v624_v38  ;;  %v245_v52 = vrot.slane %v243_v40, 5  ;;  %v248_v53 = vrot.slane %v246_v44, 6  ;;  %v923_v55 = vsel %vm10131_vm8, %v918_v42, %v922_v39  ;;  %v162_v31 = vld [vmem:[%s14504_s29 + $0x28] sm:$0xf] }
  0x23   :  { %v626_v56 = vrot.slane %v624_v38, 4  ;;  %v627_v57 = vrot.slane %v559_v45, 7  ;;  %v936_v58 = vrot.slane %v934_v43, 4  ;;  %v932_v60 = vrot.slane %v930_v46, 5  ;;  %v562_v45 = vld [vmem:[%s14504_s29 + $0x2c] sm:$0xf] }
  0x24   :  { %1143 = vrot.lane.b32.xlu0 %v913_v37, %s9975_s0  ;;  %v240_v61 = vsel %vm10117_vm7, %v231_v48, %v239_v49  ;;  %v928_v62 = vrot.slane %v927_v50, 4  ;;  %v241_v63 = vrot.slane %v239_v49, 4  ;;  %v940_v0 = vshll.u32 %v858_v54, 16  ;;  %v860_v37 = vld [vmem:[%s14504_s29 + $0x30] sm:$0xf] }
  0x25   :  { %453 = vrot.lane.b32.xlu1 %v230_v41, %s9974_s25  ;;  %v249_v1 = vor.u32 %v248_v53, %v245_v52  ;;  %v944_v4 = vshrl.u32 %v858_v54, 16  ;;  %v253_v5 = vshrl.u32 %v160_v59, 16  ;;  %v256_v6 = vshll.u32 %v160_v59, 16  ;;  %v563_v53 = vld [vmem:[%s14504_s29 + $0x30] sm:$0xf] }
  0x26   :  { %v628_v7 = vsel %vm10084_vm2, %v626_v56, %v627_v57  ;;  %v937_v8 = vor.u32 %v936_v58, %v932_v60  ;;  %v933_v10 = vsel %vm10131_vm8, %v928_v62, %v932_v60  ;;  %v629_v11 = vrot.slane %v627_v57, 4  ;;  %v861_v54 = vld [vmem:[%s14504_s29 + $0x34] sm:$0xf] }
  0x27   :  { %v630_v12 = vrot.slane %v560_v3, 7  ;;  %v942_v13 = vrot.slane %v940_v0, 5  ;;  %v250_v14 = vsel %vm10117_vm7, %v241_v63, %v249_v1  ;;  %v255_v15 = vrot.slane %v253_v5, 5  ;;  %v164_v5 = vld [vmem:[%s14504_s29 + $0x30] sm:$0xf] }
  0x28   :  { %697 = vrot.lane.b32.xlu0 %v625_v51, %s9973_s23  ;;  %v258_v16 = vrot.slane %v256_v6, 6  ;;  %v946_v18 = vrot.slane %v944_v4, 4  ;;  %v938_v19 = vrot.slane %v937_v8, 4  ;;  %v954_v21 = vshrl.u32 %v859_v17, 16  ;;  %v163_v51 = vld [vmem:[%s14504_s29 + $0x2c] sm:$0xf] }
  0x29   :  { %1145 = vrot.lane.b32.xlu1 %v923_v55, %s9975_s0  ;;  %v263_v22 = vshrl.u32 %v161_v9, 16  ;;  %v266_v23 = vshll.u32 %v161_v9, 16  ;;  %v631_v24 = vsel %vm10084_vm2, %v629_v11, %v630_v12  ;;  %v632_v25 = vrot.slane %v630_v12, 4 }
  0x2a   :  { %v950_v26 = vshll.u32 %v859_v17, 16  ;;  %v251_v27 = vrot.slane %v249_v1, 4  ;;  %v259_v28 = vor.u32 %v258_v16, %v255_v15  ;;  %v633_v29 = vrot.slane %v561_v20, 7 }
  0x2b   :  { %v947_v30 = vor.u32 %v946_v18, %v942_v13  ;;  %v943_v33 = vsel %vm10131_vm8, %v938_v19, %v942_v13  ;;  %v265_v34 = vrot.slane %v263_v22, 5  ;;  %v268_v35 = vrot.slane %v266_v23, 6 }
  0x2c   :  { %455 = vrot.lane.b32.xlu0 %v240_v61, %s9974_s25  ;;  %v956_v36 = vrot.slane %v954_v21, 4  ;;  %v952_v38 = vrot.slane %v950_v26, 5  ;;  %v964_v39 = vshrl.u32 %v860_v37, 16  ;;  %v273_v40 = vshrl.u32 %v162_v31, 16  ;;  %v165_v21 = vld [vmem:[%s14504_s29 + $0x34] sm:$0xf] }
  0x2d   :  { %699 = vrot.lane.b32.xlu1 %v628_v7, %s9973_s23  ;;  %v276_v41 = vshll.u32 %v162_v31, 16  ;;  %v260_v42 = vsel %vm10117_vm7, %v251_v27, %v259_v28  ;;  %v634_v43 = vsel %vm10084_vm2, %v632_v25, %v633_v29  ;;  %v948_v44 = vrot.slane %v947_v30, 4  ;;  %v565_v26 = vld [vmem:[%s14504_s29 + $0x38] sm:$0xf]  ;;  %v863_v31 = vld [vmem:[%s14504_s29 + $0x3c] sm:$0xf] }
  0x2e   :  { %v261_v46 = vrot.slane %v259_v28, 4  ;;  %v269_v48 = vor.u32 %v268_v35, %v265_v34  ;;  %v957_v49 = vor.u32 %v956_v36, %v952_v38  ;;  %v960_v50 = vshll.u32 %v860_v37, 16 }
  0x2f   :  { %v635_v52 = vrot.slane %v633_v29, 4  ;;  %v636_v55 = vrot.slane %v562_v45, 7  ;;  %v275_v56 = vrot.slane %v273_v40, 5  ;;  %v278_v57 = vrot.slane %v276_v41, 6 }
  0x30   :  { %1147 = vrot.lane.b32.xlu0 %v933_v10, %s9975_s0  ;;  %v966_v58 = vrot.slane %v964_v39, 4  ;;  %v953_v59 = vsel %vm10131_vm8, %v948_v44, %v952_v38  ;;  %v974_v60 = vshrl.u32 %v861_v54, 16  ;;  %v283_v61 = vshrl.u32 %v163_v51, 16  ;;  %v564_v10 = vld [vmem:[%s14504_s29 + $0x34] sm:$0xf] }
  0x31   :  { %457 = vrot.lane.b32.xlu1 %v250_v14, %s9974_s25  ;;  %v286_v62 = vshll.u32 %v163_v51, 16  ;;  %v270_v63 = vsel %vm10117_vm7, %v261_v46, %v269_v48  ;;  %v958_v0 = vrot.slane %v957_v49, 4  ;;  %v962_v1 = vrot.slane %v960_v50, 5  ;;  %v862_v14 = vld [vmem:[%s14504_s29 + $0x38] sm:$0xf] }
  0x32   :  { %v271_v3 = vrot.slane %v269_v48, 4  ;;  %v970_v4 = vshll.u32 %v861_v54, 16  ;;  %v279_v6 = vor.u32 %v278_v57, %v275_v56  ;;  %v638_v7 = vrot.slane %v636_v55, 4 }
  0x33   :  { %v639_v8 = vrot.slane %v563_v53, 7  ;;  %v967_v9 = vor.u32 %v966_v58, %v962_v1  ;;  %v637_v11 = vsel %vm10084_vm2, %v635_v52, %v636_v55  ;;  %v285_v12 = vrot.slane %v283_v61, 5  ;;  %v864_v53 = vld [vmem:[%s14504_s29 + $0x40] sm:$0xf]  ;;  %v865_v61 = vld [vmem:[%s14504_s29 + $0x44] sm:$0xf] }
  0x34   :  { %701 = vrot.lane.b32.xlu0 %v631_v24, %s9973_s23  ;;  %v288_v13 = vrot.slane %v286_v62, 6  ;;  %v976_v15 = vrot.slane %v974_v60, 4  ;;  %v963_v16 = vsel %vm10131_vm8, %v958_v0, %v962_v1  ;;  %v984_v17 = vshrl.u32 %v862_v14, 16 }
  0x35   :  { %1149 = vrot.lane.b32.xlu1 %v943_v33, %s9975_s0  ;;  %v293_v18 = vshrl.u32 %v164_v5, 16  ;;  %v296_v19 = vshll.u32 %v164_v5, 16  ;;  %v972_v20 = vrot.slane %v970_v4, 5  ;;  %v280_v22 = vsel %vm10117_vm7, %v271_v3, %v279_v6  ;;  %v167_v3 = vld [vmem:[%s14504_s29 + $0x3c] sm:$0xf] }
  0x36   :  { %v640_v23 = vsel %vm10084_vm2, %v638_v7, %v639_v8  ;;  %v968_v24 = vrot.slane %v967_v9, 4  ;;  %v980_v25 = vshll.u32 %v862_v14, 16  ;;  %v281_v27 = vrot.slane %v279_v6, 4  ;;  %v9683_v9 = vld [vmem:[%s14513_s26] sm:$0xff]   ;;  %v866_v14 = vld [vmem:[%s14504_s29 + $0x48] sm:$0xf] }
  0x37   :  { %v289_v28 = vor.u32 %v288_v13, %v285_v12  ;;  %v642_v29 = vrot.slane %v564_v10, 7  ;;  %v977_v30 = vor.u32 %v976_v15, %v972_v20  ;;  %v295_v33 = vrot.slane %v293_v18, 5  ;;  %v168_v15 = vld [vmem:[%s14504_s29 + $0x40] sm:$0xf] }
  0x38   :  { %459 = vrot.lane.b32.xlu0 %v260_v42, %s9974_s25  ;;  %v298_v34 = vrot.slane %v296_v19, 6  ;;  %v986_v35 = vrot.slane %v984_v17, 4  ;;  %v303_v36 = vshrl.u32 %v165_v21, 16  ;;  %v994_v37 = vshrl.u32 %v863_v31, 16 }
  0x39   :  { %703 = vrot.lane.b32.xlu1 %v634_v43, %s9973_s23  ;;  %v306_v38 = vshll.u32 %v165_v21, 16  ;;  %v973_v39 = vsel %vm10131_vm8, %v968_v24, %v972_v20  ;;  %v641_v40 = vrot.slane %v639_v8, 4  ;;  %v982_v41 = vrot.slane %v980_v25, 5  ;;  %v166_v43 = vld [vmem:[%s14504_s29 + $0x38] sm:$0xf] }
  0x3a   :  { %v644_v42 = vrot.slane %v642_v29, 4  ;;  %v290_v44 = vsel %vm10117_vm7, %v281_v27, %v289_v28  ;;  %v978_v45 = vrot.slane %v977_v30, 4  ;;  %v645_v46 = vrot.slane %v565_v26, 7  ;;  %v10327_v8 = vld [vmem:[%s14504_s29 + $0x40] sm:$0xf] }
  0x3b   :  { %v990_v48 = vshll.u32 %v863_v31, 16  ;;  %v291_v49 = vrot.slane %v289_v28, 4  ;;  %v10296_v50 = vor.u32 %v298_v34, %v295_v33  ;;  %v987_v51 = vor.u32 %v986_v35, %v982_v41  ;;  %v9684_v28 = vld [vmem:[%s14513_s26 + $0x8] sm:$0xff]  }
  0x3c   :  { %1151 = vrot.lane.b32.xlu0 %v953_v59, %s9975_s0  ;;  %v305_v52 = vrot.slane %v303_v36, 5  ;;  %v308_v54 = vrot.slane %v306_v38, 6  ;;  %v996_v55 = vrot.slane %v994_v37, 4  ;;  %v313_v56 = vshrl.u32 %v166_v43, 16  ;;  %v566_v59 = vld [vmem:[%s14504_s29 + $0x3c] sm:$0xf] }
  0x3d   :  { %461 = vrot.lane.b32.xlu1 %v270_v63, %s9974_s25  ;;  %v316_v57 = vshll.u32 %v166_v43, 16  ;;  %v643_v58 = vsel %vm10084_vm2, %v641_v40, %v642_v29  ;;  %v1004_v60 = vshrl.u32 %v864_v53, 16  ;;  %v983_v62 = vsel %vm10131_vm8, %v978_v45, %v982_v41  ;;  %v9685_v38 = vld [vmem:[%s14513_s26 + $0x10] sm:$0xff]   ;;  %v10371_v43 = vld [vmem:[%s14504_s29 + $0x44] sm:$0xf] }
  0x3e   :  { %v646_v63 = vsel %vm10084_vm2, %v644_v42, %v645_v46  ;;  %v10315_v0 = vrot.slane %v990_v48, 5  ;;  %v1000_v1 = vshll.u32 %v864_v53, 16  ;;  %v300_v4 = vsel %vm10117_vm7, %v291_v49, %v10296_v50 }
  0x3f   :  { %v988_v5 = vrot.slane %v987_v51, 4  ;;  %v301_v6 = vrot.slane %v10296_v50, 4  ;;  %v647_v7 = vrot.slane %v645_v46, 4  ;;  %v309_v10 = vor.u32 %v308_v54, %v305_v52  ;;  %v169_v50 = vld [vmem:[%s14504_s29 + $0x44] sm:$0xf] }
  0x40   :  { %705 = vrot.lane.b32.xlu0 %v637_v11, %s9973_s23  ;;  %v997_v11 = vor.u32 %v996_v55, %v10315_v0  ;;  %v315_v12 = vrot.slane %v313_v56, 5  ;;  %v318_v13 = vrot.slane %v316_v57, 6  ;;  %v1006_v17 = vrot.slane %v1004_v60, 4  ;;  %v170_v55 = vld [vmem:[%s14504_s29 + $0x48] sm:$0xf] }
  0x41   :  { %1153 = vrot.lane.b32.xlu1 %v963_v16, %s9975_s0  ;;  %v648_v16 = vrot.slane %v566_v59, 7  ;;  %v1014_v18 = vshrl.u32 %v865_v61, 16  ;;  %v10341_v19 = vrot.slane %v1000_v1, 5  ;;  %v311_v20 = vrot.slane %v309_v10, 4 }
  0x42   :  { %v1010_v21 = vshll.u32 %v865_v61, 16  ;;  %v326_v24 = vshll.u32 %v167_v3, 16  ;;  %v1024_v25 = vshrl.u32 %v866_v14, 16  ;;  %v333_v26 = vshrl.u32 %v168_v15, 16  ;;  %v10402_v61 = vld [vmem:[%s14504_s29 + $0x48] sm:$0xf] }
  0x43   :  { %v336_v27 = vshll.u32 %v168_v15, 16  ;;  %v998_v29 = vrot.slane %v997_v11, 4  ;;  %v10348_v30 = vor.u32 %v318_v13, %v315_v12  ;;  %v650_v31 = vrot.slane %v648_v16, 4 }
  0x44   :  { %463 = vrot.lane.b32.xlu0 %v280_v22, %s9974_s25  ;;  %v323_v22 = vshrl.u32 %v167_v3, 16  ;;  %v651_v33 = vrot.slane %v10327_v8, 7  ;;  %v993_v34 = vsel %vm10131_vm8, %v988_v5, %v10315_v0  ;;  %v1007_v35 = vor.u32 %v1006_v17, %v10341_v19  ;;  %v10419_v8 = vld [vmem:[%s14504_s29 + $0x4c] sm:$0xf]  ;;  %v10432_v17 = vld [vmem:[%s14504_s29 + $0x54] sm:$0xf] }
  0x45   :  { %707 = vrot.lane.b32.xlu1 %v640_v23, %s9973_s23  ;;  %v9976_v23 = vmov 0   ;;  %v1016_v36 = vrot.slane %v1014_v18, 4  ;;  %v1020_v37 = vshll.u32 %v866_v14, 16  ;;  %v649_v40 = vsel %vm10084_vm2, %v647_v7, %v648_v16  ;;  %v9686_v7 = vld [vmem:[%s14513_s26 + $0x18] sm:$0xff]  }
  0x46   :  { %1523 = vmatprep.subr.bf16.mxu0 %v9976_v23  ;;  %9681 = vset.pattern.permute.xlu0 %v9976_v23  ;;  %v10366_v41 = vrot.slane %v1010_v21, 5  ;;  %v325_v42 = vrot.slane %v323_v22, 5  ;;  %v328_v45 = vrot.slane %v326_v24, 6  ;;  %v335_v46 = vrot.slane %v333_v26, 5  ;;  %v171_v22 = vld [vmem:[%s14504_s29 + $0x4c] sm:$0xf] }
  0x47   :  { %1524 = vmatpush1.bf16.msra.mxu0 %v9683_v9  ;;  %9682 = vset.pattern.permute.xlu1 %v9976_v23  ;;  %v338_v48 = vrot.slane %v336_v27, 6  ;;  %v1026_v49 = vrot.slane %v1024_v25, 4  ;;  %v1003_v51 = vsel %vm10131_vm8, %v998_v29, %v10341_v19  ;;  %v320_v52 = vsel %vm10117_vm7, %v311_v20, %v10348_v30 }
  0x48   :  { %1155 = vrot.lane.b32.xlu0 %v973_v39, %s9975_s0  ;;  %1525 = vmatprep.subr.bf16.mxu0 %v9976_v23  ;;  %v310_v39 = vsel %vm10117_vm7, %v301_v6, %v309_v10  ;;  %v652_v53 = vsel %vm10084_vm2, %v650_v31, %v651_v33  ;;  %v10392_v56 = vrot.slane %v1007_v35, 4  ;;  %v321_v57 = vrot.slane %v10348_v30, 4  ;;  %v868_v6 = vld [vmem:[%s14504_s29 + $0x50] sm:$0xf]  ;;  %v107_v30 = vld [vmem:[%s14504_s29 + $0x20] sm:$0xf] }
  0x49   :  { %465 = vrot.lane.b32.xlu1 %v290_v44, %s9974_s25  ;;  %v867_v44 = vld [vmem:[%s14504_s29 + $0x4c] sm:$0xf]  ;;  %v10396_v59 = vrot.slane %v1020_v37, 5  ;;  %v653_v60 = vrot.slane %v651_v33, 4  ;;  %v346_v0 = vshll.u32 %v169_v50, 16  ;;  %v10404_v1 = vor.u32 %v328_v45, %v325_v42 }
  0x4a   :  { %v1034_v54 = vshrl.u32 %v867_v44, 16  ;;  %v654_v3 = vrot.slane %v10371_v43, 7  ;;  %v1044_v10 = vshrl.u32 %v868_v6, 16  ;;  %v353_v11 = vshrl.u32 %v170_v55, 16  ;;  %v10458_v35 = vld [vmem:[%s14504_s29 + $0x50] sm:$0xf] }
  0x4b   :  { %1526 = vmatpush1.bf16.msra.mxu0 %v9684_v28  ;;  %v1027_v5 = vor.u32 %v1026_v49, %v10396_v59  ;;  %v356_v12 = vshll.u32 %v170_v55, 16  ;;  %v331_v14 = vrot.slane %v10404_v1, 4  ;;  %v657_v16 = vrot.slane %v10402_v61, 7  ;;  %v9687_v28 = vld [vmem:[%s14513_s26 + $0x20] sm:$0xff]   ;;  %v102_v45 = vld [vmem:[%s14504_s29 + $0xc] sm:$0xf] }
  0x4c   :  { %709 = vrot.lane.b32.xlu0 %v643_v58, %s9973_s23  ;;  %1527 = vmatprep.subr.bf16.mxu0 %v9976_v23  ;;  %v1017_v58 = vor.u32 %v1016_v36, %v10366_v41  ;;  %v1036_v9 = vrot.slane %v1034_v54, 4  ;;  %v10426_v15 = vrot.slane %v654_v3, 4  ;;  %v348_v21 = vrot.slane %v346_v0, 6  ;;  %v99_v42 = vld [vmem:[%s14504_s29] sm:$0xf] }
  0x4d   :  { %1157 = vrot.lane.b32.xlu1 %v983_v62, %s9975_s0  ;;  %v1030_v62 = vshll.u32 %v867_v44, 16  ;;  %v10441_v24 = vrot.slane %v1027_v5, 4  ;;  %v10445_v25 = vrot.slane %v657_v16, 4  ;;  %v660_v26 = vrot.slane %v10419_v8, 7  ;;  %v100_v43 = vld [vmem:[%s14504_s29 + $0x4] sm:$0xf] }
  0x4e   :  { %v10423_v13 = vrot.slane %v1017_v58, 4  ;;  %v1040_v27 = vshll.u32 %v868_v6, 16  ;;  %v355_v31 = vrot.slane %v353_v11, 5  ;;  %v358_v33 = vrot.slane %v356_v12, 6  ;;  %v101_v44 = vld [vmem:[%s14504_s29 + $0x8] sm:$0xf] }
  0x4f   :  { %1528 = vmatpush1.bf16.msra.mxu0 %v9685_v38  ;;  %v10435_v18 = vrot.slane %v1030_v62, 5  ;;  %v1050_v36 = vshll.u32 %v10432_v17, 16  ;;  %v1054_v37 = vshrl.u32 %v10432_v17, 16  ;;  %v363_v38 = vshrl.u32 %v171_v22, 16  ;;  %v10488_v49 = vld [vmem:[%s14504_s29 + $0x50] sm:$0xf] }
  0x50   :  { %467 = vrot.lane.b32.xlu0 %v300_v4, %s9974_s25  ;;  %v10407_v4 = vor.u32 %v338_v48, %v335_v46  ;;  %1529 = vmatprep.subr.bf16.mxu0 %v9976_v23  ;;  %v1013_v46 = vsel %vm10131_vm8, %v10392_v56, %v10366_v41  ;;  %v330_v41 = vsel %vm10117_vm7, %v321_v57, %v10404_v1  ;;  %v10509_v54 = vld [vmem:[%s14504_s29 + $0x58] sm:$0xf]  ;;  %v106_v55 = vld [vmem:[%s14504_s29 + $0x1c] sm:$0xf]  ;;  %v108_v56 = vld [vmem:[%s14504_s29 + $0x24] sm:$0xf] }
  0x51   :  { %711 = vrot.lane.b32.xlu1 %v646_v63, %s9973_s23  ;;  %v343_v63 = vshrl.u32 %v169_v50, 16  ;;  %v1037_v29 = vor.u32 %v1036_v9, %v10435_v18  ;;  %v103_v50 = vld [vmem:[%s14504_s29 + $0x10] sm:$0xf]  ;;  %v10522_v58 = vrot.slane %v1040_v27, 5  ;;  %v10527_v62 = vrot.slane %v660_v26, 4 }
  0x52   :  { %v341_v19 = vrot.slane %v10407_v4, 4  ;;  %v10534_v0 = vrot.slane %v1054_v37, 4  ;;  %v376_v5 = vshll.u32 %v10458_v35, 16  ;;  %v10541_v6 = vld [vmem:[%s14504_s29 + $0x5c] sm:$0xf]  ;;  %v10547_v9 = vor.u32 %v358_v33, %v355_v31 }
  0x53   :  { %v345_v20 = vrot.slane %v343_v63, 5  ;;  %1530 = vmatpush1.bf16.msra.mxu0 %v9686_v7  ;;  %v10520_v57 = vrot.slane %v1037_v29, 4  ;;  %v109_v63 = vld [vmem:[%s14504_s29 + $0x28] sm:$0xf]  ;;  %v110_v7 = vld [vmem:[%s14504_s29 + $0x2c] sm:$0xf]  ;;  %v1023_v27 = vsel %vm10131_vm8, %v10423_v13, %v10396_v59  ;;  %v340_v59 = vsel %vm10117_vm7, %v331_v14, %v10407_v4 }
  0x54   :  { %1159 = vrot.lane.b32.xlu0 %v993_v34, %s9975_s0  ;;  %v10452_v34 = vrot.slane %v1044_v10, 4  ;;  %1531 = vmatprep.subr.bf16.mxu0 %v9976_v23  ;;  %v365_v10 = vrot.slane %v363_v38, 5  ;;  %v10552_v12 = vld [vmem:[%s14504_s29 + $0x54] sm:$0xf]  ;;  %v1064_v17 = vshrl.u32 %v10509_v54, 16  ;;  %v10585_v31 = vrot.slane %v1050_v36, 5 }
  0x55   :  { %469 = vrot.lane.b32.xlu1 %v310_v39, %s9974_s25  ;;  %v366_v39 = vshll.u32 %v171_v22, 16  ;;  %v10483_v48 = vor.u32 %v348_v21, %v345_v20  ;;  %v9689_v20 = vld [vmem:[%s14513_s26 + $0x30] sm:$0xff]   ;;  %126 = vst.msk [vmem:[#allocation6] sm:$0xf] %vm125_vm9, %v99_v42  ;;  %127 = vst.msk [vmem:[#allocation6 + $0x8] sm:$0xf] %vm125_vm9, %v100_v43  ;;  %v658_v13 = vsel %vm10084_vm2, %v10426_v15, %v657_v16 }
  0x56   :  { %v10561_v21 = vld [vmem:[%s14504_s29 + $0x54] sm:$0xf]  ;;  %128 = vst.msk [vmem:[#allocation6 + $0x10] sm:$0xf] %vm125_vm9, %v101_v44  ;;  %129 = vst.msk [vmem:[#allocation6 + $0x18] sm:$0xf] %vm125_vm9, %v102_v45  ;;  %v1047_v29 = vor.u32 %v10452_v34, %v10522_v58  ;;  %v1057_v14 = vor.u32 %v10534_v0, %v10585_v31 }
  0x57   :  { %1532 = vmatpush1.bf16.msra.mxu0 %v9687_v28  ;;  %v368_v11 = vrot.slane %v366_v39, 6  ;;  %130 = vst.msk [vmem:[#allocation6 + $0x20] sm:$0xf] %vm125_vm9, %v103_v50  ;;  %133 = vst.msk [vmem:[#allocation6 + $0x38] sm:$0xf] %vm125_vm9, %v106_v55  ;;  %v663_v28 = vrot.slane %v10488_v49, 7 }
  0x58   :  { %713 = vrot.lane.b32.xlu0 %v649_v40, %s9973_s23  ;;  %v9688_v40 = vld [vmem:[%s14513_s26 + $0x28] sm:$0xff]   ;;  %1533 = vmatprep.subr.bf16.mxu0 %v9976_v23  ;;  %134 = vst.msk [vmem:[#allocation6 + $0x40] sm:$0xf] %vm125_vm9, %v107_v30  ;;  %135 = vst.msk [vmem:[#allocation6 + $0x48] sm:$0xf] %vm125_vm9, %v108_v56  ;;  %v361_v34 = vrot.slane %v10547_v9, 4 }
  0x59   :  { %1161 = vrot.lane.b32.xlu1 %v1003_v51, %s9975_s0  ;;  %v104_v51 = vld [vmem:[%s14504_s29 + $0x14] sm:$0xf]  ;;  %136 = vst.msk [vmem:[#allocation6 + $0x50] sm:$0xf] %vm125_vm9, %v109_v63  ;;  %137 = vst.msk [vmem:[#allocation6 + $0x58] sm:$0xf] %vm125_vm9, %v110_v7  ;;  %v10626_v38 = vor.u32 %v368_v11, %v365_v10 }
  0x5a   :  { %131 = vst.msk [vmem:[#allocation6 + $0x28] sm:$0xf] %vm125_vm9, %v104_v51  ;;  %v111_v22 = vld [vmem:[%s14504_s29 + $0x30] sm:$0xf]  ;;  %v112_v33 = vld [vmem:[%s14504_s29 + $0x34] sm:$0xf] }
  0x5b   :  { %1534 = vmatpush1.bf16.msra.mxu0 %v9688_v40  ;;  %138 = vst.msk [vmem:[#allocation6 + $0x60] sm:$0xf] %vm125_vm9, %v111_v22  ;;  %v1060_v36 = vshll.u32 %v10509_v54, 16  ;;  %v10609_v37 = vld [vmem:[%s14504_s29 + $0x58] sm:$0xf]  ;;  %v10620_v1 = vrot.slane %v663_v28, 4  ;;  %v350_v54 = vsel %vm10117_vm7, %v341_v19, %v10483_v48 }
  0x5c   :  { %471 = vrot.lane.b32.xlu0 %v320_v52, %s9974_s25  ;;  %v105_v52 = vld [vmem:[%s14504_s29 + $0x18] sm:$0xf]  ;;  %1535 = vmatprep.subr.bf16.mxu0 %v9976_v23  ;;  %139 = vst.msk [vmem:[#allocation6 + $0x68] sm:$0xf] %vm125_vm9, %v112_v33  ;;  %v114_v61 = vld [vmem:[%s14504_s29 + $0x3c] sm:$0xf]  ;;  %v661_v33 = vsel %vm10084_vm2, %v10445_v25, %v660_v26 }
  0x5d   :  { %715 = vrot.lane.b32.xlu1 %v652_v53, %s9973_s23  ;;  %v655_v53 = vsel %vm10084_vm2, %v653_v60, %v654_v3  ;;  %v351_v60 = vrot.slane %v10483_v48, 4  ;;  %v373_v3 = vshrl.u32 %v10458_v35, 16  ;;  %132 = vst.msk [vmem:[#allocation6 + $0x30] sm:$0xf] %vm125_vm9, %v105_v52  ;;  %v113_v35 = vld [vmem:[%s14504_s29 + $0x38] sm:$0xf] }
  0x5e   :  { %140 = vst.msk [vmem:[#allocation6 + $0x70] sm:$0xf] %vm125_vm9, %v113_v35  ;;  %v378_v16 = vrot.slane %v376_v5, 6  ;;  %141 = vst.msk [vmem:[#allocation6 + $0x78] sm:$0xf] %vm125_vm9, %v114_v61  ;;  %v1066_v39 = vrot.slane %v1064_v17, 4  ;;  %v1043_v35 = vsel %vm10131_vm8, %v10520_v57, %v10522_v58 }
  0x5f   :  { %v375_v15 = vrot.slane %v373_v3, 5  ;;  %v1070_v40 = vshll.u32 %v10541_v6, 16  ;;  %v1074_v42 = vshrl.u32 %v10541_v6, 16  ;;  %v9690_v43 = vld [vmem:[%s14513_s26 + $0x38] sm:$0xff]   ;;  %v872_v44 = vld [vmem:[%s14504_s29 + $0x60] sm:$0xf]  ;;  %1536 = vmatpush1.bf16.msra.mxu0 %v9689_v20 }
  0x60   :  { %1163 = vrot.lane.b32.xlu0 %v1013_v46, %s9975_s0  ;;  %v115_v45 = vld [vmem:[%s14504_s29 + $0x40] sm:$0xf]  ;;  %v10639_v46 = vrot.slane %v1047_v29, 4  ;;  %v666_v50 = vrot.slane %v10552_v12, 7  ;;  %v383_v51 = vshrl.u32 %v10561_v21, 16  ;;  %v386_v52 = vshll.u32 %v10561_v21, 16  ;;  %1537 = vmatprep.subr.bf16.mxu0 %v9976_v23 }
  0x61   :  { %473 = vrot.lane.b32.xlu1 %v330_v41, %s9974_s25  ;;  %v174_v41 = vld [vmem:[%s14504_s29 + $0x58] sm:$0xf]  ;;  %142 = vst.msk [vmem:[#allocation6 + $0x80] sm:$0xf] %vm125_vm9, %v115_v45  ;;  %v10657_v55 = vrot.slane %v1060_v36, 5  ;;  %v371_v30 = vrot.slane %v10626_v38, 4 }
  0x62   :  { %v873_v56 = vld [vmem:[%s14504_s29 + $0x64] sm:$0xf]  ;;  %v10665_v63 = vrot.slane %v1057_v14, 4  ;;  %v10671_v4 = vrot.slane %v666_v50, 4  ;;  %v669_v19 = vrot.slane %v10609_v37, 7  ;;  %v10679_v3 = vrot.slane %v1070_v40, 5 }
  0x63   :  { %v1067_v0 = vor.u32 %v1066_v39, %v10657_v55  ;;  %v1076_v5 = vrot.slane %v1074_v42, 4  ;;  %v1084_v6 = vshrl.u32 %v872_v44, 16  ;;  %v9691_v7 = vld [vmem:[%s14513_s26 + $0x40] sm:$0xff]   ;;  %v385_v10 = vrot.slane %v383_v51, 5  ;;  %1538 = vmatpush1.bf16.msra.mxu0 %v9690_v43  ;;  %v10687_v21 = vld [vmem:[%s14504_s29 + $0x5c] sm:$0xf] }
  0x64   :  { %717 = vrot.lane.b32.xlu0 %v655_v53, %s9973_s23  ;;  %v1033_v53 = vsel %vm10131_vm8, %v10441_v24, %v10435_v18  ;;  %v10667_v18 = vor.u32 %v378_v16, %v375_v15  ;;  %v175_v24 = vld [vmem:[%s14504_s29 + $0x5c] sm:$0xf]  ;;  %v388_v11 = vrot.slane %v386_v52, 6  ;;  %v1080_v17 = vshll.u32 %v872_v44, 16  ;;  %1539 = vmatprep.subr.bf16.mxu0 %v9976_v23  ;;  %v116_v29 = vld [vmem:[%s14504_s29 + $0x44] sm:$0xf] }
  0x65   :  { %1165 = vrot.lane.b32.xlu1 %v1023_v27, %s9975_s0  ;;  %v1094_v20 = vshrl.u32 %v873_v56, 16  ;;  %v393_v22 = vshrl.u32 %v174_v41, 16  ;;  %v396_v27 = vshll.u32 %v174_v41, 16  ;;  %143 = vst.msk [vmem:[#allocation6 + $0x88] sm:$0xf] %vm125_vm9, %v116_v29  ;;  %v10706_v36 = vrot.slane %v1067_v0, 4 }
  0x66   :  { %v1077_v8 = vor.u32 %v1076_v5, %v10679_v3  ;;  %v1086_v61 = vrot.slane %v1084_v6, 4  ;;  %v403_v14 = vshrl.u32 %v175_v24, 16  ;;  %v874_v25 = vld [vmem:[%s14504_s29 + $0x68] sm:$0xf]  ;;  %v10712_v26 = vor.u32 %v388_v11, %v385_v10  ;;  %v10719_v58 = vld [vmem:[%s14504_s29 + $0x60] sm:$0xf] }
  0x67   :  { %v10714_v57 = vrot.slane %v1080_v17, 5  ;;  %1540 = vmatpush1.bf16.msra.mxu0 %v9691_v7  ;;  %v9692_v15 = vld [vmem:[%s14513_s26 + $0x48] sm:$0xff]   ;;  %v406_v16 = vshll.u32 %v175_v24, 16  ;;  %v1096_v39 = vrot.slane %v1094_v20, 4  ;;  %v664_v40 = vsel %vm10084_vm2, %v10527_v62, %v663_v28  ;;  %v10742_v49 = vld [vmem:[%s14504_s29 + $0x64] sm:$0xf] }
  0x68   :  { %475 = vrot.lane.b32.xlu0 %v340_v59, %s9974_s25  ;;  %v381_v59 = vrot.slane %v10667_v18, 4  ;;  %v395_v42 = vrot.slane %v393_v22, 5  ;;  %v398_v43 = vrot.slane %v396_v27, 6  ;;  %1541 = vmatprep.subr.bf16.mxu0 %v9976_v23  ;;  %v10733_v44 = vrot.slane %v669_v19, 4  ;;  %v176_v62 = vld [vmem:[%s14504_s29 + $0x60] sm:$0xf] }
  0x69   :  { %719 = vrot.lane.b32.xlu1 %v658_v13, %s9973_s23  ;;  %v1090_v13 = vshll.u32 %v873_v56, 16  ;;  %v672_v45 = vrot.slane %v10687_v21, 7  ;;  %v391_v51 = vrot.slane %v10712_v26, 4  ;;  %v360_v28 = vsel %vm10117_vm7, %v351_v60, %v10547_v9  ;;  %v117_v56 = vld [vmem:[%s14504_s29 + $0x48] sm:$0xf]  ;;  %v9693_v0 = vld [vmem:[%s14513_s26 + $0x50] sm:$0xff]  }
  0x6a   :  { %v10753_v41 = vrot.slane %v1077_v8, 4  ;;  %v408_v24 = vrot.slane %v406_v16, 6  ;;  %v1100_v5 = vshll.u32 %v874_v25, 16  ;;  %v1104_v6 = vshrl.u32 %v874_v25, 16  ;;  %v10766_v60 = vld [vmem:[%s14504_s29 + $0x68] sm:$0xf] }
  0x6b   :  { %v10737_v52 = vrot.slane %v1090_v13, 5  ;;  %1542 = vmatpush1.bf16.msra.mxu0 %v9692_v15  ;;  %v875_v7 = vld [vmem:[%s14504_s29 + $0x6c] sm:$0xf]  ;;  %v177_v10 = vld [vmem:[%s14504_s29 + $0x64] sm:$0xf]  ;;  %v10775_v11 = vor.u32 %v398_v43, %v395_v42  ;;  %v10779_v17 = vrot.slane %v672_v45, 4  ;;  %v1053_v22 = vsel %vm10131_vm8, %v10639_v46, %v10585_v31 }
  0x6c   :  { %1167 = vrot.lane.b32.xlu0 %v1033_v53, %s9975_s0  ;;  %v1087_v53 = vor.u32 %v1086_v61, %v10714_v57  ;;  %144 = vst.msk [vmem:[#allocation6 + $0x90] sm:$0xf] %vm125_vm9, %v117_v56  ;;  %v675_v20 = vrot.slane %v10719_v58, 7  ;;  %1543 = vmatprep.subr.bf16.mxu0 %v9976_v23  ;;  %v370_v27 = vsel %vm10117_vm7, %v361_v34, %v10626_v38  ;;  %v413_v29 = vshrl.u32 %v176_v62, 16  ;;  %v10805_v9 = vld [vmem:[%s14504_s29 + $0x6c] sm:$0xf] }
  0x6d   :  { %477 = vrot.lane.b32.xlu1 %v350_v54, %s9974_s25  ;;  %v405_v54 = vrot.slane %v403_v14, 5  ;;  %v1097_v48 = vor.u32 %v1096_v39, %v10737_v52  ;;  %v401_v13 = vrot.slane %v10775_v11, 4  ;;  %v678_v31 = vrot.slane %v10742_v49, 7  ;;  %v9694_v14 = vld [vmem:[%s14513_s26 + $0x58] sm:$0xff]   ;;  %v118_v42 = vld [vmem:[%s14504_s29 + $0x4c] sm:$0xf] }
  0x6e   :  { %v10799_v8 = vrot.slane %v675_v20, 4  ;;  %v10811_v61 = vrot.slane %v1100_v5, 5  ;;  %v1106_v25 = vrot.slane %v1104_v6, 4  ;;  %v681_v16 = vrot.slane %v10766_v60, 7  ;;  %145 = vst.msk [vmem:[#allocation6 + $0x98] sm:$0xf] %vm125_vm9, %v118_v42 }
  0x6f   :  { %v10807_v34 = vor.u32 %v408_v24, %v405_v54  ;;  %1544 = vmatpush1.bf16.msra.mxu0 %v9693_v0  ;;  %v10809_v46 = vrot.slane %v1097_v48, 4  ;;  %v10819_v15 = vrot.slane %v678_v31, 4  ;;  %v1110_v39 = vshll.u32 %v875_v7, 16  ;;  %v178_v38 = vld [vmem:[%s14504_s29 + $0x68] sm:$0xf] }
  0x70   :  { %721 = vrot.lane.b32.xlu0 %v661_v33, %s9973_s23  ;;  %v416_v33 = vshll.u32 %v176_v62, 16  ;;  %1545 = vmatprep.subr.bf16.mxu0 %v9976_v23  ;;  %v415_v43 = vrot.slane %v413_v29, 5  ;;  %v667_v54 = vsel %vm10084_vm2, %v10620_v1, %v666_v50  ;;  %v1063_v56 = vsel %vm10131_vm8, %v10665_v63, %v10657_v55  ;;  %v10847_v1 = vld [vmem:[%s14504_s29 + $0x70] sm:$0xf] }
  0x71   :  { %1169 = vrot.lane.b32.xlu1 %v1043_v35, %s9975_s0  ;;  %v10794_v35 = vrot.slane %v1087_v53, 4  ;;  %v426_v53 = vshll.u32 %v177_v10, 16  ;;  %v411_v24 = vrot.slane %v10807_v34, 4  ;;  %v1107_v0 = vor.u32 %v1106_v25, %v10811_v61  ;;  %v579_v60 = vld [vmem:[%s14504_s29 + $0x70] sm:$0x3] }
  0x72   :  { %v418_v62 = vrot.slane %v416_v33, 6  ;;  %v10841_v48 = vrot.slane %v681_v16, 4  ;;  %v684_v12 = vrot.slane %v10805_v9, 7  ;;  %v10849_v50 = vrot.slane %v1110_v39, 5  ;;  %v120_v39 = vld [vmem:[%s14504_s29 + $0x54] sm:$0xf] }
  0x73   :  { %1546 = vmatpush1.bf16.msra.mxu0 %v9694_v14  ;;  %v10856_v5 = vrot.slane %v426_v53, 6  ;;  %v10872_v29 = vrot.slane %v1107_v0, 4  ;;  %v1120_v14 = vshll.u32 %v10847_v1, 16  ;;  %v1073_v37 = vsel %vm10131_vm8, %v10706_v36, %v10679_v3  ;;  %147 = vst.msk [vmem:[#allocation6 + $0xa8] sm:$0xf] %vm125_vm9, %v120_v39 }
  0x74   :  { %479 = vrot.lane.b32.xlu0 %v360_v28, %s9974_s25  ;;  %v1114_v28 = vshrl.u32 %v875_v7, 16  ;;  %v10854_v63 = vor.u32 %v418_v62, %v415_v43  ;;  %v380_v7 = vsel %vm10117_vm7, %v371_v30, %v10667_v18  ;;  %v433_v25 = vshrl.u32 %v178_v38, 16 }
  0x75   :  { %723 = vrot.lane.b32.xlu1 %v664_v40, %s9973_s23  ;;  %v423_v40 = vshrl.u32 %v177_v10, 16  ;;  %v119_v10 = vld [vmem:[%s14504_s29 + $0x50] sm:$0xf]  ;;  %v673_v18 = vsel %vm10084_vm2, %v10733_v44, %v672_v45  ;;  %v1083_v36 = vsel %vm10131_vm8, %v10753_v41, %v10714_v57  ;;  %v436_v62 = vshll.u32 %v178_v38, 16  ;;  %v121_v41 = vld [vmem:[%s14504_s29 + $0x58] sm:$0xf] }
  0x76   :  { %v1116_v6 = vrot.slane %v1114_v28, 4  ;;  %v421_v33 = vrot.slane %v10854_v63, 4  ;;  %146 = vst.msk [vmem:[#allocation6 + $0xa0] sm:$0xf] %vm125_vm9, %v119_v10  ;;  %v10919_v45 = vrot.slane %v1120_v14, 5  ;;  %v400_v57 = vsel %vm10117_vm7, %v391_v51, %v10775_v11 }
  0x77   :  { %v10851_v55 = vrot.slane %v423_v40, 5  ;;  %148 = vst.msk [vmem:[#allocation6 + $0xb0] sm:$0xf] %vm125_vm9, %v121_v41  ;;  %v1093_v58 = vsel %vm10131_vm8, %v10794_v35, %v10737_v52  ;;  %v10952_v51 = vld [vmem:[%s14504_s29 + $0x74] sm:$0xf]  ;;  %v438_v10 = vrot.slane %v436_v62, 6 }
  0x78   :  { %1171 = vrot.lane.b32.xlu0 %v1053_v22, %s9975_s0  ;;  %v1117_v42 = vor.u32 %v1116_v6, %v10849_v50  ;;  %v179_v52 = vld [vmem:[%s14504_s29 + $0x6c] sm:$0x1]  ;;  %v122_v35 = vld [vmem:[%s14504_s29 + $0x5c] sm:$0xf] }
  0x79   :  { %481 = vrot.lane.b32.xlu1 %v370_v27, %s9974_s25  ;;  %v670_v27 = vsel %vm10084_vm2, %v10671_v4, %v669_v19  ;;  %v390_v4 = vsel %vm10117_vm7, %v381_v59, %v10712_v26  ;;  %v1124_v19 = vshrl.u32 %v10847_v1, 16  ;;  %v435_v1 = vrot.slane %v433_v25, 5  ;;  %149 = vst.msk [vmem:[#allocation6 + $0xb8] sm:$0xf] %vm125_vm9, %v122_v35 }
  0x7a   :  { %v10917_v44 = vrot.slane %v1117_v42, 4  ;;  %v429_v14 = vor.u32 %v10856_v5, %v10851_v55 }
  0x7c   :  { %725 = vrot.lane.b32.xlu0 %v667_v54, %s9973_s23  ;;  %v676_v54 = vsel %vm10084_vm2, %v10779_v17, %v675_v20  ;;  %v410_v20 = vsel %vm10117_vm7, %v401_v13, %v10807_v34  ;;  %v679_v13 = vsel %vm10084_vm2, %v10799_v8, %v678_v31  ;;  %v443_v8 = vshll.u32 %v179_v52, 16 }
  0x7d   :  { %1173 = vrot.lane.b32.xlu1 %v1063_v56, %s9975_s0  ;;  %v420_v31 = vsel %vm10117_vm7, %v411_v24, %v10854_v63  ;;  %v430_v55 = vsel %vm10117_vm7, %v421_v33, %v429_v14  ;;  %v431_v63 = vrot.slane %v429_v14, 4  ;;  %v1123_v42 = vsel %vm10131_vm8, %v10917_v44, %v10919_v45  ;;  %v1664_v14 = vld [vmem:[%s14460_s4 + $0x10] sm:$0xff] }
  0x80   :  { %v690_v22 = vpop.permute.xlu0 %689  ;;  %483 = vrot.lane.b32.xlu0 %v380_v7, %s9974_s25  ;;  %v1103_v7 = vsel %vm10131_vm8, %v10809_v46, %v10811_v61  ;;  %v123_v46 = vld [vmem:[%s14504_s29 + $0x60] sm:$0xf] }
  0x81   :  { %v741_v30 = vrot.slane %v690_v22, 4  ;;  %727 = vrot.lane.b32.xlu1 %v670_v27, %s9973_s23  ;;  %v1130_v27 = vshll.u32 %v10952_v51, 16  ;;  %150 = vst.msk [vmem:[#allocation6 + $0xc0] sm:$0xf] %vm125_vm9, %v123_v46  ;;  %v1667_v46 = vld [vmem:[%s14460_s4 + $0x28] sm:$0xff] }
  0x83   :  { %v768_v3 = vsel %vm767_vm10, %v741_v30, %v690_v22  ;;  %v1126_v22 = vrot.slane %v1124_v19, 4  ;;  %v682_v30 = vsel %vm10084_vm2, %v10819_v15, %v681_v16  ;;  %v1113_v15 = vsel %vm10131_vm8, %v10872_v29, %v10849_v50 }
  0x84   :  { %1175 = vrot.lane.b32.xlu0 %v1073_v37, %s9975_s0  ;;  %v692_v40 = vpop.permute.xlu0 %691  ;;  %v685_v50 = vsel %vm10084_vm2, %v10841_v48, %v684_v12  ;;  %v686_v29 = vrot.slane %v684_v12, 4  ;;  %v1132_v62 = vrot.slane %v1130_v27, 5  ;;  %v445_v48 = vrot.slane %v443_v8, 6  ;;  %v1663_v27 = vld [vmem:[%s14460_s4 + $0x8] sm:$0xff] }
  0x85   :  { %485 = vrot.lane.b32.xlu1 %v390_v4, %s9974_s25  ;;  %v742_v59 = vrot.slane %v692_v40, 4  ;;  %v1134_v4 = vshrl.u32 %v10952_v51, 16  ;;  %v1127_v5 = vor.u32 %v1126_v22, %v10919_v45 }
  0x87   :  { %v448_v21 = vpop.permute.xlu1 %447  ;;  %v769_v28 = vsel %vm767_vm10, %v742_v59, %v692_v40  ;;  %v124_v40 = vld [vmem:[%s14504_s29 + $0x64] sm:$0x7] }
  0x88   :  { %526 = vst.msk [vmem:[#allocation6] sm:$0xf] %vm525_vm13, %v448_v21  ;;  %729 = vrot.lane.b32.xlu0 %v673_v18, %s9973_s23  ;;  %v439_v18 = vor.u32 %v438_v10, %v435_v1  ;;  %v1136_v21 = vrot.slane %v1134_v4, 4  ;;  %v1665_v10 = vld [vmem:[%s14460_s4 + $0x18] sm:$0xff] }
  0x89   :  { %1177 = vrot.lane.b32.xlu1 %v1083_v36, %s9975_s0  ;;  %823 = vst.msk [vmem:[#allocation6] sm:$0xff] %vm10911_vm15, %v768_v3  ;;  %v687_v3 = vrot.slane %v579_v60, 7  ;;  %v1128_v36 = vrot.slane %v1127_v5, 4  ;;  %v1669_v4 = vld [vmem:[%s14460_s4 + $0x38] sm:$0xff]  ;;  %v1668_v5 = vld [vmem:[%s14460_s4 + $0x30] sm:$0xff] }
  0x8a   :  { %v1140_v53 = vpop.permute.xlu0 %1139  ;;  %152 = vst.msk [vmem:[#allocation6 + $0xc8] sm:$0x7] %vm151_vm3, %v124_v40  ;;  %v440_v44 = vsel %vm10117_vm7, %v431_v63, %v439_v18 }
  0x8b   :  { %1218 = vst.msk [vmem:[#allocation6 + $0x4] sm:$0xf] %vm1217_vm14, %v1140_v53  ;;  %v450_v26 = vpop.permute.xlu1 %449 }
  0x8c   :  { %527 = vst.msk [vmem:[#allocation6 + $0x8] sm:$0xf] %vm525_vm13, %v450_v26  ;;  %487 = vrot.lane.b32.xlu0 %v400_v57, %s9974_s25  ;;  %v441_v57 = vrot.slane %v439_v18, 4 }
  0x8d   :  { %824 = vst.msk [vmem:[#allocation6 + $0x8] sm:$0xff] %vm10911_vm15, %v769_v28  ;;  %731 = vrot.lane.b32.xlu1 %v676_v54, %s9973_s23  ;;  %v688_v28 = vsel %vm10084_vm2, %v686_v29, %v687_v3  ;;  %v1670_v3 = vld [vmem:[%s14460_s4 + $0x40] sm:$0xff] }
  0x8e   :  { %v694_v17 = vpop.permute.xlu0 %693 }
  0x8f   :  { %v743_v56 = vrot.slane %v694_v17, 4  ;;  %v1142_v0 = vpop.permute.xlu1 %1141 }
  0x90   :  { %1219 = vst.msk [vmem:[#allocation6 + $0xc] sm:$0xf] %vm1217_vm14, %v1142_v0  ;;  %1179 = vrot.lane.b32.xlu0 %v1093_v58, %s9975_s0  ;;  %v446_v0 = vsel %vm10117_vm7, %v441_v57, %v445_v48  ;;  %v1675_v48 = vld [vmem:[%s14460_s4 + $0x68] sm:$0xff] }
  0x91   :  { %v770_v11 = vsel %vm767_vm10, %v743_v56, %v694_v17  ;;  %489 = vrot.lane.b32.xlu1 %v410_v20, %s9974_s25  ;;  %v1133_v17 = vsel %vm10131_vm8, %v1128_v36, %v1132_v62  ;;  %v1137_v20 = vor.u32 %v1136_v21, %v1132_v62 }
  0x92   :  { %v452_v6 = vpop.permute.xlu0 %451 }
  0x93   :  { %528 = vst.msk [vmem:[#allocation6 + $0x10] sm:$0xf] %vm525_vm13, %v452_v6  ;;  %v696_v38 = vpop.permute.xlu1 %695 }
  0x94   :  { %825 = vst.msk [vmem:[#allocation6 + $0x10] sm:$0xff] %vm10911_vm15, %v770_v11  ;;  %v744_v49 = vrot.slane %v696_v38, 4  ;;  %733 = vrot.lane.b32.xlu0 %v679_v13, %s9973_s23  ;;  %v9695_v24 = vld [vmem:[#allocation6] ss:$8 sps:$4 sm:$0xff]   ;;  %v1138_v11 = vrot.slane %v1137_v20, 4  ;;  %v1662_v13 = vld [vmem:[%s14460_s4] sm:$0xff] }
  0x95   :  { %1181 = vrot.lane.b32.xlu1 %v1103_v7, %s9975_s0 }
  0x96   :  { %v1144_v61 = vpop.permute.xlu0 %1143  ;;  %v771_v19 = vsel %vm767_vm10, %v744_v49, %v696_v38 }
  0x97   :  { %1220 = vst.msk [vmem:[#allocation6 + $0x14] sm:$0xf] %vm1217_vm14, %v1144_v61  ;;  %v454_v34 = vpop.permute.xlu1 %453  ;;  %v9697_v37 = vld [vmem:[#allocation6 + $0x4] ss:$8 sps:$4 sm:$0xff]  }
  0x98   :  { %529 = vst.msk [vmem:[#allocation6 + $0x18] sm:$0xf] %vm525_vm13, %v454_v34  ;;  %491 = vrot.lane.b32.xlu0 %v420_v31, %s9974_s25  ;;  %8876 = vmatprep.mubr.msk.bf16.mxu0 %vm14497_vm1, %v9697_v37 }
  0x99   :  { %826 = vst.msk [vmem:[#allocation6 + $0x18] sm:$0xff] %vm10911_vm15, %v771_v19  ;;  %735 = vrot.lane.b32.xlu1 %v682_v30, %s9973_s23  ;;  %1556 = vmatmul.mubr.bf16.vlgmr.msra.gmra.mrb[0].mxu0 %v9695_v24 }
  0x9a   :  { %v698_v16 = vpop.permute.xlu0 %697 }
  0x9b   :  { %v745_v25 = vrot.slane %v698_v16, 4  ;;  %v1146_v39 = vpop.permute.xlu1 %1145 }
  0x9c   :  { %1221 = vst.msk [vmem:[#allocation6 + $0x1c] sm:$0xf] %vm1217_vm14, %v1146_v39  ;;  %1183 = vrot.lane.b32.xlu0 %v1113_v15, %s9975_s0  ;;  %v1666_v15 = vld [vmem:[%s14460_s4 + $0x20] sm:$0xff] }
  0x9d   :  { %v772_v33 = vsel %vm767_vm10, %v745_v25, %v698_v16  ;;  %493 = vrot.lane.b32.xlu1 %v430_v55, %s9974_s25  ;;  %v1671_v25 = vld [vmem:[%s14460_s4 + $0x48] sm:$0xff] }
  0x9e   :  { %v456_v59 = vpop.permute.xlu0 %455  ;;  %v1247_v45 = vld [vmem:[#allocation6 + $0x10] sm:$0xff] }
  0x9f   :  { %530 = vst.msk [vmem:[#allocation6 + $0x20] sm:$0xf] %vm525_vm13, %v456_v59  ;;  %v700_v9 = vpop.permute.xlu1 %699 }
  0xa0   :  { %827 = vst.msk [vmem:[#allocation6 + $0x20] sm:$0xff] %vm10911_vm15, %v772_v33  ;;  %v746_v12 = vrot.slane %v700_v9, 4  ;;  %737 = vrot.lane.b32.xlu0 %v685_v50, %s9973_s23  ;;  %v1673_v33 = vld [vmem:[%s14460_s4 + $0x58] sm:$0xff] }
  0xa1   :  { %1185 = vrot.lane.b32.xlu1 %v1123_v42, %s9975_s0 }
  0xa2   :  { %v1148_v41 = vpop.permute.xlu0 %1147  ;;  %v773_v58 = vsel %vm767_vm10, %v746_v12, %v700_v9  ;;  %v1672_v12 = vld [vmem:[%s14460_s4 + $0x50] sm:$0xff] }
  0xa3   :  { %1222 = vst.msk [vmem:[#allocation6 + $0x24] sm:$0xf] %vm1217_vm14, %v1148_v41  ;;  %v458_v53 = vpop.permute.xlu1 %457  ;;  %v1248_v54 = vld [vmem:[#allocation6 + $0x18] sm:$0xff]  ;;  %v1677_v41 = vld [vmem:[%s14460_s4 + $0x78] sm:$0xff] }
  0xa4   :  { %v9698_v26 = vld [vmem:[#allocation6 + $0x14] ss:$8 sps:$4 sm:$0xff]   ;;  %531 = vst.msk [vmem:[#allocation6 + $0x28] sm:$0xf] %vm525_vm13, %v458_v53  ;;  %495 = vrot.lane.b32.xlu0 %v440_v44, %s9974_s25  ;;  %v8840_v51 = vcombine.low %v1247_v45, %v1248_v54  ;;  %v1674_v45 = vld [vmem:[%s14460_s4 + $0x60] sm:$0xff] }
  0xa5   :  { %828 = vst.msk [vmem:[#allocation6 + $0x28] sm:$0xff] %vm10911_vm15, %v773_v58  ;;  %739 = vrot.lane.b32.xlu1 %v688_v28, %s9973_s23  ;;  %8877 = vmatprep.mubr.msk.bf16.mxu0 %vm14497_vm1, %v9698_v26 }
  0xa6   :  { %v702_v56 = vpop.permute.xlu0 %701  ;;  %1564 = vmatmul.mubr.bf16.gmra.mrb[4].mxu0 %v8840_v51  ;;  %v1679_v51 = vld [vmem:[%s14460_s4 + $0x88] sm:$0xff] }
  0xa7   :  { %v747_v1 = vrot.slane %v702_v56, 4  ;;  %v1150_v52 = vpop.permute.xlu1 %1149 }
  0xa8   :  { %1223 = vst.msk [vmem:[#allocation6 + $0x2c] sm:$0xf] %vm1217_vm14, %v1150_v52  ;;  %1187 = vrot.lane.b32.xlu0 %v1133_v17, %s9975_s0 }
  0xa9   :  { %v774_v35 = vsel %vm767_vm10, %v747_v1, %v702_v56  ;;  %497 = vrot.lane.b32.xlu1 %v446_v0, %s9974_s25  ;;  %v1676_v56 = vld [vmem:[%s14460_s4 + $0x70] sm:$0xff] }
  0xaa   :  { %v460_v6 = vpop.permute.xlu0 %459  ;;  %v1249_v49 = vld [vmem:[#allocation6 + $0x20] sm:$0xff] }
  0xab   :  { %532 = vst.msk [vmem:[#allocation6 + $0x30] sm:$0xf] %vm525_vm13, %v460_v6  ;;  %v704_v32 = vpop.permute.xlu1 %703  ;;  %v1678_v6 = vld [vmem:[%s14460_s4 + $0x80] sm:$0xff] }
  0xac   :  { %829 = vst.msk [vmem:[#allocation6 + $0x30] sm:$0xff] %vm10911_vm15, %v774_v35  ;;  %v748_v7 = vrot.slane %v704_v32, 4  ;;  %1690 = vperm.xlu0 %9681, %v1662_v13   ;;  %v1681_v35 = vld [vmem:[%s14460_s4 + $0x98] sm:$0xff] }
  0xad   :  { %1189 = vrot.lane.b32.xlu1 %v1138_v11, %s9975_s0 }
  0xae   :  { %v1152_v22 = vpop.permute.xlu0 %1151  ;;  %v775_v61 = vsel %vm767_vm10, %v748_v7, %v704_v32 }
  0xaf   :  { %1224 = vst.msk [vmem:[#allocation6 + $0x34] sm:$0xf] %vm1217_vm14, %v1152_v22  ;;  %v462_v38 = vpop.permute.xlu1 %461  ;;  %v1250_v8 = vld [vmem:[#allocation6 + $0x28] sm:$0xff]  ;;  %v1683_v22 = vld [vmem:[%s14460_s4 + $0xa8] sm:$0xff] }
  0xb0   :  { %v9700_v31 = vld [vmem:[#allocation6 + $0x24] ss:$8 sps:$4 sm:$0xff]   ;;  %533 = vst.msk [vmem:[#allocation6 + $0x38] sm:$0xf] %vm525_vm13, %v462_v38  ;;  %v8842_v30 = vcombine.low %v1249_v49, %v1250_v8  ;;  %1705 = vperm.xlu0 %9681, %v1665_v10   ;;  %v1680_v10 = vld [vmem:[%s14460_s4 + $0x90] sm:$0xff] }
  0xb1   :  { %830 = vst.msk [vmem:[#allocation6 + $0x38] sm:$0xff] %vm10911_vm15, %v775_v61  ;;  %8878 = vmatprep.mubr.msk.bf16.mxu0 %vm14497_vm1, %v9700_v31  ;;  %1695 = vperm.xlu1 %9682, %v1663_v27  }
  0xb2   :  { %v706_v34 = vpop.permute.xlu0 %705  ;;  %1572 = vmatmul.mubr.bf16.gmra.mrb[8].mxu0 %v8842_v30 }
  0xb3   :  { %v749_v24 = vrot.slane %v706_v34, 4  ;;  %v1154_v37 = vpop.permute.xlu1 %1153 }
  0xb4   :  { %1225 = vst.msk [vmem:[#allocation6 + $0x3c] sm:$0xf] %vm1217_vm14, %v1154_v37  ;;  %1715 = vperm.xlu0 %9681, %v1667_v46   ;;  %v1685_v46 = vld [vmem:[%s14460_s4 + $0xb8] sm:$0xff] }
  0xb5   :  { %v776_v19 = vsel %vm767_vm10, %v749_v24, %v706_v34  ;;  %1700 = vperm.xlu1 %9682, %v1664_v14   ;;  %v1682_v14 = vld [vmem:[%s14460_s4 + $0xa0] sm:$0xff] }
  0xb6   :  { %v464_v60 = vpop.permute.xlu0 %463  ;;  %v1251_v39 = vld [vmem:[#allocation6 + $0x30] sm:$0xff] }
  0xb7   :  { %534 = vst.msk [vmem:[#allocation6 + $0x40] sm:$0xf] %vm525_vm13, %v464_v60  ;;  %v708_v16 = vpop.permute.xlu1 %707 }
  0xb8   :  { %831 = vst.msk [vmem:[#allocation6 + $0x40] sm:$0xff] %vm10911_vm15, %v776_v19  ;;  %v750_v55 = vrot.slane %v708_v16, 4  ;;  %1725 = vperm.xlu0 %9681, %v1669_v4   ;;  %v1687_v4 = vld [vmem:[%s14460_s4 + $0xc8] sm:$0x3f] }
  0xb9   :  { %1710 = vperm.xlu1 %9682, %v1666_v15   ;;  %v1684_v15 = vld [vmem:[%s14460_s4 + $0xb0] sm:$0xff] }
  0xba   :  { %v1156_v40 = vpop.permute.xlu0 %1155  ;;  %v777_v42 = vsel %vm767_vm10, %v750_v55, %v708_v16 }
  0xbb   :  { %1226 = vst.msk [vmem:[#allocation6 + $0x44] sm:$0xf] %vm1217_vm14, %v1156_v40  ;;  %v466_v50 = vpop.permute.xlu1 %465  ;;  %v1252_v63 = vld [vmem:[#allocation6 + $0x38] sm:$0xff] }
  0xbc   :  { %v9702_v29 = vld [vmem:[#allocation6 + $0x34] ss:$8 sps:$4 sm:$0xff]   ;;  %535 = vst.msk [vmem:[#allocation6 + $0x48] sm:$0xf] %vm525_vm13, %v466_v50  ;;  %v8844_v18 = vcombine.low %v1251_v39, %v1252_v63  ;;  %1735 = vperm.xlu0 %9681, %v1671_v25  }
  0xbd   :  { %832 = vst.msk [vmem:[#allocation6 + $0x48] sm:$0xff] %vm10911_vm15, %v777_v42  ;;  %8879 = vmatprep.mubr.msk.bf16.mxu0 %vm14497_vm1, %v9702_v29  ;;  %1720 = vperm.xlu1 %9682, %v1668_v5   ;;  %v1686_v5 = vld [vmem:[%s14460_s4 + $0xc0] sm:$0xff] }
  0xbe   :  { %v710_v59 = vpop.permute.xlu0 %709  ;;  %1580 = vmatmul.mubr.bf16.gmra.mrb[12].mxu0 %v8844_v18 }
  0xbf   :  { %v751_v36 = vrot.slane %v710_v59, 4  ;;  %v1158_v62 = vpop.permute.xlu1 %1157 }
  0xc0   :  { %1227 = vst.msk [vmem:[#allocation6 + $0x4c] sm:$0xf] %vm1217_vm14, %v1158_v62  ;;  %1745 = vperm.xlu0 %9681, %v1673_v33  }
  0xc1   :  { %v778_v21 = vsel %vm767_vm10, %v751_v36, %v710_v59  ;;  %1730 = vperm.xlu1 %9682, %v1670_v3  }
  0xc2   :  { %v468_v9 = vpop.permute.xlu0 %467  ;;  %v1253_v28 = vld [vmem:[#allocation6 + $0x40] sm:$0xff] }
  0xc3   :  { %536 = vst.msk [vmem:[#allocation6 + $0x50] sm:$0xf] %vm525_vm13, %v468_v9  ;;  %v712_v57 = vpop.permute.xlu1 %711 }
  0xc4   :  { %833 = vst.msk [vmem:[#allocation6 + $0x50] sm:$0xff] %vm10911_vm15, %v778_v21  ;;  %v752_v44 = vrot.slane %v712_v57, 4  ;;  %1755 = vperm.xlu0 %9681, %v1675_v48  }
  0xc5   :  { %1740 = vperm.xlu1 %9682, %v1672_v12  }
  0xc6   :  { %v1160_v53 = vpop.permute.xlu0 %1159  ;;  %v779_v17 = vsel %vm767_vm10, %v752_v44, %v712_v57 }
  0xc7   :  { %1228 = vst.msk [vmem:[#allocation6 + $0x54] sm:$0xf] %vm1217_vm14, %v1160_v53  ;;  %v470_v54 = vpop.permute.xlu1 %469  ;;  %v1254_v26 = vld [vmem:[#allocation6 + $0x48] sm:$0xff] }
  0xc8   :  { %v9704_v58 = vld [vmem:[#allocation6 + $0x44] ss:$8 sps:$4 sm:$0xff]   ;;  %537 = vst.msk [vmem:[#allocation6 + $0x58] sm:$0xf] %vm525_vm13, %v470_v54  ;;  %v8846_v20 = vcombine.low %v1253_v28, %v1254_v26  ;;  %1765 = vperm.xlu0 %9681, %v1677_v41  }
  0xc9   :  { %834 = vst.msk [vmem:[#allocation6 + $0x58] sm:$0xff] %vm10911_vm15, %v779_v17  ;;  %8880 = vmatprep.mubr.msk.bf16.mxu0 %vm14497_vm1, %v9704_v58  ;;  %1750 = vperm.xlu1 %9682, %v1674_v45  }
  0xca   :  { %v714_v0 = vpop.permute.xlu0 %713  ;;  %1588 = vmatmul.mubr.bf16.gmra.mrb[16].mxu0 %v8846_v20 }
  0xcb   :  { %v753_v1 = vrot.slane %v714_v0, 4  ;;  %v1162_v52 = vpop.permute.xlu1 %1161 }
  0xcc   :  { %1229 = vst.msk [vmem:[#allocation6 + $0x5c] sm:$0xf] %vm1217_vm14, %v1162_v52  ;;  %1775 = vperm.xlu0 %9681, %v1679_v51  }
  0xcd   :  { %v780_v11 = vsel %vm767_vm10, %v753_v1, %v714_v0  ;;  %1760 = vperm.xlu1 %9682, %v1676_v56  }
  0xce   :  { %v472_v13 = vpop.permute.xlu0 %471  ;;  %v1255_v27 = vld [vmem:[#allocation6 + $0x50] sm:$0xff] }
  0xcf   :  { %538 = vst.msk [vmem:[#allocation6 + $0x60] sm:$0xf] %vm525_vm13, %v472_v13  ;;  %v716_v32 = vpop.permute.xlu1 %715 }
  0xd0   :  { %835 = vst.msk [vmem:[#allocation6 + $0x60] sm:$0xff] %vm10911_vm15, %v780_v11  ;;  %v754_v7 = vrot.slane %v716_v32, 4  ;;  %1785 = vperm.xlu0 %9681, %v1681_v35  }
  0xd1   :  { %1770 = vperm.xlu1 %9682, %v1678_v6  }
  0xd2   :  { %v1164_v38 = vpop.permute.xlu0 %1163  ;;  %v781_v61 = vsel %vm767_vm10, %v754_v7, %v716_v32 }
  0xd3   :  { %1230 = vst.msk [vmem:[#allocation6 + $0x64] sm:$0xf] %vm1217_vm14, %v1164_v38  ;;  %v474_v49 = vpop.permute.xlu1 %473  ;;  %v1256_v8 = vld [vmem:[#allocation6 + $0x58] sm:$0xff] }
  0xd4   :  { %v9706_v31 = vld [vmem:[#allocation6 + $0x54] ss:$8 sps:$4 sm:$0xff]   ;;  %539 = vst.msk [vmem:[#allocation6 + $0x68] sm:$0xf] %vm525_vm13, %v474_v49  ;;  %v8848_v30 = vcombine.low %v1255_v27, %v1256_v8  ;;  %1795 = vperm.xlu0 %9681, %v1683_v22  }
  0xd5   :  { %836 = vst.msk [vmem:[#allocation6 + $0x68] sm:$0xff] %vm10911_vm15, %v781_v61  ;;  %8881 = vmatprep.mubr.msk.bf16.mxu0 %vm14497_vm1, %v9706_v31  ;;  %1780 = vperm.xlu1 %9682, %v1680_v10  }
  0xd6   :  { %v718_v34 = vpop.permute.xlu0 %717  ;;  %1596 = vmatmul.mubr.bf16.gmra.mrb[20].mxu0 %v8848_v30 }
  0xd7   :  { %v755_v24 = vrot.slane %v718_v34, 4  ;;  %v1166_v37 = vpop.permute.xlu1 %1165 }
  0xd8   :  { %1231 = vst.msk [vmem:[#allocation6 + $0x6c] sm:$0xf] %vm1217_vm14, %v1166_v37  ;;  %1805 = vperm.xlu0 %9681, %v1685_v46  }
  0xd9   :  { %v782_v19 = vsel %vm767_vm10, %v755_v24, %v718_v34  ;;  %1790 = vperm.xlu1 %9682, %v1682_v14  }
  0xda   :  { %v476_v60 = vpop.permute.xlu0 %475  ;;  %v1257_v25 = vld [vmem:[#allocation6 + $0x60] sm:$0xff] }
  0xdb   :  { %540 = vst.msk [vmem:[#allocation6 + $0x70] sm:$0xf] %vm525_vm13, %v476_v60  ;;  %v720_v16 = vpop.permute.xlu1 %719 }
  0xdc   :  { %837 = vst.msk [vmem:[#allocation6 + $0x70] sm:$0xff] %vm10911_vm15, %v782_v19  ;;  %v756_v55 = vrot.slane %v720_v16, 4  ;;  %1815 = vperm.xlu0 %9681, %v1687_v4  }
  0xdd   :  { %1800 = vperm.xlu1 %9682, %v1684_v15  }
  0xde   :  { %v1168_v39 = vpop.permute.xlu0 %1167  ;;  %v783_v29 = vsel %vm767_vm10, %v756_v55, %v720_v16 }
  0xdf   :  { %1232 = vst.msk [vmem:[#allocation6 + $0x74] sm:$0xf] %vm1217_vm14, %v1168_v39  ;;  %v478_v40 = vpop.permute.xlu1 %477  ;;  %v1258_v50 = vld [vmem:[#allocation6 + $0x68] sm:$0xff] }
  0xe0   :  { %v9708_v63 = vld [vmem:[#allocation6 + $0x64] ss:$8 sps:$4 sm:$0xff]   ;;  %541 = vst.msk [vmem:[#allocation6 + $0x78] sm:$0xf] %vm525_vm13, %v478_v40  ;;  %v8850_v33 = vcombine.low %v1257_v25, %v1258_v50 }
  0xe1   :  { %838 = vst.msk [vmem:[#allocation6 + $0x78] sm:$0xff] %vm10911_vm15, %v783_v29  ;;  %8882 = vmatprep.mubr.msk.bf16.mxu0 %vm14497_vm1, %v9708_v63  ;;  %1810 = vperm.xlu1 %9682, %v1686_v5  }
  0xe2   :  { %v722_v42 = vpop.permute.xlu0 %721  ;;  %1604 = vmatmul.mubr.bf16.gmra.mrb[24].mxu0 %v8850_v33 }
  0xe3   :  { %v757_v18 = vrot.slane %v722_v42, 4  ;;  %v1170_v3 = vpop.permute.xlu1 %1169 }
  0xe4   :  { %1233 = vst.msk [vmem:[#allocation6 + $0x7c] sm:$0xf] %vm1217_vm14, %v1170_v3 }
  0xe5   :  { %v784_v59 = vsel %vm767_vm10, %v757_v18, %v722_v42 }
  0xe6   :  { %v480_v36 = vpop.permute.xlu0 %479 }
  0xe7   :  { %542 = vst.msk [vmem:[#allocation6 + $0x80] sm:$0xf] %vm525_vm13, %v480_v36  ;;  %v724_v62 = vpop.permute.xlu1 %723 }
  0xe8   :  { %839 = vst.msk [vmem:[#allocation6 + $0x80] sm:$0xff] %vm10911_vm15, %v784_v59  ;;  %v758_v48 = vrot.slane %v724_v62, 4 }
  0xe9   :  { %23 = vsyncpa [#allocation9], 0  ;;  %v1259_v12 = vld [vmem:[#allocation6 + $0x70] sm:$0xff]  ;;  %vm848_vm4 = vcmask 1043200   ;;  %vm849_vm6 = vcmask 129028   ;;  %vm551_vm7 = vcmask 780672  }
  0xea   :  { %v1172_v21 = vpop.permute.xlu0 %1171  ;;  %v785_v45 = vsel %vm767_vm10, %v758_v48, %v724_v62  ;;  %vm850_vm9 = vmor %vm849_vm6, %vm848_vm4  ;;  %vm1243_vm11 = vcmask 518272   ;;  %vm70_vm12 = vcmask 522240   ;;  %s14530_s0 = sld [smem:[#allocation29_spill]]  ;;  %vm2576_vm3 = vcmask 519171   ;;  %s9978_s1 = smov 64  }
  0xeb   :  { %1234 = vst.msk [vmem:[#allocation6 + $0x84] sm:$0xf] %vm1217_vm14, %v1172_v21  ;;  %v482_v9 = vpop.permute.xlu1 %481  ;;  %v1260_v57 = vld [vmem:[#allocation6 + $0x78] sm:$0xff]  ;;  %vm2577_vm4 = vsmask.f32 7950 }
  0xec   :  { %v9710_v44 = vld [vmem:[#allocation6 + $0x74] ss:$8 sps:$4 sm:$0xff]   ;;  %543 = vst.msk [vmem:[#allocation6 + $0x88] sm:$0xf] %vm525_vm13, %v482_v9  ;;  %v8852_v41 = vcombine.low %v1259_v12, %v1260_v57  ;;  %vm2583_vm6 = vsmask.f32 1280  ;;  %vm11903_vm5 = vmand %vm2576_vm3, %vm2577_vm4 }
  0xed   :  { %840 = vst.msk [vmem:[#allocation6 + $0x88] sm:$0xff] %vm10911_vm15, %v785_v45  ;;  %8883 = vmatprep.mubr.msk.bf16.mxu0 %vm14497_vm1, %v9710_v44  ;;  %vm2633_vm0 = vsmask.f32 3334 }
  0xee   :  { %v726_v28 = vpop.permute.xlu0 %725  ;;  %1612 = vmatmul.mubr.bf16.gmra.mrb[28].mxu0 %v8852_v41 }
  0xef   :  { %v759_v53 = vrot.slane %v726_v28, 4  ;;  %v1174_v54 = vpop.permute.xlu1 %1173 }
  0xf0   :  { %1235 = vst.msk [vmem:[#allocation6 + $0x8c] sm:$0xf] %vm1217_vm14, %v1174_v54 }
  0xf1   :  { %v786_v26 = vsel %vm767_vm10, %v759_v53, %v726_v28 }
  0xf2   :  { %v484_v58 = vpop.permute.xlu0 %483  ;;  %v1261_v0 = vld [vmem:[#allocation6 + $0x80] sm:$0xff] }
  0xf3   :  { %544 = vst.msk [vmem:[#allocation6 + $0x90] sm:$0xf] %vm525_vm13, %v484_v58  ;;  %v728_v51 = vpop.permute.xlu1 %727 }
  0xf4   :  { %841 = vst.msk [vmem:[#allocation6 + $0x90] sm:$0xff] %vm10911_vm15, %v786_v26  ;;  %v760_v17 = vrot.slane %v728_v51, 4 }
  0xf6   :  { %v1176_v20 = vpop.permute.xlu0 %1175  ;;  %v787_v35 = vsel %vm767_vm10, %v760_v17, %v728_v51 }
  0xf7   :  { %1236 = vst.msk [vmem:[#allocation6 + $0x94] sm:$0xf] %vm1217_vm14, %v1176_v20  ;;  %v486_v56 = vpop.permute.xlu1 %485  ;;  %v1262_v1 = vld [vmem:[#allocation6 + $0x88] sm:$0xff] }
  0xf8   :  { %v9712_v52 = vld [vmem:[#allocation6 + $0x84] ss:$8 sps:$4 sm:$0xff]   ;;  %545 = vst.msk [vmem:[#allocation6 + $0x98] sm:$0xf] %vm525_vm13, %v486_v56  ;;  %v8854_v11 = vcombine.low %v1261_v0, %v1262_v1 }
  0xf9   :  { %842 = vst.msk [vmem:[#allocation6 + $0x98] sm:$0xff] %vm10911_vm15, %v787_v35  ;;  %8884 = vmatprep.mubr.msk.bf16.mxu0 %vm14497_vm1, %v9712_v52 }
  0xfa   :  { %v730_v13 = vpop.permute.xlu0 %729  ;;  %1620 = vmatmul.mubr.bf16.gmra.mrb[32].mxu0 %v8854_v11 }
  0xfb   :  { %v761_v6 = vrot.slane %v730_v13, 4  ;;  %v1178_v32 = vpop.permute.xlu1 %1177 }
  0xfc   :  { %1237 = vst.msk [vmem:[#allocation6 + $0x9c] sm:$0xf] %vm1217_vm14, %v1178_v32 }
  0xfd   :  { %v788_v7 = vsel %vm767_vm10, %v761_v6, %v730_v13 }
  0xfe   :  { %v488_v10 = vpop.permute.xlu0 %487  ;;  %v1263_v8 = vld [vmem:[#allocation6 + $0x90] sm:$0xff] }
  0xff   :  { %546 = vst.msk [vmem:[#allocation6 + $0xa0] sm:$0xf] %vm525_vm13, %v488_v10  ;;  %v732_v22 = vpop.permute.xlu1 %731 }
 0x100   :  { %843 = vst.msk [vmem:[#allocation6 + $0xa0] sm:$0xff] %vm10911_vm15, %v788_v7  ;;  %v762_v27 = vrot.slane %v732_v22, 4 }
 0x102   :  { %v1180_v38 = vpop.permute.xlu0 %1179  ;;  %v789_v61 = vsel %vm767_vm10, %v762_v27, %v732_v22 }
 0x103   :  { %1238 = vst.msk [vmem:[#allocation6 + $0xa4] sm:$0xf] %vm1217_vm14, %v1180_v38  ;;  %v490_v49 = vpop.permute.xlu1 %489  ;;  %v1264_v31 = vld [vmem:[#allocation6 + $0x98] sm:$0xff] }
 0x104   :  { %v9714_v46 = vld [vmem:[#allocation6 + $0x94] ss:$8 sps:$4 sm:$0xff]   ;;  %547 = vst.msk [vmem:[#allocation6 + $0xa8] sm:$0xf] %vm525_vm13, %v490_v49  ;;  %v8856_v30 = vcombine.low %v1263_v8, %v1264_v31 }
 0x105   :  { %844 = vst.msk [vmem:[#allocation6 + $0xa8] sm:$0xff] %vm10911_vm15, %v789_v61  ;;  %8885 = vmatprep.mubr.msk.bf16.mxu0 %vm14497_vm1, %v9714_v46 }
 0x106   :  { %v734_v14 = vpop.permute.xlu0 %733  ;;  %1628 = vmatmul.mubr.bf16.gmra.mrb[36].mxu0 %v8856_v30 }
 0x107   :  { %v763_v34 = vrot.slane %v734_v14, 4  ;;  %v1182_v24 = vpop.permute.xlu1 %1181 }
 0x108   :  { %1239 = vst.msk [vmem:[#allocation6 + $0xac] sm:$0xf] %vm1217_vm14, %v1182_v24 }
 0x109   :  { %v790_v37 = vsel %vm767_vm10, %v763_v34, %v734_v14 }
 0x10a   :  { %v492_v4 = vpop.permute.xlu0 %491  ;;  %v1265_v55 = vld [vmem:[#allocation6 + $0xa0] sm:$0xff] }
 0x10b   :  { %548 = vst.msk [vmem:[#allocation6 + $0xb0] sm:$0xf] %vm525_vm13, %v492_v4  ;;  %v736_v19 = vpop.permute.xlu1 %735 }
 0x10c   :  { %845 = vst.msk [vmem:[#allocation6 + $0xb0] sm:$0xff] %vm10911_vm15, %v790_v37  ;;  %v764_v60 = vrot.slane %v736_v19, 4 }
 0x10e   :  { %v1184_v15 = vpop.permute.xlu0 %1183  ;;  %v791_v39 = vsel %vm767_vm10, %v764_v60, %v736_v19  ;;  %v9977_v19 = vmov 0.0  }
 0x10f   :  { %1240 = vst.msk [vmem:[#allocation6 + $0xb4] sm:$0xf] %vm1217_vm14, %v1184_v15  ;;  %v494_v16 = vpop.permute.xlu1 %493  ;;  %v1266_v5 = vld [vmem:[#allocation6 + $0xa8] sm:$0xff] }
 0x110   :  { %v9716_v25 = vld [vmem:[#allocation6 + $0xa4] ss:$8 sps:$4 sm:$0xff]   ;;  %549 = vst.msk [vmem:[#allocation6 + $0xb8] sm:$0xf] %vm525_vm13, %v494_v16  ;;  %v8858_v40 = vcombine.low %v1265_v55, %v1266_v5 }
 0x111   :  { %846 = vst.msk [vmem:[#allocation6 + $0xb8] sm:$0xff] %vm10911_vm15, %v791_v39  ;;  %8886 = vmatprep.mubr.msk.bf16.mxu0 %vm14497_vm1, %v9716_v25 }
 0x112   :  { %v738_v50 = vpop.permute.xlu0 %737  ;;  %1636 = vmatmul.mubr.bf16.gmra.mrb[40].mxu0 %v8858_v40  ;;  %62 = vst.msk [vmem:[#allocation2] sm:$0xff] %vm14497_vm1, %v9977_v19  ;;  %65 = vst.msk [vmem:[#allocation2 + $0xd9] sm:$0xff] %vm14497_vm1, %v9977_v19 }
 0x113   :  { %v765_v63 = vrot.slane %v738_v50, 4  ;;  %v1186_v29 = vpop.permute.xlu1 %1185  ;;  %66 = vst.msk [vmem:[#allocation2 + $0xe1] sm:$0xff] %vm14497_vm1, %v9977_v19  ;;  %67 = vst.msk [vmem:[#allocation2 + $0xe9] sm:$0xff] %vm14497_vm1, %v9977_v19 }
 0x114   :  { %1241 = vst.msk [vmem:[#allocation6 + $0xbc] sm:$0xf] %vm1217_vm14, %v1186_v29 }
 0x115   :  { %v792_v33 = vsel %vm767_vm10, %v765_v63, %v738_v50  ;;  %68 = vst.msk [vmem:[#allocation2 + $0xf1] sm:$0xff] %vm14497_vm1, %v9977_v19  ;;  %69 = vst.msk [vmem:[#allocation2 + $0xf9] sm:$0xff] %vm14497_vm1, %v9977_v19 }
 0x116   :  { %v496_v42 = vpop.permute.xlu0 %495  ;;  %v1267_v62 = vld [vmem:[#allocation6 + $0xb0] sm:$0xff]  ;;  %71 = vst.msk [vmem:[#allocation2 + $0x101] sm:$0x7f] %vm70_vm12, %v9977_v19  ;;  %vm2612_vm12 = vsmask.f32 256 }
 0x117   :  { %550 = vst.msk [vmem:[#allocation6 + $0xc0] sm:$0xf] %vm525_vm13, %v496_v42  ;;  %v740_v18 = vpop.permute.xlu1 %739  ;;  %vm14495_vm13 = vcmask 519168  }
 0x118   :  { %847 = vst.msk [vmem:[#allocation6 + $0xc0] sm:$0xff] %vm10911_vm15, %v792_v33  ;;  %v766_v3 = vrot.slane %v740_v18, 4  ;;  %vm1893_vm15 = vcmask 521216  }
 0x119   :  { %73 = vst.msk [vmem:[#allocation3] sm:$0xf] %vm14495_vm13, %v9976_v23  ;;  %74 = vst.msk [vmem:[#allocation3 + $0x4] sm:$0xf] %vm14495_vm13, %v9976_v23 }
 0x11a   :  { %v1188_v59 = vpop.permute.xlu0 %1187  ;;  %v793_v9 = vsel %vm767_vm10, %v766_v3, %v740_v18  ;;  %vm63_vm10 = vcmask 518144   ;;  %75 = vst.msk [vmem:[#allocation3 + $0x8] sm:$0xf] %vm14495_vm13, %v9976_v23  ;;  %76 = vst.msk [vmem:[#allocation3 + $0xc] sm:$0xf] %vm14495_vm13, %v9976_v23 }
 0x11b   :  { %1242 = vst.msk [vmem:[#allocation6 + $0xc4] sm:$0xf] %vm1217_vm14, %v1188_v59  ;;  %v498_v36 = vpop.permute.xlu1 %497  ;;  %v1268_v48 = vld [vmem:[#allocation6 + $0xb8] sm:$0xff]  ;;  %vm14496_vm14 = vcmask 517120  }
 0x11c   :  { %v9718_v21 = vld [vmem:[#allocation6 + $0xb4] ss:$8 sps:$4 sm:$0xff]   ;;  %552 = vst.msk [vmem:[#allocation6 + $0xc8] sm:$0x7] %vm551_vm7, %v498_v36  ;;  %v8860_v12 = vcombine.low %v1267_v62, %v1268_v48  ;;  %vm2605_vm7 = vcmask 519170  }
 0x11d   :  { %8887 = vmatprep.mubr.msk.bf16.mxu0 %vm14497_vm1, %v9718_v21  ;;  %851 = vst.msk [vmem:[#allocation6 + $0xc8] sm:$0x77] %vm850_vm9, %v793_v9  ;;  %vm2606_vm9 = vsmask.f32 7946 }
 0x11e   :  { %1644 = vmatmul.mubr.bf16.gmra.mrb[44].mxu0 %v8860_v12  ;;  %64 = vst.msk [vmem:[#allocation2 + $0x8] sm:$0x7] %vm63_vm10, %v9977_v19  ;;  %vm11929_vm3 = vmand %vm2605_vm7, %vm2606_vm9  ;;  %vm2653_vm7 = vsmask.f32 2306 }
 0x11f   :  { %v1190_v43 = vpop.permute.xlu1 %1189  ;;  %77 = vst.msk [vmem:[#allocation3 + $0x10] sm:$0xf] %vm14495_vm13, %v9976_v23  ;;  %78 = vst.msk [vmem:[#allocation3 + $0x14] sm:$0xf] %vm14495_vm13, %v9976_v23 }
 0x120   :  { %1244 = vst.msk [vmem:[#allocation6 + $0xcc] sm:$0x7] %vm1243_vm11, %v1190_v43  ;;  %vm14499_vm11 = vcmask 516096  }
 0x121   :  { %79 = vst.msk [vmem:[#allocation3 + $0x18] sm:$0xf] %vm14495_vm13, %v9976_v23  ;;  %80 = vst.msk [vmem:[#allocation3 + $0x1c] sm:$0xf] %vm14495_vm13, %v9976_v23 }
 0x122   :  { %81 = vst.msk [vmem:[#allocation3 + $0x20] sm:$0xf] %vm14495_vm13, %v9976_v23  ;;  %v2496_v23 = vld [vmem:[#allocation2 + $0x106] sm:$0x3]  ;;  %vm11912_vm13 = vmand %vm14496_vm14, %vm2583_vm6 }
 0x123   :  { %vm11939_vm4 = vmand %vm14499_vm11, %vm2612_vm12 }
 0x124   :  { %v9722_v44 = vld [vmem:[#allocation6 + $0xc0] ss:$8 sps:$4 sm:$0x7f]  }
 0x127   :  { %v9720_v57 = vld [vmem:[#allocation6 + $0xc4] ss:$8 sps:$4 sm:$0x7f]  }
 0x128   :  { %8888 = vmatprep.mubr.msk.bf16.mxu0 %vm14497_vm1, %v9720_v57 }
 0x129   :  { %1652 = vmatmul.mubr.bf16.gmra.mrb[48].mxu0 %v9722_v44 }
 0x12b   :  { %v11250_v45 = vpop.permute.xlu0 %1690 }
 0x12f   :  { %v11272_v32 = vpop.permute.xlu0 %1705 }
 0x130   :  { %v11254_v28 = vpop.permute.xlu1 %1695 }
 0x133   :  { %v11297_v15 = vpop.permute.xlu0 %1715 }
 0x134   :  { %v11268_v13 = vpop.permute.xlu1 %1700 }
 0x137   :  { %v11315_v21 = vpop.permute.xlu0 %1725 }
 0x138   :  { %v11286_v4 = vpop.permute.xlu1 %1710  ;;  %14517 = vst [vmem:[#allocation14_spill] sm:$0xff] %v11315_v21 }
 0x13c   :  { %v11311_v62 = vpop.permute.xlu1 %1720 }
 0x13d   :  { %14516 = vst [vmem:[#allocation13_spill] sm:$0xff] %v11311_v62 }
 0x16c   :  { %v11252_v41 = vpop.f32.mrb[0].mxu0 }
 0x16d   :  { %v1818_v53 = vmul.f32 %v11250_v45, %v11252_v41  ;;  %v1559_v54 = vpop.f32.mrb[1].mxu0 }
 0x16e   :  { %v11258_v26 = vpop.f32.mrb[2].mxu0 }
 0x16f   :  { %v1902_v58 = vmul.f32 %v1818_v53, %v11252_v41  ;;  %v1819_v51 = vmul.f32 %v11254_v28, %v11258_v26  ;;  %v1562_v17 = vpop.f32.mrb[3].mxu0  ;;  %v1844_v20 = vsel %vm14497_vm1, %v1818_v53, 0.0 }
 0x171   :  { %v1845_v56 = vsel %vm14497_vm1, %v1819_v51, 0.0  ;;  %v1903_v0 = vmul.f32 %v1819_v51, %v11258_v26  ;;  %v1928_v52 = vsel %vm14497_vm1, %v1902_v58, 0.0 }
 0x172   :  { %v1846_v1 = vadd.f32 %v1845_v56, %v1844_v20 }
 0x173   :  { %v1929_v35 = vsel %vm14497_vm1, %v1903_v0, 0.0 }
 0x174   :  { %v1930_v11 = vadd.f32 %v1929_v35, %v1928_v52  ;;  %v11329_v35 = vpop.permute.xlu1 %1730 }
 0x175   :  { %14518 = vst [vmem:[#allocation15_spill] sm:$0xff] %v11329_v35 }
 0x179   :  { %v11270_v6 = vpop.f32.mrb[4].mxu0 }
 0x17a   :  { %v1820_v7 = vmul.f32 %v11268_v13, %v11270_v6  ;;  %v1567_v10 = vpop.f32.mrb[5].mxu0 }
 0x17b   :  { %v11276_v22 = vpop.f32.mrb[6].mxu0 }
 0x17c   :  { %v1847_v27 = vsel %vm14497_vm1, %v1820_v7, 0.0  ;;  %v1904_v38 = vmul.f32 %v1820_v7, %v11270_v6  ;;  %v1821_v49 = vmul.f32 %v11272_v32, %v11276_v22  ;;  %v1570_v8 = vpop.f32.mrb[7].mxu0  ;;  %v11333_v7 = vpop.permute.xlu0 %1735 }
 0x17d   :  { %v1848_v31 = vadd.f32 %v1847_v27, %v1846_v1  ;;  %14519 = vst [vmem:[#allocation16_spill] sm:$0xff] %v11333_v7 }
 0x17e   :  { %v1931_v46 = vsel %vm14497_vm1, %v1904_v38, 0.0  ;;  %v1849_v61 = vsel %vm14497_vm1, %v1821_v49, 0.0  ;;  %v1905_v30 = vmul.f32 %v1821_v49, %v11276_v22 }
 0x17f   :  { %v1932_v14 = vadd.f32 %v1931_v46, %v1930_v11  ;;  %v1850_v34 = vadd.f32 %v1849_v61, %v1848_v31 }
 0x180   :  { %v1933_v24 = vsel %vm14497_vm1, %v1905_v30, 0.0 }
 0x181   :  { %v1934_v37 = vadd.f32 %v1933_v24, %v1932_v14 }
 0x185   :  { %v11295_v60 = vpop.f32.mrb[8].mxu0 }
 0x186   :  { %v1822_v16 = vmul.f32 %v11286_v4, %v11295_v60  ;;  %v1575_v55 = vpop.f32.mrb[9].mxu0 }
 0x187   :  { %v11301_v5 = vpop.f32.mrb[10].mxu0  ;;  %v11347_v55 = vpop.permute.xlu1 %1740 }
 0x188   :  { %v1851_v25 = vsel %vm14497_vm1, %v1822_v16, 0.0  ;;  %v1906_v39 = vmul.f32 %v1822_v16, %v11295_v60  ;;  %v1823_v40 = vmul.f32 %v11297_v15, %v11301_v5  ;;  %v1578_v50 = vpop.f32.mrb[11].mxu0  ;;  %14520 = vst [vmem:[#allocation17_spill] sm:$0xff] %v11347_v55 }
 0x189   :  { %v1852_v63 = vadd.f32 %v1851_v25, %v1850_v34 }
 0x18a   :  { %v1935_v29 = vsel %vm14497_vm1, %v1906_v39, 0.0  ;;  %v1853_v33 = vsel %vm14497_vm1, %v1823_v40, 0.0  ;;  %v1907_v42 = vmul.f32 %v1823_v40, %v11301_v5  ;;  %v11351_v39 = vpop.permute.xlu0 %1745 }
 0x18b   :  { %v1936_v18 = vadd.f32 %v1935_v29, %v1934_v37  ;;  %v1854_v3 = vadd.f32 %v1853_v33, %v1852_v63  ;;  %14521 = vst [vmem:[#allocation18_spill] sm:$0xff] %v11351_v39 }
 0x18c   :  { %v1937_v59 = vsel %vm14497_vm1, %v1907_v42, 0.0 }
 0x18d   :  { %v1938_v36 = vadd.f32 %v1937_v59, %v1936_v18 }
 0x191   :  { %v11313_v48 = vpop.f32.mrb[12].mxu0 }
 0x192   :  { %v1824_v9 = vmul.f32 %v11311_v62, %v11313_v48  ;;  %v1583_v12 = vpop.f32.mrb[13].mxu0 }
 0x193   :  { %v11319_v43 = vpop.f32.mrb[14].mxu0 }
 0x194   :  { %v1855_v57 = vsel %vm14497_vm1, %v1824_v9, 0.0  ;;  %v1908_v44 = vmul.f32 %v1824_v9, %v11313_v48  ;;  %v1825_v53 = vmul.f32 %v11315_v21, %v11319_v43  ;;  %v1586_v54 = vpop.f32.mrb[15].mxu0 }
 0x195   :  { %v1856_v58 = vadd.f32 %v1855_v57, %v1854_v3  ;;  %v11365_v54 = vpop.permute.xlu1 %1750 }
 0x196   :  { %v1939_v51 = vsel %vm14497_vm1, %v1908_v44, 0.0  ;;  %v1857_v17 = vsel %vm14497_vm1, %v1825_v53, 0.0  ;;  %v1909_v20 = vmul.f32 %v1825_v53, %v11319_v43  ;;  %14522 = vst [vmem:[#allocation19_spill] sm:$0xff] %v11365_v54 }
 0x197   :  { %v1940_v56 = vadd.f32 %v1939_v51, %v1938_v36  ;;  %v1858_v0 = vadd.f32 %v1857_v17, %v1856_v58  ;;  %v11369_v51 = vpop.permute.xlu0 %1755 }
 0x198   :  { %v1941_v1 = vsel %vm14497_vm1, %v1909_v20, 0.0  ;;  %14523 = vst [vmem:[#allocation20_spill] sm:$0xff] %v11369_v51 }
 0x199   :  { %v1942_v52 = vadd.f32 %v1941_v1, %v1940_v56 }
 0x19d   :  { %v11331_v11 = vpop.f32.mrb[16].mxu0 }
 0x19e   :  { %v1826_v10 = vmul.f32 %v11329_v35, %v11331_v11  ;;  %v1591_v27 = vpop.f32.mrb[17].mxu0 }
 0x19f   :  { %v11337_v38 = vpop.f32.mrb[18].mxu0 }
 0x1a0   :  { %v1859_v49 = vsel %vm14497_vm1, %v1826_v10, 0.0  ;;  %v1910_v8 = vmul.f32 %v1826_v10, %v11331_v11  ;;  %v1827_v31 = vmul.f32 %v11333_v7, %v11337_v38  ;;  %v1594_v46 = vpop.f32.mrb[19].mxu0 }
 0x1a1   :  { %v1860_v61 = vadd.f32 %v1859_v49, %v1858_v0  ;;  %v2213_v49 = vld [vmem:[#allocation2 + $0xe2] sm:$0xff] }
 0x1a2   :  { %v1943_v30 = vsel %vm14497_vm1, %v1910_v8, 0.0  ;;  %v1861_v14 = vsel %vm14497_vm1, %v1827_v31, 0.0  ;;  %v1911_v34 = vmul.f32 %v1827_v31, %v11337_v38  ;;  %v2214_v8 = vld [vmem:[#allocation2 + $0xea] sm:$0xff] }
 0x1a3   :  { %v1944_v24 = vadd.f32 %v1943_v30, %v1942_v52  ;;  %v1862_v37 = vadd.f32 %v1861_v14, %v1860_v61  ;;  %v2215_v30 = vld [vmem:[#allocation2 + $0xf2] sm:$0xff] }
 0x1a4   :  { %v1945_v19 = vsel %vm14497_vm1, %v1911_v34, 0.0 }
 0x1a5   :  { %v1946_v16 = vadd.f32 %v1945_v19, %v1944_v24  ;;  %v2244_v24 = vld [vmem:[#allocation2 + $0xe3] sm:$0xff] }
 0x1a9   :  { %v11349_v25 = vpop.f32.mrb[20].mxu0 }
 0x1aa   :  { %v1828_v40 = vmul.f32 %v11347_v55, %v11349_v25  ;;  %v1599_v50 = vpop.f32.mrb[21].mxu0 }
 0x1ab   :  { %v11355_v63 = vpop.f32.mrb[22].mxu0 }
 0x1ac   :  { %v1863_v29 = vsel %vm14497_vm1, %v1828_v40, 0.0  ;;  %v1912_v33 = vmul.f32 %v1828_v40, %v11349_v25  ;;  %v1829_v42 = vmul.f32 %v11351_v39, %v11355_v63  ;;  %v1602_v18 = vpop.f32.mrb[23].mxu0  ;;  %v2275_v40 = vmax.f32 %v2213_v49, %v2244_v24 }
 0x1ad   :  { %v1864_v3 = vadd.f32 %v1863_v29, %v1862_v37  ;;  %v2245_v37 = vld [vmem:[#allocation2 + $0xeb] sm:$0xff] }
 0x1ae   :  { %v1947_v59 = vsel %vm14497_vm1, %v1912_v33, 0.0  ;;  %v1865_v36 = vsel %vm14497_vm1, %v1829_v42, 0.0  ;;  %v1913_v9 = vmul.f32 %v1829_v42, %v11355_v63  ;;  %v2276_v50 = vmax.f32 %v2214_v8, %v2245_v37  ;;  %v2306_v42 = vld [vmem:[#allocation2 + $0xe4] sm:$0xff]  ;;  %v2307_v18 = vld [vmem:[#allocation2 + $0xec] sm:$0xff] }
 0x1af   :  { %v1948_v12 = vadd.f32 %v1947_v59, %v1946_v16  ;;  %v1866_v57 = vadd.f32 %v1865_v36, %v1864_v3  ;;  %v2246_v16 = vld [vmem:[#allocation2 + $0xf3] sm:$0xff]  ;;  %v2337_v36 = vmax.f32 %v2275_v40, %v2306_v42  ;;  %v2309_v40 = vld [vmem:[#allocation2 + $0xfc] sm:$0x3] }
 0x1b0   :  { %v1949_v44 = vsel %vm14497_vm1, %v1913_v9, 0.0  ;;  %v2277_v33 = vmax.f32 %v2215_v30, %v2246_v16  ;;  %v2216_v3 = vld [vmem:[#allocation2 + $0xfa] sm:$0x3]  ;;  %v2338_v9 = vmax.f32 %v2276_v50, %v2307_v18 }
 0x1b1   :  { %v1950_v53 = vadd.f32 %v1949_v44, %v1948_v12  ;;  %v2308_v59 = vld [vmem:[#allocation2 + $0xf4] sm:$0xff]  ;;  %v11383_v12 = vld [vmem:[#allocation2 + $0xdc] sm:$0xff]  ;;  %v11385_v44 = vpop.permute.xlu1 %1760 }
 0x1b2   :  { %14524 = vst [vmem:[#allocation21_spill] sm:$0xff] %v11385_v44  ;;  %2368 = vst.msk [vmem:[#allocation2 + $0xe3] sm:$0xff] %vm14497_vm1, %v2337_v36  ;;  %v2247_v30 = vld [vmem:[#allocation2 + $0xfb] sm:$0x3] }
 0x1b3   :  { %2369 = vst.msk [vmem:[#allocation2 + $0xeb] sm:$0xff] %vm14497_vm1, %v2338_v9  ;;  %v2278_v16 = vmax.f32 %v2216_v3, %v2247_v30 }
 0x1b5   :  { %v11367_v58 = vpop.f32.mrb[24].mxu0  ;;  %v11406_v50 = vpop.permute.xlu1 %1770  ;;  %v2340_v42 = vmax.f32 %v2278_v16, %v2309_v40 }
 0x1b6   :  { %v1830_v17 = vmul.f32 %v11365_v54, %v11367_v58  ;;  %v1607_v20 = vpop.f32.mrb[25].mxu0  ;;  %14526 = vst [vmem:[#allocation23_spill] sm:$0xff] %v11406_v50 }
 0x1b7   :  { %v11373_v56 = vpop.f32.mrb[26].mxu0  ;;  %2372 = vst.msk [vmem:[#allocation2 + $0xfb] sm:$0x3] %vm14496_vm14, %v2340_v42 }
 0x1b8   :  { %v1867_v0 = vsel %vm14497_vm1, %v1830_v17, 0.0  ;;  %v1914_v1 = vmul.f32 %v1830_v17, %v11367_v58  ;;  %v1831_v52 = vmul.f32 %v11369_v51, %v11373_v56  ;;  %v1610_v10 = vpop.f32.mrb[27].mxu0 }
 0x1b9   :  { %v1868_v27 = vadd.f32 %v1867_v0, %v1866_v57  ;;  %v2339_v57 = vmax.f32 %v2277_v33, %v2308_v59  ;;  %v11394_v0 = vpop.permute.xlu0 %1765  ;;  %v11443_v40 = vpop.permute.xlu1 %1780 }
 0x1ba   :  { %v1951_v31 = vsel %vm14497_vm1, %v1914_v1, 0.0  ;;  %v1869_v46 = vsel %vm14497_vm1, %v1831_v52, 0.0  ;;  %v1915_v61 = vmul.f32 %v1831_v52, %v11373_v56  ;;  %14525 = vst [vmem:[#allocation22_spill] sm:$0xff] %v11394_v0 }
 0x1bb   :  { %v1952_v14 = vadd.f32 %v1951_v31, %v1950_v53  ;;  %v1870_v34 = vadd.f32 %v1869_v46, %v1868_v27  ;;  %2370 = vst.msk [vmem:[#allocation2 + $0xf3] sm:$0xff] %vm14497_vm1, %v2339_v57 }
 0x1bc   :  { %v1953_v19 = vsel %vm14497_vm1, %v1915_v61, 0.0 }
 0x1bd   :  { %v1954_v29 = vadd.f32 %v1953_v19, %v1952_v14  ;;  %v11412_v59 = vpop.permute.xlu0 %1775 }
 0x1be   :  { %14527 = vst [vmem:[#allocation24_spill] sm:$0xff] %v11412_v59 }
 0x1c1   :  { %v11387_v53 = vpop.f32.mrb[28].mxu0 }
 0x1c2   :  { %v1832_v17 = vmul.f32 %v11385_v44, %v11387_v53  ;;  %v1615_v20 = vpop.f32.mrb[29].mxu0 }
 0x1c3   :  { %v11396_v1 = vpop.f32.mrb[30].mxu0 }
 0x1c4   :  { %v1871_v52 = vsel %vm14497_vm1, %v1832_v17, 0.0  ;;  %v1916_v10 = vmul.f32 %v1832_v17, %v11387_v53  ;;  %v1833_v27 = vmul.f32 %v11394_v0, %v11396_v1  ;;  %v1618_v49 = vpop.f32.mrb[31].mxu0 }
 0x1c5   :  { %v1872_v8 = vadd.f32 %v1871_v52, %v1870_v34  ;;  %v2402_v52 = vld [vmem:[#allocation2 + $0xe8] sm:$0xff] }
 0x1c6   :  { %v1955_v31 = vsel %vm14497_vm1, %v1916_v10, 0.0  ;;  %v1873_v46 = vsel %vm14497_vm1, %v1833_v27, 0.0  ;;  %v1917_v61 = vmul.f32 %v1833_v27, %v11396_v1 }
 0x1c7   :  { %v1956_v14 = vadd.f32 %v1955_v31, %v1954_v29  ;;  %v1874_v24 = vadd.f32 %v1873_v46, %v1872_v8  ;;  %v2433_v29 = vld [vmem:[#allocation2 + $0xf3] sm:$0xff] }
 0x1c8   :  { %v1957_v37 = vsel %vm14497_vm1, %v1917_v61, 0.0  ;;  %v2464_v8 = vmax.f32 %v2402_v52, %v2433_v29  ;;  %v2495_v61 = vld [vmem:[#allocation2 + $0xfe] sm:$0xff] }
 0x1c9   :  { %v1958_v19 = vadd.f32 %v1957_v37, %v1956_v14  ;;  %v2403_v37 = vld [vmem:[#allocation2 + $0xf0] sm:$0x3] }
 0x1ca   :  { %v2526_v16 = vmax.f32 %v2464_v8, %v2495_v61 }
 0x1cd   :  { %v11408_v33 = vpop.f32.mrb[32].mxu0 }
 0x1ce   :  { %v1834_v34 = vmul.f32 %v11406_v50, %v11408_v33  ;;  %v1623_v18 = vpop.f32.mrb[33].mxu0 }
 0x1cf   :  { %v11414_v36 = vpop.f32.mrb[34].mxu0 }
 0x1d0   :  { %v1875_v9 = vsel %vm14497_vm1, %v1834_v34, 0.0  ;;  %v1918_v3 = vmul.f32 %v1834_v34, %v11408_v33  ;;  %v1835_v57 = vmul.f32 %v11412_v59, %v11414_v36  ;;  %v1626_v17 = vpop.f32.mrb[35].mxu0  ;;  %v11447_v34 = vld [vmem:[#allocation2 + $0xee] sm:$0xff] }
 0x1d1   :  { %v1876_v20 = vadd.f32 %v1875_v9, %v1874_v24  ;;  %v2434_v24 = vld [vmem:[#allocation2 + $0xfb] sm:$0x3]  ;;  %14528 = vst [vmem:[#allocation25_spill] sm:$0xff] %v11447_v34 }
 0x1d2   :  { %v1959_v10 = vsel %vm14497_vm1, %v1918_v3, 0.0  ;;  %v1877_v27 = vsel %vm14497_vm1, %v1835_v57, 0.0  ;;  %v1919_v49 = vmul.f32 %v1835_v57, %v11414_v36  ;;  %v2465_v18 = vmax.f32 %v2403_v37, %v2434_v24  ;;  %v11449_v9 = vld [vmem:[#allocation2 + $0xf6] sm:$0xff]  ;;  %v11454_v3 = vpop.permute.xlu0 %1785  ;;  %v11467_v24 = vpop.permute.xlu1 %1790 }
 0x1d3   :  { %v1960_v31 = vadd.f32 %v1959_v10, %v1958_v19  ;;  %v1878_v46 = vadd.f32 %v1877_v27, %v1876_v20  ;;  %14529 = vst [vmem:[#allocation26_spill] sm:$0xff] %v11449_v9  ;;  %2557 = vst.msk [vmem:[#allocation2 + $0xf3] sm:$0xff] %vm14497_vm1, %v2526_v16 }
 0x1d4   :  { %v1961_v30 = vsel %vm14497_vm1, %v1919_v49, 0.0  ;;  %v2527_v17 = vmax.f32 %v2465_v18, %v2496_v23 }
 0x1d5   :  { %v1962_v14 = vadd.f32 %v1961_v30, %v1960_v31 }
 0x1d6   :  { %2558 = vst.msk [vmem:[#allocation2 + $0xfb] sm:$0x3] %vm14496_vm14, %v2527_v17  ;;  %v11485_v47 = vpop.permute.xlu1 %1800  ;;  %vm3023_vm14 = vsmask.f32 4368 }
 0x1d9   :  { %v11445_v42 = vpop.f32.mrb[36].mxu0 }
 0x1da   :  { %v1836_v19 = vmul.f32 %v11443_v40, %v11445_v42  ;;  %v1631_v29 = vpop.f32.mrb[37].mxu0  ;;  %v11503_v0 = vpop.permute.xlu1 %1810 }
 0x1db   :  { %v11456_v57 = vpop.f32.mrb[38].mxu0  ;;  %v11473_v29 = vpop.permute.xlu0 %1795 }
 0x1dc   :  { %v1879_v20 = vsel %vm14497_vm1, %v1836_v19, 0.0  ;;  %v1920_v52 = vmul.f32 %v1836_v19, %v11445_v42  ;;  %v1837_v10 = vmul.f32 %v11454_v3, %v11456_v57  ;;  %v1634_v27 = vpop.f32.mrb[39].mxu0 }
 0x1dd   :  { %v1880_v49 = vadd.f32 %v1879_v20, %v1878_v46 }
 0x1de   :  { %v1963_v8 = vsel %vm14497_vm1, %v1920_v52, 0.0  ;;  %v1881_v31 = vsel %vm14497_vm1, %v1837_v10, 0.0  ;;  %v1921_v61 = vmul.f32 %v1837_v10, %v11456_v57 }
 0x1df   :  { %v1964_v30 = vadd.f32 %v1963_v8, %v1962_v14  ;;  %v1882_v37 = vadd.f32 %v1881_v31, %v1880_v49 }
 0x1e0   :  { %v1965_v16 = vsel %vm14497_vm1, %v1921_v61, 0.0 }
 0x1e1   :  { %v1966_v23 = vadd.f32 %v1965_v16, %v1964_v30 }
 0x1e5   :  { %v11469_v18 = vpop.f32.mrb[40].mxu0 }
 0x1e6   :  { %v1838_v46 = vmul.f32 %v11467_v24, %v11469_v18  ;;  %v1639_v19 = vpop.f32.mrb[41].mxu0 }
 0x1e7   :  { %v11475_v17 = vpop.f32.mrb[42].mxu0 }
 0x1e8   :  { %v1883_v20 = vsel %vm14497_vm1, %v1838_v46, 0.0  ;;  %v1922_v14 = vmul.f32 %v1838_v46, %v11469_v18  ;;  %v1839_v52 = vmul.f32 %v11473_v29, %v11475_v17  ;;  %v1642_v10 = vpop.f32.mrb[43].mxu0 }
 0x1e9   :  { %v1884_v27 = vadd.f32 %v1883_v20, %v1882_v37  ;;  %v11491_v37 = vpop.permute.xlu0 %1805 }
 0x1ea   :  { %v1967_v49 = vsel %vm14497_vm1, %v1922_v14, 0.0  ;;  %v1885_v8 = vsel %vm14497_vm1, %v1839_v52, 0.0  ;;  %v1923_v31 = vmul.f32 %v1839_v52, %v11475_v17 }
 0x1eb   :  { %v1968_v61 = vadd.f32 %v1967_v49, %v1966_v23  ;;  %v1886_v30 = vadd.f32 %v1885_v8, %v1884_v27 }
 0x1ec   :  { %v1969_v16 = vsel %vm14497_vm1, %v1923_v31, 0.0 }
 0x1ed   :  { %v1970_v19 = vadd.f32 %v1969_v16, %v1968_v61 }
 0x1f1   :  { %v11487_v2 = vpop.f32.mrb[44].mxu0 }
 0x1f2   :  { %v1840_v46 = vmul.f32 %v11485_v47, %v11487_v2  ;;  %v1647_v10 = vpop.f32.mrb[45].mxu0 }
 0x1f3   :  { %v11493_v20 = vpop.f32.mrb[46].mxu0 }
 0x1f4   :  { %v1887_v14 = vsel %vm14497_vm1, %v1840_v46, 0.0  ;;  %v1924_v23 = vmul.f32 %v1840_v46, %v11487_v2  ;;  %v1841_v52 = vmul.f32 %v11491_v37, %v11493_v20  ;;  %v1650_v27 = vpop.f32.mrb[47].mxu0 }
 0x1f5   :  { %v1888_v49 = vadd.f32 %v1887_v14, %v1886_v30  ;;  %v11509_v30 = vpop.permute.xlu0 %1815 }
 0x1f6   :  { %v1971_v8 = vsel %vm14497_vm1, %v1924_v23, 0.0  ;;  %v1889_v31 = vsel %vm14497_vm1, %v1841_v52, 0.0  ;;  %v1925_v61 = vmul.f32 %v1841_v52, %v11493_v20 }
 0x1f7   :  { %v1972_v16 = vadd.f32 %v1971_v8, %v1970_v19  ;;  %v1890_v10 = vadd.f32 %v1889_v31, %v1888_v49 }
 0x1f8   :  { %v1973_v59 = vsel %vm14497_vm1, %v1925_v61, 0.0 }
 0x1f9   :  { %v1974_v50 = vadd.f32 %v1973_v59, %v1972_v16 }
 0x1fc   :  { %v11505_v44 = vpop.f32.mrb[48].mxu0 }
 0x1fd   :  { %v1842_v46 = vmul.f32 %v11503_v0, %v11505_v44  ;;  %v1655_v27 = vpop.f32.mrb[49].mxu0 }
 0x1fe   :  { %v11511_v14 = vpop.f32.mrb[50].mxu0 }
 0x1ff   :  { %v1891_v23 = vsel %vm14497_vm1, %v1842_v46, 0.0  ;;  %v1926_v19 = vmul.f32 %v1842_v46, %v11505_v44  ;;  %v1843_v59 = vmul.f32 %v11509_v30, %v11511_v14  ;;  %v1658_v52 = vpop.f32.mrb[51].mxu0 }
 0x200   :  { %v1892_v49 = vadd.f32 %v1891_v23, %v1890_v10 }
 0x201   :  { %v1975_v8 = vsel %vm14497_vm1, %v1926_v19, 0.0  ;;  %v1894_v31 = vsel %vm1893_vm15, %v1843_v59, 0.0  ;;  %v1927_v61 = vmul.f32 %v1843_v59, %v11511_v14 }
 0x202   :  { %v1976_v16 = vadd.f32 %v1975_v8, %v1974_v50  ;;  %v1895_v27 = vadd.f32 %v1894_v31, %v1892_v49 }
 0x203   :  { %v1977_v51 = vsel %vm1893_vm15, %v1927_v61, 0.0 }
 0x204   :  { %v1896_v54 = vrot.slane %v1895_v27, 4  ;;  %v1978_v34 = vadd.f32 %v1977_v51, %v1976_v16 }
 0x206   :  { %v1897_v39 = vadd.f32 %v1896_v54, %v1895_v27  ;;  %v1979_v55 = vrot.slane %v1978_v34, 4 }
 0x208   :  { %v1898_v46 = vrot.slane %v1897_v39, 2  ;;  %v1980_v9 = vadd.f32 %v1979_v55, %v1978_v34 }
 0x20a   :  { %v1899_v7 = vadd.f32 %v1898_v46, %v1897_v39  ;;  %v1981_v35 = vrot.slane %v1980_v9, 2 }
 0x20c   :  { %v1900_v52 = vrot.slane %v1899_v7, 1  ;;  %v1982_v10 = vadd.f32 %v1981_v35, %v1980_v9 }
 0x20e   :  { %v1901_v23 = vadd.f32 %v1900_v52, %v1899_v7  ;;  %v1983_v19 = vrot.slane %v1982_v10, 1  ;;  %v11582_v52 = vld [vmem:[%s14530_s0] ss:$0 sm:$0xff] }
 0x210   :  { %v1984_v21 = vadd.f32 %v1983_v19, %v1982_v10  ;;  %v11521_v62 = vmul.f32 0.0078125, %v1901_v23 }
 0x212   :  { %v1986_v59 = vmul.f32 0.0078125, %v1984_v21  ;;  %v1987_v50 = vmul.f32 %v11521_v62, %v11521_v62  ;;  %v2008_v51 = vsub.f32 %v11445_v42, %v11521_v62  ;;  %v2009_v54 = vsub.f32 %v11456_v57, %v11521_v62 }
 0x213   :  { %v2010_v55 = vsub.f32 %v11469_v18, %v11521_v62  ;;  %v2011_v35 = vsub.f32 %v11475_v17, %v11521_v62  ;;  %v2012_v7 = vsub.f32 %v11487_v2, %v11521_v62  ;;  %v2013_v21 = vsub.f32 %v11493_v20, %v11521_v62 }
 0x214   :  { %v1988_v39 = vsub.f32 %v1986_v59, %v1987_v50  ;;  %v2014_v34 = vsub.f32 %v11505_v44, %v11521_v62  ;;  %v2015_v42 = vsub.f32 %v11511_v14, %v11521_v62  ;;  %v1990_v9 = vsub.f32 %v11252_v41, %v11521_v62  ;;  %v2212_v50 = vld [vmem:[#allocation2 + $0xda] sm:$0xff] }
 0x215   :  { %v1991_v57 = vsub.f32 %v11258_v26, %v11521_v62  ;;  %v1992_v18 = vsub.f32 %v11270_v6, %v11521_v62  ;;  %v1993_v2 = vsub.f32 %v11276_v22, %v11521_v62  ;;  %v1994_v17 = vsub.f32 %v11295_v60, %v11521_v62 }
 0x216   :  { %v1989_v20 = vmax.f32 %v1988_v39, 0.0  ;;  %v2243_v39 = vld [vmem:[#allocation2 + $0xdb] sm:$0xff]  ;;  %v14531_v26 = vsub.f32 %v11301_v5, %v11521_v62  ;;  %v14532_v22 = vsub.f32 %v11313_v48, %v11521_v62 }
 0x218   :  { %v2016_v27 = vadd.f32 1e-05, %v1989_v20  ;;  %v2274_v20 = vmax.f32 %v2212_v50, %v2243_v39  ;;  %v11594_v50 = vld [vmem:[%s14459_s3] ss:$0 sm:$0xff] }
 0x21a   :  { %9939 = vrsqrt.f32 %v2016_v27  ;;  %v11585_v10 = vmax.f32 %v2274_v20, %v11383_v12 }
 0x224   :  { %v11577_v46 = vpop.eup %9939 }
 0x225   :  { %v2036_v23 = vmul.f32 %v11577_v46, %v2008_v51  ;;  %v2037_v19 = vmul.f32 %v11577_v46, %v2009_v54  ;;  %v2038_v59 = vmul.f32 %v11577_v46, %v2010_v55  ;;  %v2039_v27 = vmul.f32 %v11577_v46, %v2011_v35 }
 0x226   :  { %v2040_v39 = vmul.f32 %v11577_v46, %v2012_v7  ;;  %v2041_v16 = vmul.f32 %v11577_v46, %v2013_v21  ;;  %v2042_v12 = vmul.f32 %v11577_v46, %v2014_v34  ;;  %v2043_v20 = vmul.f32 %v11577_v46, %v2015_v42 }
 0x227   :  { %v2068_v51 = vmul.f32 %v11582_v52, %v2036_v23  ;;  %v2069_v54 = vmul.f32 %v11582_v52, %v2037_v19  ;;  %v2070_v55 = vmul.f32 %v11582_v52, %v2038_v59  ;;  %v2071_v35 = vmul.f32 %v11582_v52, %v2039_v27 }
 0x228   :  { %v2072_v61 = vmul.f32 %v11582_v52, %v2040_v39  ;;  %v2073_v31 = vmul.f32 %v11582_v52, %v2041_v16  ;;  %v2074_v7 = vmul.f32 %v11582_v52, %v2042_v12  ;;  %v2075_v21 = vmul.f32 %v11582_v52, %v2043_v20 }
 0x229   :  { %v2100_v34 = vadd.f32 %v11594_v50, %v2068_v51  ;;  %v2101_v42 = vadd.f32 %v11594_v50, %v2069_v54  ;;  %v2102_v23 = vadd.f32 %v11594_v50, %v2070_v55  ;;  %v2103_v19 = vadd.f32 %v11594_v50, %v2071_v35 }
 0x22a   :  { %v2104_v59 = vadd.f32 %v11594_v50, %v2072_v61  ;;  %v2105_v27 = vadd.f32 %v11594_v50, %v2073_v31  ;;  %v2106_v39 = vadd.f32 %v11594_v50, %v2074_v7  ;;  %v2107_v16 = vadd.f32 %v11594_v50, %v2075_v21 }
 0x22b   :  { %v2126_v8 = vmax.f32 %v2100_v34, 0.0  ;;  %v2127_v12 = vmax.f32 %v2101_v42, 0.0  ;;  %v2128_v49 = vmax.f32 %v2102_v23, 0.0  ;;  %v2129_v20 = vmax.f32 %v2103_v19, 0.0 }
 0x22c   :  { %v2130_v14 = vmax.f32 %v2104_v59, 0.0  ;;  %v2131_v51 = vmax.f32 %v2105_v27, 0.0  ;;  %v2132_v44 = vmax.f32 %v2106_v39, 0.0  ;;  %v2133_v54 = vmax.f32 %v2107_v16, 0.0 }
 0x22d   :  { %v2152_v55 = vmul.f32 %v2126_v8, %v11443_v40  ;;  %v2153_v35 = vmul.f32 %v2127_v12, %v11454_v3  ;;  %v2154_v61 = vmul.f32 %v2128_v49, %v11467_v24  ;;  %v2155_v31 = vmul.f32 %v2129_v20, %v11473_v29 }
 0x22e   :  { %v2156_v7 = vmul.f32 %v2130_v14, %v11485_v47  ;;  %v2157_v21 = vmul.f32 %v2131_v51, %v11491_v37  ;;  %v2158_v34 = vmul.f32 %v2132_v44, %v11503_v0  ;;  %v2159_v42 = vmul.f32 %v2133_v54, %v11509_v30 }
 0x22f   :  { %2178 = vst.msk [vmem:[#allocation2 + $0x9b] sm:$0xff] %vm14497_vm1, %v2152_v55  ;;  %2179 = vst.msk [vmem:[#allocation2 + $0xa3] sm:$0xff] %vm14497_vm1, %v2153_v35  ;;  %v2018_v40 = vmul.f32 %v11577_v46, %v1990_v9  ;;  %v2019_v47 = vmul.f32 %v11577_v46, %v1991_v57  ;;  %v2020_v0 = vmul.f32 %v11577_v46, %v1992_v18 }
 0x230   :  { %2180 = vst.msk [vmem:[#allocation2 + $0xab] sm:$0xff] %vm14497_vm1, %v2154_v61  ;;  %2181 = vst.msk [vmem:[#allocation2 + $0xb3] sm:$0xff] %vm14497_vm1, %v2155_v31  ;;  %v2021_v3 = vmul.f32 %v11577_v46, %v1993_v2  ;;  %v2022_v41 = vmul.f32 %v11577_v46, %v1994_v17  ;;  %v2023_v6 = vmul.f32 %v11577_v46, %v14531_v26 }
 0x231   :  { %2182 = vst.msk [vmem:[#allocation2 + $0xbb] sm:$0xff] %vm14497_vm1, %v2156_v7  ;;  %2183 = vst.msk [vmem:[#allocation2 + $0xc3] sm:$0xff] %vm14497_vm1, %v2157_v21  ;;  %v2024_v24 = vmul.f32 %v11577_v46, %v14532_v22  ;;  %v14533_v29 = vsub.f32 %v11319_v43, %v11521_v62  ;;  %v2050_v30 = vmul.f32 %v11582_v52, %v2018_v40  ;;  %v14536_v22 = vld [vmem:[#allocation13_spill] sm:$0xff] }
 0x232   :  { %2184 = vst.msk [vmem:[#allocation2 + $0xcb] sm:$0xff] %vm14497_vm1, %v2158_v34  ;;  %v2051_v60 = vmul.f32 %v11582_v52, %v2019_v47  ;;  %v2052_v9 = vmul.f32 %v11582_v52, %v2020_v0  ;;  %v2053_v5 = vmul.f32 %v11582_v52, %v2021_v3  ;;  %v2054_v57 = vmul.f32 %v11582_v52, %v2022_v41 }
 0x233   :  { %2185 = vst.msk [vmem:[#allocation2 + $0xd3] sm:$0x3f] %vm1893_vm15, %v2159_v42  ;;  %v2025_v37 = vmul.f32 %v11577_v46, %v14533_v29  ;;  %v2055_v18 = vmul.f32 %v11582_v52, %v2023_v6  ;;  %v2056_v48 = vmul.f32 %v11582_v52, %v2024_v24  ;;  %v14534_v2 = vsub.f32 %v11331_v11, %v11521_v62 }
 0x234   :  { %v2082_v17 = vadd.f32 %v11594_v50, %v2050_v30  ;;  %v2083_v44 = vadd.f32 %v11594_v50, %v2051_v60  ;;  %v2084_v14 = vadd.f32 %v11594_v50, %v2052_v9  ;;  %v2085_v49 = vadd.f32 %v11594_v50, %v2053_v5 }
 0x235   :  { %v2026_v43 = vmul.f32 %v11577_v46, %v14534_v2  ;;  %v2086_v8 = vadd.f32 %v11594_v50, %v2054_v57  ;;  %v2087_v23 = vadd.f32 %v11594_v50, %v2055_v18  ;;  %v2088_v19 = vadd.f32 %v11594_v50, %v2056_v48 }
 0x236   :  { %v14535_v59 = vsub.f32 %v11337_v38, %v11521_v62  ;;  %v2108_v27 = vmax.f32 %v2082_v17, 0.0  ;;  %v2109_v39 = vmax.f32 %v2083_v44, 0.0  ;;  %v2110_v16 = vmax.f32 %v2084_v14, 0.0  ;;  %v2205_v20 = vld [vmem:[#allocation2 + $0xa2] sm:$0xff] }
 0x237   :  { %v2111_v12 = vmax.f32 %v2085_v49, 0.0  ;;  %v2206_v51 = vld [vmem:[#allocation2 + $0xaa] sm:$0xff]  ;;  %v2207_v54 = vld [vmem:[#allocation2 + $0xb2] sm:$0xff]  ;;  %v2112_v55 = vmax.f32 %v2086_v8, 0.0  ;;  %v2113_v35 = vmax.f32 %v2087_v23, 0.0  ;;  %v2114_v61 = vmax.f32 %v2088_v19, 0.0 }
 0x238   :  { %v2027_v11 = vmul.f32 %v11577_v46, %v14535_v59  ;;  %v2057_v31 = vmul.f32 %v11582_v52, %v2025_v37  ;;  %v2208_v7 = vld [vmem:[#allocation2 + $0xba] sm:$0xff]  ;;  %v2209_v21 = vld [vmem:[#allocation2 + $0xc2] sm:$0xff]  ;;  %v2134_v42 = vmul.f32 %v2108_v27, %v11250_v45  ;;  %v2135_v38 = vmul.f32 %v2109_v39, %v11254_v28  ;;  %v2237_v41 = vld [vmem:[#allocation2 + $0xab] sm:$0xff] }
 0x239   :  { %v2210_v34 = vld [vmem:[#allocation2 + $0xca] sm:$0xff]  ;;  %v2136_v40 = vmul.f32 %v2110_v16, %v11268_v13  ;;  %v2137_v47 = vmul.f32 %v2111_v12, %v11272_v32  ;;  %v2138_v26 = vmul.f32 %v2112_v55, %v11286_v4  ;;  %v2139_v6 = vmul.f32 %v2113_v35, %v11297_v15  ;;  %v2238_v37 = vld [vmem:[#allocation2 + $0xb3] sm:$0xff]  ;;  %v2239_v30 = vld [vmem:[#allocation2 + $0xbb] sm:$0xff] }
 0x23a   :  { %v2211_v0 = vld [vmem:[#allocation2 + $0xd2] sm:$0xff]  ;;  %v2236_v3 = vld [vmem:[#allocation2 + $0xa3] sm:$0xff]  ;;  %v2140_v24 = vmul.f32 %v2114_v61, %v14536_v22  ;;  %v2058_v29 = vmul.f32 %v11582_v52, %v2026_v43  ;;  %v2268_v28 = vmax.f32 %v2206_v51, %v2237_v41  ;;  %2160 = vst.msk [vmem:[#allocation2 + $0xb] sm:$0xff] %vm14497_vm1, %v2134_v42  ;;  %2161 = vst.msk [vmem:[#allocation2 + $0x13] sm:$0xff] %vm14497_vm1, %v2135_v38  ;;  %vm2632_vm15 = vcmask 519169  }
 0x23b   :  { %v2240_v45 = vld [vmem:[#allocation2 + $0xc3] sm:$0xff]  ;;  %v2267_v60 = vmax.f32 %v2205_v20, %v2236_v3  ;;  %2162 = vst.msk [vmem:[#allocation2 + $0x1b] sm:$0xff] %vm14497_vm1, %v2136_v40  ;;  %2163 = vst.msk [vmem:[#allocation2 + $0x23] sm:$0xff] %vm14497_vm1, %v2137_v47  ;;  %v2059_v13 = vmul.f32 %v11582_v52, %v2027_v11  ;;  %v2089_v32 = vadd.f32 %v11594_v50, %v2057_v31  ;;  %v2241_v4 = vld [vmem:[#allocation2 + $0xcb] sm:$0xff] }
 0x23c   :  { %v2242_v15 = vld [vmem:[#allocation2 + $0xd3] sm:$0xff]  ;;  %v2269_v9 = vmax.f32 %v2207_v54, %v2238_v37  ;;  %v2270_v5 = vmax.f32 %v2208_v7, %v2239_v30  ;;  %v2271_v57 = vmax.f32 %v2209_v21, %v2240_v45  ;;  %2164 = vst.msk [vmem:[#allocation2 + $0x2b] sm:$0xff] %vm14497_vm1, %v2138_v26  ;;  %2165 = vst.msk [vmem:[#allocation2 + $0x33] sm:$0xff] %vm14497_vm1, %v2139_v6  ;;  %v2298_v43 = vld [vmem:[#allocation2 + $0xa4] sm:$0xff] }
 0x23d   :  { %2166 = vst.msk [vmem:[#allocation2 + $0x3b] sm:$0xff] %vm14497_vm1, %v2140_v24  ;;  %v2090_v18 = vadd.f32 %v11594_v50, %v2058_v29  ;;  %v2272_v48 = vmax.f32 %v2210_v34, %v2241_v4  ;;  %v2273_v2 = vmax.f32 %v2211_v0, %v2242_v15  ;;  %v2299_v17 = vld [vmem:[#allocation2 + $0xac] sm:$0xff]  ;;  %v2300_v44 = vld [vmem:[#allocation2 + $0xb4] sm:$0xff]  ;;  %v2091_v14 = vadd.f32 %v11594_v50, %v2059_v13  ;;  %v2301_v8 = vld [vmem:[#allocation2 + $0xbc] sm:$0xff] }
 0x23e   :  { %v2115_v49 = vmax.f32 %v2089_v32, 0.0  ;;  %v2302_v23 = vld [vmem:[#allocation2 + $0xc4] sm:$0xff]  ;;  %v2303_v19 = vld [vmem:[#allocation2 + $0xcc] sm:$0xff]  ;;  %v2329_v59 = vmax.f32 %v2267_v60, %v2298_v43  ;;  %v2330_v11 = vmax.f32 %v2268_v28, %v2299_v17  ;;  %v2331_v27 = vmax.f32 %v2269_v9, %v2300_v44  ;;  %v11706_v16 = vld [vmem:[#allocation2 + $0x9c] sm:$0xff] }
 0x23f   :  { %v2116_v39 = vmax.f32 %v2090_v18, 0.0  ;;  %v2304_v12 = vld [vmem:[#allocation2 + $0xd4] sm:$0xff]  ;;  %v2332_v20 = vmax.f32 %v2270_v5, %v2301_v8  ;;  %v2333_v51 = vmax.f32 %v2271_v57, %v2302_v23  ;;  %v2334_v54 = vmax.f32 %v2272_v48, %v2303_v19  ;;  %v14537_v61 = vld [vmem:[#allocation14_spill] sm:$0xff]  ;;  %v14538_v7 = vld [vmem:[#allocation15_spill] sm:$0xff] }
 0x240   :  { %v2117_v55 = vmax.f32 %v2091_v14, 0.0  ;;  %v2335_v35 = vmax.f32 %v2273_v2, %v2304_v12  ;;  %2360 = vst.msk [vmem:[#allocation2 + $0xa3] sm:$0xff] %vm14497_vm1, %v2329_v59  ;;  %2361 = vst.msk [vmem:[#allocation2 + $0xab] sm:$0xff] %vm14497_vm1, %v2330_v11  ;;  %v2141_v31 = vmul.f32 %v2115_v49, %v14537_v61  ;;  %v14539_v34 = vsub.f32 %v11349_v25, %v11521_v62  ;;  %v14540_v38 = vld [vmem:[#allocation16_spill] sm:$0xff] }
 0x241   :  { %2362 = vst.msk [vmem:[#allocation2 + $0xb3] sm:$0xff] %vm14497_vm1, %v2331_v27  ;;  %2367 = vst.msk [vmem:[#allocation2 + $0xdb] sm:$0xff] %vm14497_vm1, %v11585_v10  ;;  %v2142_v21 = vmul.f32 %v2116_v39, %v14538_v7  ;;  %v14541_v10 = vsub.f32 %v11355_v63, %v11521_v62  ;;  %v14542_v0 = vsub.f32 %v11367_v58, %v11521_v62  ;;  %v2186_v26 = vld [vmem:[#allocation2 + $0xa] sm:$0xff]  ;;  %v2187_v6 = vld [vmem:[#allocation2 + $0x12] sm:$0xff] }
 0x242   :  { %v2028_v42 = vmul.f32 %v11577_v46, %v14539_v34  ;;  %2363 = vst.msk [vmem:[#allocation2 + $0xbb] sm:$0xff] %vm14497_vm1, %v2332_v20  ;;  %2364 = vst.msk [vmem:[#allocation2 + $0xc3] sm:$0xff] %vm14497_vm1, %v2333_v51  ;;  %v2143_v40 = vmul.f32 %v2117_v55, %v14540_v38  ;;  %v14543_v3 = vsub.f32 %v11373_v56, %v11521_v62  ;;  %v2432_v30 = vld [vmem:[#allocation2 + $0xeb] sm:$0xff]  ;;  %v11751_v45 = vld [vmem:[#allocation2 + $0x1a] sm:$0xff] }
 0x243   :  { %2365 = vst.msk [vmem:[#allocation2 + $0xcb] sm:$0xff] %vm14497_vm1, %v2334_v54  ;;  %v2029_v47 = vmul.f32 %v11577_v46, %v14541_v10  ;;  %v2030_v25 = vmul.f32 %v11577_v46, %v14542_v0  ;;  %2366 = vst.msk [vmem:[#allocation2 + $0xd3] sm:$0xff] %vm14497_vm1, %v2335_v35  ;;  %v14544_v63 = vsub.f32 %v11387_v53, %v11521_v62  ;;  %v11753_v60 = vld [vmem:[#allocation2 + $0x22] sm:$0xff]  ;;  %v11755_v53 = vld [vmem:[#allocation2 + $0x2a] sm:$0xff] }
 0x244   :  { %v2031_v41 = vmul.f32 %v11577_v46, %v14543_v3  ;;  %2167 = vst.msk [vmem:[#allocation2 + $0x43] sm:$0xff] %vm14497_vm1, %v2141_v31  ;;  %2168 = vst.msk [vmem:[#allocation2 + $0x4b] sm:$0xff] %vm14497_vm1, %v2142_v21  ;;  %v2060_v22 = vmul.f32 %v11582_v52, %v2028_v42  ;;  %v14545_v56 = vsub.f32 %v11396_v1, %v11521_v62  ;;  %v11765_v4 = vld [vmem:[#allocation2 + $0x32] sm:$0xff]  ;;  %v11770_v48 = vld [vmem:[#allocation2 + $0x1b] sm:$0xff] }
 0x245   :  { %v2032_v58 = vmul.f32 %v11577_v46, %v14544_v63  ;;  %v14546_v29 = vsub.f32 %v11408_v33, %v11521_v62  ;;  %2169 = vst.msk [vmem:[#allocation2 + $0x53] sm:$0xff] %vm14497_vm1, %v2143_v40  ;;  %v2061_v28 = vmul.f32 %v11582_v52, %v2029_v47  ;;  %v2062_v1 = vmul.f32 %v11582_v52, %v2030_v25  ;;  %v2217_v15 = vld [vmem:[#allocation2 + $0xb] sm:$0xff]  ;;  %v2218_v9 = vld [vmem:[#allocation2 + $0x13] sm:$0xff]  ;;  %v11772_v2 = vld [vmem:[#allocation2 + $0x23] sm:$0xff] }
 0x246   :  { %v2033_v24 = vmul.f32 %v11577_v46, %v14545_v56  ;;  %v2063_v13 = vmul.f32 %v11582_v52, %v2031_v41  ;;  %v14547_v33 = vsub.f32 %v11414_v36, %v11521_v62  ;;  %v2092_v57 = vadd.f32 %v11594_v50, %v2060_v22  ;;  %v11774_v43 = vld [vmem:[#allocation2 + $0x2b] sm:$0xff]  ;;  %v11778_v44 = vld [vmem:[#allocation2 + $0x33] sm:$0xff]  ;;  %v2431_v27 = vld [vmem:[#allocation2 + $0xe3] sm:$0xff] }
 0x247   :  { %v2034_v37 = vmul.f32 %v11577_v46, %v14546_v29  ;;  %v2064_v5 = vmul.f32 %v11582_v52, %v2032_v58  ;;  %v2248_v17 = vmax.f32 %v2186_v26, %v2217_v15  ;;  %v2249_v62 = vmax.f32 %v2187_v6, %v2218_v9  ;;  %v2279_v8 = vld [vmem:[#allocation2 + $0xc] sm:$0xff]  ;;  %v2280_v23 = vld [vmem:[#allocation2 + $0x14] sm:$0xff]  ;;  %v14548_v6 = vld [vmem:[#allocation26_spill] sm:$0xff] }
 0x248   :  { %v2035_v32 = vmul.f32 %v11577_v46, %v14547_v33  ;;  %v2065_v18 = vmul.f32 %v11582_v52, %v2033_v24  ;;  %v2093_v36 = vadd.f32 %v11594_v50, %v2061_v28  ;;  %v2094_v46 = vadd.f32 %v11594_v50, %v2062_v1  ;;  %v2401_v11 = vld [vmem:[#allocation2 + $0xe0] sm:$0xff]  ;;  %v2395_v54 = vld [vmem:[#allocation2 + $0xb0] sm:$0xff]  ;;  %vm11967_vm9 = vmand %vm2632_vm15, %vm2633_vm0 }
 0x249   :  { %v2250_v14 = vmax.f32 %v11751_v45, %v11770_v48  ;;  %v2251_v49 = vmax.f32 %v11753_v60, %v11772_v2  ;;  %v2095_v19 = vadd.f32 %v11594_v50, %v2063_v13  ;;  %v11786_v59 = vmul.f32 %v11582_v52, %v2034_v37  ;;  %v2396_v55 = vld [vmem:[#allocation2 + $0xb8] sm:$0xff]  ;;  %v2397_v35 = vld [vmem:[#allocation2 + $0xc0] sm:$0xff]  ;;  %vm12015_vm0 = vmand %vm63_vm10, %vm2653_vm7 }
 0x24a   :  { %v2252_v39 = vmax.f32 %v11755_v53, %v11774_v43  ;;  %v2310_v12 = vmax.f32 %v2248_v17, %v2279_v8  ;;  %v2311_v20 = vmax.f32 %v2249_v62, %v2280_v23  ;;  %v11791_v51 = vadd.f32 %v11594_v50, %v2064_v5  ;;  %v2398_v34 = vld [vmem:[#allocation2 + $0xc8] sm:$0xff]  ;;  %v2399_v42 = vld [vmem:[#allocation2 + $0xd0] sm:$0xff]  ;;  %v2400_v38 = vld [vmem:[#allocation2 + $0xd8] sm:$0xff] }
 0x24b   :  { %v2463_v61 = vmax.f32 %v2401_v11, %v2432_v30  ;;  %v2118_v31 = vmax.f32 %v2092_v57, 0.0  ;;  %v2119_v7 = vmax.f32 %v2093_v36, 0.0  ;;  %v2120_v21 = vmax.f32 %v2094_v46, 0.0  ;;  %v2426_v25 = vld [vmem:[#allocation2 + $0xbb] sm:$0xff]  ;;  %v2427_v3 = vld [vmem:[#allocation2 + $0xc3] sm:$0xff]  ;;  %v2428_v41 = vld [vmem:[#allocation2 + $0xcb] sm:$0xff] }
 0x24c   :  { %v2253_v40 = vmax.f32 %v11765_v4, %v11778_v44  ;;  %2341 = vst.msk [vmem:[#allocation2 + $0xb] sm:$0xff] %vm14497_vm1, %v2310_v12  ;;  %2342 = vst.msk [vmem:[#allocation2 + $0x13] sm:$0xff] %vm14497_vm1, %v2311_v20  ;;  %v2121_v10 = vmax.f32 %v2095_v19, 0.0  ;;  %v2122_v47 = vmax.f32 %v11791_v51, 0.0  ;;  %v2067_v0 = vmul.f32 %v11582_v52, %v2035_v32  ;;  %v14549_v58 = vld [vmem:[#allocation17_spill] sm:$0xff]  ;;  %v2492_v1 = vld [vmem:[#allocation2 + $0xe6] sm:$0xff] }
 0x24d   :  { %v2462_v26 = vmax.f32 %v2400_v38, %v2431_v27  ;;  %v2525_v63 = vmax.f32 %v2463_v61, %v14548_v6  ;;  %v2144_v22 = vmul.f32 %v2118_v31, %v14549_v58  ;;  %v11802_v56 = vadd.f32 %v11594_v50, %v2065_v18  ;;  %v2429_v24 = vld [vmem:[#allocation2 + $0xd3] sm:$0xff]  ;;  %v2430_v29 = vld [vmem:[#allocation2 + $0xdb] sm:$0xff]  ;;  %v2488_v9 = vld [vmem:[#allocation2 + $0xc6] sm:$0xff] }
 0x24e   :  { %v2457_v37 = vmax.f32 %v2395_v54, %v2426_v25  ;;  %v2458_v30 = vmax.f32 %v2396_v55, %v2427_v3  ;;  %v2459_v28 = vmax.f32 %v2397_v35, %v2428_v41  ;;  %v14550_v13 = vld [vmem:[#allocation18_spill] sm:$0xff]  ;;  %v2460_v52 = vmax.f32 %v2398_v34, %v2429_v24  ;;  %v2489_v5 = vld [vmem:[#allocation2 + $0xce] sm:$0xff]  ;;  %v14552_v18 = vld [vmem:[#allocation19_spill] sm:$0xff] }
 0x24f   :  { %v2145_v33 = vmul.f32 %v2119_v7, %v14550_v13  ;;  %v2461_v32 = vmax.f32 %v2399_v42, %v2430_v29  ;;  %v11805_v4 = vld [vmem:[#allocation2 + $0xb6] sm:$0xff]  ;;  %v11807_v15 = vld [vmem:[#allocation2 + $0xbe] sm:$0xff]  ;;  %2556 = vst.msk [vmem:[#allocation2 + $0xeb] sm:$0xff] %vm14497_vm1, %v2525_v63  ;;  %v2146_v62 = vmul.f32 %v2120_v21, %v14552_v18  ;;  %2170 = vst.msk [vmem:[#allocation2 + $0x5b] sm:$0xff] %vm14497_vm1, %v2144_v22  ;;  %vm2901_vm10 = vcmask 1042432  }
 0x250   :  { %v14551_v57 = vld [vmem:[#allocation25_spill] sm:$0xff]  ;;  %v2491_v46 = vld [vmem:[#allocation2 + $0xde] sm:$0xff]  ;;  %v2519_v44 = vmax.f32 %v2457_v37, %v2488_v9  ;;  %v2520_v8 = vmax.f32 %v2458_v30, %v2489_v5  ;;  %v14553_v19 = vld [vmem:[#allocation20_spill] sm:$0xff]  ;;  %v2098_v43 = vadd.f32 %v11594_v50, %v11786_v59  ;;  %vm2902_vm15 = vcmask 1046532  }
 0x251   :  { %v2524_v17 = vmax.f32 %v2462_v26, %v14551_v57  ;;  %v2490_v36 = vld [vmem:[#allocation2 + $0xd6] sm:$0xff]  ;;  %v2147_v11 = vmul.f32 %v2121_v10, %v14553_v19  ;;  %2171 = vst.msk [vmem:[#allocation2 + $0x63] sm:$0xff] %vm14497_vm1, %v2145_v33  ;;  %v2522_v12 = vmax.f32 %v2460_v52, %v2491_v46  ;;  %v2523_v20 = vmax.f32 %v2461_v32, %v2492_v1  ;;  %v2282_v51 = vld [vmem:[#allocation2 + $0x24] sm:$0xff]  ;;  %v2283_v54 = vld [vmem:[#allocation2 + $0x2c] sm:$0xff] }
 0x252   :  { %v2281_v23 = vld [vmem:[#allocation2 + $0x1c] sm:$0xff]  ;;  %v2521_v27 = vmax.f32 %v2459_v28, %v2490_v36  ;;  %v2284_v55 = vld [vmem:[#allocation2 + $0x34] sm:$0xff]  ;;  %2172 = vst.msk [vmem:[#allocation2 + $0x6b] sm:$0xff] %vm14497_vm1, %v2146_v62  ;;  %2550 = vst.msk [vmem:[#allocation2 + $0xbb] sm:$0xff] %vm14497_vm1, %v2519_v44  ;;  %v2313_v31 = vmax.f32 %v2251_v49, %v2282_v51  ;;  %v2314_v7 = vmax.f32 %v2252_v39, %v2283_v54  ;;  %v2123_v39 = vmax.f32 %v11802_v56, 0.0 }
 0x253   :  { %2555 = vst.msk [vmem:[#allocation2 + $0xe3] sm:$0xff] %vm14497_vm1, %v2524_v17  ;;  %v2312_v35 = vmax.f32 %v2250_v14, %v2281_v23  ;;  %2551 = vst.msk [vmem:[#allocation2 + $0xc3] sm:$0xff] %vm14497_vm1, %v2520_v8  ;;  %v2192_v61 = vld [vmem:[#allocation2 + $0x3a] sm:$0xff]  ;;  %v2315_v21 = vmax.f32 %v2253_v40, %v2284_v55  ;;  %v2193_v45 = vld [vmem:[#allocation2 + $0x42] sm:$0xff]  ;;  %v2099_v49 = vadd.f32 %v11594_v50, %v2067_v0  ;;  %v2124_v0 = vmax.f32 %v2098_v43, 0.0 }
 0x254   :  { %v11828_v34 = vld [vmem:[#allocation2] sm:$0xff]  ;;  %v14554_v48 = vld [vmem:[#allocation21_spill] sm:$0xff]  ;;  %2173 = vst.msk [vmem:[#allocation2 + $0x73] sm:$0xff] %vm14497_vm1, %v2147_v11  ;;  %2552 = vst.msk [vmem:[#allocation2 + $0xcb] sm:$0xff] %vm14497_vm1, %v2521_v27 }
 0x255   :  { %v2148_v14 = vmul.f32 %v2122_v47, %v14554_v48  ;;  %2553 = vst.msk [vmem:[#allocation2 + $0xd3] sm:$0xff] %vm14497_vm1, %v2522_v12  ;;  %2554 = vst.msk [vmem:[#allocation2 + $0xdb] sm:$0xff] %vm14497_vm1, %v2523_v20  ;;  %v2404_v60 = vld [vmem:[#allocation2 + $0xb] sm:$0xff]  ;;  %v2405_v38 = vld [vmem:[#allocation2 + $0x13] sm:$0xff]  ;;  %v2125_v56 = vmax.f32 %v2099_v49, 0.0 }
 0x256   :  { %2343 = vst.msk [vmem:[#allocation2 + $0x1b] sm:$0xff] %vm14497_vm1, %v2312_v35  ;;  %v2194_v2 = vld [vmem:[#allocation2 + $0x4a] sm:$0xff]  ;;  %v2195_v53 = vld [vmem:[#allocation2 + $0x52] sm:$0xff]  ;;  %2344 = vst.msk [vmem:[#allocation2 + $0x23] sm:$0xff] %vm14497_vm1, %v2313_v31  ;;  %v2435_v26 = vmax.f32 %v11828_v34, %v2404_v60 }
 0x257   :  { %2345 = vst.msk [vmem:[#allocation2 + $0x2b] sm:$0xff] %vm14497_vm1, %v2314_v7  ;;  %2346 = vst.msk [vmem:[#allocation2 + $0x33] sm:$0xff] %vm14497_vm1, %v2315_v21  ;;  %v11843_v42 = vld [vmem:[#allocation2 + $0x8] sm:$0xff]  ;;  %v2223_v40 = vld [vmem:[#allocation2 + $0x3b] sm:$0xff] }
 0x258   :  { %v2224_v10 = vld [vmem:[#allocation2 + $0x43] sm:$0xff]  ;;  %2174 = vst.msk [vmem:[#allocation2 + $0x7b] sm:$0xff] %vm14497_vm1, %v2148_v14  ;;  %v2225_v47 = vld [vmem:[#allocation2 + $0x4b] sm:$0xff]  ;;  %v2254_v25 = vmax.f32 %v2192_v61, %v2223_v40  ;;  %v2196_v58 = vld [vmem:[#allocation2 + $0x5a] sm:$0xff]  ;;  %v2436_v46 = vmax.f32 %v11843_v42, %v2405_v38 }
 0x259   :  { %v2255_v59 = vmax.f32 %v2193_v45, %v2224_v10  ;;  %v2285_v3 = vld [vmem:[#allocation2 + $0x3c] sm:$0xff]  ;;  %v2286_v50 = vld [vmem:[#allocation2 + $0x44] sm:$0xff]  ;;  %v2375_v41 = vld [vmem:[#allocation2 + $0x10] sm:$0xff]  ;;  %v2256_v6 = vmax.f32 %v2194_v2, %v2225_v47 }
 0x25a   :  { %v2287_v63 = vld [vmem:[#allocation2 + $0x4c] sm:$0xff]  ;;  %v14555_v24 = vld [vmem:[#allocation22_spill] sm:$0xff]  ;;  %v2316_v37 = vmax.f32 %v2254_v25, %v2285_v3  ;;  %v14556_v52 = vld [vmem:[#allocation23_spill] sm:$0xff] }
 0x25b   :  { %v2226_v22 = vld [vmem:[#allocation2 + $0x53] sm:$0xff]  ;;  %v2149_v29 = vmul.f32 %v2123_v39, %v14555_v24  ;;  %v2317_v30 = vmax.f32 %v2255_v59, %v2286_v50  ;;  %v2197_v28 = vld [vmem:[#allocation2 + $0x62] sm:$0xff]  ;;  %v2150_v32 = vmul.f32 %v2124_v0, %v14556_v52  ;;  %v2318_v9 = vmax.f32 %v2256_v6, %v2287_v63  ;;  %v2198_v5 = vld [vmem:[#allocation2 + $0x6a] sm:$0xff] }
 0x25c   :  { %v2227_v1 = vld [vmem:[#allocation2 + $0x5b] sm:$0xff]  ;;  %v2228_v13 = vld [vmem:[#allocation2 + $0x63] sm:$0xff]  ;;  %v2257_v33 = vmax.f32 %v2195_v53, %v2226_v22  ;;  %v2229_v57 = vld [vmem:[#allocation2 + $0x6b] sm:$0xff]  ;;  %2347 = vst.msk [vmem:[#allocation2 + $0x3b] sm:$0xff] %vm14497_vm1, %v2316_v37 }
 0x25d   :  { %v2258_v17 = vmax.f32 %v2196_v58, %v2227_v1  ;;  %v2288_v18 = vld [vmem:[#allocation2 + $0x54] sm:$0xff]  ;;  %v14557_v62 = vld [vmem:[#allocation24_spill] sm:$0xff]  ;;  %2175 = vst.msk [vmem:[#allocation2 + $0x83] sm:$0xff] %vm14497_vm1, %v2149_v29  ;;  %2348 = vst.msk [vmem:[#allocation2 + $0x43] sm:$0xff] %vm14497_vm1, %v2317_v30  ;;  %v2259_v31 = vmax.f32 %v2197_v28, %v2228_v13  ;;  %v2260_v7 = vmax.f32 %v2198_v5, %v2229_v57 }
 0x25e   :  { %v2151_v36 = vmul.f32 %v2125_v56, %v14557_v62  ;;  %v2199_v44 = vld [vmem:[#allocation2 + $0x72] sm:$0xff]  ;;  %v2289_v23 = vld [vmem:[#allocation2 + $0x5c] sm:$0xff]  ;;  %v2319_v19 = vmax.f32 %v2257_v33, %v2288_v18  ;;  %2176 = vst.msk [vmem:[#allocation2 + $0x8b] sm:$0xff] %vm14497_vm1, %v2150_v32  ;;  %2349 = vst.msk [vmem:[#allocation2 + $0x4b] sm:$0xff] %vm14497_vm1, %v2318_v9 }
 0x25f   :  { %v2230_v8 = vld [vmem:[#allocation2 + $0x73] sm:$0xff]  ;;  %v2406_v27 = vld [vmem:[#allocation2 + $0x1b] sm:$0xff]  ;;  %v2320_v20 = vmax.f32 %v2258_v17, %v2289_v23  ;;  %v2378_v54 = vld [vmem:[#allocation2 + $0x28] sm:$0xff] }
 0x260   :  { %v2376_v11 = vld [vmem:[#allocation2 + $0x18] sm:$0xff]  ;;  %2177 = vst.msk [vmem:[#allocation2 + $0x93] sm:$0xff] %vm14497_vm1, %v2151_v36  ;;  %v2377_v51 = vld [vmem:[#allocation2 + $0x20] sm:$0xff]  ;;  %v2437_v35 = vmax.f32 %v2375_v41, %v2406_v27  ;;  %2350 = vst.msk [vmem:[#allocation2 + $0x53] sm:$0xff] %vm14497_vm1, %v2319_v19  ;;  %v2261_v14 = vmax.f32 %v2199_v44, %v2230_v8 }
 0x261   :  { %v2466_v12 = vld [vmem:[#allocation2 + $0x16] sm:$0xff]  ;;  %v2407_v55 = vld [vmem:[#allocation2 + $0x23] sm:$0xff]  ;;  %v2408_v21 = vld [vmem:[#allocation2 + $0x2b] sm:$0xff]  ;;  %2351 = vst.msk [vmem:[#allocation2 + $0x5b] sm:$0xff] %vm14497_vm1, %v2320_v20 }
 0x262   :  { %v2497_v61 = vmax.f32 %v2435_v26, %v2466_v12  ;;  %v2438_v34 = vmax.f32 %v2376_v11, %v2407_v55  ;;  %v2467_v45 = vld [vmem:[#allocation2 + $0x1e] sm:$0xff]  ;;  %v2468_v48 = vld [vmem:[#allocation2 + $0x26] sm:$0xff]  ;;  %v2469_v60 = vld [vmem:[#allocation2 + $0x2e] sm:$0xff]  ;;  %v2439_v42 = vmax.f32 %v2377_v51, %v2408_v21 }
 0x263   :  { %v2498_v2 = vmax.f32 %v2436_v46, %v2467_v45  ;;  %v2499_v53 = vmax.f32 %v2437_v35, %v2468_v48  ;;  %v2409_v43 = vld [vmem:[#allocation2 + $0x33] sm:$0xff]  ;;  %v11862_v39 = vld [vmem:[#allocation2 + $0xa8] sm:$0xff]  ;;  %v2410_v63 = vld [vmem:[#allocation2 + $0x3b] sm:$0xff] }
 0x264   :  { %2528 = vst.msk [vmem:[#allocation2 + $0xb] sm:$0xff] %vm14497_vm1, %v2497_v61  ;;  %v11860_v49 = vld [vmem:[#allocation3 + $0x10] sm:$0xf]  ;;  %v2500_v38 = vmax.f32 %v2438_v34, %v2469_v60  ;;  %v2379_v40 = vld [vmem:[#allocation2 + $0x30] sm:$0xff]  ;;  %v2440_v10 = vmax.f32 %v2378_v54, %v2409_v43  ;;  %v2290_v47 = vld [vmem:[#allocation2 + $0x64] sm:$0xff] }
 0x265   :  { %v2291_v25 = vld [vmem:[#allocation2 + $0x6c] sm:$0xff]  ;;  %2529 = vst.msk [vmem:[#allocation2 + $0x13] sm:$0xff] %vm14497_vm1, %v2498_v2  ;;  %2530 = vst.msk [vmem:[#allocation2 + $0x1b] sm:$0xff] %vm14497_vm1, %v2499_v53  ;;  %v11868_v3 = vld [vmem:[#allocation2 + $0x7a] sm:$0xff]  ;;  %v2321_v0 = vmax.f32 %v2259_v31, %v2290_v47  ;;  %v2441_v56 = vmax.f32 %v2379_v40, %v2410_v63  ;;  %v2812_v37 = vshll.u32 %v11860_v49, 16  ;;  %v2816_v52 = vshrl.u32 %v11860_v49, 16 }
 0x266   :  { %v11864_v59 = vld [vmem:[#allocation2 + $0xb3] sm:$0xff]  ;;  %v2322_v41 = vmax.f32 %v2260_v7, %v2291_v25  ;;  %2531 = vst.msk [vmem:[#allocation2 + $0x23] sm:$0xff] %vm14497_vm1, %v2500_v38  ;;  %v2381_v6 = vld [vmem:[#allocation2 + $0x40] sm:$0xff]  ;;  %v11875_v33 = vld [vmem:[#allocation2 + $0x48] sm:$0xff] }
 0x267   :  { %v2292_v50 = vld [vmem:[#allocation2 + $0x74] sm:$0xff]  ;;  %v2411_v22 = vld [vmem:[#allocation2 + $0x43] sm:$0xff]  ;;  %2352 = vst.msk [vmem:[#allocation2 + $0x63] sm:$0xff] %vm14497_vm1, %v2321_v0  ;;  %v2456_v9 = vmax.f32 %v11862_v39, %v11864_v59  ;;  %v2412_v17 = vld [vmem:[#allocation2 + $0x4b] sm:$0xff]  ;;  %v11889_v20 = vrot.slane %v2812_v37, 5  ;;  %v11896_v34 = vrot.slane %v2816_v52, 4 }
 0x268   :  { %v2380_v26 = vld [vmem:[#allocation2 + $0x38] sm:$0xff]  ;;  %v2323_v58 = vmax.f32 %v2261_v14, %v2292_v50  ;;  %2353 = vst.msk [vmem:[#allocation2 + $0x6b] sm:$0xff] %vm14497_vm1, %v2322_v41  ;;  %v2472_v28 = vld [vmem:[#allocation2 + $0x46] sm:$0xff]  ;;  %v2383_v57 = vld [vmem:[#allocation2 + $0x50] sm:$0xff]  ;;  %v2443_v8 = vmax.f32 %v2381_v6, %v2412_v17 }
 0x269   :  { %v2470_v24 = vld [vmem:[#allocation2 + $0x36] sm:$0xff]  ;;  %v2471_v29 = vld [vmem:[#allocation2 + $0x3e] sm:$0xff]  ;;  %v2442_v30 = vmax.f32 %v2380_v26, %v2411_v22  ;;  %v2503_v5 = vmax.f32 %v2441_v56, %v2472_v28  ;;  %v2473_v23 = vld [vmem:[#allocation2 + $0x4e] sm:$0xff]  ;;  %v11899_v45 = vmax.f32 %v2456_v9, %v11807_v15 }
 0x26a   :  { %v2501_v1 = vmax.f32 %v2439_v42, %v2470_v24  ;;  %v2502_v13 = vmax.f32 %v2440_v10, %v2471_v29  ;;  %2354 = vst.msk [vmem:[#allocation2 + $0x73] sm:$0xff] %vm14497_vm1, %v2323_v58  ;;  %v11878_v32 = vld [vmem:[#allocation2 + $0x7b] sm:$0xff]  ;;  %v2413_v18 = vld [vmem:[#allocation2 + $0x53] sm:$0xff]  ;;  %v2202_v51 = vld [vmem:[#allocation2 + $0x8a] sm:$0xff] }
 0x26b   :  { %v11882_v62 = vld [vmem:[#allocation2 + $0x82] sm:$0xff]  ;;  %v2560_v36 = vld [vmem:[#allocation2 + $0xb] ss:$2 sm:$0xf]  ;;  %v2384_v46 = vld [vmem:[#allocation2 + $0x58] sm:$0xff]  ;;  %2534 = vst.msk [vmem:[#allocation2 + $0x3b] sm:$0xff] %vm14497_vm1, %v2503_v5  ;;  %v2504_v12 = vmax.f32 %v2442_v30, %v2473_v23  ;;  %v2444_v55 = vmax.f32 %v11875_v33, %v2413_v18  ;;  %v2262_v43 = vmax.f32 %v11868_v3, %v11878_v32 }
 0x26c   :  { %2532 = vst.msk [vmem:[#allocation2 + $0x2b] sm:$0xff] %vm14497_vm1, %v2501_v1  ;;  %2533 = vst.msk [vmem:[#allocation2 + $0x33] sm:$0xff] %vm14497_vm1, %v2502_v13  ;;  %v2414_v44 = vld [vmem:[#allocation2 + $0x5b] sm:$0xff]  ;;  %v9194_v11 = vpack.c.bf16 %v2560_v36, %v2560_v36  ;;  %v11891_v54 = vld [vmem:[#allocation2 + $0x92] sm:$0xff] }
 0x26d   :  { %v11886_v19 = vld [vmem:[#allocation2 + $0x9b] sm:$0xff]  ;;  %v2445_v35 = vmax.f32 %v2383_v57, %v2414_v44  ;;  %v2232_v7 = vld [vmem:[#allocation2 + $0x83] sm:$0xff]  ;;  %v2233_v21 = vld [vmem:[#allocation2 + $0x8b] sm:$0xff]  ;;  %2535 = vst.msk [vmem:[#allocation2 + $0x43] sm:$0xff] %vm14497_vm1, %v2504_v12 }
 0x26e   :  { %v2474_v27 = vld [vmem:[#allocation2 + $0x56] sm:$0xff]  ;;  %v2566_v48 = vshll.u32 %v9194_v11, 16  ;;  %v2569_v14 = vshrl.u32 %v9194_v11, 16  ;;  %v2589_v2 = vld [vmem:[#allocation2 + $0x21] ss:$2 sm:$0xf]  ;;  %v2263_v38 = vmax.f32 %v11882_v62, %v2232_v7  ;;  %v2264_v40 = vmax.f32 %v2202_v51, %v2233_v21 }
 0x26f   :  { %v2505_v61 = vmax.f32 %v2443_v8, %v2474_v27  ;;  %v11894_v31 = vld [vmem:[#allocation2 + $0x9a] sm:$0xff]  ;;  %v2579_v49 = vld [vmem:[#allocation3] sm:$0x8]  ;;  %v9195_v39 = vpack.c.bf16 %v2589_v2, %v2589_v2  ;;  %v2415_v42 = vld [vmem:[#allocation2 + $0x63] sm:$0xff]  ;;  %v2819_v51 = vor.u32 %v11896_v34, %v11889_v20 }
 0x270   :  { %v2234_v53 = vld [vmem:[#allocation2 + $0x93] sm:$0xff]  ;;  %v2568_v47 = vrot.slane %v2566_v48, 5  ;;  %v2571_v25 = vrot.slane %v2569_v14, 4  ;;  %v2446_v59 = vmax.f32 %v2384_v46, %v2415_v42  ;;  %v2475_v3 = vld [vmem:[#allocation2 + $0x5e] sm:$0xff]  ;;  %v2476_v50 = vld [vmem:[#allocation2 + $0x66] sm:$0xff]  ;;  %v2266_v41 = vmax.f32 %v11894_v31, %v11886_v19 }
 0x271   :  { %2536 = vst.msk [vmem:[#allocation2 + $0x4b] sm:$0xff] %vm14497_vm1, %v2505_v61  ;;  %v2265_v10 = vmax.f32 %v11891_v54, %v2234_v53  ;;  %v11919_v0 = vld [vmem:[#allocation3 + $0x10] sm:$0xf]  ;;  %v2585_v26 = vld [vmem:[#allocation3 + $0x4] sm:$0x3]  ;;  %v2595_v6 = vshrl.u32 %v9195_v39, 16  ;;  %v2506_v56 = vmax.f32 %v2444_v55, %v2475_v3  ;;  %v2507_v24 = vmax.f32 %v2445_v35, %v2476_v50 }
 0x272   :  { %v2598_v63 = vshll.u32 %v9195_v39, 16  ;;  %v11923_v58 = vld [vmem:[#allocation2 + $0x60] sm:$0xff]  ;;  %v2477_v22 = vld [vmem:[#allocation2 + $0x6e] sm:$0xff]  ;;  %v2572_v37 = vor.u32 %v2571_v25, %v2568_v47  ;;  %v2580_v30 = vsel %vm11903_vm5, %v2568_v47, %v2579_v49  ;;  %v2970_v19 = vrot.slane %v11919_v0, 7  ;;  %v11958_v48 = vld [vmem:[#allocation3 + $0x10] sm:$0xf] }
 0x273   :  { %v2293_v29 = vld [vmem:[#allocation2 + $0x7c] sm:$0xff]  ;;  %v2508_v28 = vmax.f32 %v2446_v59, %v2477_v22  ;;  %v2294_v1 = vld [vmem:[#allocation2 + $0x84] sm:$0xff]  ;;  %v2295_v13 = vld [vmem:[#allocation2 + $0x8c] sm:$0xff]  ;;  %2581 = vst [vmem:[#allocation3] sm:$0x8] %v2580_v30  ;;  %v2597_v32 = vrot.slane %v2595_v6, 5  ;;  %v2328_v54 = vmax.f32 %v2266_v41, %v11706_v16 }
 0x274   :  { %v2296_v33 = vld [vmem:[#allocation2 + $0x94] sm:$0xff]  ;;  %v2324_v52 = vmax.f32 %v2262_v43, %v2293_v29  ;;  %v2600_v9 = vrot.slane %v2598_v63, 6  ;;  %2537 = vst.msk [vmem:[#allocation2 + $0x53] sm:$0xff] %vm14497_vm1, %v2506_v56  ;;  %2538 = vst.msk [vmem:[#allocation2 + $0x5b] sm:$0xff] %vm14497_vm1, %v2507_v24  ;;  %v2325_v17 = vmax.f32 %v2263_v38, %v2294_v1  ;;  %v2326_v18 = vmax.f32 %v2264_v40, %v2295_v13  ;;  %v11935_v62 = vld [vmem:[#allocation2 + $0x68] sm:$0xff] }
 0x275   :  { %v2618_v57 = vld [vmem:[#allocation2 + $0x37] ss:$2 sm:$0xf]  ;;  %v2573_v36 = vrot.slane %v2572_v37, 4  ;;  %v2608_v46 = vld [vmem:[#allocation3 + $0x4] sm:$0xc]  ;;  %v2327_v11 = vmax.f32 %v2265_v10, %v2296_v33 }
 0x276   :  { %v2614_v8 = vld [vmem:[#allocation3 + $0x8] sm:$0x1]  ;;  %v9196_v23 = vpack.c.bf16 %v2618_v57, %v2618_v57  ;;  %2355 = vst.msk [vmem:[#allocation2 + $0x7b] sm:$0xff] %vm14497_vm1, %v2324_v52  ;;  %2539 = vst.msk [vmem:[#allocation2 + $0x63] sm:$0xff] %vm14497_vm1, %v2508_v28  ;;  %v2601_v27 = vor.u32 %v2600_v9, %v2597_v32  ;;  %v2602_v12 = vrot.slane %v2597_v32, 4  ;;  %v2417_v49 = vld [vmem:[#allocation2 + $0x73] sm:$0xff] }
 0x277   :  { %2356 = vst.msk [vmem:[#allocation2 + $0x83] sm:$0xff] %vm14497_vm1, %v2325_v17  ;;  %2357 = vst.msk [vmem:[#allocation2 + $0x8b] sm:$0xff] %vm14497_vm1, %v2326_v18  ;;  %v11951_v55 = vld [vmem:[#allocation2 + $0xae] sm:$0xff]  ;;  %v2717_v35 = vld [vmem:[#allocation2 + $0xc6] ss:$2 sm:$0xf]  ;;  %v2586_v61 = vsel %vm11912_vm13, %v2573_v36, %v2585_v26  ;;  %v2448_v37 = vmax.f32 %v11935_v62, %v2417_v49 }
 0x278   :  { %v2624_v31 = vshrl.u32 %v9196_v23, 16  ;;  %v2627_v7 = vshll.u32 %v9196_v23, 16  ;;  %2358 = vst.msk [vmem:[#allocation2 + $0x93] sm:$0xff] %vm14497_vm1, %v2327_v11  ;;  %2549 = vst.msk [vmem:[#allocation2 + $0xb3] sm:$0xff] %vm14497_vm1, %v11899_v45  ;;  %v9201_v21 = vpack.c.bf16 %v2717_v35, %v2717_v35  ;;  %v2609_v16 = vsel %vm11929_vm3, %v2601_v27, %v2608_v46  ;;  %v2635_v14 = vld [vmem:[#allocation3 + $0x8] sm:$0xe] }
 0x279   :  { %2587 = vst [vmem:[#allocation3 + $0x4] sm:$0x3] %v2586_v61  ;;  %v2615_v34 = vsel %vm11939_vm4, %v2602_v12, %v2614_v8  ;;  %2359 = vst.msk [vmem:[#allocation2 + $0x9b] sm:$0xff] %vm14497_vm1, %v2328_v54  ;;  %v2416_v43 = vld [vmem:[#allocation2 + $0x6b] sm:$0xff]  ;;  %v11971_v38 = vrot.slane %v2819_v51, 4  ;;  %v11975_v40 = vrot.slane %v2970_v19, 4 }
 0x27a   :  { %2610 = vst [vmem:[#allocation3 + $0x4] sm:$0xc] %v2609_v16  ;;  %2616 = vst [vmem:[#allocation3 + $0x8] sm:$0x1] %v2615_v34  ;;  %v2626_v2 = vrot.slane %v2624_v31, 6  ;;  %v2629_v53 = vrot.slane %v2627_v7, 7  ;;  %v2447_v56 = vmax.f32 %v11923_v58, %v2416_v43 }
 0x27b   :  { %v2723_v39 = vshrl.u32 %v9201_v21, 16  ;;  %v2726_v42 = vshll.u32 %v9201_v21, 16  ;;  %v3259_v10 = vshrl.u32 %v11958_v48, 16  ;;  %v9723_v47 = vld [vmem:[%s14461_s5 + $0x40] sm:$0xff]   ;;  %v9725_v59 = vld [vmem:[%s14461_s5 + $0x48] sm:$0xff]   ;;  %v2387_v29 = vld [vmem:[#allocation2 + $0x70] sm:$0xff] }
 0x27c   :  { %v9724_v25 = vld [vmem:[%s14461_s5] sm:$0xff]   ;;  %v2943_v3 = vld [vmem:[#allocation3] sm:$0x8]  ;;  %v2630_v50 = vor.u32 %v2629_v53, %v2626_v2  ;;  %v2639_v24 = vld [vmem:[#allocation2 + $0x4d] ss:$2 sm:$0xf]  ;;  %9256 = vmatprep.subr.bf16.mxu1 %v9723_v47 }
 0x27d   :  { %v2764_v41 = vld [vmem:[#allocation3] sm:$0xf]  ;;  %v11987_v26 = vrot.slane %v2723_v39, 5  ;;  %v11989_v6 = vrot.slane %v2726_v42, 6  ;;  %v8900_v30 = vrot.slane %v2943_v3, 11  ;;  %v9197_v1 = vpack.c.bf16 %v2639_v24, %v2639_v24  ;;  %v2388_v13 = vld [vmem:[#allocation2 + $0x78] sm:$0xff]  ;;  %9257 = vmatpush3.bf16.msra.mxu1 %v9724_v25 }
 0x27e   :  { %v2773_v63 = vshrl.u32 %v2764_v41, 16  ;;  %v2776_v22 = vshll.u32 %v2764_v41, 16  ;;  %v2636_v28 = vsel %vm11967_vm9, %v2630_v50, %v2635_v14  ;;  %v11995_v33 = vld [vmem:[#allocation2 + $0x80] sm:$0xff]  ;;  %v3262_v32 = vshll.u32 %v11958_v48, 16  ;;  %v2420_v18 = vld [vmem:[#allocation2 + $0x8b] sm:$0xff]  ;;  %9258 = vmatprep.subr.bf16.mxu1 %v9725_v59  ;;  %v2478_v12 = vld [vmem:[#allocation2 + $0x76] sm:$0xff] }
 0x27f   :  { %v11997_v52 = vld [vmem:[#allocation2 + $0xa3] sm:$0xff]  ;;  %2637 = vst [vmem:[#allocation3 + $0x8] sm:$0xe] %v2636_v28  ;;  %v2418_v57 = vld [vmem:[#allocation2 + $0x7b] sm:$0xff]  ;;  %v2729_v62 = vor.u32 %v11989_v6, %v11987_v26  ;;  %v2730_v36 = vrot.slane %v11987_v26, 4  ;;  %v2645_v46 = vshrl.u32 %v9197_v1, 16  ;;  %v2451_v21 = vmax.f32 %v11995_v33, %v2420_v18 }
 0x280   :  { %v2775_v58 = vrot.slane %v2773_v63, 4  ;;  %v2778_v9 = vrot.slane %v2776_v22, 5  ;;  %v2419_v17 = vld [vmem:[#allocation2 + $0x83] sm:$0xff]  ;;  %v2648_v8 = vshll.u32 %v9197_v1, 16  ;;  %v2449_v11 = vmax.f32 %v2387_v29, %v2418_v57  ;;  %v12005_v35 = vld [vmem:[#allocation2 + $0xab] sm:$0xff]  ;;  %v2392_v42 = vld [vmem:[#allocation2 + $0x98] sm:$0xff] }
 0x281   :  { %v12003_v23 = vld [vmem:[#allocation2 + $0x88] sm:$0xff]  ;;  %v2450_v27 = vmax.f32 %v2388_v13, %v2419_v17  ;;  %v2479_v51 = vld [vmem:[#allocation2 + $0x7e] sm:$0xff]  ;;  %v2509_v34 = vmax.f32 %v2447_v56, %v2478_v12  ;;  %v2647_v49 = vrot.slane %v2645_v46, 7  ;;  %v2391_v39 = vld [vmem:[#allocation2 + $0x90] sm:$0xff]  ;;  %v2454_v63 = vmax.f32 %v2392_v42, %v11997_v52 }
 0x282   :  { %v2480_v54 = vld [vmem:[#allocation2 + $0x86] sm:$0xff]  ;;  %v2779_v7 = vor.u32 %v2778_v9, %v2775_v58  ;;  %v2481_v16 = vld [vmem:[#allocation2 + $0x8e] sm:$0xff]  ;;  %v2510_v14 = vmax.f32 %v2448_v37, %v2479_v51  ;;  %v2422_v41 = vld [vmem:[#allocation2 + $0x9b] sm:$0xff]  ;;  %v12076_v5 = vrot.slane %v3262_v32, 7 }
 0x283   :  { %v2944_v61 = vld [vmem:[#allocation3 + $0x4] sm:$0xf]  ;;  %v2511_v25 = vmax.f32 %v2449_v11, %v2480_v54  ;;  %v2512_v59 = vmax.f32 %v2450_v27, %v2481_v16  ;;  %2540 = vst.msk [vmem:[#allocation2 + $0x6b] sm:$0xff] %vm14497_vm1, %v2509_v34  ;;  %v2393_v3 = vld [vmem:[#allocation2 + $0xa0] sm:$0xff]  ;;  %v2421_v50 = vld [vmem:[#allocation2 + $0x93] sm:$0xff]  ;;  %v2650_v33 = vor.u32 %v2648_v8, %v2647_v49  ;;  %v2453_v52 = vmax.f32 %v2391_v39, %v2422_v41 }
 0x284   :  { %v2765_v31 = vld [vmem:[#allocation3 + $0x4] sm:$0xf]  ;;  %v2961_v2 = vrot.slane %v2944_v61, 7  ;;  %v2780_v47 = vrot.slane %v2779_v7, 4  ;;  %2541 = vst.msk [vmem:[#allocation2 + $0x73] sm:$0xff] %vm14497_vm1, %v2510_v14  ;;  %v2455_v58 = vmax.f32 %v2393_v3, %v12005_v35  ;;  %v2482_v9 = vld [vmem:[#allocation2 + $0x96] sm:$0xff] }
 0x285   :  { %v2782_v53 = vshll.u32 %v2765_v31, 16  ;;  %v2786_v43 = vshrl.u32 %v2765_v31, 16  ;;  %v2655_v1 = vld [vmem:[#allocation3 + $0xc] sm:$0x7]  ;;  %v9726_v13 = vld [vmem:[%s14461_s5 + $0x8] sm:$0xff]   ;;  %2542 = vst.msk [vmem:[#allocation2 + $0x7b] sm:$0xff] %vm14497_vm1, %v2511_v25  ;;  %v2513_v12 = vmax.f32 %v2451_v21, %v2482_v9 }
 0x286   :  { %v2962_v56 = vsel %vm10084_vm2, %v8900_v30, %v2961_v2  ;;  %v2963_v24 = vrot.slane %v2961_v2, 4  ;;  %2543 = vst.msk [vmem:[#allocation2 + $0x83] sm:$0xff] %vm14497_vm1, %v2512_v59  ;;  %v2452_v30 = vmax.f32 %v12003_v23, %v2421_v50  ;;  %v2733_v57 = vld [vmem:[#allocation3 + $0x1c] sm:$0xc]  ;;  %v9727_v17 = vld [vmem:[%s14461_s5 + $0x50] sm:$0xff]   ;;  %v2516_v23 = vmax.f32 %v2454_v63, %v11951_v55  ;;  %9259 = vmatpush3.bf16.msra.mxu1 %v9726_v13  ;;  %v2483_v7 = vld [vmem:[#allocation2 + $0x9e] sm:$0xff] }
 0x287   :  { %v2784_v29 = vrot.slane %v2782_v53, 5  ;;  %v2788_v37 = vrot.slane %v2786_v43, 4  ;;  %2982 = vrot.lane.b32.xlu1 %v2962_v56, %s9978_s1  ;;  %v2945_v18 = vld [vmem:[#allocation3 + $0x8] sm:$0xf]  ;;  %v12033_v51 = vld [vmem:[#allocation3 + $0x10] sm:$0xf]  ;;  %v2656_v31 = vsel %vm12015_vm0, %v2650_v33, %v2655_v1  ;;  %9260 = vmatprep.subr.bf16.mxu1 %v9727_v17  ;;  %v2517_v2 = vmax.f32 %v2455_v58, %v11805_v4 }
 0x288   :  { %v2766_v11 = vld [vmem:[#allocation3 + $0x8] sm:$0xf]  ;;  %v2964_v54 = vrot.slane %v2945_v18, 7  ;;  %v2484_v16 = vld [vmem:[#allocation2 + $0xa6] sm:$0xff]  ;;  %2657 = vst [vmem:[#allocation3 + $0xc] sm:$0x7] %v2656_v31  ;;  %v2514_v21 = vmax.f32 %v2452_v30, %v2483_v7  ;;  %v2734_v4 = vsel %vm11929_vm3, %v2729_v62, %v2733_v57 }
 0x289   :  { %v2785_v8 = vsel %vm10131_vm8, %v2780_v47, %v2784_v29  ;;  %v2789_v27 = vor.u32 %v2788_v37, %v2784_v29  ;;  %v2792_v35 = vshll.u32 %v2766_v11, 16  ;;  %v2796_v61 = vshrl.u32 %v2766_v11, 16  ;;  %v9728_v34 = vld [vmem:[%s14461_s5 + $0x10] sm:$0xff]   ;;  %2544 = vst.msk [vmem:[#allocation2 + $0x8b] sm:$0xff] %vm14497_vm1, %v2513_v12  ;;  %2547 = vst.msk [vmem:[#allocation2 + $0xa3] sm:$0xff] %vm14497_vm1, %v2516_v23  ;;  %v9729_v43 = vld [vmem:[%s14461_s5 + $0x58] sm:$0xff]  }
 0x28a   :  { %v2515_v55 = vmax.f32 %v2453_v52, %v2484_v16  ;;  %v2736_v53 = vld [vmem:[#allocation3 + $0x20] sm:$0x1]  ;;  %v2965_v49 = vsel %vm10084_vm2, %v2963_v24, %v2964_v54  ;;  %v2915_v47 = vrot.slane %v12033_v51, 5  ;;  %v12050_v25 = vld [vmem:[#allocation3 + $0x10] sm:$0xf]  ;;  %2545 = vst.msk [vmem:[#allocation2 + $0x93] sm:$0xff] %vm14497_vm1, %v2514_v21  ;;  %9261 = vmatpush3.bf16.msra.mxu1 %v9728_v34 }
 0x28b   :  { %v2790_v14 = vrot.slane %v2789_v27, 4  ;;  %2851 = vrot.lane.b32.xlu1 %v2785_v8, %s9978_s1  ;;  %v2794_v39 = vrot.slane %v2792_v35, 5  ;;  %v2798_v42 = vrot.slane %v2796_v61, 4  ;;  %2984 = vrot.lane.b32.xlu0 %v2965_v49, %s9978_s1  ;;  %2548 = vst.msk [vmem:[#allocation2 + $0xab] sm:$0xff] %vm14497_vm1, %v2517_v2  ;;  %v12061_v59 = vld [vmem:[#allocation3 + $0x4] sm:$0xc] }
 0x28c   :  { %2546 = vst.msk [vmem:[#allocation2 + $0x9b] sm:$0xff] %vm14497_vm1, %v2515_v55  ;;  %v12065_v3 = vrot.slane %v3259_v10, 6  ;;  %v9730_v50 = vld [vmem:[%s14461_s5 + $0x18] sm:$0xff]   ;;  %2735 = vst [vmem:[#allocation3 + $0x1c] sm:$0xc] %v2734_v4  ;;  %v2737_v10 = vsel %vm11939_vm4, %v2730_v36, %v2736_v53  ;;  %9262 = vmatprep.subr.bf16.mxu1 %v9729_v43  ;;  %v9731_v62 = vld [vmem:[%s14461_s5 + $0x60] sm:$0xff]  }
 0x28d   :  { %v12070_v41 = vld [vmem:[#allocation3 + $0x10] sm:$0xf]  ;;  %v2795_v63 = vsel %vm10131_vm8, %v2790_v14, %v2794_v39  ;;  %v12082_v6 = vld [vmem:[#allocation3 + $0x4] sm:$0xf]  ;;  %v2747_v56 = vld [vmem:[#allocation3] sm:$0xf]  ;;  %v2799_v24 = vor.u32 %v2798_v42, %v2794_v39 }
 0x28e   :  { %v2659_v29 = vld [vmem:[#allocation2 + $0x84] ss:$2 sm:$0xf]  ;;  %2738 = vst [vmem:[#allocation3 + $0x20] sm:$0x1] %v2737_v10  ;;  %vm14572_vm3 = vcmask 519168   ;;  %9263 = vmatpush3.bf16.msra.mxu1 %v9730_v50 }
 0x28f   :  { %v2885_v37 = vld [vmem:[#allocation3] sm:$0xe]  ;;  %2755 = vst.msk [vmem:[#allocation7] sm:$0xf] %vm14572_vm3, %v2747_v56  ;;  %v3188_v48 = vrot.slane %v12050_v25, 6  ;;  %v12089_v26 = vrot.slane %v2964_v54, 4  ;;  %v9198_v32 = vpack.c.bf16 %v2659_v29, %v2659_v29  ;;  %2853 = vrot.lane.b32.xlu0 %v2795_v63, %s9978_s1  ;;  %vm14573_vm7 = vmmov %vm14572_vm3  ;;  %9264 = vmatprep.subr.bf16.mxu1 %v9731_v62 }
 0x290   :  { %v12091_v36 = vld [vmem:[#allocation3 + $0x8] sm:$0xf]  ;;  %v2748_v1 = vld [vmem:[#allocation3 + $0x4] sm:$0xf]  ;;  %v3058_v13 = vshrl.u32 %v12070_v41, 16  ;;  %v3230_v33 = vshrl.u32 %v12061_v59, 16 }
 0x291   :  { %v3233_v30 = vshll.u32 %v12061_v59, 16  ;;  %v2906_v52 = vrot.slane %v12082_v6, 5  ;;  %v9732_v58 = vld [vmem:[%s14461_s5 + $0x20] sm:$0xff]   ;;  %2756 = vst.msk [vmem:[#allocation7 + $0x14] sm:$0xf] %vm14573_vm7, %v2748_v1  ;;  %v2665_v17 = vshrl.u32 %v9198_v32, 16  ;;  %vm12109_vm7 = vmor %vm2901_vm10, %vm2902_vm15 }
 0x292   :  { %v2749_v9 = vld [vmem:[#allocation3 + $0x8] sm:$0xf]  ;;  %v2767_v57 = vld [vmem:[#allocation3 + $0xc] sm:$0xf]  ;;  %v2668_v18 = vshll.u32 %v9198_v32, 16  ;;  %v8899_v8 = vrot.slane %v2885_v37, 9  ;;  %9265 = vmatpush3.bf16.msra.mxu1 %v9732_v58  ;;  %vm14576_vm10 = vmmov %vm14572_vm3 }
 0x293   :  { %v9733_v11 = vld [vmem:[%s14461_s5 + $0x68] sm:$0xff]   ;;  %2757 = vst.msk [vmem:[#allocation7 + $0x28] sm:$0xf] %vm14572_vm3, %v2749_v9  ;;  %v2800_v27 = vrot.slane %v2799_v24, 4  ;;  %v2802_v12 = vshll.u32 %v2767_v57, 16  ;;  %v2806_v23 = vshrl.u32 %v2767_v57, 16 }
 0x294   :  { %v2946_v54 = vld [vmem:[#allocation3 + $0xc] sm:$0xf]  ;;  %v2673_v35 = vld [vmem:[#allocation3 + $0x14] sm:$0xe]  ;;  %v3239_v61 = vshrl.u32 %v12091_v36, 16  ;;  %v2667_v7 = vrot.slane %v2665_v17, 6  ;;  %v2907_v21 = vsel %vm12109_vm7, %v8899_v8, %v2906_v52  ;;  %9266 = vmatprep.subr.bf16.mxu1 %v9733_v11 }
 0x295   :  { %v2670_v16 = vrot.slane %v2668_v18, 7  ;;  %v2677_v34 = vld [vmem:[#allocation2 + $0x9a] ss:$2 sm:$0xf]  ;;  %v3242_v14 = vshll.u32 %v12091_v36, 16  ;;  %v2804_v55 = vrot.slane %v2802_v12, 5 }
 0x296   :  { %v2808_v2 = vrot.slane %v2806_v23, 4  ;;  %v2694_v53 = vld [vmem:[#allocation2 + $0xb0] ss:$2 sm:$0xf]  ;;  %2935 = vst.msk [vmem:[#allocation7 + $0x4] sm:$0xf] %vm14572_vm3, %v2907_v21  ;;  %v9199_v39 = vpack.c.bf16 %v2677_v34, %v2677_v34 }
 0x297   :  { %v9734_v43 = vld [vmem:[%s14461_s5 + $0x28] sm:$0xff]   ;;  %v2671_v49 = vor.u32 %v2670_v16, %v2667_v7  ;;  %v9200_v42 = vpack.c.bf16 %v2694_v53, %v2694_v53  ;;  %v12122_v4 = vrot.slane %v3230_v33, 6  ;;  %v2887_v59 = vld [vmem:[#allocation3 + $0x8] sm:$0xf]  ;;  %v2805_v63 = vsel %vm10131_vm8, %v2800_v27, %v2804_v55  ;;  %v2750_v24 = vld [vmem:[#allocation3 + $0xc] sm:$0xf] }
 0x298   :  { %v9735_v50 = vld [vmem:[%s14461_s5 + $0x70] sm:$0xff]   ;;  %v2809_v10 = vor.u32 %v2808_v2, %v2804_v55  ;;  %v2967_v62 = vrot.slane %v2946_v54, 7  ;;  %v12129_v56 = vrot.slane %v3233_v30, 7  ;;  %2855 = vrot.lane.b32.xlu1 %v2805_v63, %s9978_s1  ;;  %v2683_v37 = vshrl.u32 %v9199_v39, 16  ;;  %v2710_v36 = vld [vmem:[#allocation3 + $0x18] sm:$0x8]  ;;  %9267 = vmatpush3.bf16.msra.mxu1 %v9734_v43 }
 0x299   :  { %v2674_v29 = vsel %vm11967_vm9, %v2671_v49, %v2673_v35  ;;  %v2700_v32 = vshll.u32 %v9200_v42, 16  ;;  %v12134_v1 = vrot.slane %v3239_v61, 6  ;;  %2758 = vst.msk [vmem:[#allocation7 + $0x3c] sm:$0xf] %vm14576_vm10, %v2750_v24  ;;  %v2690_v58 = vld [vmem:[#allocation3 + $0x18] sm:$0x7]  ;;  %v12139_v30 = vor.u32 %v12076_v5, %v12065_v3  ;;  %9268 = vmatprep.subr.bf16.mxu1 %v9735_v50  ;;  %vm14577_vm9 = vmmov %vm14572_vm3 }
 0x29a   :  { %v2810_v33 = vrot.slane %v2809_v10, 4  ;;  %2675 = vst [vmem:[#allocation3 + $0x14] sm:$0xe] %v2674_v29  ;;  %v2703_v9 = vshrl.u32 %v9200_v42, 16  ;;  %v3221_v57 = vld [vmem:[#allocation3 + $0xc] sm:$0xf]  ;;  %v2968_v8 = vsel %vm10084_vm2, %v12089_v26, %v2967_v62 }
 0x29b   :  { %v2909_v17 = vrot.slane %v2887_v59, 5  ;;  %v9736_v45 = vld [vmem:[%s14461_s5 + $0x30] sm:$0xff]   ;;  %v12144_v18 = vld [vmem:[#allocation3 + $0x10] sm:$0xf]  ;;  %v2685_v11 = vrot.slane %v2683_v37, 7  ;;  %v2686_v27 = vshll.u32 %v9199_v39, 16 }
 0x29c   :  { %v2702_v12 = vrot.slane %v2700_v32, 5  ;;  %v9737_v3 = vld [vmem:[%s14461_s5 + $0x78] sm:$0xff]   ;;  %v2815_v23 = vsel %vm10131_vm8, %v2810_v33, %v11889_v20  ;;  %v2969_v54 = vrot.slane %v2967_v62, 4  ;;  %v2705_v35 = vrot.slane %v2703_v9, 4  ;;  %v2888_v7 = vld [vmem:[#allocation3 + $0xc] sm:$0xf]  ;;  %2986 = vrot.lane.b32.xlu1 %v2968_v8, %s9978_s1  ;;  %9269 = vmatpush3.bf16.msra.mxu1 %v9736_v45 }
 0x29d   :  { %v2751_v5 = vld [vmem:[#allocation3 + $0x10] sm:$0xf]  ;;  %v2908_v61 = vrot.slane %v2906_v52, 4  ;;  %2857 = vrot.lane.b32.xlu0 %v2815_v23, %s9978_s1  ;;  %v2688_v26 = vor.u32 %v2686_v27, %v2685_v11  ;;  %v3249_v34 = vshrl.u32 %v3221_v57, 16  ;;  %v3252_v21 = vshll.u32 %v3221_v57, 16  ;;  %9270 = vmatprep.subr.bf16.mxu1 %v9737_v3 }
 0x29e   :  { %2759 = vst.msk [vmem:[#allocation7 + $0x50] sm:$0xf] %vm14577_vm9, %v2751_v5  ;;  %v2711_v16 = vsel %vm11903_vm5, %v2702_v12, %v2710_v36  ;;  %vm3227_vm15 = vsmask.f32 5392  ;;  %v2706_v20 = vor.u32 %v2705_v35, %v2702_v12  ;;  %v3244_v55 = vrot.slane %v3242_v14, 7  ;;  %v9738_v2 = vld [vmem:[%s14461_s5 + $0x38] sm:$0xff]  }
 0x29f   :  { %2712 = vst [vmem:[#allocation3 + $0x18] sm:$0x8] %v2711_v16  ;;  %v2910_v6 = vsel %vm12109_vm7, %v2908_v61, %v2909_v17  ;;  %v2911_v52 = vrot.slane %v2909_v17, 4  ;;  %v2691_v53 = vsel %vm12015_vm0, %v2688_v26, %v2690_v58  ;;  %v2713_v43 = vld [vmem:[#allocation3 + $0x1c] sm:$0x3]  ;;  %v2912_v49 = vrot.slane %v2888_v7, 5  ;;  %vm14578_vm0 = vmmov %vm14572_vm3 }
 0x2a0   :  { %2936 = vst.msk [vmem:[#allocation7 + $0x18] sm:$0xf] %vm14572_vm3, %v2910_v6  ;;  %v9739_v14 = vld [vmem:[%s14461_s5 + $0xc0] sm:$0xff]   ;;  %v12175_v39 = vrot.slane %v3058_v13, 7  ;;  %v3364_v42 = vrot.slane %v12144_v18, 7  ;;  %v2971_v28 = vsel %vm10084_vm2, %v2969_v54, %v2970_v19  ;;  %v2707_v59 = vrot.slane %v2706_v20, 4  ;;  %9271 = vmatpush3.bf16.msra.mxu1 %v9738_v2  ;;  %vm14580_vm3 = vmmov %vm14578_vm0 }
 0x2a1   :  { %2692 = vst [vmem:[#allocation3 + $0x18] sm:$0x7] %v2691_v53  ;;  %v2917_v50 = vrot.slane %v2915_v47, 4  ;;  %v3061_v63 = vshll.u32 %v12070_v41, 16  ;;  %2988 = vrot.lane.b32.xlu0 %v2971_v28, %s9978_s1  ;;  %v2769_v10 = vld [vmem:[#allocation3 + $0x14] sm:$0xf]  ;;  %v3236_v13 = vor.u32 %v12129_v56, %v12122_v4  ;;  %v2913_v0 = vsel %vm12109_vm7, %v2911_v52, %v2912_v49  ;;  %9296 = vmatprep.subr.bf16.mxu1 %v9739_v14 }
 0x2a2   :  { %v3251_v62 = vrot.slane %v3249_v34, 6  ;;  %v3254_v24 = vrot.slane %v3252_v21, 7  ;;  %v2822_v29 = vshll.u32 %v2769_v10, 16  ;;  %v2826_v19 = vshrl.u32 %v2769_v10, 16  ;;  %v2948_v37 = vld [vmem:[#allocation3 + $0x14] sm:$0xf] }
 0x2a3   :  { %v2714_v32 = vsel %vm11912_vm13, %v2707_v59, %v2713_v43  ;;  %v12193_v36 = vor.u32 %v3244_v55, %v12134_v1  ;;  %2937 = vst.msk [vmem:[#allocation7 + $0x2c] sm:$0xf] %vm14578_vm0, %v2913_v0  ;;  %v3267_v41 = vrot.slane %v12139_v30, 4  ;;  %v2752_v4 = vld [vmem:[#allocation3 + $0x14] sm:$0xf]  ;;  %v12199_v56 = vrot.slane %v3188_v48, 4  ;;  %vm14579_vm13 = vmmov %vm14578_vm0 }
 0x2a4   :  { %2715 = vst [vmem:[#allocation3 + $0x1c] sm:$0x3] %v2714_v32  ;;  %v3065_v33 = vrot.slane %v12175_v39, 4  ;;  %v12204_v15 = vrot.slane %v3364_v42, 4  ;;  %v2824_v1 = vrot.slane %v2822_v29, 5  ;;  %v2828_v58 = vrot.slane %v2826_v19, 4 }
 0x2a5   :  { %v3223_v9 = vld [vmem:[#allocation3 + $0x14] sm:$0xf]  ;;  %2760 = vst.msk [vmem:[#allocation7 + $0x64] sm:$0xf] %vm14579_vm13, %v2752_v4  ;;  %v12210_v17 = vor.u32 %v3061_v63, %v12175_v39  ;;  %v2973_v45 = vrot.slane %v2948_v37, 7  ;;  %v3255_v8 = vor.u32 %v3254_v24, %v3251_v62  ;;  %v2914_v11 = vrot.slane %v2912_v49, 4  ;;  %vm12232_vm13 = vmor %vm2583_vm6, %vm3227_vm15 }
 0x2a6   :  { %v12207_v57 = vld [vmem:[#allocation3 + $0x14] sm:$0xf]  ;;  %v3014_v12 = vld [vmem:[#allocation3] sm:$0x8]  ;;  %v2825_v3 = vsel %vm10131_vm8, %v11971_v38, %v2824_v1  ;;  %v2829_v5 = vor.u32 %v2828_v58, %v2824_v1  ;;  %v12216_v23 = vrot.slane %v3236_v13, 4  ;;  %v3247_v54 = vrot.slane %v12193_v36, 4  ;;  %vm14583_vm6 = vmmov %vm14578_vm0 }
 0x2a7   :  { %v2918_v27 = vrot.slane %v12207_v57, 5  ;;  %v12219_v35 = vld [vmem:[#allocation3 + $0x4] sm:$0xf]  ;;  %2859 = vrot.lane.b32.xlu1 %v2825_v3, %s9978_s1  ;;  %v3269_v26 = vshrl.u32 %v3223_v9, 16  ;;  %v3272_v16 = vshll.u32 %v3223_v9, 16  ;;  %v2916_v34 = vsel %vm12109_vm7, %v2914_v11, %v2915_v47  ;;  %vm14584_vm15 = vmmov %vm14578_vm0 }
 0x2a8   :  { %v2770_v61 = vld [vmem:[#allocation3 + $0x18] sm:$0xf]  ;;  %vm3177_vm10 = vcmask 1041408   ;;  %vm3178_vm9 = vcmask 1045508   ;;  %v2830_v21 = vrot.slane %v2829_v5, 4  ;;  %v3026_v6 = vshrl.u32 %v3014_v12, 16 }
 0x2a9   :  { %v2949_v7 = vld [vmem:[#allocation3 + $0x18] sm:$0xf]  ;;  %v2919_v38 = vsel %vm12109_vm7, %v2917_v50, %v2918_v27  ;;  %v2832_v20 = vshll.u32 %v2770_v61, 16  ;;  %v2836_v55 = vshrl.u32 %v2770_v61, 16  ;;  %2938 = vst.msk [vmem:[#allocation7 + $0x40] sm:$0xf] %vm14580_vm3, %v2916_v34  ;;  %v2974_v14 = vsel %vm10084_vm2, %v11975_v40, %v2973_v45  ;;  %vm12284_vm3 = vmor %vm3177_vm10, %vm3178_vm9 }
 0x2aa   :  { %2939 = vst.msk [vmem:[#allocation7 + $0x54] sm:$0xf] %vm14578_vm0, %v2919_v38  ;;  %v2975_v47 = vrot.slane %v2973_v45, 4  ;;  %v2976_v52 = vrot.slane %v2949_v7, 7  ;;  %v3257_v2 = vrot.slane %v3255_v8, 4  ;;  %v3031_v43 = vshrl.u32 %v12219_v35, 16  ;;  %vm12292_vm0 = vmor %vm2612_vm12, %vm3023_vm14 }
 0x2ab   :  { %v3224_v53 = vld [vmem:[#allocation3 + $0x18] sm:$0xf]  ;;  %v2834_v49 = vrot.slane %v2832_v20, 5  ;;  %v2771_v28 = vld [vmem:[#allocation3 + $0x1c] sm:$0x3]  ;;  %v2838_v59 = vrot.slane %v2836_v55, 4  ;;  %v3246_v63 = vsel %vm12232_vm13, %v12216_v23, %v12193_v36  ;;  %2990 = vrot.lane.b32.xlu1 %v2974_v14, %s9978_s1  ;;  %v12253_v45 = vsel %vm12232_vm13, %v3247_v54, %v3255_v8  ;;  %vm14589_vm10 = vmmov %vm14583_vm6 }
 0x2ac   :  { %v12240_v50 = vld [vmem:[#allocation3 + $0x1c] sm:$0xf]  ;;  %v2842_v10 = vshll.u32 %v2771_v28, 16  ;;  %v2846_v13 = vshrl.u32 %v2771_v28, 16  ;;  %v3271_v62 = vrot.slane %v3269_v26, 6  ;;  %v3274_v24 = vrot.slane %v3272_v16, 7  ;;  %vm14590_vm14 = vmmov %vm14583_vm6 }
 0x2ad   :  { %v2835_v0 = vsel %vm10131_vm8, %v2830_v21, %v2834_v49  ;;  %v2839_v29 = vor.u32 %v2838_v59, %v2834_v49  ;;  %v3279_v40 = vshrl.u32 %v3224_v53, 16  ;;  %v3282_v19 = vshll.u32 %v3224_v53, 16  ;;  %v2891_v37 = vld [vmem:[#allocation3 + $0x18] sm:$0xf]  ;;  %v2754_v12 = vld [vmem:[#allocation3 + $0x1c] sm:$0x1]  ;;  %vm14591_vm12 = vmmov %vm14583_vm6 }
 0x2ae   :  { %2861 = vrot.lane.b32.xlu0 %v2835_v0, %s9978_s1  ;;  %v2844_v32 = vrot.slane %v2842_v10, 5  ;;  %v2848_v4 = vrot.slane %v2846_v13, 4  ;;  %v2978_v1 = vrot.slane %v2976_v52, 4  ;;  %v2979_v58 = vrot.slane %v12240_v50, 7  ;;  %v2753_v9 = vld [vmem:[#allocation3 + $0x18] sm:$0xf]  ;;  %vm14592_vm9 = vmmov %vm14583_vm6 }
 0x2af   :  { %v2840_v57 = vrot.slane %v2839_v29, 4  ;;  %v12258_v11 = vsel %vm12232_vm13, %v3257_v2, %v12139_v30  ;;  %2761 = vst.msk [vmem:[#allocation7 + $0x78] sm:$0xf] %vm14583_vm6, %v2753_v9  ;;  %v8901_v3 = vrot.slane %v3026_v6, 11  ;;  %v3016_v5 = vld [vmem:[#allocation3 + $0x8] sm:$0xf]  ;;  %v2977_v8 = vsel %vm10084_vm2, %v2975_v47, %v2976_v52 }
 0x2b0   :  { %v2849_v61 = vor.u32 %v2848_v4, %v2844_v32  ;;  %v2920_v7 = vrot.slane %v2918_v27, 4  ;;  %v2921_v26 = vrot.slane %v2891_v37, 5  ;;  %2763 = vst.msk [vmem:[#allocation7 + $0x8c] sm:$0x1] %vm14499_vm11, %v2754_v12  ;;  %v2892_v16 = vld [vmem:[#allocation3 + $0x1c] sm:$0x3]  ;;  %v12266_v38 = vor.u32 %v3274_v24, %v3271_v62 }
 0x2b1   :  { %v3033_v34 = vrot.slane %v3031_v43, 7  ;;  %v2845_v54 = vsel %vm10131_vm8, %v2840_v57, %v2844_v32  ;;  %v12268_v21 = vrot.slane %v3279_v40, 6  ;;  %v3161_v20 = vld [vmem:[#allocation3 + $0x4] sm:$0xc]  ;;  %v3162_v55 = vld [vmem:[#allocation3 + $0x8] sm:$0xf]  ;;  %v2980_v27 = vsel %vm10084_vm2, %v2978_v1, %v2979_v58 }
 0x2b2   :  { %2992 = vrot.lane.b32.xlu0 %v2977_v8, %s9978_s1  ;;  %2863 = vrot.lane.b32.xlu1 %v2845_v54, %s9978_s1  ;;  %v12274_v6 = vrot.slane %v3282_v19, 7  ;;  %v2922_v47 = vsel %vm12109_vm7, %v2920_v7, %v2921_v26  ;;  %v2923_v52 = vrot.slane %v2921_v26, 4  ;;  %v2850_v2 = vrot.slane %v2849_v61, 4  ;;  %v12278_v53 = vld [vmem:[#allocation3 + $0x1c] sm:$0xf] }
 0x2b3   :  { %2940 = vst.msk [vmem:[#allocation7 + $0x68] sm:$0xf] %vm14584_vm15, %v2922_v47  ;;  %v2924_v43 = vrot.slane %v2892_v16, 5  ;;  %v3034_v49 = vshll.u32 %v12219_v35, 16  ;;  %v3040_v14 = vshrl.u32 %v3016_v5, 16  ;;  %v3038_v59 = vrot.slane %v3033_v34, 4  ;;  %vm14593_vm15 = vmmov %vm14583_vm6 }
 0x2b4   :  { %v3043_v50 = vshll.u32 %v3016_v5, 16  ;;  %v8902_v10 = vrot.slane %v3161_v20, 10  ;;  %v3182_v13 = vrot.slane %v3162_v55, 6  ;;  %v3163_v62 = vld [vmem:[#allocation3 + $0xc] sm:$0xf]  ;;  %v2981_v32 = vrot.slane %v2979_v58, 4 }
 0x2b5   :  { %v2925_v24 = vsel %vm12109_vm7, %v2923_v52, %v2924_v43  ;;  %v2926_v0 = vrot.slane %v2924_v43, 4  ;;  %v3036_v29 = vor.u32 %v3034_v49, %v3033_v34  ;;  %v3042_v40 = vrot.slane %v3040_v14, 7  ;;  %v3017_v19 = vld [vmem:[#allocation3 + $0xc] sm:$0xf]  ;;  %v3165_v35 = vld [vmem:[#allocation3 + $0x14] sm:$0xf] }
 0x2b6   :  { %2865 = vrot.lane.b32.xlu0 %v2850_v2, %s9978_s1  ;;  %2994 = vrot.lane.b32.xlu1 %v2980_v27, %s9978_s1  ;;  %v3289_v4 = vshrl.u32 %v12278_v53, 16  ;;  %2941 = vst.msk [vmem:[#allocation7 + $0x7c] sm:$0xf] %vm14589_vm10, %v2925_v24  ;;  %v3183_v1 = vsel %vm12284_vm3, %v8902_v10, %v3182_v13  ;;  %v3184_v9 = vrot.slane %v3182_v13, 4  ;;  %v3019_v57 = vld [vmem:[#allocation3 + $0x14] sm:$0xf]  ;;  %vm14594_vm10 = vmmov %vm14583_vm6  ;;  %v3276_v18 = vsel %vm12232_vm13, %v3267_v41, %v12266_v38 }
 0x2b7   :  { %v3292_v12 = vshll.u32 %v12278_v53, 16  ;;  %2942 = vst.msk [vmem:[#allocation7 + $0x90] sm:$0x1] %vm14499_vm11, %v2926_v0  ;;  %v3037_v5 = vsel %vm12292_vm0, %v8901_v3, %v3036_v29  ;;  %v3045_v61 = vor.u32 %v3043_v50, %v3042_v40  ;;  %v3185_v58 = vrot.slane %v3163_v62, 6  ;;  %v3020_v7 = vld [vmem:[#allocation3 + $0x18] sm:$0xf] }
 0x2b8   :  { %3211 = vst.msk [vmem:[#allocation7 + $0xc] sm:$0xf] %vm14590_vm14, %v3183_v1  ;;  %v3113_v26 = vld [vmem:[#allocation3 + $0x4] sm:$0xf]  ;;  %v3047_v16 = vrot.slane %v3042_v40, 4  ;;  %v3049_v34 = vshrl.u32 %v3017_v19, 16  ;;  %vm14595_vm14 = vmmov %vm14583_vm6 }
 0x2b9   :  { %3105 = vst.msk [vmem:[#allocation7 + $0x8] sm:$0xf] %vm14591_vm12, %v3037_v5  ;;  %v3052_v8 = vshll.u32 %v3017_v19, 16  ;;  %v3191_v54 = vrot.slane %v3165_v35, 6  ;;  %v3046_v20 = vsel %vm12292_vm0, %v3038_v59, %v3045_v61  ;;  %v3186_v55 = vsel %vm12284_vm3, %v3184_v9, %v3185_v58  ;;  %v3166_v47 = vld [vmem:[#allocation3 + $0x18] sm:$0xf]  ;;  %vm14596_vm12 = vmmov %vm14583_vm6 }
 0x2ba   :  { %v3187_v27 = vrot.slane %v3185_v58, 4  ;;  %v3067_v3 = vshrl.u32 %v3019_v57, 16  ;;  %v3167_v52 = vld [vmem:[#allocation3 + $0x1c] sm:$0xf]  ;;  %2996 = vrot.lane.b32.xlu0 %v2981_v32, %s9978_s1  ;;  %3129 = vrot.lane.b32.xlu1 %v3113_v26, %s9978_s1  ;;  %3106 = vst.msk [vmem:[#allocation7 + $0x1c] sm:$0xf] %vm14592_vm9, %v3046_v20  ;;  %vm14597_vm9 = vmmov %vm14583_vm6 }
 0x2bb   :  { %3212 = vst.msk [vmem:[#allocation7 + $0x20] sm:$0xf] %vm14583_vm6, %v3186_v55  ;;  %v3051_v2 = vrot.slane %v3049_v34, 7  ;;  %v3192_v43 = vsel %vm12284_vm3, %v12199_v56, %v3191_v54  ;;  %v3070_v49 = vshll.u32 %v3019_v57, 16  ;;  %v3076_v14 = vshrl.u32 %v3020_v7, 16 }
 0x2bc   :  { %v3021_v59 = vld [vmem:[#allocation3 + $0x1c] sm:$0xf]  ;;  %v3114_v50 = vld [vmem:[#allocation3 + $0x8] sm:$0xf]  ;;  %v3189_v10 = vsel %vm12284_vm3, %v3187_v27, %v3188_v48  ;;  %3214 = vst.msk [vmem:[#allocation7 + $0x48] sm:$0xf] %vm14593_vm15, %v3192_v43  ;;  %vm14598_vm15 = vmmov %vm14583_vm6 }
 0x2bd   :  { %v3069_v13 = vrot.slane %v3067_v3, 7  ;;  %v3079_v62 = vshll.u32 %v3020_v7, 16  ;;  %v3193_v24 = vrot.slane %v3191_v54, 4  ;;  %v3054_v0 = vor.u32 %v3052_v8, %v3051_v2  ;;  %3213 = vst.msk [vmem:[#allocation7 + $0x34] sm:$0xf] %vm14594_vm10, %v3189_v10  ;;  %vm14599_vm10 = vmmov %vm14583_vm6 }
 0x2be   :  { %v3056_v29 = vrot.slane %v3051_v2, 4  ;;  %v3078_v40 = vrot.slane %v3076_v14, 7  ;;  %v3194_v56 = vrot.slane %v3166_v47, 6  ;;  %v3022_v19 = vld [vmem:[#allocation3 + $0x20] sm:$0x1]  ;;  %v3197_v1 = vrot.slane %v3167_v52, 6  ;;  %3131 = vrot.lane.b32.xlu0 %v3114_v50, %s9978_s1  ;;  %3308 = vrot.lane.b32.xlu1 %v3246_v63, %s9978_s1 }
 0x2bf   :  { %v3072_v35 = vor.u32 %v3070_v49, %v3069_v13  ;;  %v3074_v32 = vrot.slane %v3069_v13, 4  ;;  %v3085_v9 = vshrl.u32 %v3021_v59, 16  ;;  %v3168_v25 = vld [vmem:[#allocation3 + $0x20] sm:$0x7]  ;;  %v3055_v48 = vsel %vm12292_vm0, %v3047_v16, %v3054_v0  ;;  %v3340_v58 = vld [vmem:[#allocation3 + $0x4] sm:$0x8] }
 0x2c0   :  { %v3064_v57 = vsel %vm12292_vm0, %v3056_v29, %v12210_v17  ;;  %v3081_v5 = vor.u32 %v3079_v62, %v3078_v40  ;;  %v3196_v61 = vrot.slane %v3194_v56, 4  ;;  %v3341_v7 = vld [vmem:[#allocation3 + $0x8] sm:$0xf]  ;;  %3107 = vst.msk [vmem:[#allocation7 + $0x30] sm:$0xf] %vm14595_vm14, %v3055_v48  ;;  %v3195_v23 = vsel %vm12284_vm3, %v3193_v24, %v3194_v56  ;;  %vm14600_vm14 = vmmov %vm14583_vm6 }
 0x2c1   :  { %3108 = vst.msk [vmem:[#allocation7 + $0x44] sm:$0xf] %vm14596_vm12, %v3064_v57  ;;  %v3073_v36 = vsel %vm12292_vm0, %v3065_v33, %v3072_v35  ;;  %v3083_v63 = vrot.slane %v3078_v40, 4  ;;  %v3087_v26 = vrot.slane %v3085_v9, 7  ;;  %v3342_v16 = vld [vmem:[#allocation3 + $0xc] sm:$0xf]  ;;  %vm14601_vm12 = vmmov %vm14583_vm6 }
 0x2c2   :  { %v3344_v17 = vld [vmem:[#allocation3 + $0x14] sm:$0xf]  ;;  %3109 = vst.msk [vmem:[#allocation7 + $0x58] sm:$0xf] %vm14597_vm9, %v3073_v36  ;;  %v3082_v34 = vsel %vm12292_vm0, %v3074_v32, %v3081_v5  ;;  %v3198_v39 = vsel %vm12284_vm3, %v3196_v61, %v3197_v1  ;;  %v3088_v8 = vshll.u32 %v3021_v59, 16  ;;  %v3094_v54 = vshll.u32 %v3022_v19, 16  ;;  %3310 = vrot.lane.b32.xlu0 %v12253_v45, %s9978_s1  ;;  %vm14602_vm9 = vmmov %vm14583_vm6 }
 0x2c3   :  { %3215 = vst.msk [vmem:[#allocation7 + $0x5c] sm:$0xf] %vm14583_vm6, %v3195_v23  ;;  %v3345_v33 = vld [vmem:[#allocation3 + $0x18] sm:$0xf]  ;;  %v3115_v20 = vld [vmem:[#allocation3 + $0xc] sm:$0xf] }
 0x2c4   :  { %3110 = vst.msk [vmem:[#allocation7 + $0x6c] sm:$0xf] %vm14598_vm15, %v3082_v34  ;;  %v3092_v55 = vrot.slane %v3087_v26, 4  ;;  %v3199_v27 = vrot.slane %v3197_v1, 4  ;;  %v3200_v3 = vrot.slane %v3168_v25, 6  ;;  %v8903_v47 = vrot.slane %v3340_v58, 11  ;;  %3133 = vrot.lane.b32.xlu1 %v3115_v20, %s9978_s1  ;;  %vm14603_vm15 = vmmov %vm14583_vm6 }
 0x2c5   :  { %3216 = vst.msk [vmem:[#allocation7 + $0x70] sm:$0xf] %vm14599_vm10, %v3198_v39  ;;  %v3090_v52 = vor.u32 %v3088_v8, %v3087_v26  ;;  %v3358_v2 = vrot.slane %v3341_v7, 7  ;;  %v3361_v43 = vrot.slane %v3342_v16, 7  ;;  %v3367_v49 = vrot.slane %v3344_v17, 7  ;;  %vm14604_vm10 = vmmov %vm14583_vm6  ;;  %v2739_v8 = vld [vmem:[%s14473_s17] sm:$0xff] }
 0x2c6   :  { %v3346_v14 = vld [vmem:[#allocation3 + $0x1c] sm:$0xf]  ;;  %v3116_v59 = vld [vmem:[#allocation3 + $0x10] sm:$0xf]  ;;  %v3096_v50 = vsel %vm12292_vm0, %v3092_v55, %v3094_v54  ;;  %v3201_v10 = vsel %vm12284_vm3, %v3199_v27, %v3200_v3  ;;  %v3202_v13 = vrot.slane %v3200_v3, 4  ;;  %v3370_v62 = vrot.slane %v3345_v33, 7 }
 0x2c7   :  { %v3347_v24 = vld [vmem:[#allocation3 + $0x20] sm:$0xf]  ;;  %v3091_v45 = vsel %vm12292_vm0, %v3083_v63, %v3090_v52  ;;  %3112 = vst.msk [vmem:[#allocation7 + $0x94] sm:$0x1] %vm14499_vm11, %v3096_v50  ;;  %v3359_v0 = vsel %vm10084_vm2, %v8903_v47, %v3358_v2  ;;  %v3360_v29 = vrot.slane %v3358_v2, 4  ;;  %v3363_v40 = vrot.slane %v3361_v43, 4  ;;  %3135 = vrot.lane.b32.xlu0 %v3116_v59, %s9978_s1 }
 0x2c8   :  { %3217 = vst.msk [vmem:[#allocation7 + $0x84] sm:$0xf] %vm14600_vm14, %v3201_v10  ;;  %v3368_v56 = vsel %vm10084_vm2, %v12204_v15, %v3367_v49  ;;  %v3369_v19 = vrot.slane %v3367_v49, 4  ;;  %v3372_v35 = vrot.slane %v3370_v62, 4  ;;  %v3373_v32 = vrot.slane %v3346_v14, 7  ;;  %3312 = vrot.lane.b32.xlu1 %v12258_v11, %s9978_s1  ;;  %vm14605_vm14 = vmmov %vm14583_vm6  ;;  %v2740_v33 = vld [vmem:[%s14473_s17 + $0x8] sm:$0xff] }
 0x2c9   :  { %3111 = vst.msk [vmem:[#allocation7 + $0x80] sm:$0xf] %vm14601_vm12, %v3091_v45  ;;  %v3362_v1 = vsel %vm10084_vm2, %v3360_v29, %v3361_v43  ;;  %v3365_v9 = vsel %vm10084_vm2, %v3363_v40, %v3364_v42  ;;  %v3376_v25 = vrot.slane %v3347_v24, 7  ;;  %v3277_v42 = vrot.slane %v12266_v38, 4  ;;  %v3226_v57 = vld [vmem:[#allocation3 + $0x20] sm:$0xf]  ;;  %vm14606_vm12 = vmmov %vm14583_vm6 }
 0x2ca   :  { %3218 = vst.msk [vmem:[#allocation7 + $0x98] sm:$0x1] %vm14499_vm11, %v3202_v13  ;;  %v3371_v15 = vsel %vm10084_vm2, %v3369_v19, %v3370_v62  ;;  %v3374_v11 = vsel %vm10084_vm2, %v3372_v35, %v3373_v32  ;;  %v3375_v48 = vrot.slane %v3373_v32, 4  ;;  %v3117_v61 = vld [vmem:[#allocation3 + $0x14] sm:$0xf]  ;;  %v3285_v58 = vor.u32 %v12274_v6, %v12268_v21  ;;  %v2741_v20 = vld [vmem:[%s14473_s17 + $0x10] sm:$0xff] }
 0x2cb   :  { %3387 = vst.msk [vmem:[#allocation7 + $0x10] sm:$0xf] %vm14602_vm9, %v3359_v0  ;;  %v3378_v5 = vrot.slane %v3376_v25, 4  ;;  %v3291_v7 = vrot.slane %v3289_v4, 6  ;;  %v3294_v30 = vrot.slane %v3292_v12, 7  ;;  %3314 = vrot.lane.b32.xlu0 %v3276_v18, %s9978_s1  ;;  %vm14607_vm9 = vmmov %vm14583_vm6  ;;  %v3299_v38 = vshrl.u32 %v3226_v57, 16 }
 0x2cc   :  { %3390 = vst.msk [vmem:[#allocation7 + $0x4c] sm:$0xf] %vm14583_vm6, %v3368_v56  ;;  %v3377_v41 = vsel %vm10084_vm2, %v3375_v48, %v3376_v25  ;;  %3137 = vrot.lane.b32.xlu1 %v3117_v61, %s9978_s1  ;;  %v3302_v36 = vshll.u32 %v3226_v57, 16  ;;  %v3118_v21 = vld [vmem:[#allocation3 + $0x18] sm:$0xf]  ;;  %v3286_v6 = vsel %vm12232_vm13, %v3277_v42, %v3285_v58  ;;  %v3287_v4 = vrot.slane %v3285_v58, 4 }
 0x2cd   :  { %3388 = vst.msk [vmem:[#allocation7 + $0x24] sm:$0xf] %vm14603_vm15, %v3362_v1  ;;  %v3295_v53 = vor.u32 %v3294_v30, %v3291_v7  ;;  %v3301_v12 = vrot.slane %v3299_v38, 6  ;;  %v3119_v63 = vld [vmem:[#allocation3 + $0x1c] sm:$0xf]  ;;  %v2742_v55 = vld [vmem:[%s14473_s17 + $0x18] sm:$0xff] }
 0x2ce   :  { %3389 = vst.msk [vmem:[#allocation7 + $0x38] sm:$0xf] %vm14604_vm10, %v3365_v9  ;;  %v3304_v23 = vrot.slane %v3302_v36, 7  ;;  %v3120_v34 = vld [vmem:[#allocation3 + $0x20] sm:$0x1]  ;;  %v2743_v27 = vld [vmem:[%s14473_s17 + $0x20] sm:$0xff] }
 0x2cf   :  { %3391 = vst.msk [vmem:[#allocation7 + $0x60] sm:$0xf] %vm14605_vm14, %v3371_v15  ;;  %3139 = vrot.lane.b32.xlu0 %v3118_v21, %s9978_s1  ;;  %v3296_v26 = vsel %vm12232_vm13, %v3287_v4, %v3295_v53  ;;  %v3297_v16 = vrot.slane %v3295_v53, 4  ;;  %v2744_v3 = vld [vmem:[%s14473_s17 + $0x28] sm:$0xff]  ;;  %v2745_v47 = vld [vmem:[%s14473_s17 + $0x30] sm:$0xff]  ;;  %vm14500_vm6 = vcmask 1043968   ;;  %vm14609_vm14 = vmmov %vm14607_vm9 }
 0x2d0   :  { %3392 = vst.msk [vmem:[#allocation7 + $0x74] sm:$0xf] %vm14606_vm12, %v3374_v11  ;;  %3316 = vrot.lane.b32.xlu1 %v3286_v6, %s9978_s1  ;;  %v3305_v17 = vor.u32 %v3304_v23, %v3301_v12  ;;  %v2746_v52 = vld [vmem:[%s14473_s17 + $0x38] sm:$0x3]  ;;  %v9740_v24 = vld [vmem:[%s14461_s5 + $0x80] sm:$0xff]   ;;  %v9741_v45 = vld [vmem:[%s14461_s5 + $0xc8] sm:$0xff]  }
 0x2d1   :  { %3393 = vst.msk [vmem:[#allocation7 + $0x88] sm:$0xf] %vm14607_vm9, %v3377_v41  ;;  %v9742_v40 = vld [vmem:[%s14461_s5 + $0x88] sm:$0xff]   ;;  %v9743_v56 = vld [vmem:[%s14461_s5 + $0xd0] sm:$0xff]   ;;  %v9745_v32 = vld [vmem:[%s14461_s5 + $0xd8] sm:$0xff]   ;;  %vm14498_vm15 = vcmask 1040896  }
 0x2d2   :  { %3394 = vst.msk [vmem:[#allocation7 + $0x9c] sm:$0x1] %vm14499_vm11, %v3378_v5  ;;  %v3306_v39 = vsel %vm12232_vm13, %v3297_v16, %v3305_v17  ;;  %v3307_v54 = vrot.slane %v3305_v17, 4  ;;  %v9744_v35 = vld [vmem:[%s14461_s5 + $0x90] sm:$0xff]   ;;  %v9746_v9 = vld [vmem:[%s14461_s5 + $0x98] sm:$0xff]   ;;  %v9747_v25 = vld [vmem:[%s14461_s5 + $0xe0] sm:$0xff]  }
 0x2d3   :  { %3318 = vrot.lane.b32.xlu0 %v3296_v26, %s9978_s1  ;;  %v9748_v57 = vld [vmem:[%s14461_s5 + $0xa0] sm:$0xff]   ;;  %v9749_v5 = vld [vmem:[%s14461_s5 + $0xe8] sm:$0xff]   ;;  %v9751_v7 = vld [vmem:[%s14461_s5 + $0xf0] sm:$0xff]   ;;  %vm14608_vm10 = vsmask.f32 3328 }
 0x2d4   :  { %3141 = vrot.lane.b32.xlu1 %v3119_v63, %s9978_s1  ;;  %v9750_v58 = vld [vmem:[%s14461_s5 + $0xa8] sm:$0xff]   ;;  %v9752_v38 = vld [vmem:[%s14461_s5 + $0xb0] sm:$0xff]   ;;  %v9753_v36 = vld [vmem:[%s14461_s5 + $0xf8] sm:$0xff]   ;;  %vm88_vm9 = vsmask.f32 7938 }
 0x2d5   :  { %v9754_v4 = vld [vmem:[%s14461_s5 + $0xb8] sm:$0xff]   ;;  %v9755_v53 = vld [vmem:[%s14461_s5 + $0x100] sm:$0xff]   ;;  %vm12540_vm12 = vmand %vm14609_vm14, %vm14608_vm10 }
 0x2d6   :  { %vm14612_vm10 = vmmov %vm14609_vm14 }
 0x2d7   :  { %3143 = vrot.lane.b32.xlu0 %v3120_v34, %s9978_s1  ;;  %vm12547_vm14 = vmand %vm14612_vm10, %vm88_vm9  ;;  %vm14615_vm9 = vcmask 517120  }
 0x2d8   :  { %3320 = vrot.lane.b32.xlu1 %v3306_v39, %s9978_s1  ;;  %vm14616_vm10 = vmmov %vm14615_vm9 }
 0x2db   :  { %3322 = vrot.lane.b32.xlu0 %v3307_v54, %s9978_s1 }
 0x2dc   :  { %4018 = vperm.xlu1 %9682, %v2739_v8  }
 0x2df   :  { %4023 = vperm.xlu0 %9681, %v2740_v33  }
 0x2e0   :  { %4028 = vperm.xlu1 %9682, %v2741_v20  }
 0x2e3   :  { %4033 = vperm.xlu0 %9681, %v2742_v55  }
 0x2e4   :  { %4038 = vperm.xlu1 %9682, %v2743_v27  }
 0x2e7   :  { %4043 = vperm.xlu0 %9681, %v2744_v3  }
 0x2e8   :  { %4048 = vperm.xlu1 %9682, %v2745_v47  }
 0x2eb   :  { %4053 = vperm.xlu0 %9681, %v2746_v52  }
 0x2f9   :  { %v2983_v2 = vpop.permute.xlu1 %2982 }
 0x2fa   :  { %3006 = vst.msk [vmem:[#allocation7 + $0x4] sm:$0xf] %vm14500_vm6, %v2983_v2 }
 0x2fd   :  { %v2852_v43 = vpop.permute.xlu1 %2851  ;;  %v2985_v49 = vpop.permute.xlu0 %2984 }
 0x2fe   :  { %2876 = vst.msk [vmem:[#allocation7] sm:$0xf] %vm14500_vm6, %v2852_v43  ;;  %3007 = vst.msk [vmem:[#allocation7 + $0x18] sm:$0xf] %vm14500_vm6, %v2985_v49 }
 0x301   :  { %v2854_v14 = vpop.permute.xlu0 %2853 }
 0x302   :  { %2877 = vst.msk [vmem:[#allocation7 + $0x14] sm:$0xf] %vm14500_vm6, %v2854_v14 }
 0x305   :  { %v3395_v50 = vld [vmem:[#allocation7] sm:$0xff] }
 0x309   :  { %v3398_v10 = vld [vmem:[#allocation7 + $0x14] sm:$0xff] }
 0x30a   :  { %v2856_v59 = vpop.permute.xlu1 %2855  ;;  %v8905_v13 = vcombine.high %v3395_v50, %v3398_v10  ;;  %v8904_v62 = vcombine.low %v3395_v50, %v3398_v10  ;;  %v9756_v50 = vld [vmem:[%s14461_s5 + $0x108] sm:$0xff]  }
 0x30b   :  { %2878 = vst.msk [vmem:[#allocation7 + $0x28] sm:$0xf] %vm14500_vm6, %v2856_v59 }
 0x30c   :  { %3851 = vmatprep.mubr.bf16.mxu1 %v8905_v13 }
 0x30d   :  { %3852 = vmatmul.mubr.bf16.vlgmr.msra.gmra.mrb[0].mxu1 %v8904_v62  ;;  %v9757_v62 = vld [vmem:[%s14461_s5 + $0x110] sm:$0xff]  }
 0x30e   :  { %v2987_v29 = vpop.permute.xlu1 %2986  ;;  %9297 = vmatpush3.bf16.msra.mxu1 %v9740_v24 }
 0x30f   :  { %v2858_v0 = vpop.permute.xlu0 %2857  ;;  %3008 = vst.msk [vmem:[#allocation7 + $0x2c] sm:$0xf] %vm14500_vm6, %v2987_v29  ;;  %9298 = vmatprep.subr.bf16.mxu1 %v9741_v45 }
 0x310   :  { %2879 = vst.msk [vmem:[#allocation7 + $0x3c] sm:$0xf] %vm14500_vm6, %v2858_v0 }
 0x312   :  { %9299 = vmatpush3.bf16.msra.mxu1 %v9742_v40 }
 0x313   :  { %v2989_v19 = vpop.permute.xlu0 %2988  ;;  %9300 = vmatprep.subr.bf16.mxu1 %v9743_v56 }
 0x314   :  { %3009 = vst.msk [vmem:[#allocation7 + $0x40] sm:$0xf] %vm14500_vm6, %v2989_v19  ;;  %v9758_v19 = vld [vmem:[%s14461_s5 + $0x118] sm:$0xff]  }
 0x316   :  { %9301 = vmatpush3.bf16.msra.mxu1 %v9744_v35  ;;  %v3401_v15 = vld [vmem:[#allocation7 + $0x28] sm:$0xff] }
 0x317   :  { %9302 = vmatprep.subr.bf16.mxu1 %v9745_v32 }
 0x319   :  { %v2860_v1 = vpop.permute.xlu1 %2859 }
 0x31a   :  { %2880 = vst.msk [vmem:[#allocation7 + $0x50] sm:$0xf] %vm14500_vm6, %v2860_v1  ;;  %9303 = vmatpush3.bf16.msra.mxu1 %v9746_v9 }
 0x31b   :  { %v3404_v11 = vld [vmem:[#allocation7 + $0x3c] sm:$0xff]  ;;  %9304 = vmatprep.subr.bf16.mxu1 %v9747_v25 }
 0x31c   :  { %v8910_v48 = vcombine.high %v3401_v15, %v3404_v11  ;;  %v8909_v18 = vcombine.low %v3401_v15, %v3404_v11 }
 0x31d   :  { %v2991_v42 = vpop.permute.xlu1 %2990 }
 0x31e   :  { %3010 = vst.msk [vmem:[#allocation7 + $0x54] sm:$0xf] %vm14500_vm6, %v2991_v42  ;;  %3859 = vmatprep.mubr.bf16.mxu1 %v8910_v48  ;;  %9305 = vmatpush3.bf16.msra.mxu1 %v9748_v57 }
 0x31f   :  { %3860 = vmatmul.mubr.bf16.gmra.mrb[4].mxu1 %v8909_v18  ;;  %9306 = vmatprep.subr.bf16.mxu1 %v9749_v5  ;;  %v9759_v5 = vld [vmem:[#allocation7 + $0x10] ss:$20 sps:$4 sm:$0xff]  }
 0x320   :  { %v2862_v61 = vpop.permute.xlu0 %2861 }
 0x321   :  { %2881 = vst.msk [vmem:[#allocation7 + $0x64] sm:$0xf] %vm14500_vm6, %v2862_v61  ;;  %v9760_v61 = vld [vmem:[#allocation7 + $0x38] ss:$20 sps:$4 sm:$0xff]  }
 0x322   :  { %9307 = vmatpush3.bf16.msra.mxu1 %v9750_v58  ;;  %v9761_v58 = vld [vmem:[#allocation7 + $0x60] ss:$20 sps:$4 sm:$0xff]  }
 0x323   :  { %9308 = vmatprep.subr.bf16.mxu1 %v9751_v7  ;;  %v9762_v7 = vld [vmem:[#allocation7 + $0x88] ss:$20 sps:$4 sm:$0x1f]  }
 0x324   :  { %v2993_v30 = vpop.permute.xlu0 %2992  ;;  %v2864_v41 = vpop.permute.xlu1 %2863 }
 0x325   :  { %3011 = vst.msk [vmem:[#allocation7 + $0x68] sm:$0xf] %vm14500_vm6, %v2993_v30  ;;  %2882 = vst.msk [vmem:[#allocation7 + $0x78] sm:$0xf] %vm14500_vm6, %v2864_v41  ;;  %v3407_v12 = vld [vmem:[#allocation7 + $0x50] sm:$0xff] }
 0x326   :  { %9309 = vmatpush3.bf16.msra.mxu1 %v9752_v38 }
 0x327   :  { %9310 = vmatprep.subr.bf16.mxu1 %v9753_v36 }
 0x328   :  { %v2866_v21 = vpop.permute.xlu0 %2865  ;;  %v2995_v6 = vpop.permute.xlu1 %2994 }
 0x329   :  { %2884 = vst.msk [vmem:[#allocation7 + $0x8c] sm:$0x1] %vm14498_vm15, %v2866_v21 }
 0x32a   :  { %3012 = vst.msk [vmem:[#allocation7 + $0x7c] sm:$0xf] %vm14500_vm6, %v2995_v6  ;;  %9311 = vmatpush3.bf16.msra.mxu1 %v9754_v4 }
 0x32b   :  { %9608 = vmatprep.subr.bf16.mxu1 %v9755_v53 }
 0x32c   :  { %v3410_v23 = vld [vmem:[#allocation7 + $0x64] sm:$0xff]  ;;  %v2997_v63 = vpop.permute.xlu0 %2996  ;;  %v3130_v26 = vpop.permute.xlu1 %3129 }
 0x32d   :  { %3013 = vst.msk [vmem:[#allocation7 + $0x90] sm:$0x1] %vm14498_vm15, %v2997_v63  ;;  %v8915_v16 = vcombine.high %v3407_v12, %v3410_v23  ;;  %v8914_v17 = vcombine.low %v3407_v12, %v3410_v23 }
 0x32e   :  { %3153 = vst.msk [vmem:[#allocation7 + $0x8] sm:$0xf] %vm14500_vm6, %v3130_v26 }
 0x32f   :  { %3867 = vmatprep.mubr.bf16.mxu1 %v8915_v16 }
 0x330   :  { %v3132_v34 = vpop.permute.xlu0 %3131  ;;  %3868 = vmatmul.mubr.bf16.gmra.mrb[8].mxu1 %v8914_v17  ;;  %v3309_v39 = vpop.permute.xlu1 %3308 }
 0x331   :  { %3154 = vst.msk [vmem:[#allocation7 + $0x1c] sm:$0xf] %vm14500_vm6, %v3132_v34  ;;  %3332 = vst.msk [vmem:[#allocation7 + $0xc] sm:$0xf] %vm14500_vm6, %v3309_v39  ;;  %v3413_v8 = vld [vmem:[#allocation7 + $0x78] sm:$0xff] }
 0x334   :  { %v3416_v54 = vld [vmem:[#allocation7 + $0x8c] sm:$0x11]  ;;  %v3311_v33 = vpop.permute.xlu0 %3310 }
 0x335   :  { %3333 = vst.msk [vmem:[#allocation7 + $0x20] sm:$0xf] %vm14500_vm6, %v3311_v33  ;;  %v8920_v55 = vcombine.high %v3413_v8, %v3416_v54  ;;  %v8919_v27 = vcombine.low %v3413_v8, %v3416_v54 }
 0x336   :  { %v3134_v20 = vpop.permute.xlu1 %3133 }
 0x337   :  { %3155 = vst.msk [vmem:[#allocation7 + $0x30] sm:$0xf] %vm14500_vm6, %v3134_v20  ;;  %3875 = vmatprep.mubr.bf16.mxu1 %v8920_v55 }
 0x338   :  { %3876 = vmatmul.mubr.bf16.gmra.mrb[12].mxu1 %v8919_v27  ;;  %v3396_v52 = vld [vmem:[#allocation7 + $0x8] sm:$0xff] }
 0x339   :  { %v3136_v3 = vpop.permute.xlu0 %3135 }
 0x33a   :  { %v3313_v47 = vpop.permute.xlu1 %3312  ;;  %3156 = vst.msk [vmem:[#allocation7 + $0x44] sm:$0xf] %vm14500_vm6, %v3136_v3 }
 0x33b   :  { %3334 = vst.msk [vmem:[#allocation7 + $0x34] sm:$0xf] %vm14500_vm6, %v3313_v47 }
 0x33c   :  { %v3399_v2 = vld [vmem:[#allocation7 + $0x1c] sm:$0xff] }
 0x33d   :  { %v3315_v43 = vpop.permute.xlu0 %3314  ;;  %v8907_v14 = vcombine.high %v3396_v52, %v3399_v2  ;;  %v8906_v59 = vcombine.low %v3396_v52, %v3399_v2 }
 0x33e   :  { %v3138_v49 = vpop.permute.xlu1 %3137  ;;  %3335 = vst.msk [vmem:[#allocation7 + $0x48] sm:$0xf] %vm14500_vm6, %v3315_v43  ;;  %v93_v43 = vld [vmem:[#allocation5] sm:$0xf] }
 0x33f   :  { %3157 = vst.msk [vmem:[#allocation7 + $0x58] sm:$0xf] %vm14500_vm6, %v3138_v49  ;;  %3916 = vmatprep.mubr.bf16.mxu1 %v8907_v14  ;;  %v94_v14 = vsel %vm12540_vm12, 0, %v93_v43 }
 0x340   :  { %3917 = vmatmul.mubr.bf16.vlgmr.msra.gmra.mrb[16].mxu1 %v8906_v59  ;;  %95 = vst [vmem:[#allocation5] sm:$0xf] %v94_v14 }
 0x341   :  { %v3140_v10 = vpop.permute.xlu0 %3139  ;;  %9609 = vmatpush3.bf16.msra.mxu1 %v9755_v53 }
 0x342   :  { %v3317_v13 = vpop.permute.xlu1 %3316  ;;  %3158 = vst.msk [vmem:[#allocation7 + $0x6c] sm:$0xf] %vm14500_vm6, %v3140_v10  ;;  %9610 = vmatprep.subr.bf16.mxu1 %v9756_v50  ;;  %v3402_v24 = vld [vmem:[#allocation7 + $0x30] sm:$0xff] }
 0x343   :  { %3336 = vst.msk [vmem:[#allocation7 + $0x5c] sm:$0xf] %vm14500_vm6, %v3317_v13 }
 0x345   :  { %v3405_v45 = vld [vmem:[#allocation7 + $0x44] sm:$0xff]  ;;  %v3319_v0 = vpop.permute.xlu0 %3318  ;;  %9611 = vmatpush3.bf16.msra.mxu1 %v9756_v50 }
 0x346   :  { %v3142_v29 = vpop.permute.xlu1 %3141  ;;  %3337 = vst.msk [vmem:[#allocation7 + $0x70] sm:$0xf] %vm14500_vm6, %v3319_v0  ;;  %v8912_v40 = vcombine.high %v3402_v24, %v3405_v45  ;;  %v8911_v56 = vcombine.low %v3402_v24, %v3405_v45  ;;  %9612 = vmatprep.subr.bf16.mxu1 %v9757_v62 }
 0x347   :  { %3159 = vst.msk [vmem:[#allocation7 + $0x80] sm:$0xf] %vm14500_vm6, %v3142_v29 }
 0x348   :  { %3924 = vmatprep.mubr.bf16.mxu1 %v8912_v40 }
 0x349   :  { %v3144_v35 = vpop.permute.xlu0 %3143  ;;  %3925 = vmatmul.mubr.bf16.gmra.mrb[20].mxu1 %v8911_v56 }
 0x34a   :  { %v3321_v32 = vpop.permute.xlu1 %3320  ;;  %3160 = vst.msk [vmem:[#allocation7 + $0x94] sm:$0x1] %vm14498_vm15, %v3144_v35  ;;  %9613 = vmatpush3.bf16.msra.mxu1 %v9757_v62  ;;  %v3408_v1 = vld [vmem:[#allocation7 + $0x58] sm:$0xff]  ;;  %v96_v35 = vld [vmem:[#allocation5 + $0x20] sm:$0xf] }
 0x34b   :  { %3338 = vst.msk [vmem:[#allocation7 + $0x84] sm:$0xf] %vm14500_vm6, %v3321_v32  ;;  %9614 = vmatprep.subr.bf16.mxu1 %v9758_v19 }
 0x34d   :  { %v3411_v9 = vld [vmem:[#allocation7 + $0x6c] sm:$0xff]  ;;  %v3323_v25 = vpop.permute.xlu0 %3322 }
 0x34e   :  { %3339 = vst.msk [vmem:[#allocation7 + $0x98] sm:$0x1] %vm14498_vm15, %v3323_v25  ;;  %v8917_v15 = vcombine.high %v3408_v1, %v3411_v9  ;;  %v8916_v11 = vcombine.low %v3408_v1, %v3411_v9  ;;  %9615 = vmatpush3.bf16.msra.mxu1 %v9758_v19  ;;  %v97_v9 = vsel %vm12547_vm14, 0, %v96_v35 }
 0x34f   :  { %98 = vst [vmem:[#allocation5 + $0x20] sm:$0xf] %v97_v9 }
 0x350   :  { %3932 = vmatprep.mubr.bf16.mxu1 %v8917_v15 }
 0x351   :  { %3933 = vmatmul.mubr.bf16.gmra.mrb[24].mxu1 %v8916_v11 }
 0x352   :  { %v3414_v48 = vld [vmem:[#allocation7 + $0x80] sm:$0xff] }
 0x355   :  { %v3417_v18 = vld [vmem:[#allocation7 + $0x94] sm:$0x11] }
 0x356   :  { %v8922_v42 = vcombine.high %v3414_v48, %v3417_v18  ;;  %v8921_v57 = vcombine.low %v3414_v48, %v3417_v18 }
 0x358   :  { %3940 = vmatprep.mubr.bf16.mxu1 %v8922_v42 }
 0x359   :  { %3941 = vmatmul.mubr.bf16.gmra.mrb[28].mxu1 %v8921_v57 }
 0x35a   :  { %9616 = vmatprep.mubr.msk.bf16.mxu1 %vm14497_vm1, %v9759_v5 }
 0x361   :  { %9617 = vmatmul.mubr.msk.bf16.vlgmr.msra.gmra.mrb[32].mxu1 %vm14497_vm1, %v9760_v61 }
 0x362   :  { %9620 = vmatprep.mubr.msk.bf16.mxu1 %vm14497_vm1, %v9761_v58 }
 0x369   :  { %9621 = vmatmul.mubr.msk.bf16.gmra.mrb[36].mxu1 %vm14497_vm1, %v9762_v7 }
 0x3e0   :  { %v9272_v30 = vpop.f32.mrb[0].mxu1 }
 0x3e1   :  { %v9273_v41 = vpop.f32.mrb[1].mxu1 }
 0x3e2   :  { %v9274_v38 = vadd.f32 %v9273_v41, %v9272_v30  ;;  %v9275_v36 = vpop.f32.mrb[2].mxu1  ;;  %v12553_v30 = vpop.permute.xlu1 %4018 }
 0x3e3   :  { %v9276_v21 = vpop.f32.mrb[3].mxu1 }
 0x3e4   :  { %v9277_v6 = vadd.f32 %v9276_v21, %v9275_v36  ;;  %v12555_v21 = vpop.permute.xlu0 %4023 }
 0x3f2   :  { %v9278_v4 = vpop.f32.mrb[4].mxu1 }
 0x3f3   :  { %v9279_v53 = vpop.f32.mrb[5].mxu1 }
 0x3f4   :  { %v9280_v12 = vadd.f32 %v9279_v53, %v9278_v4  ;;  %v9281_v23 = vpop.f32.mrb[6].mxu1 }
 0x3f5   :  { %v9282_v63 = vpop.f32.mrb[7].mxu1 }
 0x3f6   :  { %v9283_v26 = vadd.f32 %v9282_v63, %v9281_v23 }
 0x403   :  { %v9284_v16 = vpop.f32.mrb[8].mxu1 }
 0x404   :  { %v9285_v17 = vpop.f32.mrb[9].mxu1 }
 0x405   :  { %v9286_v34 = vadd.f32 %v9285_v17, %v9284_v16  ;;  %v9287_v39 = vpop.f32.mrb[10].mxu1  ;;  %v12561_v16 = vpop.permute.xlu0 %4033 }
 0x406   :  { %v9288_v8 = vpop.f32.mrb[11].mxu1 }
 0x407   :  { %v9289_v54 = vadd.f32 %v9288_v8, %v9287_v39 }
 0x40b   :  { %v9290_v33 = vpop.f32.mrb[12].mxu1 }
 0x40c   :  { %v9291_v20 = vpop.f32.mrb[13].mxu1 }
 0x40d   :  { %v9292_v55 = vadd.f32 %v9291_v20, %v9290_v33  ;;  %v9293_v27 = vpop.f32.mrb[14].mxu1 }
 0x40e   :  { %v9294_v3 = vpop.f32.mrb[15].mxu1 }
 0x40f   :  { %v9295_v47 = vadd.f32 %v9294_v3, %v9293_v27 }
 0x413   :  { %v9312_v52 = vpop.f32.mrb[16].mxu1 }
 0x414   :  { %v9313_v49 = vpop.f32.mrb[17].mxu1 }
 0x415   :  { %v9314_v59 = vadd.f32 %v9313_v49, %v9312_v52  ;;  %v9315_v50 = vpop.f32.mrb[18].mxu1  ;;  %v12580_v52 = vpop.permute.xlu0 %4043 }
 0x416   :  { %v9316_v10 = vpop.f32.mrb[19].mxu1 }
 0x417   :  { %v9317_v13 = vadd.f32 %v9316_v10, %v9315_v50  ;;  %v3919_v62 = vadd.f32 %v9314_v59, %v9274_v38 }
 0x419   :  { %v3922_v24 = vadd.f32 %v9317_v13, %v9277_v6 }
 0x41c   :  { %v9318_v45 = vpop.f32.mrb[20].mxu1 }
 0x41d   :  { %v9319_v0 = vpop.f32.mrb[21].mxu1 }
 0x41e   :  { %v9320_v29 = vadd.f32 %v9319_v0, %v9318_v45  ;;  %v9321_v40 = vpop.f32.mrb[22].mxu1 }
 0x41f   :  { %v9322_v56 = vpop.f32.mrb[23].mxu1 }
 0x420   :  { %v9323_v32 = vadd.f32 %v9322_v56, %v9321_v40  ;;  %v3927_v1 = vadd.f32 %v9320_v29, %v9280_v12  ;;  %v12557_v12 = vpop.permute.xlu1 %4028 }
 0x422   :  { %v3930_v25 = vadd.f32 %v9323_v32, %v9283_v26 }
 0x424   :  { %v9324_v15 = vpop.f32.mrb[24].mxu1 }
 0x425   :  { %v9325_v11 = vpop.f32.mrb[25].mxu1 }
 0x426   :  { %v9326_v48 = vadd.f32 %v9325_v11, %v9324_v15  ;;  %v9327_v18 = vpop.f32.mrb[26].mxu1 }
 0x427   :  { %v9328_v42 = vpop.f32.mrb[27].mxu1 }
 0x428   :  { %v9329_v57 = vadd.f32 %v9328_v42, %v9327_v18  ;;  %v3935_v5 = vadd.f32 %v9326_v48, %v9286_v34 }
 0x42a   :  { %v3938_v61 = vadd.f32 %v9329_v57, %v9289_v54 }
 0x42c   :  { %v9330_v58 = vpop.f32.mrb[28].mxu1 }
 0x42d   :  { %v9331_v7 = vpop.f32.mrb[29].mxu1 }
 0x42e   :  { %v9332_v41 = vadd.f32 %v9331_v7, %v9330_v58  ;;  %v9333_v38 = vpop.f32.mrb[30].mxu1  ;;  %v12606_v58 = vpop.permute.xlu0 %4053 }
 0x42f   :  { %v9334_v36 = vpop.f32.mrb[31].mxu1 }
 0x430   :  { %v9335_v6 = vadd.f32 %v9334_v36, %v9333_v38  ;;  %v3943_v4 = vadd.f32 %v9332_v41, %v9292_v55  ;;  %v12573_v55 = vpop.permute.xlu1 %4038 }
 0x432   :  { %v3946_v53 = vadd.f32 %v9335_v6, %v9295_v47 }
 0x434   :  { %v9618_v23 = vpop.f32.mrb[32].mxu1 }
 0x435   :  { %v12559_v63 = vadd.f32 %v9618_v23, %v3927_v1  ;;  %v3983_v26 = vpop.f32.mrb[33].mxu1 }
 0x436   :  { %v12563_v17 = vadd.f32 %v3983_v26, %v3919_v62  ;;  %v9619_v34 = vpop.f32.mrb[34].mxu1 }
 0x437   :  { %v12565_v39 = vadd.f32 %v9619_v34, %v3930_v25  ;;  %v3986_v8 = vpop.f32.mrb[35].mxu1  ;;  %v4058_v54 = vmul.f32 %v12557_v12, %v12559_v63  ;;  %v12596_v25 = vpop.permute.xlu1 %4048 }
 0x438   :  { %v4056_v33 = vmul.f32 %v12553_v30, %v12563_v17  ;;  %v12571_v20 = vadd.f32 %v3986_v8, %v3922_v24 }
 0x439   :  { %v4059_v3 = vmul.f32 %v12561_v16, %v12565_v39  ;;  %v4087_v43 = vmul.f32 %v4058_v54, %v12559_v63  ;;  %v4067_v10 = vsel %vm14497_vm1, %v4058_v54, 0.0 }
 0x43a   :  { %v4085_v27 = vmul.f32 %v4056_v33, %v12563_v17  ;;  %v4057_v47 = vmul.f32 %v12555_v21, %v12571_v20  ;;  %v4064_v49 = vsel %vm14497_vm1, %v4056_v33, 0.0 }
 0x43b   :  { %v4088_v0 = vmul.f32 %v4059_v3, %v12565_v39  ;;  %v4096_v15 = vsel %vm14497_vm1, %v4087_v43, 0.0  ;;  %v4069_v11 = vsel %vm14497_vm1, %v4059_v3, 0.0 }
 0x43c   :  { %v4065_v14 = vsel %vm14497_vm1, %v4057_v47, 0.0  ;;  %v4086_v59 = vmul.f32 %v4057_v47, %v12571_v20  ;;  %v9622_v50 = vpop.f32.mrb[36].mxu1  ;;  %v4093_v45 = vsel %vm14497_vm1, %v4085_v27, 0.0 }
 0x43d   :  { %v4066_v13 = vadd.f32 %v4065_v14, %v4064_v49  ;;  %v12587_v62 = vadd.f32 %v9622_v50, %v3943_v4  ;;  %v3999_v24 = vpop.f32.mrb[37].mxu1  ;;  %v4098_v7 = vsel %vm14497_vm1, %v4088_v0, 0.0  ;;  %v9763_v0 = vld [vmem:[%s14464_s8 + $0xc0] sm:$0xff]  }
 0x43e   :  { %v4094_v29 = vsel %vm14497_vm1, %v4086_v59, 0.0  ;;  %v12592_v40 = vadd.f32 %v3999_v24, %v3935_v5  ;;  %v9623_v56 = vpop.f32.mrb[38].mxu1  ;;  %9384 = vmatprep.subr.bf16.mxu0 %v9763_v0 }
 0x43f   :  { %v4068_v35 = vadd.f32 %v4067_v10, %v4066_v13  ;;  %v4095_v32 = vadd.f32 %v4094_v29, %v4093_v45  ;;  %v12594_v1 = vadd.f32 %v9623_v56, %v3946_v53  ;;  %v4002_v9 = vpop.f32.mrb[39].mxu1  ;;  %v4062_v57 = vmul.f32 %v12596_v25, %v12587_v62  ;;  %v9764_v29 = vld [vmem:[%s14464_s8 + $0x80] sm:$0xff]  }
 0x440   :  { %v4060_v48 = vmul.f32 %v12573_v55, %v12592_v40  ;;  %v12602_v18 = vadd.f32 %v4002_v9, %v3938_v61  ;;  %9385 = vmatpush3.bf16.msra.mxu0 %v9764_v29 }
 0x441   :  { %v4097_v42 = vadd.f32 %v4096_v15, %v4095_v32  ;;  %v4070_v5 = vadd.f32 %v4069_v11, %v4068_v35  ;;  %v4063_v61 = vmul.f32 %v12606_v58, %v12594_v1  ;;  %v4091_v26 = vmul.f32 %v4062_v57, %v12587_v62  ;;  %v9765_v15 = vld [vmem:[%s14464_s8 + $0xc8] sm:$0xff]  }
 0x442   :  { %v4071_v41 = vsel %vm14497_vm1, %v4060_v48, 0.0  ;;  %v4089_v38 = vmul.f32 %v4060_v48, %v12592_v40  ;;  %v4061_v36 = vmul.f32 %v12580_v52, %v12602_v18  ;;  %v4075_v33 = vsel %vm14497_vm1, %v4062_v57, 0.0  ;;  %v9766_v11 = vld [vmem:[%s14464_s8 + $0x88] sm:$0xff]   ;;  %v9767_v48 = vld [vmem:[%s14464_s8 + $0xd0] sm:$0xff]   ;;  %9386 = vmatprep.subr.bf16.mxu0 %v9765_v15 }
 0x443   :  { %v4072_v6 = vadd.f32 %v4071_v41, %v4070_v5  ;;  %v4099_v4 = vadd.f32 %v4098_v7, %v4097_v42  ;;  %v4092_v27 = vmul.f32 %v4063_v61, %v12594_v1  ;;  %v4077_v43 = vsel %vm14615_vm9, %v4063_v61, 0.0  ;;  %v9773_v5 = vld [vmem:[%s14464_s8 + $0x40] sm:$0xff]   ;;  %v9768_v41 = vld [vmem:[%s14464_s8 + $0x90] sm:$0xff]  }
 0x444   :  { %v4100_v53 = vsel %vm14497_vm1, %v4089_v38, 0.0  ;;  %v4073_v23 = vsel %vm14497_vm1, %v4061_v36, 0.0  ;;  %v4090_v54 = vmul.f32 %v4061_v36, %v12602_v18  ;;  %v4104_v14 = vsel %vm14497_vm1, %v4091_v26, 0.0  ;;  %9387 = vmatpush3.bf16.msra.mxu0 %v9766_v11  ;;  %v9769_v36 = vld [vmem:[%s14464_s8 + $0xd8] sm:$0xff]   ;;  %9344 = vmatprep.subr.bf16.mxu1 %v9773_v5 }
 0x445   :  { %v4101_v34 = vadd.f32 %v4100_v53, %v4099_v4  ;;  %v4074_v8 = vadd.f32 %v4073_v23, %v4072_v6  ;;  %v4106_v10 = vsel %vm14616_vm10, %v4092_v27, 0.0  ;;  %9388 = vmatprep.subr.bf16.mxu0 %v9767_v48  ;;  %v9770_v53 = vld [vmem:[%s14464_s8 + $0x98] sm:$0xff]   ;;  %vm14617_vm9 = vcmask 519168  }
 0x446   :  { %v4102_v47 = vsel %vm14497_vm1, %v4090_v54, 0.0  ;;  %v9771_v54 = vld [vmem:[%s14464_s8 + $0xe0] sm:$0xff]   ;;  %vm14618_vm10 = vmmov %vm14617_vm9 }
 0x447   :  { %v4076_v3 = vadd.f32 %v4075_v33, %v4074_v8  ;;  %v4103_v49 = vadd.f32 %v4102_v47, %v4101_v34  ;;  %vm14619_vm1 = vmmov %vm14617_vm9 }
 0x448   :  { %9389 = vmatpush3.bf16.msra.mxu0 %v9768_v41  ;;  %vm14620_vm15 = vmmov %vm14619_vm1 }
 0x449   :  { %v4078_v59 = vadd.f32 %v4077_v43, %v4076_v3  ;;  %v4105_v50 = vadd.f32 %v4104_v14, %v4103_v49  ;;  %9390 = vmatprep.subr.bf16.mxu0 %v9769_v36 }
 0x44b   :  { %v4079_v13 = vrot.slane %v4078_v59, 4  ;;  %v4107_v24 = vadd.f32 %v4106_v10, %v4105_v50  ;;  %v8965_v50 = vld [vmem:[%s14463_s7] ss:$0 sm:$0xff] }
 0x44c   :  { %9391 = vmatpush3.bf16.msra.mxu0 %v9770_v53 }
 0x44d   :  { %v4080_v45 = vadd.f32 %v4079_v13, %v4078_v59  ;;  %v4108_v56 = vrot.slane %v4107_v24, 4  ;;  %9392 = vmatprep.subr.bf16.mxu0 %v9771_v54 }
 0x44f   :  { %v4081_v35 = vrot.slane %v4080_v45, 2  ;;  %v4109_v32 = vadd.f32 %v4108_v56, %v4107_v24 }
 0x451   :  { %v4082_v9 = vadd.f32 %v4081_v35, %v4080_v45  ;;  %v4110_v42 = vrot.slane %v4109_v32, 2 }
 0x453   :  { %v4083_v57 = vrot.slane %v4082_v9, 1  ;;  %v4111_v7 = vadd.f32 %v4110_v42, %v4109_v32 }
 0x455   :  { %v4084_v38 = vadd.f32 %v4083_v57, %v4082_v9  ;;  %v4112_v6 = vrot.slane %v4111_v7, 1 }
 0x457   :  { %v4114_v4 = vmul.f32 0.03125, %v4084_v38  ;;  %v4113_v61 = vadd.f32 %v4112_v6, %v4111_v7 }
 0x459   :  { %v4116_v23 = vmul.f32 %v4114_v4, %v4114_v4  ;;  %v4119_v26 = vsub.f32 %v12563_v17, %v4114_v4  ;;  %v4120_v34 = vsub.f32 %v12571_v20, %v4114_v4  ;;  %v4121_v8 = vsub.f32 %v12559_v63, %v4114_v4  ;;  %v9772_v63 = vld [vmem:[%s14464_s8 + $0xa0] sm:$0xff]  }
 0x45a   :  { %v4115_v33 = vmul.f32 0.03125, %v4113_v61  ;;  %v4122_v27 = vsub.f32 %v12565_v39, %v4114_v4  ;;  %v4123_v3 = vsub.f32 %v12592_v40, %v4114_v4  ;;  %v4124_v47 = vsub.f32 %v12602_v18, %v4114_v4  ;;  %9393 = vmatpush3.bf16.msra.mxu0 %v9772_v63  ;;  %v8964_v40 = vld [vmem:[%s14462_s6] ss:$0 sm:$0xff] }
 0x45b   :  { %v4125_v43 = vsub.f32 %v12587_v62, %v4114_v4  ;;  %v4126_v17 = vsub.f32 %v12594_v1, %v4114_v4 }
 0x45c   :  { %v4117_v49 = vsub.f32 %v4115_v33, %v4116_v23 }
 0x45e   :  { %v4118_v20 = vmax.f32 %v4117_v49, 0.0 }
 0x460   :  { %v4127_v14 = vadd.f32 1e-05, %v4118_v20 }
 0x462   :  { %9941 = vrsqrt.f32 %v4127_v14 }
 0x46c   :  { %v9942_v39 = vpop.eup %9941 }
 0x46d   :  { %v4129_v18 = vmul.f32 %v9942_v39, %v4119_v26  ;;  %v4130_v62 = vmul.f32 %v9942_v39, %v4120_v34  ;;  %v4131_v59 = vmul.f32 %v9942_v39, %v4121_v8  ;;  %v4132_v1 = vmul.f32 %v9942_v39, %v4122_v27 }
 0x46e   :  { %v4133_v10 = vmul.f32 %v9942_v39, %v4123_v3  ;;  %v4134_v13 = vmul.f32 %v9942_v39, %v4124_v47  ;;  %v4135_v24 = vmul.f32 %v9942_v39, %v4125_v43  ;;  %v4136_v45 = vmul.f32 %v9942_v39, %v4126_v17 }
 0x46f   :  { %v4143_v0 = vmul.f32 %v8964_v40, %v4129_v18  ;;  %v4144_v29 = vmul.f32 %v8964_v40, %v4130_v62  ;;  %v4145_v56 = vmul.f32 %v8964_v40, %v4131_v59  ;;  %v4146_v35 = vmul.f32 %v8964_v40, %v4132_v1 }
 0x470   :  { %v4147_v32 = vmul.f32 %v8964_v40, %v4133_v10  ;;  %v4148_v9 = vmul.f32 %v8964_v40, %v4134_v13  ;;  %v4149_v15 = vmul.f32 %v8964_v40, %v4135_v24  ;;  %v4150_v11 = vmul.f32 %v8964_v40, %v4136_v45 }
 0x471   :  { %v4157_v48 = vadd.f32 %v8965_v50, %v4143_v0  ;;  %v4158_v42 = vadd.f32 %v8965_v50, %v4144_v29  ;;  %v4159_v57 = vadd.f32 %v8965_v50, %v4145_v56  ;;  %v4160_v5 = vadd.f32 %v8965_v50, %v4146_v35 }
 0x472   :  { %v4161_v7 = vadd.f32 %v8965_v50, %v4147_v32  ;;  %v4162_v41 = vadd.f32 %v8965_v50, %v4148_v9  ;;  %v4163_v38 = vadd.f32 %v8965_v50, %v4149_v15  ;;  %v4164_v36 = vadd.f32 %v8965_v50, %v4150_v11 }
 0x473   :  { %v4165_v6 = vmax.f32 %v4157_v48, 0.0  ;;  %v4166_v4 = vmax.f32 %v4158_v42, 0.0  ;;  %v4167_v61 = vmax.f32 %v4159_v57, 0.0  ;;  %v4168_v53 = vmax.f32 %v4160_v5, 0.0 }
 0x474   :  { %v4169_v23 = vmax.f32 %v4161_v7, 0.0  ;;  %v4170_v26 = vmax.f32 %v4162_v41, 0.0  ;;  %v4171_v34 = vmax.f32 %v4163_v38, 0.0  ;;  %v4172_v8 = vmax.f32 %v4164_v36, 0.0 }
 0x475   :  { %v4173_v54 = vmul.f32 %v4165_v6, %v12553_v30  ;;  %v4174_v33 = vmul.f32 %v4166_v4, %v12555_v21  ;;  %v4176_v27 = vmul.f32 %v4168_v53, %v12561_v16  ;;  %v4175_v3 = vmul.f32 %v4167_v61, %v12557_v12 }
 0x476   :  { %v4177_v47 = vmul.f32 %v4169_v23, %v12573_v55  ;;  %v4178_v43 = vmul.f32 %v4170_v26, %v12580_v52  ;;  %v4179_v17 = vmul.f32 %v4171_v34, %v12596_v25  ;;  %v4180_v49 = vmul.f32 %v4172_v8, %v12606_v58 }
 0x477   :  { %v9205_v63 = vpack.c.bf16 %v4176_v27, %v4176_v27  ;;  %v9203_v20 = vpack.c.bf16 %v4174_v33, %v4174_v33  ;;  %v9204_v14 = vpack.c.bf16 %v4175_v3, %v4175_v3  ;;  %v9202_v39 = vpack.c.bf16 %v4173_v54, %v4173_v54 }
 0x478   :  { %v9206_v40 = vpack.c.bf16 %v4177_v47, %v4177_v47  ;;  %v9207_v18 = vpack.c.bf16 %v4178_v43, %v4178_v43  ;;  %v9208_v62 = vpack.c.bf16 %v4179_v17, %v4179_v17  ;;  %v9209_v59 = vpack.c.bf16 %v4180_v49, %v4180_v49 }
 0x479   :  { %v4235_v1 = vshll.u32 %v9205_v63, 16  ;;  %v4239_v50 = vshrl.u32 %v9205_v63, 16  ;;  %v4215_v10 = vshll.u32 %v9203_v20, 16  ;;  %v4219_v13 = vshrl.u32 %v9203_v20, 16 }
 0x47a   :  { %v4245_v24 = vshll.u32 %v9206_v40, 16  ;;  %v4249_v45 = vshrl.u32 %v9206_v40, 16  ;;  %v4255_v0 = vshll.u32 %v9207_v18, 16  ;;  %v4259_v29 = vshrl.u32 %v9207_v18, 16  ;;  %v4292_v40 = vld [vmem:[#allocation5] sm:$0x8] }
 0x47b   :  { %v4237_v56 = vrot.slane %v4235_v1, 5  ;;  %v4241_v35 = vrot.slane %v4239_v50, 4  ;;  %v4265_v32 = vshll.u32 %v9208_v62, 16  ;;  %v4269_v9 = vshrl.u32 %v9208_v62, 16  ;;  %v4302_v18 = vld [vmem:[#allocation5 + $0x20] sm:$0x1] }
 0x47c   :  { %v4247_v15 = vrot.slane %v4245_v24, 5  ;;  %v4251_v11 = vrot.slane %v4249_v45, 4  ;;  %v4257_v48 = vrot.slane %v4255_v0, 5  ;;  %v4261_v42 = vrot.slane %v4259_v29, 4 }
 0x47d   :  { %v4242_v57 = vor.u32 %v4241_v35, %v4237_v56  ;;  %v4267_v5 = vrot.slane %v4265_v32, 5  ;;  %v4271_v7 = vrot.slane %v4269_v9, 4  ;;  %v4275_v41 = vshll.u32 %v9209_v59, 16  ;;  %v9775_v35 = vld [vmem:[%s14464_s8 + $0x48] sm:$0xff]  }
 0x47e   :  { %v4252_v38 = vor.u32 %v4251_v11, %v4247_v15  ;;  %v4262_v36 = vor.u32 %v4261_v42, %v4257_v48  ;;  %v4217_v6 = vrot.slane %v4215_v10, 5  ;;  %v4221_v4 = vrot.slane %v4219_v13, 4 }
 0x47f   :  { %v4243_v61 = vrot.slane %v4242_v57, 4  ;;  %v4272_v53 = vor.u32 %v4271_v7, %v4267_v5  ;;  %v4277_v23 = vrot.slane %v4275_v41, 5  ;;  %v4225_v26 = vshll.u32 %v9204_v14, 16 }
 0x480   :  { %v4253_v34 = vrot.slane %v4252_v38, 4  ;;  %v4263_v8 = vrot.slane %v4262_v36, 4  ;;  %v4222_v54 = vor.u32 %v4221_v4, %v4217_v6  ;;  %v4229_v33 = vshrl.u32 %v9204_v14, 16 }
 0x481   :  { %v4248_v27 = vsel %vm10131_vm8, %v4243_v61, %v4247_v15  ;;  %v4273_v3 = vrot.slane %v4272_v53, 4  ;;  %v4227_v47 = vrot.slane %v4225_v26, 5  ;;  %v4206_v43 = vshll.u32 %v9202_v39, 16 }
 0x482   :  { %v4258_v17 = vsel %vm10131_vm8, %v4253_v34, %v4257_v48  ;;  %v4268_v49 = vsel %vm10131_vm8, %v4263_v8, %v4267_v5  ;;  %4298 = vst.msk [vmem:[#allocation5 + $0x10] sm:$0xf] %vm14617_vm9, %v4248_v27  ;;  %v4223_v63 = vrot.slane %v4222_v54, 4  ;;  %v4231_v20 = vrot.slane %v4229_v33, 4  ;;  %vm14621_vm9 = vmmov %vm14619_vm1  ;;  %v9776_v33 = vld [vmem:[%s14464_s8 + $0x8] sm:$0xff]  }
 0x483   :  { %v4278_v14 = vsel %vm10131_vm8, %v4273_v3, %v4277_v23  ;;  %4299 = vst.msk [vmem:[#allocation5 + $0x14] sm:$0xf] %vm14618_vm10, %v4258_v17  ;;  %v4208_v62 = vrot.slane %v4206_v43, 5  ;;  %v4209_v1 = vshrl.u32 %v9202_v39, 16  ;;  %v4279_v50 = vshrl.u32 %v9209_v59, 16  ;;  %v9774_v59 = vld [vmem:[%s14464_s8] sm:$0xff]   ;;  %vm14623_vm10 = vmmov %vm14619_vm1 }
 0x484   :  { %4300 = vst.msk [vmem:[#allocation5 + $0x18] sm:$0xf] %vm14619_vm1, %v4268_v49  ;;  %v4228_v10 = vsel %vm10131_vm8, %v4223_v63, %v4227_v47  ;;  %v4232_v13 = vor.u32 %v4231_v20, %v4227_v47  ;;  %9345 = vmatpush3.bf16.msra.mxu1 %v9774_v59  ;;  %v9777_v43 = vld [vmem:[%s14464_s8 + $0x50] sm:$0xff]  }
 0x485   :  { %4301 = vst.msk [vmem:[#allocation5 + $0x1c] sm:$0xf] %vm14620_vm15, %v4278_v14  ;;  %v4211_v24 = vrot.slane %v4209_v1, 4  ;;  %v4293_v45 = vsel %vm11903_vm5, %v4208_v62, %v4292_v40  ;;  %v4303_v0 = vsel %vm11939_vm4, %v4279_v50, %v4302_v18  ;;  %9346 = vmatprep.subr.bf16.mxu1 %v9775_v35  ;;  %vm14622_vm15 = vmmov %vm14619_vm1 }
 0x486   :  { %4296 = vst.msk [vmem:[#allocation5 + $0x8] sm:$0xf] %vm14621_vm9, %v4228_v10  ;;  %v4233_v29 = vrot.slane %v4232_v13, 4  ;;  %4294 = vst [vmem:[#allocation5] sm:$0x8] %v4293_v45 }
 0x487   :  { %4304 = vst [vmem:[#allocation5 + $0x20] sm:$0x1] %v4303_v0  ;;  %v4212_v39 = vor.u32 %v4211_v24, %v4208_v62  ;;  %vm14624_vm9 = vmmov %vm14619_vm1 }
 0x488   :  { %v4238_v32 = vsel %vm10131_vm8, %v4233_v29, %v4237_v56  ;;  %9347 = vmatpush3.bf16.msra.mxu1 %v9776_v33 }
 0x489   :  { %v4213_v9 = vrot.slane %v4212_v39, 4  ;;  %4297 = vst.msk [vmem:[#allocation5 + $0xc] sm:$0xf] %vm14619_vm1, %v4238_v32  ;;  %v12708_v15 = vld [vmem:[#allocation5 + $0x10] sm:$0xf]  ;;  %9348 = vmatprep.subr.bf16.mxu1 %v9777_v43 }
 0x48a   :  { %v12710_v11 = vld [vmem:[#allocation5 + $0x10] sm:$0xf]  ;;  %v12712_v48 = vld [vmem:[#allocation5 + $0x14] sm:$0xf]  ;;  %v4522_v42 = vrot.slane %v12708_v15, 7  ;;  %v9781_v15 = vld [vmem:[%s14464_s8 + $0x58] sm:$0xff]  }
 0x48b   :  { %v4500_v57 = vld [vmem:[#allocation5 + $0x14] sm:$0xf]  ;;  %v4218_v5 = vsel %vm10131_vm8, %v4213_v9, %v4217_v6  ;;  %v4501_v7 = vld [vmem:[#allocation5 + $0x18] sm:$0xf]  ;;  %v4369_v4 = vshll.u32 %v12710_v11, 16 }
 0x48c   :  { %v4525_v41 = vrot.slane %v4500_v57, 7  ;;  %4295 = vst.msk [vmem:[#allocation5 + $0x4] sm:$0xf] %vm14622_vm15, %v4218_v5  ;;  %v4528_v23 = vrot.slane %v4501_v7, 7  ;;  %v4328_v26 = vld [vmem:[#allocation5 + $0x1c] sm:$0x3]  ;;  %vm14625_vm15 = vmmov %vm14619_vm1 }
 0x48d   :  { %v4664_v38 = vld [vmem:[#allocation5 + $0x8] sm:$0xf]  ;;  %v4321_v53 = vld [vmem:[#allocation5] sm:$0xf]  ;;  %v4524_v6 = vrot.slane %v4522_v42, 4  ;;  %v4399_v20 = vshll.u32 %v4328_v26, 16 }
 0x48e   :  { %v4497_v36 = vld [vmem:[#allocation5 + $0x8] sm:$0xf]  ;;  %4681 = vrot.lane.b32.xlu0 %v4664_v38, %s9978_s1  ;;  %v4495_v34 = vld [vmem:[#allocation5] sm:$0x8]  ;;  %v4330_v8 = vshrl.u32 %v4321_v53, 16  ;;  %v4333_v54 = vshll.u32 %v4321_v53, 16 }
 0x48f   :  { %v4516_v61 = vrot.slane %v4497_v36, 7  ;;  %v4527_v27 = vrot.slane %v4525_v41, 4  ;;  %v4502_v3 = vld [vmem:[#allocation5 + $0x1c] sm:$0xf]  ;;  %v4323_v47 = vld [vmem:[#allocation5 + $0x8] sm:$0xf]  ;;  %v12735_v59 = vsel %vm10084_vm2, %v4524_v6, %v4525_v41 }
 0x490   :  { %v4332_v17 = vrot.slane %v4330_v8, 4  ;;  %v4335_v49 = vrot.slane %v4333_v54, 5  ;;  %v4498_v63 = vld [vmem:[#allocation5 + $0xc] sm:$0xf]  ;;  %v4403_v40 = vshrl.u32 %v4328_v26, 16  ;;  %v8976_v18 = vrot.slane %v4495_v34, 11 }
 0x491   :  { %v4518_v14 = vrot.slane %v4516_v61, 4  ;;  %v4530_v62 = vrot.slane %v4528_v23, 4  ;;  %v4349_v1 = vshll.u32 %v4323_v47, 16  ;;  %v4519_v10 = vrot.slane %v4498_v63, 7  ;;  %v4324_v5 = vld [vmem:[#allocation5 + $0xc] sm:$0xf] }
 0x492   :  { %v4336_v50 = vor.u32 %v4335_v49, %v4332_v17  ;;  %v4531_v13 = vrot.slane %v4502_v3, 7  ;;  %v4353_v24 = vshrl.u32 %v4323_v47, 16  ;;  %v12731_v39 = vsel %vm10084_vm2, %v4527_v27, %v4528_v23  ;;  %v4326_v27 = vld [vmem:[#allocation5 + $0x14] sm:$0xf]  ;;  %v9778_v3 = vld [vmem:[%s14464_s8 + $0x10] sm:$0xff]  }
 0x493   :  { %v4663_v45 = vld [vmem:[#allocation5 + $0x4] sm:$0xf]  ;;  %v12738_v9 = vrot.slane %v4399_v20, 5  ;;  %v4405_v57 = vrot.slane %v4403_v40, 4  ;;  %v12744_v36 = vrot.slane %v4349_v1, 5  ;;  %v4359_v6 = vshll.u32 %v4324_v5, 16  ;;  %9349 = vmatpush3.bf16.msra.mxu1 %v9778_v3 }
 0x494   :  { %v4496_v0 = vld [vmem:[#allocation5 + $0x4] sm:$0xf]  ;;  %4679 = vrot.lane.b32.xlu1 %v4663_v45, %s9978_s1  ;;  %v12742_v7 = vsel %vm10084_vm2, %v4530_v62, %v4531_v13  ;;  %v4355_v53 = vrot.slane %v4353_v24, 4  ;;  %v4337_v26 = vrot.slane %v4336_v50, 4  ;;  %v4363_v33 = vshrl.u32 %v4324_v5, 16  ;;  %9350 = vmatprep.subr.bf16.mxu1 %v9781_v15 }
 0x495   :  { %v4322_v29 = vld [vmem:[#allocation5 + $0x4] sm:$0xf]  ;;  %v4513_v35 = vrot.slane %v4496_v0, 7  ;;  %v4521_v43 = vrot.slane %v4519_v10, 4  ;;  %v12755_v17 = vrot.slane %v4531_v13, 4  ;;  %v4373_v49 = vshrl.u32 %v12710_v11, 16 }
 0x496   :  { %v4339_v32 = vshll.u32 %v4322_v29, 16  ;;  %v4343_v38 = vshrl.u32 %v4322_v29, 16  ;;  %v4356_v54 = vor.u32 %v4355_v53, %v12744_v36  ;;  %v4766_v63 = vld [vmem:[#allocation5 + $0x4] sm:$0xc]  ;;  %v4520_v20 = vsel %vm10084_vm2, %v4518_v14, %v4519_v10  ;;  %v4327_v1 = vld [vmem:[#allocation5 + $0x18] sm:$0xf] }
 0x497   :  { %v4514_v41 = vsel %vm10084_vm2, %v8976_v18, %v4513_v35  ;;  %v4515_v23 = vrot.slane %v4513_v35, 4  ;;  %v4406_v40 = vor.u32 %v4405_v57, %v12738_v9  ;;  %v12767_v50 = vrot.slane %v4359_v6, 5  ;;  %v4767_v29 = vld [vmem:[#allocation5 + $0x8] sm:$0xf]  ;;  %v4768_v53 = vld [vmem:[#allocation5 + $0xc] sm:$0xf] }
 0x498   :  { %v4341_v34 = vrot.slane %v4339_v32, 5  ;;  %v4345_v8 = vrot.slane %v4343_v38, 4  ;;  %4534 = vrot.lane.b32.xlu1 %v4514_v41, %s9978_s1  ;;  %v12762_v62 = vrot.slane %v4356_v54, 4  ;;  %v4365_v13 = vrot.slane %v4363_v33, 4  ;;  %v9780_v11 = vld [vmem:[%s14464_s8 + $0xa8] sm:$0xff]   ;;  %v9782_v6 = vld [vmem:[%s14464_s8 + $0x18] sm:$0xff]  }
 0x499   :  { %v4517_v47 = vsel %vm10084_vm2, %v4515_v23, %v4516_v61  ;;  %v9779_v61 = vld [vmem:[%s14464_s8 + $0xe8] sm:$0xff]   ;;  %v4379_v24 = vshll.u32 %v4326_v27, 16  ;;  %v4383_v45 = vshrl.u32 %v4326_v27, 16  ;;  %v12773_v14 = vrot.slane %v4369_v4, 5  ;;  %9351 = vmatpush3.bf16.msra.mxu1 %v9782_v6 }
 0x49a   :  { %4536 = vrot.lane.b32.xlu0 %v4517_v47, %s9978_s1  ;;  %v4346_v18 = vor.u32 %v4345_v8, %v4341_v34  ;;  %v4342_v0 = vsel %vm10131_vm8, %v4337_v26, %v4341_v34  ;;  %v4375_v10 = vrot.slane %v4373_v49, 4  ;;  %v4775_v35 = vshrl.u32 %v4766_v63, 16  ;;  %9394 = vmatprep.subr.bf16.mxu0 %v9779_v61  ;;  %v9783_v49 = vld [vmem:[%s14464_s8 + $0x60] sm:$0xff]  }
 0x49b   :  { %v4523_v32 = vsel %vm10084_vm2, %v4521_v43, %v4522_v42  ;;  %v12780_v57 = vrot.slane %v4379_v24, 5  ;;  %v4385_v5 = vrot.slane %v4383_v45, 4  ;;  %v4389_v38 = vshll.u32 %v4327_v1, 16  ;;  %9395 = vmatpush3.bf16.msra.mxu0 %v9780_v11  ;;  %v4769_v43 = vld [vmem:[#allocation5 + $0x10] sm:$0xf]  ;;  %9352 = vmatprep.subr.bf16.mxu1 %v9783_v49 }
 0x49c   :  { %4408 = vrot.lane.b32.xlu1 %v4342_v0, %s9978_s1  ;;  %v4407_v4 = vrot.slane %v4406_v40, 4  ;;  %v12786_v41 = vrot.slane %v4346_v18, 4  ;;  %v4777_v23 = vrot.slane %v4775_v35, 6  ;;  %v4778_v26 = vshll.u32 %v4766_v63, 16  ;;  %v9784_v24 = vld [vmem:[%s14464_s8 + $0x20] sm:$0xff]  }
 0x49d   :  { %v4362_v42 = vsel %vm10131_vm8, %v12762_v62, %v12767_v50  ;;  %v4366_v34 = vor.u32 %v4365_v13, %v12767_v50  ;;  %v4784_v8 = vshrl.u32 %v4767_v29, 16  ;;  %v4787_v54 = vshll.u32 %v4767_v29, 16  ;;  %v4770_v13 = vld [vmem:[#allocation5 + $0x14] sm:$0xf]  ;;  %9353 = vmatpush3.bf16.msra.mxu1 %v9784_v24 }
 0x49e   :  { %4540 = vrot.lane.b32.xlu0 %v4523_v32, %s9978_s1  ;;  %v4376_v33 = vor.u32 %v4375_v10, %v12773_v14  ;;  %v4780_v27 = vrot.slane %v4778_v26, 7  ;;  %v4794_v3 = vshrl.u32 %v4768_v53, 16  ;;  %v4797_v47 = vshll.u32 %v4768_v53, 16  ;;  %v4771_v53 = vld [vmem:[#allocation5 + $0x18] sm:$0xf] }
 0x49f   :  { %v4386_v63 = vor.u32 %v4385_v5, %v12780_v57  ;;  %v12805_v40 = vrot.slane %v4389_v38, 5  ;;  %v4786_v18 = vrot.slane %v4784_v8, 6  ;;  %v4789_v61 = vrot.slane %v4787_v54, 7  ;;  %v4772_v26 = vld [vmem:[#allocation5 + $0x1c] sm:$0xf] }
 0x4a0   :  { %4538 = vrot.lane.b32.xlu1 %v4520_v20, %s9978_s1  ;;  %v4781_v45 = vor.u32 %v4780_v27, %v4777_v23  ;;  %v4796_v0 = vrot.slane %v4794_v3, 6  ;;  %v4799_v10 = vrot.slane %v4797_v47, 7  ;;  %v4393_v29 = vshrl.u32 %v4327_v1, 16  ;;  %v9785_v20 = vld [vmem:[%s14464_s8 + $0x68] sm:$0xff]   ;;  %v12838_v3 = vld [vmem:[#allocation5 + $0x20] sm:$0xf] }
 0x4a1   :  { %v4352_v35 = vsel %vm10131_vm8, %v12786_v41, %v12744_v36  ;;  %v12819_v32 = vrot.slane %v4366_v34, 4  ;;  %v4804_v5 = vshrl.u32 %v4769_v43, 16  ;;  %v4807_v38 = vshll.u32 %v4769_v43, 16  ;;  %v4305_v41 = vld [vmem:[#allocation5] sm:$0xf]  ;;  %v9786_v34 = vld [vmem:[%s14464_s8 + $0x28] sm:$0xff]   ;;  %9354 = vmatprep.subr.bf16.mxu1 %v9785_v20 }
 0x4a2   :  { %4544 = vrot.lane.b32.xlu0 %v12731_v39, %s9978_s1  ;;  %v12821_v39 = vrot.slane %v4376_v33, 4  ;;  %v12823_v11 = vor.u32 %v4789_v61, %v4786_v18  ;;  %v4395_v1 = vrot.slane %v4393_v29, 4  ;;  %v4814_v23 = vshrl.u32 %v4770_v13, 16  ;;  %4313 = vst.msk [vmem:[#allocation7] sm:$0xf] %vm14623_vm10, %v4305_v41  ;;  %9355 = vmatpush3.bf16.msra.mxu1 %v9786_v34  ;;  %vm14626_vm10 = vmmov %vm14619_vm1 }
 0x4a3   :  { %v12827_v15 = vor.u32 %v4799_v10, %v4796_v0  ;;  %v4806_v8 = vrot.slane %v4804_v5, 6  ;;  %v4809_v54 = vrot.slane %v4807_v38, 7  ;;  %v4817_v36 = vshll.u32 %v4770_v13, 16  ;;  %v12849_v18 = vld [vmem:[#allocation5 + $0x8] sm:$0xf] }
 0x4a4   :  { %4542 = vrot.lane.b32.xlu1 %v12735_v59, %s9978_s1  ;;  %v12833_v6 = vrot.slane %v4386_v63, 4  ;;  %v12835_v33 = vrot.slane %v4781_v45, 4  ;;  %v4396_v27 = vor.u32 %v4395_v1, %v12805_v40  ;;  %v4816_v59 = vrot.slane %v4814_v23, 6  ;;  %v12847_v63 = vld [vmem:[#allocation5 + $0x4] sm:$0xf] }
 0x4a5   :  { %v4372_v47 = vsel %vm10131_vm8, %v12819_v32, %v12773_v14  ;;  %v12845_v43 = vor.u32 %v4809_v54, %v4806_v8  ;;  %v4824_v49 = vshrl.u32 %v4771_v53, 16  ;;  %v4792_v61 = vrot.slane %v12823_v11, 4  ;;  %v4312_v0 = vld [vmem:[#allocation5 + $0x1c] sm:$0x1]  ;;  %v12861_v38 = vld [vmem:[#allocation5] sm:$0x8] }
 0x4a6   :  { %4422 = vrot.lane.b32.xlu0 %v4407_v4, %s9978_s1  ;;  %v4819_v4 = vrot.slane %v4817_v36, 7  ;;  %v4827_v13 = vshll.u32 %v4771_v53, 16  ;;  %v4834_v24 = vshrl.u32 %v4772_v26, 16  ;;  %v4837_v45 = vshll.u32 %v4772_v26, 16  ;;  %4320 = vst.msk [vmem:[#allocation7 + $0x8c] sm:$0x1] %vm14499_vm11, %v4312_v0 }
 0x4a7   :  { %v4802_v29 = vrot.slane %v12827_v15, 4  ;;  %v4826_v5 = vrot.slane %v4824_v49, 6  ;;  %v4306_v53 = vld [vmem:[#allocation5 + $0x4] sm:$0xf]  ;;  %v4665_v1 = vld [vmem:[#allocation5 + $0xc] sm:$0xf]  ;;  %v12893_v0 = vsel %vm12232_vm13, %v4792_v61, %v12827_v15 }
 0x4a8   :  { %4546 = vrot.lane.b32.xlu1 %v12742_v7, %s9978_s1  ;;  %v12859_v20 = vor.u32 %v4819_v4, %v4816_v59  ;;  %v12873_v26 = vrot.slane %v4396_v27, 4  ;;  %v4829_v8 = vrot.slane %v4827_v13, 7  ;;  %4314 = vst.msk [vmem:[#allocation7 + $0x14] sm:$0xf] %vm14624_vm9, %v4306_v53  ;;  %v9788_v54 = vld [vmem:[%s14464_s8 + $0xb0] sm:$0xff]   ;;  %v4812_v41 = vrot.slane %v12845_v43, 4  ;;  %vm14627_vm9 = vmmov %vm14619_vm1 }
 0x4a9   :  { %v9789_v36 = vld [vmem:[%s14464_s8 + $0x70] sm:$0xff]   ;;  %v4836_v34 = vrot.slane %v4834_v24, 6  ;;  %v4839_v27 = vrot.slane %v4837_v45, 7  ;;  %v4844_v59 = vshrl.u32 %v12838_v3, 16  ;;  %v4847_v53 = vshll.u32 %v12838_v3, 16  ;;  %v9791_v45 = vld [vmem:[%s14464_s8 + $0x78] sm:$0xff]  }
 0x4aa   :  { %4410 = vrot.lane.b32.xlu0 %v4352_v35, %s9978_s1  ;;  %v9787_v35 = vld [vmem:[%s14464_s8 + $0xf0] sm:$0xff]   ;;  %v4581_v56 = vshrl.u32 %v12847_v63, 16  ;;  %v4590_v24 = vshrl.u32 %v12849_v18, 16  ;;  %9356 = vmatprep.subr.bf16.mxu1 %v9789_v36  ;;  %v4307_v23 = vld [vmem:[#allocation5 + $0x8] sm:$0xf]  ;;  %v12905_v15 = vsel %vm12232_vm13, %v4802_v29, %v12845_v43  ;;  %v12908_v61 = vor.u32 %v4829_v8, %v4826_v5 }
 0x4ab   :  { %v4440_v4 = vld [vmem:[#allocation5] sm:$0xe]  ;;  %v4441_v49 = vld [vmem:[#allocation5 + $0x4] sm:$0xf]  ;;  %9396 = vmatprep.subr.bf16.mxu0 %v9787_v35  ;;  %v4576_v7 = vshrl.u32 %v12861_v38, 16  ;;  %v12920_v29 = vrot.slane %v4844_v59, 6 }
 0x4ac   :  { %v9790_v13 = vld [vmem:[%s14464_s8 + $0x30] sm:$0xff]   ;;  %4683 = vrot.lane.b32.xlu1 %v4665_v1, %s9978_s1  ;;  %v4442_v35 = vld [vmem:[#allocation5 + $0x8] sm:$0xf]  ;;  %v12911_v36 = vld [vmem:[#allocation5 + $0xc] sm:$0xf]  ;;  %9397 = vmatpush3.bf16.msra.mxu0 %v9788_v54  ;;  %v4583_v5 = vrot.slane %v4581_v56, 7  ;;  %v12934_v54 = vsel %vm12232_vm13, %v4812_v41, %v12859_v20  ;;  %v12936_v56 = vor.u32 %v4839_v27, %v4836_v34 }
 0x4ad   :  { %4315 = vst.msk [vmem:[#allocation7 + $0x28] sm:$0xf] %vm14619_vm1, %v4307_v23  ;;  %v4308_v10 = vld [vmem:[#allocation5 + $0xc] sm:$0xf]  ;;  %v4593_v38 = vshll.u32 %v12849_v18, 16  ;;  %9357 = vmatpush3.bf16.msra.mxu1 %v9790_v13  ;;  %v12938_v18 = vrot.slane %v4590_v24, 7 }
 0x4ae   :  { %4548 = vrot.lane.b32.xlu0 %v12755_v17, %s9978_s1  ;;  %v12923_v1 = vld [vmem:[#allocation5 + $0x10] sm:$0xf]  ;;  %v12925_v8 = vld [vmem:[#allocation5 + $0x14] sm:$0xf]  ;;  %v9792_v23 = vld [vmem:[%s14464_s8 + $0x38] sm:$0xff]   ;;  %v4584_v59 = vshll.u32 %v12847_v63, 16  ;;  %9358 = vmatprep.subr.bf16.mxu1 %v9791_v45 }
 0x4af   :  { %4316 = vst.msk [vmem:[#allocation7 + $0x3c] sm:$0xf] %vm14625_vm15, %v4308_v10  ;;  %v4309_v17 = vld [vmem:[#allocation5 + $0x10] sm:$0xf]  ;;  %v4310_v10 = vld [vmem:[#allocation5 + $0x14] sm:$0xf]  ;;  %vm14628_vm15 = vmmov %vm14619_vm1 }
 0x4b0   :  { %v12944_v13 = vld [vmem:[%s14464_s8 + $0x100] sm:$0xff]   ;;  %4317 = vst.msk [vmem:[#allocation7 + $0x50] sm:$0xf] %vm14626_vm10, %v4309_v17  ;;  %v9796_v41 = vld [vmem:[%s14464_s8 + $0xf8] sm:$0xff]   ;;  %v12950_v3 = vrot.slane %v4847_v53, 7  ;;  %v4588_v34 = vrot.slane %v4583_v5, 4  ;;  %4412 = vrot.lane.b32.xlu1 %v4362_v42, %s9978_s1  ;;  %v4595_v53 = vor.u32 %v4593_v38, %v12938_v18  ;;  %vm14629_vm10 = vmmov %vm14619_vm1 }
 0x4b1   :  { %v8975_v27 = vrot.slane %v4440_v4, 9  ;;  %v4458_v24 = vrot.slane %v4441_v49, 5  ;;  %4318 = vst.msk [vmem:[#allocation7 + $0x64] sm:$0xf] %vm14627_vm9, %v4310_v10  ;;  %v9797_v63 = vld [vmem:[%s14464_s8 + $0xb8] sm:$0xff]   ;;  %v4832_v45 = vrot.slane %v12908_v61, 4  ;;  %v4586_v4 = vor.u32 %v4584_v59, %v4583_v5  ;;  %9398 = vmatprep.subr.bf16.mxu0 %v9796_v41  ;;  %9359 = vmatpush3.bf16.msra.mxu1 %v9792_v23  ;;  %vm14630_vm9 = vmmov %vm14619_vm1 }
 0x4b2   :  { %v8977_v17 = vrot.slane %v4576_v7, 11  ;;  %v4446_v49 = vld [vmem:[#allocation5 + $0x18] sm:$0xf]  ;;  %v4447_v43 = vld [vmem:[#allocation5 + $0x1c] sm:$0x3]  ;;  %4414 = vrot.lane.b32.xlu0 %v4372_v47, %s9978_s1  ;;  %v4461_v50 = vrot.slane %v4442_v35, 5  ;;  %v4596_v5 = vsel %vm12292_vm0, %v4588_v34, %v4595_v53  ;;  %9624 = vmatprep.subr.bf16.mxu1 %v12944_v13 }
 0x4b3   :  { %v4459_v62 = vsel %vm12109_vm7, %v8975_v27, %v4458_v24  ;;  %v4460_v42 = vrot.slane %v4458_v24, 4  ;;  %v4464_v10 = vrot.slane %v12911_v36, 5  ;;  %v4311_v7 = vld [vmem:[#allocation5 + $0x18] sm:$0xf]  ;;  %v4467_v14 = vrot.slane %v12923_v1, 5  ;;  %9399 = vmatpush3.bf16.msra.mxu0 %v9797_v63 }
 0x4b4   :  { %v4587_v38 = vsel %vm12292_vm0, %v8977_v17, %v4586_v4  ;;  %4487 = vst.msk [vmem:[#allocation7 + $0x4] sm:$0xf] %vm14619_vm1, %v4459_v62  ;;  %v4470_v32 = vrot.slane %v12925_v8, 5  ;;  %v4569_v47 = vld [vmem:[#allocation5 + $0xc] sm:$0xf]  ;;  %v4463_v59 = vrot.slane %v4461_v50, 4  ;;  %v14631_v8 = vsel %vm10131_vm8, %v12821_v39, %v12780_v57 }
 0x4b5   :  { %v4711_v35 = vld [vmem:[#allocation5 + $0x4] sm:$0xc]  ;;  %4319 = vst.msk [vmem:[#allocation7 + $0x78] sm:$0xf] %vm14628_vm15, %v4311_v7  ;;  %v4462_v36 = vsel %vm12109_vm7, %v4460_v42, %v4461_v50  ;;  %v4466_v23 = vrot.slane %v4464_v10, 4  ;;  %v4473_v41 = vrot.slane %v4446_v49, 5  ;;  %4416 = vrot.lane.b32.xlu1 %v14631_v8, %s9978_s1  ;;  %v14632_v17 = vsel %vm10131_vm8, %v12833_v6, %v12805_v40  ;;  %vm14633_vm15 = vmmov %vm14619_vm1 }
 0x4b6   :  { %4656 = vst.msk [vmem:[#allocation7 + $0x1c] sm:$0xf] %vm14629_vm10, %v4596_v5  ;;  %v4712_v1 = vld [vmem:[#allocation5 + $0x8] sm:$0xf]  ;;  %v4472_v34 = vrot.slane %v4470_v32, 4  ;;  %v4469_v27 = vrot.slane %v4467_v14, 4  ;;  %4418 = vrot.lane.b32.xlu0 %v14632_v17, %s9978_s1  ;;  %v4465_v57 = vsel %vm12109_vm7, %v4463_v59, %v4464_v10  ;;  %vm14634_vm10 = vmmov %vm14619_vm1 }
 0x4b7   :  { %4655 = vst.msk [vmem:[#allocation7 + $0x8] sm:$0xf] %vm14630_vm9, %v4587_v38  ;;  %v4476_v24 = vrot.slane %v4447_v43, 5  ;;  %v4597_v63 = vrot.slane %v12938_v18, 4  ;;  %v4713_v53 = vld [vmem:[#allocation5 + $0xc] sm:$0xf]  ;;  %v4468_v4 = vsel %vm12109_vm7, %v4466_v23, %v4467_v14  ;;  %vm14635_vm9 = vmmov %vm14619_vm1  ;;  %v14636_v14 = vsel %vm12232_vm13, %v12835_v33, %v12823_v11 }
 0x4b8   :  { %4488 = vst.msk [vmem:[#allocation7 + $0x18] sm:$0xf] %vm14619_vm1, %v4462_v36  ;;  %v4475_v39 = vrot.slane %v4473_v41, 4  ;;  %v4599_v49 = vshrl.u32 %v4569_v47, 16  ;;  %v4570_v62 = vld [vmem:[#allocation5 + $0x10] sm:$0xf]  ;;  %v4474_v18 = vsel %vm12109_vm7, %v4472_v34, %v4473_v41  ;;  %v4471_v40 = vsel %vm12109_vm7, %v4469_v27, %v4470_v32 }
 0x4b9   :  { %v4714_v43 = vld [vmem:[#allocation5 + $0x10] sm:$0xf]  ;;  %4490 = vst.msk [vmem:[#allocation7 + $0x40] sm:$0xf] %vm14633_vm15, %v4468_v4  ;;  %v4602_v6 = vshll.u32 %v4569_v47, 16  ;;  %v4478_v50 = vrot.slane %v4476_v24, 4  ;;  %4853 = vrot.lane.b32.xlu1 %v14636_v14, %s9978_s1  ;;  %vm14637_vm15 = vmmov %vm14619_vm1 }
 0x4ba   :  { %4489 = vst.msk [vmem:[#allocation7 + $0x2c] sm:$0xf] %vm14634_vm10, %v4465_v57  ;;  %v4477_v42 = vsel %vm12109_vm7, %v4475_v39, %v4476_v24  ;;  %v4601_v10 = vrot.slane %v4599_v49, 7  ;;  %v8978_v7 = vrot.slane %v4711_v35, 10  ;;  %v4729_v5 = vrot.slane %v4712_v1, 6  ;;  %4855 = vrot.lane.b32.xlu0 %v12893_v0, %s9978_s1  ;;  %vm14638_vm10 = vmmov %vm14619_vm1 }
 0x4bb   :  { %4492 = vst.msk [vmem:[#allocation7 + $0x68] sm:$0xf] %vm14635_vm9, %v4474_v18  ;;  %v4715_v38 = vld [vmem:[#allocation5 + $0x14] sm:$0xf]  ;;  %v4732_v32 = vrot.slane %v4713_v53, 6  ;;  %v4608_v47 = vshrl.u32 %v4570_v62, 16  ;;  %vm14640_vm9 = vmmov %vm14619_vm1 }
 0x4bc   :  { %4491 = vst.msk [vmem:[#allocation7 + $0x54] sm:$0xf] %vm14619_vm1, %v4471_v40  ;;  %v4611_v36 = vshll.u32 %v4570_v62, 16  ;;  %v4735_v23 = vrot.slane %v4714_v43, 6  ;;  %v4571_v59 = vld [vmem:[#allocation5 + $0x14] sm:$0xf]  ;;  %v4604_v35 = vor.u32 %v4602_v6, %v4601_v10  ;;  %v4730_v41 = vsel %vm12284_vm3, %v8978_v7, %v4729_v5 }
 0x4bd   :  { %4493 = vst.msk [vmem:[#allocation7 + $0x7c] sm:$0xf] %vm14637_vm15, %v4477_v42  ;;  %v4731_v1 = vrot.slane %v4729_v5, 4  ;;  %v4606_v8 = vrot.slane %v4601_v10, 4  ;;  %v4572_v11 = vld [vmem:[#allocation5 + $0x18] sm:$0xf]  ;;  %v14639_v62 = vsel %vm10131_vm8, %v12873_v26, %v12738_v9  ;;  %vm14641_vm15 = vmmov %vm14619_vm1 }
 0x4be   :  { %4494 = vst.msk [vmem:[#allocation7 + $0x90] sm:$0x1] %vm14499_vm11, %v4478_v50  ;;  %v4610_v33 = vrot.slane %v4608_v47, 7  ;;  %v4734_v34 = vrot.slane %v4732_v32, 4  ;;  %v4737_v27 = vrot.slane %v4735_v23, 4  ;;  %v4738_v24 = vrot.slane %v4715_v38, 6  ;;  %4420 = vrot.lane.b32.xlu1 %v14639_v62, %s9978_s1 }
 0x4bf   :  { %4758 = vst.msk [vmem:[#allocation7 + $0xc] sm:$0xf] %vm14638_vm10, %v4730_v41  ;;  %v4716_v53 = vld [vmem:[#allocation5 + $0x18] sm:$0xf]  ;;  %v4605_v17 = vsel %vm12292_vm0, %v4597_v63, %v4604_v35  ;;  %v4733_v0 = vsel %vm12284_vm3, %v4731_v1, %v4732_v32  ;;  %v4617_v4 = vshrl.u32 %v4571_v59, 16  ;;  %v4620_v57 = vshll.u32 %v4571_v59, 16  ;;  %vm14642_vm10 = vmmov %vm14619_vm1 }
 0x4c0   :  { %v4717_v39 = vld [vmem:[#allocation5 + $0x1c] sm:$0xf]  ;;  %v4666_v43 = vld [vmem:[#allocation5 + $0x10] sm:$0xf]  ;;  %4657 = vst.msk [vmem:[#allocation7 + $0x30] sm:$0xf] %vm14640_vm9, %v4605_v17  ;;  %v4613_v63 = vor.u32 %v4611_v36, %v4610_v33  ;;  %v4736_v18 = vsel %vm12284_vm3, %v4734_v34, %v4735_v23  ;;  %v4739_v40 = vsel %vm12284_vm3, %v4737_v27, %v4738_v24  ;;  %vm14643_vm9 = vmmov %vm14619_vm1 }
 0x4c1   :  { %v4573_v49 = vld [vmem:[#allocation5 + $0x1c] sm:$0xf]  ;;  %4759 = vst.msk [vmem:[#allocation7 + $0x20] sm:$0xf] %vm14619_vm1, %v4733_v0  ;;  %v4615_v6 = vrot.slane %v4610_v33, 4  ;;  %4685 = vrot.lane.b32.xlu0 %v4666_v43, %s9978_s1  ;;  %v4619_v9 = vrot.slane %v4617_v4, 7 }
 0x4c2   :  { %v4574_v50 = vld [vmem:[#allocation5 + $0x20] sm:$0x1]  ;;  %4760 = vst.msk [vmem:[#allocation7 + $0x34] sm:$0xf] %vm14641_vm15, %v4736_v18  ;;  %v4626_v26 = vshrl.u32 %v4572_v11, 16  ;;  %v4629_v42 = vshll.u32 %v4572_v11, 16  ;;  %v4614_v5 = vsel %vm12292_vm0, %v4606_v8, %v4613_v63  ;;  %4857 = vrot.lane.b32.xlu1 %v12905_v15, %s9978_s1  ;;  %vm14644_vm15 = vmmov %vm14619_vm1 }
 0x4c3   :  { %4761 = vst.msk [vmem:[#allocation7 + $0x48] sm:$0xf] %vm14642_vm10, %v4739_v40  ;;  %v4740_v10 = vrot.slane %v4738_v24, 4  ;;  %v4885_v7 = vld [vmem:[#allocation5 + $0x4] sm:$0x8]  ;;  %v4741_v38 = vrot.slane %v4716_v53, 6  ;;  %v4622_v36 = vor.u32 %v4620_v57, %v4619_v9  ;;  %vm14645_vm10 = vmmov %vm14619_vm1 }
 0x4c4   :  { %v4744_v14 = vrot.slane %v4717_v39, 6  ;;  %v4635_v32 = vshrl.u32 %v4573_v49, 16  ;;  %v4886_v47 = vld [vmem:[#allocation5 + $0x8] sm:$0xf]  ;;  %4658 = vst.msk [vmem:[#allocation7 + $0x44] sm:$0xf] %vm14643_vm9, %v4614_v5  ;;  %vm14646_vm9 = vmmov %vm14619_vm1 }
 0x4c5   :  { %v4624_v23 = vrot.slane %v4619_v9, 4  ;;  %v4628_v59 = vrot.slane %v4626_v26, 7  ;;  %v4638_v35 = vshll.u32 %v4573_v49, 16  ;;  %v4887_v41 = vld [vmem:[#allocation5 + $0xc] sm:$0xf]  ;;  %v4742_v1 = vsel %vm12284_vm3, %v4740_v10, %v4741_v38  ;;  %4859 = vrot.lane.b32.xlu0 %v12934_v54, %s9978_s1 }
 0x4c6   :  { %v4743_v11 = vrot.slane %v4741_v38, 4  ;;  %v4637_v33 = vrot.slane %v4635_v32, 7  ;;  %v4644_v8 = vshll.u32 %v4574_v50, 16  ;;  %v4718_v34 = vld [vmem:[#allocation5 + $0x20] sm:$0x7]  ;;  %v4623_v24 = vsel %vm12292_vm0, %v4615_v6, %v4622_v36 }
 0x4c7   :  { %v4667_v27 = vld [vmem:[#allocation5 + $0x14] sm:$0xf]  ;;  %v4631_v53 = vor.u32 %v4629_v42, %v4628_v59  ;;  %4762 = vst.msk [vmem:[#allocation7 + $0x5c] sm:$0xf] %vm14619_vm1, %v4742_v1  ;;  %v4633_v17 = vrot.slane %v4628_v59, 4  ;;  %v8979_v0 = vrot.slane %v4885_v7, 11 }
 0x4c8   :  { %4659 = vst.msk [vmem:[#allocation7 + $0x58] sm:$0xf] %vm14644_vm15, %v4623_v24  ;;  %v4745_v15 = vsel %vm12284_vm3, %v4743_v11, %v4744_v14  ;;  %v4640_v4 = vor.u32 %v4638_v35, %v4637_v33  ;;  %v4642_v57 = vrot.slane %v4637_v33, 4  ;;  %v4903_v39 = vrot.slane %v4886_v47, 7  ;;  %v4888_v49 = vld [vmem:[#allocation5 + $0x10] sm:$0xf]  ;;  %4687 = vrot.lane.b32.xlu1 %v4667_v27, %s9978_s1  ;;  %vm14647_vm15 = vmmov %vm14619_vm1 }
 0x4c9   :  { %v4890_v62 = vld [vmem:[#allocation5 + $0x18] sm:$0xf]  ;;  %v4632_v54 = vsel %vm12292_vm0, %v4624_v23, %v4631_v53  ;;  %4763 = vst.msk [vmem:[#allocation7 + $0x70] sm:$0xf] %vm14645_vm10, %v4745_v15  ;;  %v4906_v43 = vrot.slane %v4887_v41, 7  ;;  %v4746_v63 = vrot.slane %v4744_v14, 4  ;;  %vm14648_vm10 = vmmov %vm14619_vm1 }
 0x4ca   :  { %v4747_v18 = vrot.slane %v4718_v34, 6  ;;  %v4891_v40 = vld [vmem:[#allocation5 + $0x1c] sm:$0xf]  ;;  %v4668_v6 = vld [vmem:[#allocation5 + $0x18] sm:$0xf]  ;;  %v4641_v50 = vsel %vm12292_vm0, %v4633_v17, %v4640_v4  ;;  %v4646_v9 = vsel %vm12292_vm0, %v4642_v57, %v4644_v8  ;;  %v4904_v26 = vsel %vm10084_vm2, %v8979_v0, %v4903_v39 }
 0x4cb   :  { %4660 = vst.msk [vmem:[#allocation7 + $0x6c] sm:$0xf] %vm14646_vm9, %v4632_v54  ;;  %v4905_v42 = vrot.slane %v4903_v39, 4  ;;  %v4892_v10 = vld [vmem:[#allocation5 + $0x20] sm:$0xf]  ;;  %4689 = vrot.lane.b32.xlu0 %v4668_v6, %s9978_s1  ;;  %v4908_v7 = vrot.slane %v4906_v43, 4  ;;  %vm14651_vm9 = vmmov %vm14619_vm1 }
 0x4cc   :  { %4661 = vst.msk [vmem:[#allocation7 + $0x80] sm:$0xf] %vm14619_vm1, %v4641_v50  ;;  %v4748_v5 = vsel %vm12284_vm3, %v4746_v63, %v4747_v18  ;;  %v4749_v38 = vrot.slane %v4747_v18, 4  ;;  %v4909_v14 = vrot.slane %v4888_v49, 7  ;;  %v14649_v47 = vrot.slane %v12712_v48, 7 }
 0x4cd   :  { %4662 = vst.msk [vmem:[#allocation7 + $0x94] sm:$0x1] %vm14499_vm11, %v4646_v9  ;;  %v4907_v32 = vsel %vm10084_vm2, %v4905_v42, %v4906_v43  ;;  %v4915_v23 = vrot.slane %v4890_v62, 7  ;;  %v4918_v59 = vrot.slane %v4891_v40, 7  ;;  %v14650_v35 = vrot.slane %v12859_v20, 4 }
 0x4ce   :  { %4932 = vst.msk [vmem:[#allocation7 + $0x10] sm:$0xf] %vm14647_vm15, %v4904_v26  ;;  %v4914_v36 = vrot.slane %v14649_v47, 4  ;;  %v4910_v1 = vsel %vm10084_vm2, %v4908_v7, %v4909_v14  ;;  %v4911_v11 = vrot.slane %v4909_v14, 4  ;;  %v4921_v33 = vrot.slane %v4892_v10, 7  ;;  %vm14653_vm15 = vmmov %vm14619_vm1 }
 0x4cf   :  { %4764 = vst.msk [vmem:[#allocation7 + $0x84] sm:$0xf] %vm14648_vm10, %v4748_v5  ;;  %v4831_v41 = vsel %vm12232_vm13, %v14650_v35, %v12908_v61  ;;  %v4841_v20 = vsel %vm12232_vm13, %v4832_v45, %v12936_v56  ;;  %v4917_v34 = vrot.slane %v4915_v23, 4  ;;  %v4920_v27 = vrot.slane %v4918_v59, 4  ;;  %vm14654_vm10 = vmmov %vm14619_vm1  ;;  %v4669_v0 = vld [vmem:[#allocation5 + $0x1c] sm:$0xf] }
 0x4d0   :  { %4933 = vst.msk [vmem:[#allocation7 + $0x24] sm:$0xf] %vm14651_vm9, %v4907_v32  ;;  %4861 = vrot.lane.b32.xlu1 %v4831_v41, %s9978_s1  ;;  %v4916_v8 = vsel %vm10084_vm2, %v4914_v36, %v4915_v23  ;;  %4863 = vrot.lane.b32.xlu0 %v4841_v20, %s9978_s1  ;;  %v14652_v24 = vmov %v14649_v47  ;;  %v4923_v61 = vrot.slane %v4921_v33, 4  ;;  %v4842_v15 = vrot.slane %v12936_v56, 4  ;;  %vm14655_vm9 = vmmov %vm14619_vm1  ;;  %v4670_v4 = vld [vmem:[#allocation5 + $0x20] sm:$0x1] }
 0x4d1   :  { %4765 = vst.msk [vmem:[#allocation7 + $0x98] sm:$0x1] %vm14499_vm11, %v4749_v38  ;;  %v4913_v53 = vsel %vm10084_vm2, %v4911_v11, %v14652_v24  ;;  %v4919_v45 = vsel %vm10084_vm2, %v4917_v34, %v4918_v59  ;;  %v4922_v17 = vsel %vm10084_vm2, %v4920_v27, %v4921_v33  ;;  %v4850_v48 = vor.u32 %v12950_v3, %v12920_v29  ;;  %v9800_v32 = vld [vmem:[%s14464_s8 + $0x108] sm:$0xff]   ;;  %v9805_v23 = vld [vmem:[%s14464_s8 + $0x110] sm:$0xff]  }
 0x4d2   :  { %4934 = vst.msk [vmem:[#allocation7 + $0x38] sm:$0xf] %vm14619_vm1, %v4910_v1  ;;  %4938 = vst.msk [vmem:[#allocation7 + $0x88] sm:$0xf] %vm14619_vm1, %v4922_v17 }
 0x4d3   :  { %4936 = vst.msk [vmem:[#allocation7 + $0x60] sm:$0xf] %vm14653_vm15, %v4916_v8  ;;  %v4851_v57 = vsel %vm12232_vm13, %v4842_v15, %v4850_v48  ;;  %v4852_v39 = vrot.slane %v4850_v48, 4  ;;  %vm14656_vm15 = vcmask 1040896  }
 0x4d4   :  { %4935 = vst.msk [vmem:[#allocation7 + $0x4c] sm:$0xf] %vm14654_vm10, %v4913_v53  ;;  %4691 = vrot.lane.b32.xlu1 %v4669_v0, %s9978_s1  ;;  %4693 = vrot.lane.b32.xlu0 %v4670_v4, %s9978_s1  ;;  %vm14657_vm10 = vmmov %vm14656_vm15 }
 0x4d5   :  { %4937 = vst.msk [vmem:[#allocation7 + $0x74] sm:$0xf] %vm14655_vm9, %v4919_v45  ;;  %vm14658_vm9 = vcmask 523264   ;;  %vm14659_vm1 = vmmov %vm14657_vm10 }
 0x4d6   :  { %4939 = vst.msk [vmem:[#allocation7 + $0x9c] sm:$0x1] %vm14499_vm11, %v4923_v61  ;;  %vm14662_vm11 = vmmov %vm14658_vm9 }
 0x4d8   :  { %4865 = vrot.lane.b32.xlu1 %v4851_v57, %s9978_s1  ;;  %4867 = vrot.lane.b32.xlu0 %v4852_v39, %s9978_s1 }
 0x500   :  { %v4682_v3 = vpop.permute.xlu0 %4681 }
 0x501   :  { %4704 = vst.msk [vmem:[#allocation7 + $0x1c] sm:$0xf] %vm14500_vm6, %v4682_v3 }
 0x506   :  { %v4680_v29 = vpop.permute.xlu1 %4679 }
 0x507   :  { %4703 = vst.msk [vmem:[#allocation7 + $0x8] sm:$0xf] %vm14500_vm6, %v4680_v29 }
 0x50a   :  { %v4535_v56 = vpop.permute.xlu1 %4534 }
 0x50b   :  { %4558 = vst.msk [vmem:[#allocation7 + $0x4] sm:$0xf] %vm14500_vm6, %v4535_v56 }
 0x50c   :  { %v4537_v49 = vpop.permute.xlu0 %4536 }
 0x50d   :  { %4559 = vst.msk [vmem:[#allocation7 + $0x18] sm:$0xf] %vm14500_vm6, %v4537_v49 }
 0x50e   :  { %v4409_v62 = vpop.permute.xlu1 %4408 }
 0x50f   :  { %4432 = vst.msk [vmem:[#allocation7] sm:$0xf] %vm14500_vm6, %v4409_v62 }
 0x510   :  { %v4541_v54 = vpop.permute.xlu0 %4540 }
 0x511   :  { %4561 = vst.msk [vmem:[#allocation7 + $0x40] sm:$0xf] %vm14500_vm6, %v4541_v54 }
 0x512   :  { %v4539_v43 = vpop.permute.xlu1 %4538 }
 0x513   :  { %4560 = vst.msk [vmem:[#allocation7 + $0x2c] sm:$0xf] %vm14500_vm6, %v4539_v43 }
 0x514   :  { %v4545_v63 = vpop.permute.xlu0 %4544  ;;  %v9794_v38 = vld [vmem:[#allocation7 + $0x4] ss:$20 sps:$4 sm:$0xff]  }
 0x515   :  { %4563 = vst.msk [vmem:[#allocation7 + $0x68] sm:$0xf] %vm14500_vm6, %v4545_v63  ;;  %5396 = vmatprep.mubr.bf16.mxu1 %v9794_v38 }
 0x516   :  { %v4543_v18 = vpop.permute.xlu1 %4542  ;;  %v4940_v7 = vld [vmem:[#allocation7] sm:$0xff] }
 0x517   :  { %4562 = vst.msk [vmem:[#allocation7 + $0x54] sm:$0xf] %vm14500_vm6, %v4543_v18 }
 0x518   :  { %v4423_v40 = vpop.permute.xlu0 %4422 }
 0x519   :  { %4439 = vst.msk [vmem:[#allocation7 + $0x8c] sm:$0x1] %vm14656_vm15, %v4423_v40  ;;  %v9811_v40 = vld [vmem:[#allocation7 + $0x10] ss:$20 sps:$4 sm:$0xff]   ;;  %vm14660_vm15 = vmmov %vm14659_vm1 }
 0x51a   :  { %v4547_v6 = vpop.permute.xlu1 %4546  ;;  %v9798_v11 = vld [vmem:[#allocation7 + $0x2c] ss:$20 sps:$4 sm:$0xff]  }
 0x51b   :  { %4564 = vst.msk [vmem:[#allocation7 + $0x7c] sm:$0xf] %vm14500_vm6, %v4547_v6 }
 0x51c   :  { %v4411_v50 = vpop.permute.xlu0 %4410 }
 0x51d   :  { %4433 = vst.msk [vmem:[#allocation7 + $0x14] sm:$0xf] %vm14500_vm6, %v4411_v50 }
 0x51e   :  { %v4684_v9 = vpop.permute.xlu1 %4683  ;;  %v9801_v34 = vld [vmem:[#allocation7 + $0x54] ss:$20 sps:$4 sm:$0xff]  }
 0x51f   :  { %4705 = vst.msk [vmem:[#allocation7 + $0x30] sm:$0xf] %vm14500_vm6, %v4684_v9 }
 0x520   :  { %v4549_v26 = vpop.permute.xlu0 %4548 }
 0x521   :  { %4565 = vst.msk [vmem:[#allocation7 + $0x90] sm:$0x1] %vm14657_vm10, %v4549_v26  ;;  %vm14661_vm10 = vmmov %vm14658_vm9 }
 0x522   :  { %v4413_v42 = vpop.permute.xlu1 %4412 }
 0x523   :  { %4434 = vst.msk [vmem:[#allocation7 + $0x28] sm:$0xf] %vm14500_vm6, %v4413_v42 }
 0x524   :  { %v4415_v10 = vpop.permute.xlu0 %4414  ;;  %v4943_v5 = vld [vmem:[#allocation7 + $0x14] sm:$0xff] }
 0x525   :  { %4435 = vst.msk [vmem:[#allocation7 + $0x3c] sm:$0xf] %vm14500_vm6, %v4415_v10  ;;  %v8980_v14 = vcombine.low %v4940_v7, %v4943_v5  ;;  %v9815_v7 = vld [vmem:[#allocation7 + $0x38] ss:$20 sps:$4 sm:$0xff]   ;;  %v9816_v5 = vld [vmem:[#allocation7 + $0x60] ss:$20 sps:$4 sm:$0xff]  }
 0x527   :  { %v4417_v47 = vpop.permute.xlu1 %4416  ;;  %5397 = vmatmul.mubr.bf16.vlgmr.msra.gmra.mrb[40].mxu1 %v8980_v14 }
 0x528   :  { %4436 = vst.msk [vmem:[#allocation7 + $0x50] sm:$0xf] %vm14500_vm6, %v4417_v47  ;;  %v4419_v36 = vpop.permute.xlu0 %4418  ;;  %9625 = vmatpush3.bf16.msra.mxu1 %v12944_v13  ;;  %v9810_v13 = vld [vmem:[%s14464_s8 + $0x118] sm:$0xff]   ;;  %5404 = vmatprep.mubr.bf16.mxu1 %v9798_v11  ;;  %v9806_v57 = vld [vmem:[#allocation7 + $0x7c] ss:$20 sps:$4 sm:$0x1f]  }
 0x529   :  { %4437 = vst.msk [vmem:[#allocation7 + $0x64] sm:$0xf] %vm14500_vm6, %v4419_v36  ;;  %9626 = vmatprep.subr.bf16.mxu1 %v9800_v32  ;;  %v4961_v49 = vld [vmem:[#allocation7 + $0x8c] sm:$0x11]  ;;  %v90_v47 = vld [vmem:[#allocation4 + $0x20] sm:$0xf] }
 0x52a   :  { %v4946_v35 = vld [vmem:[#allocation7 + $0x28] sm:$0xff]  ;;  %v91_v36 = vsel %vm12547_vm14, 0, %v90_v47  ;;  %vm14665_vm14 = vmmov %vm14658_vm9 }
 0x52b   :  { %v4854_v59 = vpop.permute.xlu1 %4853  ;;  %92 = vst [vmem:[#allocation4 + $0x20] sm:$0xf] %v91_v36 }
 0x52c   :  { %4877 = vst.msk [vmem:[#allocation7 + $0xc] sm:$0xf] %vm14500_vm6, %v4854_v59  ;;  %v4856_v41 = vpop.permute.xlu0 %4855  ;;  %v4949_v1 = vld [vmem:[#allocation7 + $0x3c] sm:$0xff]  ;;  %9627 = vmatpush3.bf16.msra.mxu1 %v9800_v32 }
 0x52d   :  { %4878 = vst.msk [vmem:[#allocation7 + $0x20] sm:$0xf] %vm14500_vm6, %v4856_v41  ;;  %v8985_v33 = vcombine.low %v4946_v35, %v4949_v1  ;;  %9628 = vmatprep.subr.bf16.mxu1 %v9805_v23  ;;  %v9820_v32 = vld [vmem:[#allocation7 + $0x88] ss:$20 sps:$4 sm:$0x1f]  }
 0x52e   :  { %v85_v1 = vld [vmem:[#allocation4] sm:$0xf] }
 0x52f   :  { %5405 = vmatmul.mubr.bf16.gmra.mrb[44].mxu1 %v8985_v33  ;;  %v4952_v27 = vld [vmem:[#allocation7 + $0x50] sm:$0xff]  ;;  %v86_v33 = vsel %vm12540_vm12, 0, %v85_v1  ;;  %vm14664_vm12 = vmmov %vm14658_vm9 }
 0x530   :  { %v4421_v20 = vpop.permute.xlu1 %4420  ;;  %9629 = vmatpush3.bf16.msra.mxu1 %v9805_v23  ;;  %v4955_v24 = vld [vmem:[#allocation7 + $0x64] sm:$0xff]  ;;  %5412 = vmatprep.mubr.bf16.mxu1 %v9801_v34  ;;  %87 = vst [vmem:[#allocation4] sm:$0xf] %v86_v33 }
 0x531   :  { %4438 = vst.msk [vmem:[#allocation7 + $0x78] sm:$0xf] %vm14500_vm6, %v4421_v20  ;;  %9630 = vmatprep.subr.bf16.mxu1 %v9810_v13  ;;  %v8990_v15 = vcombine.low %v4952_v27, %v4955_v24 }
 0x533   :  { %v4686_v8 = vpop.permute.xlu0 %4685  ;;  %v4941_v61 = vld [vmem:[#allocation7 + $0x8] sm:$0xff] }
 0x534   :  { %4706 = vst.msk [vmem:[#allocation7 + $0x44] sm:$0xf] %vm14500_vm6, %v4686_v8  ;;  %v4858_v53 = vpop.permute.xlu1 %4857  ;;  %v4944_v17 = vld [vmem:[#allocation7 + $0x1c] sm:$0xff]  ;;  %9631 = vmatpush3.bf16.msra.mxu1 %v9810_v13 }
 0x535   :  { %4879 = vst.msk [vmem:[#allocation7 + $0x34] sm:$0xf] %vm14500_vm6, %v4858_v53  ;;  %v9803_v0 = vld [vmem:[#allocation7 + $0xc] ss:$20 sps:$4 sm:$0xff]   ;;  %v8982_v48 = vcombine.low %v4941_v61, %v4944_v17 }
 0x536   :  { %5461 = vmatprep.mubr.bf16.mxu0 %v9803_v0 }
 0x537   :  { %v4860_v45 = vpop.permute.xlu0 %4859  ;;  %5413 = vmatmul.mubr.bf16.gmra.mrb[48].mxu1 %v8990_v15  ;;  %5462 = vmatmul.mubr.bf16.vlgmr.msra.gmra.mrb[52].mxu0 %v8982_v48 }
 0x538   :  { %4880 = vst.msk [vmem:[#allocation7 + $0x48] sm:$0xf] %vm14500_vm6, %v4860_v45  ;;  %5420 = vmatprep.mubr.bf16.mxu1 %v9806_v57  ;;  %v4958_v3 = vld [vmem:[#allocation7 + $0x78] sm:$0xff] }
 0x539   :  { %v8995_v63 = vcombine.low %v4958_v3, %v4961_v49 }
 0x53a   :  { %v4688_v4 = vpop.permute.xlu1 %4687 }
 0x53b   :  { %4707 = vst.msk [vmem:[#allocation7 + $0x58] sm:$0xf] %vm14500_vm6, %v4688_v4 }
 0x53c   :  { %v4947_v56 = vld [vmem:[#allocation7 + $0x30] sm:$0xff] }
 0x53d   :  { %v4690_v39 = vpop.permute.xlu0 %4689 }
 0x53e   :  { %4708 = vst.msk [vmem:[#allocation7 + $0x6c] sm:$0xf] %vm14500_vm6, %v4690_v39 }
 0x53f   :  { %v4950_v54 = vld [vmem:[#allocation7 + $0x44] sm:$0xff]  ;;  %5421 = vmatmul.mubr.bf16.gmra.mrb[52].mxu1 %v8995_v63 }
 0x540   :  { %v9808_v43 = vld [vmem:[#allocation7 + $0x34] ss:$20 sps:$4 sm:$0xff]   ;;  %v8987_v18 = vcombine.low %v4947_v56, %v4950_v54  ;;  %9632 = vmatprep.mubr.msk.bf16.mxu1 %vm14658_vm9, %v9811_v40 }
 0x541   :  { %5469 = vmatprep.mubr.bf16.mxu0 %v9808_v43 }
 0x542   :  { %v4862_v29 = vpop.permute.xlu1 %4861  ;;  %v4864_v62 = vpop.permute.xlu0 %4863  ;;  %5470 = vmatmul.mubr.bf16.gmra.mrb[56].mxu0 %v8987_v18 }
 0x543   :  { %4881 = vst.msk [vmem:[#allocation7 + $0x5c] sm:$0xf] %vm14500_vm6, %v4862_v29  ;;  %4882 = vst.msk [vmem:[#allocation7 + $0x70] sm:$0xf] %vm14500_vm6, %v4864_v62 }
 0x545   :  { %v9814_v10 = vld [vmem:[#allocation7 + $0x58] ss:$20 sps:$4 sm:$0xff]  }
 0x546   :  { %v4692_v6 = vpop.permute.xlu1 %4691  ;;  %v4694_v50 = vpop.permute.xlu0 %4693 }
 0x547   :  { %4709 = vst.msk [vmem:[#allocation7 + $0x80] sm:$0xf] %vm14500_vm6, %v4692_v6  ;;  %9633 = vmatmul.mubr.msk.bf16.vlgmr.msra.gmra.mrb[56].mxu1 %vm14661_vm10, %v9815_v7 }
 0x548   :  { %4710 = vst.msk [vmem:[#allocation7 + $0x94] sm:$0x1] %vm14659_vm1, %v4694_v50  ;;  %9636 = vmatprep.mubr.msk.bf16.mxu1 %vm14662_vm11, %v9816_v5  ;;  %vm14663_vm11 = vmmov %vm14658_vm9 }
 0x549   :  { %vm14666_vm1 = vmmov %vm14658_vm9 }
 0x54a   :  { %v4866_v9 = vpop.permute.xlu1 %4865  ;;  %v4868_v26 = vpop.permute.xlu0 %4867  ;;  %v9812_v42 = vld [vmem:[#allocation7 + $0x5c] ss:$20 sps:$4 sm:$0xff]   ;;  %vm14668_vm10 = vmmov %vm14666_vm1 }
 0x54b   :  { %4883 = vst.msk [vmem:[#allocation7 + $0x84] sm:$0xf] %vm14500_vm6, %v4866_v9  ;;  %5477 = vmatprep.mubr.bf16.mxu0 %v9812_v42 }
 0x54c   :  { %4884 = vst.msk [vmem:[#allocation7 + $0x98] sm:$0x1] %vm14660_vm15, %v4868_v26  ;;  %5478 = vmatmul.mubr.bf16.gmra.mrb[60].mxu0 %v9814_v10  ;;  %vm14667_vm15 = vmmov %vm14666_vm1 }
 0x54f   :  { %v9819_v14 = vld [vmem:[#allocation7 + $0x80] ss:$20 sps:$4 sm:$0x1f]   ;;  %9637 = vmatmul.mubr.msk.bf16.gmra.mrb[60].mxu1 %vm14658_vm9, %v9820_v32  ;;  %vm14669_vm9 = vmmov %vm14666_vm1 }
 0x553   :  { %v9817_v38 = vld [vmem:[#allocation7 + $0x84] ss:$20 sps:$4 sm:$0x1f]  }
 0x554   :  { %5485 = vmatprep.mubr.bf16.mxu0 %v9817_v38 }
 0x555   :  { %5486 = vmatmul.mubr.bf16.gmra.mrb[64].mxu0 %v9819_v14 }
 0x5fa   :  { %v9360_v23 = vpop.f32.mrb[40].mxu1 }
 0x5fb   :  { %v9361_v59 = vpop.f32.mrb[41].mxu1 }
 0x5fc   :  { %v9362_v35 = vadd.f32 %v9361_v59, %v9360_v23  ;;  %v9363_v41 = vpop.f32.mrb[42].mxu1 }
 0x5fd   :  { %v9364_v11 = vpop.f32.mrb[43].mxu1 }
 0x5fe   :  { %v9365_v13 = vadd.f32 %v9364_v11, %v9363_v41 }
 0x602   :  { %v9366_v20 = vpop.f32.mrb[44].mxu1 }
 0x603   :  { %v9367_v8 = vpop.f32.mrb[45].mxu1 }
 0x604   :  { %v9368_v34 = vadd.f32 %v9367_v8, %v9366_v20  ;;  %v9369_v27 = vpop.f32.mrb[46].mxu1 }
 0x605   :  { %v9370_v24 = vpop.f32.mrb[47].mxu1 }
 0x606   :  { %v9371_v53 = vadd.f32 %v9370_v24, %v9369_v27 }
 0x60a   :  { %v9372_v19 = vpop.f32.mrb[48].mxu1  ;;  %v9400_v61 = vpop.f32.mrb[52].mxu0 }
 0x60b   :  { %v9373_v45 = vpop.f32.mrb[49].mxu1  ;;  %v9401_v17 = vpop.f32.mrb[53].mxu0 }
 0x60c   :  { %v9374_v0 = vadd.f32 %v9373_v45, %v9372_v19  ;;  %v9402_v15 = vadd.f32 %v9401_v17, %v9400_v61  ;;  %v9375_v48 = vpop.f32.mrb[50].mxu1  ;;  %v9403_v4 = vpop.f32.mrb[54].mxu0 }
 0x60d   :  { %v9376_v57 = vpop.f32.mrb[51].mxu1  ;;  %v9404_v39 = vpop.f32.mrb[55].mxu0 }
 0x60e   :  { %v9377_v2 = vadd.f32 %v9376_v57, %v9375_v48  ;;  %v9405_v3 = vadd.f32 %v9404_v39, %v9403_v4  ;;  %v5464_v29 = vadd.f32 %v9402_v15, %v9362_v35 }
 0x610   :  { %v5467_v56 = vadd.f32 %v9405_v3, %v9365_v13 }
 0x612   :  { %v9378_v49 = vpop.f32.mrb[52].mxu1 }
 0x613   :  { %v9379_v54 = vpop.f32.mrb[53].mxu1 }
 0x614   :  { %v9380_v63 = vadd.f32 %v9379_v54, %v9378_v49  ;;  %v9381_v40 = vpop.f32.mrb[54].mxu1 }
 0x615   :  { %v9406_v62 = vpop.f32.mrb[56].mxu0  ;;  %v9382_v50 = vpop.f32.mrb[55].mxu1 }
 0x616   :  { %v9407_v43 = vpop.f32.mrb[57].mxu0  ;;  %v9383_v26 = vadd.f32 %v9382_v50, %v9381_v40 }
 0x617   :  { %v9408_v18 = vadd.f32 %v9407_v43, %v9406_v62  ;;  %v9409_v6 = vpop.f32.mrb[58].mxu0 }
 0x618   :  { %v9410_v9 = vpop.f32.mrb[59].mxu0 }
 0x619   :  { %v9411_v42 = vadd.f32 %v9410_v9, %v9409_v6  ;;  %v5472_v10 = vadd.f32 %v9408_v18, %v9368_v34 }
 0x61a   :  { %v9634_v38 = vpop.f32.mrb[56].mxu1 }
 0x61b   :  { %v5475_v7 = vadd.f32 %v9411_v42, %v9371_v53  ;;  %v13174_v14 = vadd.f32 %v9634_v38, %v5472_v10  ;;  %v5528_v47 = vpop.f32.mrb[57].mxu1 }
 0x61c   :  { %v13176_v23 = vadd.f32 %v5528_v47, %v5464_v29  ;;  %v9635_v35 = vpop.f32.mrb[58].mxu1 }
 0x61d   :  { %v5581_v41 = vmul.f32 %v13174_v14, %v12557_v12  ;;  %v13180_v1 = vadd.f32 %v9635_v35, %v5475_v7  ;;  %v5531_v33 = vpop.f32.mrb[59].mxu1 }
 0x61e   :  { %v5579_v13 = vmul.f32 %v13176_v23, %v12553_v30  ;;  %v13184_v8 = vadd.f32 %v5531_v33, %v5467_v56 }
 0x61f   :  { %v9412_v5 = vpop.f32.mrb[60].mxu0  ;;  %v5582_v27 = vmul.f32 %v13180_v1, %v12561_v16  ;;  %v5610_v61 = vmul.f32 %v5581_v41, %v13174_v14 }
 0x620   :  { %v9413_v32 = vpop.f32.mrb[61].mxu0  ;;  %v5608_v24 = vmul.f32 %v5579_v13, %v13176_v23  ;;  %v5580_v53 = vmul.f32 %v13184_v8, %v12555_v21  ;;  %v5587_v45 = vsel %vm14663_vm11, %v5579_v13, 0.0  ;;  %vm14670_vm11 = vmmov %vm14666_vm1 }
 0x621   :  { %v9414_v36 = vadd.f32 %v9413_v32, %v9412_v5  ;;  %v9415_v59 = vpop.f32.mrb[62].mxu0  ;;  %v5611_v57 = vmul.f32 %v5582_v27, %v13180_v1  ;;  %v5619_v18 = vsel %vm14668_vm10, %v5610_v61, 0.0  ;;  %v5592_v40 = vsel %vm14669_vm9, %v5582_v27, 0.0  ;;  %vm14674_vm10 = vmmov %vm14666_vm1 }
 0x622   :  { %v9416_v11 = vpop.f32.mrb[63].mxu0  ;;  %v5588_v17 = vsel %vm14664_vm12, %v5580_v53, 0.0  ;;  %v5609_v15 = vmul.f32 %v5580_v53, %v13184_v8  ;;  %v9638_v4 = vpop.f32.mrb[60].mxu1  ;;  %v5616_v56 = vsel %vm14666_vm1, %v5608_v24, 0.0  ;;  %vm14671_vm12 = vmmov %vm14666_vm1  ;;  %vm14675_vm9 = vcmask 517120  }
 0x623   :  { %v9417_v20 = vadd.f32 %v9416_v11, %v9415_v59  ;;  %v5480_v34 = vadd.f32 %v9414_v36, %v9374_v0  ;;  %v5590_v0 = vsel %vm14665_vm14, %v5581_v41, 0.0  ;;  %v5589_v39 = vadd.f32 %v5588_v17, %v5587_v45  ;;  %v5544_v29 = vpop.f32.mrb[61].mxu1  ;;  %vm14672_vm14 = vmmov %vm14666_vm1 }
 0x624   :  { %v9639_v43 = vpop.f32.mrb[62].mxu1  ;;  %v5621_v32 = vsel %vm14670_vm11, %v5611_v57, 0.0  ;;  %vm14676_vm11 = vmmov %vm14666_vm1 }
 0x625   :  { %v5483_v19 = vadd.f32 %v9417_v20, %v9377_v2  ;;  %v5617_v2 = vsel %vm14667_vm15, %v5609_v15, 0.0  ;;  %v13199_v62 = vadd.f32 %v5544_v29, %v5480_v34  ;;  %v5591_v6 = vadd.f32 %v5590_v0, %v5589_v39  ;;  %v5547_v42 = vpop.f32.mrb[63].mxu1  ;;  %vm14673_vm15 = vmmov %vm14666_vm1 }
 0x626   :  { %v5618_v50 = vadd.f32 %v5617_v2, %v5616_v56 }
 0x627   :  { %v5583_v7 = vmul.f32 %v13199_v62, %v12573_v55  ;;  %v13205_v38 = vadd.f32 %v5547_v42, %v5483_v19  ;;  %v5593_v36 = vadd.f32 %v5592_v40, %v5591_v6 }
 0x628   :  { %v9418_v48 = vpop.f32.mrb[64].mxu0  ;;  %v5620_v47 = vadd.f32 %v5619_v18, %v5618_v50 }
 0x629   :  { %v9419_v3 = vpop.f32.mrb[65].mxu0  ;;  %v5594_v35 = vsel %vm14671_vm12, %v5583_v7, 0.0  ;;  %v5612_v41 = vmul.f32 %v5583_v7, %v13199_v62  ;;  %vm14677_vm12 = vmmov %vm14675_vm9 }
 0x62a   :  { %v9420_v49 = vadd.f32 %v9419_v3, %v9418_v48  ;;  %v9421_v54 = vpop.f32.mrb[66].mxu0  ;;  %v5595_v33 = vadd.f32 %v5594_v35, %v5593_v36  ;;  %v5622_v13 = vadd.f32 %v5621_v32, %v5620_v47 }
 0x62b   :  { %v9422_v9 = vpop.f32.mrb[67].mxu0  ;;  %v5623_v34 = vsel %vm14672_vm14, %v5612_v41, 0.0  ;;  %vm14678_vm14 = vcmask 1040384  }
 0x62c   :  { %v5488_v10 = vadd.f32 %v9420_v49, %v9380_v63  ;;  %v9423_v5 = vadd.f32 %v9422_v9, %v9421_v54  ;;  %v5584_v63 = vmul.f32 %v13205_v38, %v12580_v52  ;;  %v5624_v24 = vadd.f32 %v5623_v34, %v5622_v13  ;;  %v9821_v9 = vld [vmem:[%s14467_s11 + $0x40] sm:$0xff]  }
 0x62d   :  { %9432 = vmatprep.subr.bf16.mxu0 %v9821_v9 }
 0x62e   :  { %v13208_v59 = vadd.f32 %v9638_v4, %v5488_v10  ;;  %v5491_v11 = vadd.f32 %v9423_v5, %v9383_v26  ;;  %v5596_v53 = vsel %vm14666_vm1, %v5584_v63, 0.0  ;;  %v5613_v19 = vmul.f32 %v5584_v63, %v13205_v38  ;;  %vm14679_vm1 = vmmov %vm14678_vm14 }
 0x62f   :  { %v5597_v45 = vadd.f32 %v5596_v53, %v5595_v33  ;;  %vm14685_vm6 = vmmov %vm14679_vm1 }
 0x630   :  { %v5585_v20 = vmul.f32 %v13208_v59, %v12596_v25  ;;  %v13217_v27 = vadd.f32 %v9639_v43, %v5491_v11  ;;  %v5625_v15 = vsel %vm14674_vm10, %v5613_v19, 0.0  ;;  %vm14681_vm10 = vmmov %vm14679_vm1 }
 0x631   :  { %v5626_v57 = vadd.f32 %v5625_v15, %v5624_v24 }
 0x632   :  { %v5614_v61 = vmul.f32 %v5585_v20, %v13208_v59  ;;  %v5586_v26 = vmul.f32 %v13217_v27, %v12606_v58  ;;  %v5598_v17 = vsel %vm14673_vm15, %v5585_v20, 0.0  ;;  %vm14680_vm15 = vmmov %vm14679_vm1 }
 0x633   :  { %v5599_v0 = vadd.f32 %v5598_v17, %v5597_v45  ;;  %v9251_v45 = vld [vmem:[#allocation3 + $0x10] sm:$0xff]   ;;  %v9252_v17 = vld [vmem:[#allocation3 + $0x18] sm:$0xff]  }
 0x634   :  { %v5600_v48 = vsel %vm14675_vm9, %v5586_v26, 0.0  ;;  %v5615_v4 = vmul.f32 %v5586_v26, %v13217_v27  ;;  %v5627_v39 = vsel %vm14676_vm11, %v5614_v61, 0.0  ;;  %v5560_v61 = vld [vmem:[#allocation3 + $0x4] sm:$0xf]  ;;  %v9250_v26 = vld [vmem:[#allocation3 + $0x8] sm:$0xff]   ;;  %vm14682_vm9 = vmmov %vm14679_vm1 }
 0x635   :  { %v5601_v29 = vadd.f32 %v5600_v48, %v5599_v0  ;;  %v5628_v56 = vadd.f32 %v5627_v39, %v5626_v57  ;;  %v9229_v15 = vunpack.c.h.bf16 %v9250_v26  ;;  %v5567_v48 = vld [vmem:[#allocation3 + $0x20] sm:$0x1]  ;;  %v9237_v0 = vunpack.c.h.bf16 %v9252_v17  ;;  %vm14683_vm11 = vmmov %vm14679_vm1 }
 0x636   :  { %v5629_v3 = vsel %vm14677_vm12, %v5615_v4, 0.0  ;;  %v9233_v4 = vunpack.c.h.bf16 %v9251_v45  ;;  %vm14684_vm12 = vmmov %vm14679_vm1 }
 0x637   :  { %v5602_v2 = vrot.slane %v5601_v29, 4  ;;  %v5630_v49 = vadd.f32 %v5629_v3, %v5628_v56  ;;  %v5703_v3 = vrot.slane %v9229_v15, 7 }
 0x638   :  { %v5707_v56 = vrot.slane %v9233_v4, 7 }
 0x639   :  { %v5603_v54 = vadd.f32 %v5602_v2, %v5601_v29  ;;  %v5631_v43 = vrot.slane %v5630_v49, 4 }
 0x63b   :  { %v5604_v18 = vrot.slane %v5603_v54, 2  ;;  %v5632_v40 = vadd.f32 %v5631_v43, %v5630_v49  ;;  %v5711_v49 = vrot.slane %v9237_v0, 7 }
 0x63d   :  { %v5605_v6 = vadd.f32 %v5604_v18, %v5603_v54  ;;  %v5633_v50 = vrot.slane %v5632_v40, 2 }
 0x63f   :  { %v5606_v42 = vrot.slane %v5605_v6, 1  ;;  %v5634_v10 = vadd.f32 %v5633_v50, %v5632_v40 }
 0x641   :  { %v5607_v7 = vadd.f32 %v5606_v42, %v5605_v6  ;;  %v5635_v5 = vrot.slane %v5634_v10, 1  ;;  %v9040_v42 = vld [vmem:[%s14465_s9] ss:$0 sm:$0xff] }
 0x643   :  { %v5636_v32 = vadd.f32 %v5635_v5, %v5634_v10  ;;  %v5637_v47 = vmul.f32 0.03125, %v5607_v7 }
 0x645   :  { %v5638_v36 = vmul.f32 0.03125, %v5636_v32  ;;  %v5639_v35 = vmul.f32 %v5637_v47, %v5637_v47  ;;  %v5642_v41 = vsub.f32 %v13176_v23, %v5637_v47  ;;  %v5643_v11 = vsub.f32 %v13184_v8, %v5637_v47  ;;  %v5559_v8 = vld [vmem:[#allocation3] sm:$0x8] }
 0x646   :  { %v5644_v33 = vsub.f32 %v13174_v14, %v5637_v47  ;;  %v5645_v13 = vsub.f32 %v13180_v1, %v5637_v47  ;;  %v5646_v63 = vsub.f32 %v13199_v62, %v5637_v47  ;;  %v5647_v20 = vsub.f32 %v13205_v38, %v5637_v47 }
 0x647   :  { %v5640_v34 = vsub.f32 %v5638_v36, %v5639_v35  ;;  %v5648_v24 = vsub.f32 %v13208_v59, %v5637_v47  ;;  %v5649_v53 = vsub.f32 %v13217_v27, %v5637_v47  ;;  %v9228_v14 = vunpack.c.l.bf16 %v9250_v26 }
 0x648   :  { %v9232_v1 = vunpack.c.l.bf16 %v9251_v45  ;;  %v5569_v62 = vunpack.c.l.bf16 %v5560_v61  ;;  %v9236_v38 = vunpack.c.l.bf16 %v9252_v17  ;;  %v5568_v57 = vunpack.c.l.bf16 %v5559_v8 }
 0x649   :  { %v5641_v19 = vmax.f32 %v5640_v34, 0.0  ;;  %v5576_v59 = vunpack.c.l.bf16 %v5567_v48  ;;  %v5701_v27 = vrot.slane %v9228_v14, 7 }
 0x64a   :  { %v5699_v39 = vrot.slane %v5569_v62, 7  ;;  %v5705_v29 = vrot.slane %v9232_v1, 7  ;;  %v5709_v2 = vrot.slane %v9236_v38, 7  ;;  %v5698_v54 = vrot.slane %v5568_v57, 7 }
 0x64b   :  { %v5650_v23 = vadd.f32 1e-05, %v5641_v19  ;;  %v5713_v43 = vrot.slane %v5576_v59, 7  ;;  %v5704_v6 = vsel %vm14680_vm15, %v5701_v27, %v5703_v3  ;;  %v9041_v19 = vld [vmem:[%s14466_s10] ss:$0 sm:$0xff] }
 0x64c   :  { %v5700_v18 = vsel %vm14678_vm14, %v5698_v54, %v5699_v39  ;;  %v5702_v40 = vsel %vm14679_vm1, %v5699_v39, %v5701_v27  ;;  %v5706_v50 = vsel %vm14681_vm10, %v5703_v3, %v5705_v29  ;;  %v5708_v10 = vsel %vm14682_vm9, %v5705_v29, %v5707_v56 }
 0x64d   :  { %9943 = vrsqrt.f32 %v5650_v23  ;;  %v5710_v7 = vsel %vm14683_vm11, %v5707_v56, %v5709_v2  ;;  %v5712_v5 = vsel %vm14684_vm12, %v5709_v2, %v5711_v49  ;;  %v5714_v32 = vsel %vm14685_vm6, %v5711_v49, %v5713_v43 }
 0x64e   :  { %vm14686_vm6 = vcmask 519168  }
 0x64f   :  { %vm14687_vm14 = vmmov %vm14686_vm6 }
 0x650   :  { %vm14688_vm1 = vmmov %vm14686_vm6 }
 0x651   :  { %vm14689_vm15 = vmmov %vm14688_vm1 }
 0x652   :  { %vm14690_vm10 = vmmov %vm14688_vm1 }
 0x653   :  { %vm14691_vm9 = vmmov %vm14688_vm1 }
 0x654   :  { %vm14692_vm11 = vmmov %vm14688_vm1 }
 0x655   :  { %vm14693_vm12 = vmmov %vm14688_vm1 }
 0x657   :  { %v9944_v9 = vpop.eup %9943 }
 0x658   :  { %v5652_v47 = vmul.f32 %v9944_v9, %v5642_v41  ;;  %v5653_v36 = vmul.f32 %v9944_v9, %v5643_v11  ;;  %v5654_v35 = vmul.f32 %v9944_v9, %v5644_v33  ;;  %v5655_v34 = vmul.f32 %v9944_v9, %v5645_v13 }
 0x659   :  { %v5656_v61 = vmul.f32 %v9944_v9, %v5646_v63  ;;  %v5657_v26 = vmul.f32 %v9944_v9, %v5647_v20  ;;  %v5658_v45 = vmul.f32 %v9944_v9, %v5648_v24  ;;  %v5659_v23 = vmul.f32 %v9944_v9, %v5649_v53 }
 0x65a   :  { %v5666_v17 = vmul.f32 %v9040_v42, %v5652_v47  ;;  %v5667_v8 = vmul.f32 %v9040_v42, %v5653_v36  ;;  %v5668_v14 = vmul.f32 %v9040_v42, %v5654_v35  ;;  %v5669_v15 = vmul.f32 %v9040_v42, %v5655_v34 }
 0x65b   :  { %v5670_v1 = vmul.f32 %v9040_v42, %v5656_v61  ;;  %v5671_v48 = vmul.f32 %v9040_v42, %v5657_v26  ;;  %v5672_v62 = vmul.f32 %v9040_v42, %v5658_v45  ;;  %v5673_v4 = vmul.f32 %v9040_v42, %v5659_v23 }
 0x65c   :  { %v5680_v41 = vadd.f32 %v9041_v19, %v5666_v17  ;;  %v5681_v11 = vadd.f32 %v9041_v19, %v5667_v8  ;;  %v5682_v33 = vadd.f32 %v9041_v19, %v5668_v14  ;;  %v5683_v13 = vadd.f32 %v9041_v19, %v5669_v15 }
 0x65d   :  { %v5684_v38 = vadd.f32 %v9041_v19, %v5670_v1  ;;  %v5685_v0 = vadd.f32 %v9041_v19, %v5671_v48  ;;  %v5686_v57 = vadd.f32 %v9041_v19, %v5672_v62  ;;  %v5687_v59 = vadd.f32 %v9041_v19, %v5673_v4 }
 0x65e   :  { %v5723_v63 = vadd.f32 %v5700_v18, %v5680_v41  ;;  %v5724_v20 = vadd.f32 %v5702_v40, %v5681_v11  ;;  %v5725_v24 = vadd.f32 %v5704_v6, %v5682_v33  ;;  %v5726_v53 = vadd.f32 %v5706_v50, %v5683_v13 }
 0x65f   :  { %v5727_v39 = vadd.f32 %v5708_v10, %v5684_v38  ;;  %v5728_v27 = vadd.f32 %v5710_v7, %v5685_v0  ;;  %v5729_v3 = vadd.f32 %v5712_v5, %v5686_v57  ;;  %v5730_v29 = vadd.f32 %v5714_v32, %v5687_v59 }
 0x660   :  { %v5731_v56 = vmax.f32 %v5723_v63, 0.0  ;;  %v5732_v2 = vmax.f32 %v5724_v20, 0.0  ;;  %v5733_v49 = vmax.f32 %v5725_v24, 0.0  ;;  %v5734_v54 = vmax.f32 %v5726_v53, 0.0 }
 0x661   :  { %v5735_v43 = vmax.f32 %v5727_v39, 0.0  ;;  %v5736_v9 = vmax.f32 %v5728_v27, 0.0  ;;  %v5737_v42 = vmax.f32 %v5729_v3, 0.0  ;;  %v5738_v47 = vmax.f32 %v5730_v29, 0.0  ;;  %v5868_v39 = vld [vmem:[#allocation4 + $0x20] sm:$0x1] }
 0x662   :  { %v5740_v36 = vmul.f32 %v5732_v2, %v12555_v21  ;;  %v5741_v35 = vmul.f32 %v5733_v49, %v12557_v12  ;;  %v5742_v18 = vmul.f32 %v5734_v54, %v12561_v16  ;;  %v5739_v40 = vmul.f32 %v5731_v56, %v12553_v30 }
 0x663   :  { %v5743_v6 = vmul.f32 %v5735_v43, %v12573_v55  ;;  %v5744_v50 = vmul.f32 %v5736_v9, %v12580_v52  ;;  %v5745_v10 = vmul.f32 %v5737_v42, %v12596_v25  ;;  %v5746_v7 = vmul.f32 %v5738_v47, %v12606_v58 }
 0x664   :  { %v9211_v5 = vpack.c.bf16 %v5740_v36, %v5740_v36  ;;  %v9212_v32 = vpack.c.bf16 %v5741_v35, %v5741_v35  ;;  %v9213_v34 = vpack.c.bf16 %v5742_v18, %v5742_v18  ;;  %v9210_v19 = vpack.c.bf16 %v5739_v40, %v5739_v40 }
 0x665   :  { %v9214_v61 = vpack.c.bf16 %v5743_v6, %v5743_v6  ;;  %v9215_v26 = vpack.c.bf16 %v5744_v50, %v5744_v50  ;;  %v9216_v45 = vpack.c.bf16 %v5745_v10, %v5745_v10  ;;  %v9217_v23 = vpack.c.bf16 %v5746_v7, %v5746_v7 }
 0x666   :  { %v5791_v17 = vshll.u32 %v9212_v32, 16  ;;  %v5795_v8 = vshrl.u32 %v9212_v32, 16  ;;  %v5801_v14 = vshll.u32 %v9213_v34, 16  ;;  %v5805_v15 = vshrl.u32 %v9213_v34, 16 }
 0x667   :  { %v5811_v1 = vshll.u32 %v9214_v61, 16  ;;  %v5815_v48 = vshrl.u32 %v9214_v61, 16  ;;  %v5821_v62 = vshll.u32 %v9215_v26, 16  ;;  %v5825_v4 = vshrl.u32 %v9215_v26, 16 }
 0x668   :  { %v13263_v41 = vrot.slane %v5791_v17, 5  ;;  %v5797_v11 = vrot.slane %v5795_v8, 4  ;;  %v5803_v33 = vrot.slane %v5801_v14, 5  ;;  %v5807_v13 = vrot.slane %v5805_v15, 4 }
 0x669   :  { %v5813_v38 = vrot.slane %v5811_v1, 5  ;;  %v5817_v0 = vrot.slane %v5815_v48, 4  ;;  %v5823_v57 = vrot.slane %v5821_v62, 5  ;;  %v5827_v59 = vrot.slane %v5825_v4, 4  ;;  %v9822_v48 = vld [vmem:[%s14467_s11] sm:$0xff]  }
 0x66a   :  { %v5798_v63 = vor.u32 %v5797_v11, %v13263_v41  ;;  %v5808_v20 = vor.u32 %v5807_v13, %v5803_v33  ;;  %v5831_v24 = vshll.u32 %v9216_v45, 16  ;;  %v5835_v53 = vshrl.u32 %v9216_v45, 16  ;;  %v5858_v45 = vld [vmem:[#allocation4] sm:$0x8]  ;;  %9433 = vmatpush3.bf16.msra.mxu0 %v9822_v48 }
 0x66b   :  { %v5818_v27 = vor.u32 %v5817_v0, %v5813_v38  ;;  %v5828_v3 = vor.u32 %v5827_v59, %v5823_v57  ;;  %v5841_v29 = vshll.u32 %v9217_v23, 16  ;;  %v5845_v56 = vshrl.u32 %v9217_v23, 16 }
 0x66c   :  { %v5799_v2 = vrot.slane %v5798_v63, 4  ;;  %v5809_v49 = vrot.slane %v5808_v20, 4  ;;  %v5833_v54 = vrot.slane %v5831_v24, 5  ;;  %v5837_v43 = vrot.slane %v5835_v53, 4 }
 0x66d   :  { %v5819_v9 = vrot.slane %v5818_v27, 4  ;;  %v5829_v42 = vrot.slane %v5828_v3, 4  ;;  %v5869_v47 = vsel %vm11939_vm4, %v5845_v56, %v5868_v39  ;;  %v5781_v40 = vshll.u32 %v9211_v5, 16 }
 0x66e   :  { %v5804_v36 = vsel %vm10131_vm8, %v5799_v2, %v5803_v33  ;;  %v5814_v35 = vsel %vm10131_vm8, %v5809_v49, %v5813_v38  ;;  %v5838_v18 = vor.u32 %v5837_v43, %v5833_v54  ;;  %5870 = vst [vmem:[#allocation4 + $0x20] sm:$0x1] %v5869_v47  ;;  %v5785_v10 = vshrl.u32 %v9211_v5, 16 }
 0x66f   :  { %v5824_v6 = vsel %vm10131_vm8, %v5819_v9, %v5823_v57  ;;  %v5834_v50 = vsel %vm10131_vm8, %v5829_v42, %v5833_v54  ;;  %5863 = vst.msk [vmem:[#allocation4 + $0xc] sm:$0xf] %vm14686_vm6, %v5804_v36  ;;  %v5772_v7 = vshll.u32 %v9210_v19, 16  ;;  %v5843_v34 = vrot.slane %v5841_v29, 5  ;;  %v9824_v36 = vld [vmem:[%s14467_s11 + $0x8] sm:$0xff]  }
 0x670   :  { %5864 = vst.msk [vmem:[#allocation4 + $0x10] sm:$0xf] %vm14687_vm14, %v5814_v35  ;;  %v5839_v32 = vrot.slane %v5838_v18, 4  ;;  %v5783_v61 = vrot.slane %v5781_v40, 5  ;;  %v5775_v26 = vshrl.u32 %v9210_v19, 16  ;;  %v5787_v23 = vrot.slane %v5785_v10, 4  ;;  %vm14695_vm14 = vmmov %vm14688_vm1 }
 0x671   :  { %5865 = vst.msk [vmem:[#allocation4 + $0x14] sm:$0xf] %vm14688_vm1, %v5824_v6  ;;  %v5774_v17 = vrot.slane %v5772_v7, 5  ;;  %v9823_v19 = vld [vmem:[%s14467_s11 + $0x48] sm:$0xff]   ;;  %vm14694_vm6 = vcmask 516096  }
 0x672   :  { %5866 = vst.msk [vmem:[#allocation4 + $0x18] sm:$0xf] %vm14689_vm15, %v5834_v50  ;;  %v5844_v8 = vsel %vm10131_vm8, %v5839_v32, %v5843_v34  ;;  %v5777_v14 = vrot.slane %v5775_v26, 4  ;;  %v5788_v15 = vor.u32 %v5787_v23, %v5783_v61  ;;  %9434 = vmatprep.subr.bf16.mxu0 %v9823_v19  ;;  %vm14696_vm15 = vmmov %vm14688_vm1 }
 0x673   :  { %5867 = vst.msk [vmem:[#allocation4 + $0x1c] sm:$0xf] %vm14690_vm10, %v5844_v8  ;;  %v5859_v5 = vsel %vm11903_vm5, %v5774_v17, %v5858_v45  ;;  %9435 = vmatpush3.bf16.msra.mxu0 %v9824_v36  ;;  %vm14697_vm10 = vmmov %vm14688_vm1 }
 0x674   :  { %v5778_v1 = vor.u32 %v5777_v14, %v5774_v17  ;;  %5860 = vst [vmem:[#allocation4] sm:$0x8] %v5859_v5  ;;  %v5789_v62 = vrot.slane %v5788_v15, 4 }
 0x675   :  { %v13291_v4 = vld [vmem:[#allocation4 + $0x20] sm:$0xf] }
 0x676   :  { %v5779_v11 = vrot.slane %v5778_v1, 4  ;;  %v13293_v33 = vld [vmem:[#allocation4 + $0xc] sm:$0xf]  ;;  %v5794_v0 = vsel %vm10131_vm8, %v5789_v62, %v13263_v41  ;;  %v6410_v39 = vshrl.u32 %v13291_v4, 16 }
 0x677   :  { %v6065_v13 = vld [vmem:[#allocation4 + $0x10] sm:$0xf]  ;;  %v6085_v57 = vrot.slane %v13293_v33, 7  ;;  %5862 = vst.msk [vmem:[#allocation4 + $0x8] sm:$0xf] %vm14691_vm9, %v5794_v0  ;;  %vm14698_vm9 = vmmov %vm14688_vm1 }
 0x678   :  { %v13295_v38 = vld [vmem:[#allocation4 + $0x14] sm:$0xf]  ;;  %v5784_v63 = vsel %vm10131_vm8, %v5779_v11, %v5783_v61  ;;  %v6088_v20 = vrot.slane %v6065_v13, 7  ;;  %v5890_v29 = vld [vmem:[#allocation4 + $0xc] sm:$0xf]  ;;  %v13312_v6 = vrot.slane %v6410_v39, 6 }
 0x679   :  { %v6066_v59 = vld [vmem:[#allocation4 + $0x14] sm:$0xf]  ;;  %5861 = vst.msk [vmem:[#allocation4 + $0x4] sm:$0xf] %vm14692_vm11, %v5784_v63  ;;  %v6067_v24 = vld [vmem:[#allocation4 + $0x18] sm:$0xf]  ;;  %vm14701_vm11 = vmmov %vm14688_vm1 }
 0x67a   :  { %v6091_v53 = vrot.slane %v6066_v59, 7  ;;  %v6087_v41 = vrot.slane %v6085_v57, 4  ;;  %v5894_v3 = vld [vmem:[#allocation4 + $0x1c] sm:$0x3]  ;;  %v6094_v42 = vrot.slane %v6067_v24, 7  ;;  %v6090_v47 = vrot.slane %v6088_v20, 4 }
 0x67b   :  { %v6061_v56 = vld [vmem:[#allocation4] sm:$0x8]  ;;  %v5965_v49 = vshll.u32 %v5894_v3, 16  ;;  %v5969_v54 = vshrl.u32 %v5894_v3, 16  ;;  %v5925_v40 = vshll.u32 %v5890_v29, 16 }
 0x67c   :  { %v5887_v2 = vld [vmem:[#allocation4] sm:$0xf]  ;;  %v9052_v35 = vrot.slane %v6061_v56, 11  ;;  %v6093_v18 = vrot.slane %v6091_v53, 4  ;;  %v6068_v34 = vld [vmem:[#allocation4 + $0x1c] sm:$0xf]  ;;  %v6089_v45 = vsel %vm10084_vm2, %v6087_v41, %v6088_v20  ;;  %v13321_v5 = vsel %vm10084_vm2, %v6090_v47, %v6091_v53 }
 0x67d   :  { %v5896_v43 = vshrl.u32 %v5887_v2, 16  ;;  %v5899_v9 = vshll.u32 %v5887_v2, 16  ;;  %v13314_v7 = vrot.slane %v5965_v49, 5  ;;  %v5971_v32 = vrot.slane %v5969_v54, 4  ;;  %v5891_v24 = vld [vmem:[#allocation4 + $0x10] sm:$0xf] }
 0x67e   :  { %v6230_v61 = vld [vmem:[#allocation4 + $0x8] sm:$0xf]  ;;  %v13326_v62 = vsel %vm10084_vm2, %v6093_v18, %v6094_v42  ;;  %v6096_v11 = vrot.slane %v6094_v42, 4  ;;  %v6097_v63 = vrot.slane %v6068_v34, 7  ;;  %v5929_v20 = vshrl.u32 %v5890_v29, 16 }
 0x67f   :  { %v5898_v50 = vrot.slane %v5896_v43, 4  ;;  %v5901_v10 = vrot.slane %v5899_v9, 5  ;;  %v6063_v26 = vld [vmem:[#allocation4 + $0x8] sm:$0xf]  ;;  %6247 = vrot.lane.b32.xlu0 %v6230_v61, %s9978_s1  ;;  %v5892_v56 = vld [vmem:[#allocation4 + $0x14] sm:$0xf]  ;;  %v5972_v9 = vor.u32 %v5971_v32, %v13314_v7 }
 0x680   :  { %v5889_v23 = vld [vmem:[#allocation4 + $0x8] sm:$0xf]  ;;  %v6229_v17 = vld [vmem:[#allocation4 + $0x4] sm:$0xf]  ;;  %v6082_v14 = vrot.slane %v6063_v26, 7  ;;  %v5935_v36 = vshll.u32 %v5891_v24, 16  ;;  %v13351_v26 = vsel %vm10084_vm2, %v6096_v11, %v6097_v63 }
 0x681   :  { %v6062_v8 = vld [vmem:[#allocation4 + $0x4] sm:$0xf]  ;;  %v5902_v15 = vor.u32 %v5901_v10, %v5898_v50  ;;  %v5915_v1 = vshll.u32 %v5889_v23, 16  ;;  %6245 = vrot.lane.b32.xlu1 %v6229_v17, %s9978_s1  ;;  %v5919_v13 = vshrl.u32 %v5889_v23, 16  ;;  %v13344_v50 = vrot.slane %v5925_v40, 5  ;;  %v9827_v61 = vld [vmem:[%s14467_s11 + $0x58] sm:$0xff]  }
 0x682   :  { %v6079_v48 = vrot.slane %v6062_v8, 7  ;;  %v5888_v19 = vld [vmem:[#allocation4 + $0x4] sm:$0xf]  ;;  %v6084_v43 = vrot.slane %v6082_v14, 4  ;;  %v5931_v10 = vrot.slane %v5929_v20, 4  ;;  %v5945_v32 = vshll.u32 %v5892_v56, 16 }
 0x683   :  { %v5905_v0 = vshll.u32 %v5888_v19, 16  ;;  %v5909_v59 = vshrl.u32 %v5888_v19, 16  ;;  %v13330_v41 = vrot.slane %v5915_v1, 5  ;;  %v5921_v3 = vrot.slane %v5919_v13, 4  ;;  %v9825_v2 = vld [vmem:[%s14467_s11 + $0x50] sm:$0xff]  }
 0x684   :  { %v6080_v53 = vsel %vm10084_vm2, %v9052_v35, %v6079_v48  ;;  %v6081_v39 = vrot.slane %v6079_v48, 4  ;;  %v5903_v49 = vrot.slane %v5902_v15, 4  ;;  %v9826_v29 = vld [vmem:[%s14467_s11 + $0x10] sm:$0xff]   ;;  %v5939_v35 = vshrl.u32 %v5891_v24, 16  ;;  %9436 = vmatprep.subr.bf16.mxu0 %v9825_v2  ;;  %v5893_v34 = vld [vmem:[#allocation4 + $0x18] sm:$0xf] }
 0x685   :  { %v5907_v54 = vrot.slane %v5905_v0, 5  ;;  %6100 = vrot.lane.b32.xlu1 %v6080_v53, %s9978_s1  ;;  %v5911_v47 = vrot.slane %v5909_v59, 4  ;;  %v5922_v18 = vor.u32 %v5921_v3, %v13330_v41  ;;  %9437 = vmatpush3.bf16.msra.mxu0 %v9826_v29  ;;  %v13353_v23 = vrot.slane %v5935_v36, 5  ;;  %v6333_v19 = vld [vmem:[#allocation4 + $0x8] sm:$0xf] }
 0x686   :  { %v6083_v42 = vsel %vm10084_vm2, %v6081_v39, %v6082_v14  ;;  %v5941_v17 = vrot.slane %v5939_v35, 4  ;;  %v5949_v8 = vshrl.u32 %v5892_v56, 16  ;;  %v6332_v14 = vld [vmem:[#allocation4 + $0x4] sm:$0xc]  ;;  %v5973_v15 = vrot.slane %v5972_v9, 4  ;;  %9438 = vmatprep.subr.bf16.mxu0 %v9827_v61 }
 0x687   :  { %6102 = vrot.lane.b32.xlu0 %v6083_v42, %s9978_s1  ;;  %v5908_v40 = vsel %vm10131_vm8, %v5903_v49, %v5907_v54  ;;  %v13357_v1 = vrot.slane %v6097_v63, 4  ;;  %v13359_v48 = vrot.slane %v5945_v32, 5  ;;  %v6086_v11 = vsel %vm10084_vm2, %v6084_v43, %v6085_v57  ;;  %v6334_v20 = vld [vmem:[#allocation4 + $0xc] sm:$0xf]  ;;  %v6335_v49 = vld [vmem:[#allocation4 + $0x10] sm:$0xf] }
 0x688   :  { %v5912_v13 = vor.u32 %v5911_v47, %v5907_v54  ;;  %v5951_v0 = vrot.slane %v5949_v8, 4  ;;  %v5955_v59 = vshll.u32 %v5893_v34, 16  ;;  %v13367_v24 = vrot.slane %v5922_v18, 4  ;;  %v9828_v57 = vld [vmem:[%s14467_s11 + $0x18] sm:$0xff]   ;;  %v6336_v29 = vld [vmem:[#allocation4 + $0x14] sm:$0xf] }
 0x689   :  { %5974 = vrot.lane.b32.xlu1 %v5908_v40, %s9978_s1  ;;  %v5932_v63 = vor.u32 %v5931_v10, %v13344_v50  ;;  %v5959_v53 = vshrl.u32 %v5893_v34, 16  ;;  %v6341_v39 = vshrl.u32 %v6332_v14, 16  ;;  %v5942_v3 = vor.u32 %v5941_v17, %v13353_v23  ;;  %9439 = vmatpush3.bf16.msra.mxu0 %v9828_v57  ;;  %v9829_v18 = vld [vmem:[%s14467_s11 + $0x60] sm:$0xff]   ;;  %v13474_v27 = vld [vmem:[#allocation4] sm:$0xe] }
 0x68a   :  { %v5952_v56 = vor.u32 %v5951_v0, %v13359_v48  ;;  %v6344_v33 = vshll.u32 %v6332_v14, 16  ;;  %v6350_v2 = vshrl.u32 %v6333_v19, 16  ;;  %v6353_v43 = vshll.u32 %v6333_v19, 16  ;;  %v5871_v19 = vld [vmem:[#allocation4] sm:$0xf]  ;;  %9440 = vmatprep.subr.bf16.mxu0 %v9829_v18 }
 0x68b   :  { %6106 = vrot.lane.b32.xlu0 %v6089_v45, %s9978_s1  ;;  %v6343_v54 = vrot.slane %v6341_v39, 6  ;;  %v6360_v45 = vshrl.u32 %v6334_v20, 16  ;;  %v6363_v9 = vshll.u32 %v6334_v20, 16  ;;  %v13376_v42 = vrot.slane %v5912_v13, 4  ;;  %v6337_v20 = vld [vmem:[#allocation4 + $0x18] sm:$0xf] }
 0x68c   :  { %v13378_v47 = vrot.slane %v5955_v59, 5  ;;  %v6346_v36 = vrot.slane %v6344_v33, 7  ;;  %v6352_v35 = vrot.slane %v6350_v2, 6  ;;  %v6355_v10 = vrot.slane %v6353_v43, 7  ;;  %5879 = vst.msk [vmem:[#allocation7] sm:$0xf] %vm14693_vm12, %v5871_v19  ;;  %vm14702_vm12 = vmmov %vm14688_vm1 }
 0x68d   :  { %6104 = vrot.lane.b32.xlu1 %v6086_v11, %s9978_s1  ;;  %v6362_v32 = vrot.slane %v6360_v45, 6  ;;  %v6365_v34 = vrot.slane %v6363_v9, 7  ;;  %v5961_v61 = vrot.slane %v5959_v53, 4  ;;  %v13385_v17 = vrot.slane %v5932_v63, 4  ;;  %v9834_v18 = vld [vmem:[%s14467_s11 + $0x28] sm:$0xff]  }
 0x68e   :  { %v6347_v8 = vor.u32 %v6346_v36, %v6343_v54  ;;  %v6370_v14 = vshrl.u32 %v6335_v49, 16  ;;  %v6373_v40 = vshll.u32 %v6335_v49, 16  ;;  %v13387_v11 = vrot.slane %v5942_v3, 4  ;;  %v9831_v54 = vld [vmem:[%s14467_s11 + $0xc0] sm:$0xff]   ;;  %v5878_v36 = vld [vmem:[#allocation4 + $0x1c] sm:$0x1] }
 0x68f   :  { %6110 = vrot.lane.b32.xlu0 %v13326_v62, %s9978_s1  ;;  %v13389_v13 = vrot.slane %v5952_v56, 4  ;;  %v13391_v0 = vor.u32 %v6355_v10, %v6352_v35  ;;  %v6380_v59 = vshrl.u32 %v6336_v29, 16  ;;  %v9830_v62 = vld [vmem:[%s14467_s11 + $0x20] sm:$0xff]   ;;  %v5962_v63 = vor.u32 %v5961_v61, %v13378_v47  ;;  %v13400_v56 = vld [vmem:[#allocation4 + $0x1c] sm:$0xf]  ;;  %9472 = vmatprep.subr.bf16.mxu1 %v9831_v54 }
 0x690   :  { %v6372_v53 = vrot.slane %v6370_v14, 6  ;;  %v6375_v39 = vrot.slane %v6373_v40, 7  ;;  %v6383_v3 = vshll.u32 %v6336_v29, 16  ;;  %v13407_v2 = vrot.slane %v6347_v8, 4  ;;  %9441 = vmatpush3.bf16.msra.mxu0 %v9830_v62  ;;  %v9833_v35 = vld [vmem:[%s14467_s11 + $0x68] sm:$0xff]  }
 0x691   :  { %6108 = vrot.lane.b32.xlu1 %v13321_v5, %s9978_s1  ;;  %v13409_v49 = vor.u32 %v6365_v34, %v6362_v32  ;;  %v6382_v57 = vrot.slane %v6380_v59, 6  ;;  %v13411_v5 = vld [vmem:[#allocation4 + $0x4] sm:$0xf]  ;;  %v5918_v43 = vsel %vm10131_vm8, %v13376_v42, %v13330_v41  ;;  %v6390_v29 = vshrl.u32 %v6337_v20, 16  ;;  %v13437_v34 = vld [vmem:[#allocation4 + $0x8] sm:$0xf]  ;;  %9442 = vmatprep.subr.bf16.mxu0 %v9833_v35 }
 0x692   :  { %v13423_v45 = vor.u32 %v6375_v39, %v6372_v53  ;;  %v6385_v9 = vrot.slane %v6383_v3, 7  ;;  %v6358_v41 = vrot.slane %v13391_v0, 4  ;;  %v6393_v42 = vshll.u32 %v6337_v20, 16  ;;  %5886 = vst.msk [vmem:[#allocation7 + $0x8c] sm:$0x1] %vm14694_vm6, %v5878_v36  ;;  %v9835_v61 = vld [vmem:[%s14467_s11 + $0xc8] sm:$0xff]   ;;  %vm14703_vm6 = vmmov %vm14688_vm1 }
 0x693   :  { %5988 = vrot.lane.b32.xlu0 %v5973_v15, %s9978_s1  ;;  %v9832_v15 = vld [vmem:[%s14467_s11 + $0x80] sm:$0xff]   ;;  %v6400_v32 = vshrl.u32 %v13400_v56, 16  ;;  %v13453_v40 = vrot.slane %v5962_v63, 4  ;;  %v6392_v19 = vrot.slane %v6390_v29, 6  ;;  %v5872_v59 = vld [vmem:[#allocation4 + $0x4] sm:$0xf] }
 0x694   :  { %9473 = vmatpush3.bf16.msra.mxu1 %v9832_v15  ;;  %v9836_v20 = vld [vmem:[%s14467_s11 + $0x88] sm:$0xff]   ;;  %v6231_v62 = vld [vmem:[#allocation4 + $0xc] sm:$0xf]  ;;  %v6368_v53 = vrot.slane %v13409_v49, 4  ;;  %v6395_v39 = vrot.slane %v6393_v42, 7  ;;  %v6403_v3 = vshll.u32 %v13400_v56, 16  ;;  %v13470_v29 = vor.u32 %v6385_v9, %v6382_v57  ;;  %9443 = vmatpush3.bf16.msra.mxu0 %v9834_v18 }
 0x695   :  { %6112 = vrot.lane.b32.xlu1 %v13351_v26, %s9978_s1  ;;  %v9837_v26 = vld [vmem:[%s14467_s11 + $0x70] sm:$0xff]   ;;  %v6132_v54 = vld [vmem:[#allocation4] sm:$0x8]  ;;  %5880 = vst.msk [vmem:[#allocation7 + $0x14] sm:$0xf] %vm14695_vm14, %v5872_v59  ;;  %v6378_v15 = vrot.slane %v13423_v45, 4  ;;  %9474 = vmatprep.subr.bf16.mxu1 %v9835_v61  ;;  %vm14704_vm14 = vmmov %vm14688_vm1 }
 0x696   :  { %v6156_v36 = vshrl.u32 %v13437_v34, 16  ;;  %v9838_v56 = vld [vmem:[%s14467_s11 + $0x30] sm:$0xff]   ;;  %v13482_v42 = vor.u32 %v6395_v39, %v6392_v19  ;;  %v6402_v57 = vrot.slane %v6400_v32, 6  ;;  %v6159_v59 = vshll.u32 %v13437_v34, 16  ;;  %9444 = vmatprep.subr.bf16.mxu0 %v9837_v26  ;;  %v9841_v18 = vld [vmem:[%s14467_s11 + $0x78] sm:$0xff]  }
 0x697   :  { %5976 = vrot.lane.b32.xlu0 %v5918_v43, %s9978_s1  ;;  %v6147_v43 = vshrl.u32 %v13411_v5, 16  ;;  %v9839_v35 = vld [vmem:[%s14467_s11 + $0xd0] sm:$0xff]   ;;  %v6142_v32 = vshrl.u32 %v6132_v54, 16  ;;  %v6150_v39 = vshll.u32 %v13411_v5, 16  ;;  %v13497_v9 = vld [vmem:[#allocation4 + $0xc] sm:$0xf]  ;;  %v13512_v5 = vsel %vm12232_vm13, %v6358_v41, %v13409_v49 }
 0x698   :  { %v13486_v63 = vld [vmem:[#allocation4 + $0x4] sm:$0xf]  ;;  %v13488_v14 = vld [vmem:[#allocation4 + $0x8] sm:$0xf]  ;;  %v13494_v19 = vrot.slane %v6156_v36, 7  ;;  %9475 = vmatpush3.bf16.msra.mxu1 %v9836_v20  ;;  %v13521_v20 = vsel %vm12232_vm13, %v6368_v53, %v13423_v45  ;;  %v6405_v54 = vrot.slane %v6403_v3, 7  ;;  %9445 = vmatpush3.bf16.msra.mxu0 %v9838_v56  ;;  %v13537_v3 = vsel %vm12232_vm13, %v6378_v15, %v13470_v29 }
 0x699   :  { %v5873_v61 = vld [vmem:[#allocation4 + $0x8] sm:$0xf]  ;;  %6249 = vrot.lane.b32.xlu1 %v6231_v62, %s9978_s1  ;;  %v6149_v8 = vrot.slane %v6147_v43, 7  ;;  %v13499_v34 = vld [vmem:[#allocation4 + $0x10] sm:$0xf]  ;;  %9476 = vmatprep.subr.bf16.mxu1 %v9839_v35  ;;  %v9053_v33 = vrot.slane %v6142_v32, 11  ;;  %v14699_v15 = vsel %vm10131_vm8, %v13367_v24, %v13344_v50  ;;  %v14700_v50 = vsel %vm10131_vm8, %v13385_v17, %v13353_v23 }
 0x69a   :  { %v13501_v10 = vld [vmem:[#allocation4 + $0x14] sm:$0xf]  ;;  %v9840_v26 = vld [vmem:[%s14467_s11 + $0x90] sm:$0xff]   ;;  %5881 = vst.msk [vmem:[#allocation7 + $0x28] sm:$0xf] %vm14688_vm1, %v5873_v61  ;;  %v6161_v61 = vor.u32 %v6159_v59, %v13494_v19  ;;  %v9842_v45 = vld [vmem:[%s14467_s11 + $0x38] sm:$0xff]   ;;  %9446 = vmatprep.subr.bf16.mxu0 %v9841_v18  ;;  %v13571_v24 = vor.u32 %v6405_v54, %v6402_v57 }
 0x69b   :  { %6114 = vrot.lane.b32.xlu0 %v13357_v1, %s9978_s1  ;;  %v13523_v43 = vld [vmem:[#allocation4 + $0x18] sm:$0xf]  ;;  %v9843_v1 = vld [vmem:[%s14467_s11 + $0xd8] sm:$0xff]   ;;  %v6154_v36 = vrot.slane %v6149_v8, 4  ;;  %v6152_v62 = vor.u32 %v6150_v39, %v6149_v8  ;;  %v5876_v53 = vld [vmem:[#allocation4 + $0x14] sm:$0xf] }
 0x69c   :  { %v5874_v49 = vld [vmem:[#allocation4 + $0xc] sm:$0xf]  ;;  %v5875_v41 = vld [vmem:[#allocation4 + $0x10] sm:$0xf]  ;;  %v6388_v35 = vrot.slane %v13470_v29, 4  ;;  %v6398_v59 = vrot.slane %v13482_v42, 4  ;;  %9477 = vmatpush3.bf16.msra.mxu1 %v9840_v26  ;;  %9447 = vmatpush3.bf16.msra.mxu0 %v9842_v45 }
 0x69d   :  { %5882 = vst.msk [vmem:[#allocation7 + $0x3c] sm:$0xf] %vm14696_vm15, %v5874_v49  ;;  %v9051_v8 = vrot.slane %v13474_v27, 9  ;;  %v6013_v56 = vld [vmem:[#allocation4 + $0x1c] sm:$0x3]  ;;  %v13545_v32 = vld [vmem:[%s14467_s11 + $0x100] sm:$0xff]   ;;  %5978 = vrot.lane.b32.xlu1 %v14699_v15, %s9978_s1  ;;  %v6162_v39 = vsel %vm12292_vm0, %v6154_v36, %v6161_v61  ;;  %v6153_v27 = vsel %vm12292_vm0, %v9053_v33, %v6152_v62  ;;  %9478 = vmatprep.subr.bf16.mxu1 %v9843_v1  ;;  %vm14707_vm15 = vmmov %vm14688_vm1 }
 0x69e   :  { %5883 = vst.msk [vmem:[#allocation7 + $0x50] sm:$0xf] %vm14697_vm10, %v5875_v41  ;;  %v6024_v18 = vrot.slane %v13486_v63, 5  ;;  %v6027_v49 = vrot.slane %v13488_v14, 5  ;;  %v13560_v41 = vld [vmem:[#allocation4 + $0xc] sm:$0xf]  ;;  %9640 = vmatprep.subr.bf16.mxu0 %v13545_v32  ;;  %vm14708_vm10 = vmmov %vm14688_vm1 }
 0x69f   :  { %5884 = vst.msk [vmem:[#allocation7 + $0x64] sm:$0xf] %vm14698_vm9, %v5876_v53  ;;  %v9844_v53 = vld [vmem:[%s14467_s11 + $0x98] sm:$0xff]   ;;  %5980 = vrot.lane.b32.xlu0 %v14700_v50, %s9978_s1  ;;  %v6030_v33 = vrot.slane %v13497_v9, 5  ;;  %v6033_v14 = vrot.slane %v13499_v34, 5  ;;  %v6036_v63 = vrot.slane %v13501_v10, 5  ;;  %vm14709_vm9 = vmmov %vm14688_vm1 }
 0x6a0   :  { %6222 = vst.msk [vmem:[#allocation7 + $0x1c] sm:$0xf] %vm14701_vm11, %v6162_v39  ;;  %v9848_v26 = vld [vmem:[%s14467_s11 + $0xe0] sm:$0xff]   ;;  %v6277_v62 = vld [vmem:[#allocation4 + $0x4] sm:$0xc]  ;;  %v6025_v17 = vsel %vm12109_vm7, %v9051_v8, %v6024_v18  ;;  %v6026_v57 = vrot.slane %v6024_v18, 4  ;;  %9479 = vmatpush3.bf16.msra.mxu1 %v9844_v53  ;;  %vm14710_vm11 = vmmov %vm14688_vm1 }
 0x6a1   :  { %6221 = vst.msk [vmem:[#allocation7 + $0x8] sm:$0xf] %vm14702_vm12, %v6153_v27  ;;  %v5877_v23 = vld [vmem:[#allocation4 + $0x18] sm:$0xf]  ;;  %v6029_v54 = vrot.slane %v6027_v49, 4  ;;  %v6039_v36 = vrot.slane %v13523_v43, 5  ;;  %v14705_v43 = vsel %vm10131_vm8, %v13387_v11, %v13359_v48  ;;  %9480 = vmatprep.subr.bf16.mxu1 %v9848_v26  ;;  %vm14711_vm12 = vmmov %vm14688_vm1 }
 0x6a2   :  { %v9849_v9 = vld [vmem:[%s14467_s11 + $0xa0] sm:$0xff]   ;;  %v6278_v10 = vld [vmem:[#allocation4 + $0x8] sm:$0xf]  ;;  %5885 = vst.msk [vmem:[#allocation7 + $0x78] sm:$0xf] %vm14703_vm6, %v5877_v23  ;;  %v6032_v34 = vrot.slane %v6030_v33, 4  ;;  %5982 = vrot.lane.b32.xlu1 %v14705_v43, %s9978_s1  ;;  %v6028_v45 = vsel %vm12109_vm7, %v6026_v57, %v6027_v49  ;;  %v14706_v23 = vsel %vm10131_vm8, %v13389_v13, %v13378_v47 }
 0x6a3   :  { %6053 = vst.msk [vmem:[#allocation7 + $0x4] sm:$0xf] %vm14704_vm14, %v6025_v17  ;;  %v6038_v1 = vrot.slane %v6036_v63, 4  ;;  %v6035_v61 = vrot.slane %v6033_v14, 4  ;;  %v6042_v15 = vrot.slane %v6013_v56, 5  ;;  %v6031_v39 = vsel %vm12109_vm7, %v6029_v54, %v6030_v33  ;;  %5984 = vrot.lane.b32.xlu0 %v14706_v23, %s9978_s1  ;;  %v9850_v47 = vld [vmem:[%s14467_s11 + $0xe8] sm:$0xff]   ;;  %vm14714_vm14 = vmmov %vm14688_vm1 }
 0x6a4   :  { %v6279_v8 = vld [vmem:[#allocation4 + $0xc] sm:$0xf]  ;;  %v6041_v27 = vrot.slane %v6039_v36, 4  ;;  %v6163_v18 = vrot.slane %v13494_v19, 4  ;;  %v6136_v56 = vld [vmem:[#allocation4 + $0x10] sm:$0xf]  ;;  %v6034_v48 = vsel %vm12109_vm7, %v6032_v34, %v6033_v14  ;;  %9481 = vmatpush3.bf16.msra.mxu1 %v9849_v9 }
 0x6a5   :  { %v6280_v50 = vld [vmem:[#allocation4 + $0x10] sm:$0xf]  ;;  %6054 = vst.msk [vmem:[#allocation7 + $0x18] sm:$0xf] %vm14688_vm1, %v6028_v45  ;;  %v6040_v11 = vsel %vm12109_vm7, %v6038_v1, %v6039_v36  ;;  %v6037_v19 = vsel %vm12109_vm7, %v6035_v61, %v6036_v63  ;;  %v6165_v49 = vshrl.u32 %v13560_v41, 16  ;;  %v6168_v14 = vshll.u32 %v13560_v41, 16  ;;  %9482 = vmatprep.subr.bf16.mxu1 %v9850_v47 }
 0x6a6   :  { %6055 = vst.msk [vmem:[#allocation7 + $0x2c] sm:$0xf] %vm14707_vm15, %v6031_v39  ;;  %v13619_v13 = vld [vmem:[#allocation4 + $0x14] sm:$0xf]  ;;  %v6043_v33 = vsel %vm12109_vm7, %v6041_v27, %v6042_v15  ;;  %v6044_v63 = vrot.slane %v6042_v15, 4  ;;  %v9054_v26 = vrot.slane %v6277_v62, 10  ;;  %v14712_v1 = vsel %vm12232_vm13, %v13407_v2, %v13391_v0  ;;  %vm14716_vm15 = vmmov %vm14688_vm1 }
 0x6a7   :  { %v6137_v53 = vld [vmem:[#allocation4 + $0x14] sm:$0xf]  ;;  %6056 = vst.msk [vmem:[#allocation7 + $0x40] sm:$0xf] %vm14708_vm10, %v6034_v48  ;;  %v6167_v17 = vrot.slane %v6165_v49, 7  ;;  %v6295_v57 = vrot.slane %v6278_v10, 6  ;;  %6419 = vrot.lane.b32.xlu1 %v14712_v1, %s9978_s1  ;;  %6421 = vrot.lane.b32.xlu0 %v13512_v5, %s9978_s1  ;;  %v14715_v47 = vsel %vm10131_vm8, %v13453_v40, %v13314_v7  ;;  %vm14717_vm10 = vmmov %vm14688_vm1 }
 0x6a8   :  { %6058 = vst.msk [vmem:[#allocation7 + $0x68] sm:$0xf] %vm14709_vm9, %v6040_v11  ;;  %v6298_v54 = vrot.slane %v6279_v8, 6  ;;  %v9851_v36 = vld [vmem:[%s14467_s11 + $0xa8] sm:$0xff]   ;;  %v6174_v34 = vshrl.u32 %v6136_v56, 16  ;;  %vm14713_vm6 = vcmask 516096   ;;  %vm14718_vm9 = vmmov %vm14688_vm1 }
 0x6a9   :  { %6057 = vst.msk [vmem:[#allocation7 + $0x54] sm:$0xf] %vm14710_vm11, %v6037_v19  ;;  %v6177_v41 = vshll.u32 %v6136_v56, 16  ;;  %v6301_v62 = vrot.slane %v6280_v50, 6  ;;  %v6304_v10 = vrot.slane %v13619_v13, 6  ;;  %v6183_v61 = vshrl.u32 %v6137_v53, 16  ;;  %9483 = vmatpush3.bf16.msra.mxu1 %v9851_v36  ;;  %vm14719_vm11 = vmmov %vm14688_vm1 }
 0x6aa   :  { %6059 = vst.msk [vmem:[#allocation7 + $0x7c] sm:$0xf] %vm14711_vm12, %v6043_v33  ;;  %v6138_v15 = vld [vmem:[#allocation4 + $0x18] sm:$0xf]  ;;  %v6170_v8 = vor.u32 %v6168_v14, %v6167_v17  ;;  %v6296_v43 = vsel %vm12284_vm3, %v9054_v26, %v6295_v57  ;;  %v6297_v45 = vrot.slane %v6295_v57, 4  ;;  %v9855_v0 = vld [vmem:[%s14467_s11 + $0xf0] sm:$0xff]   ;;  %vm14720_vm12 = vmmov %vm14688_vm1 }
 0x6ab   :  { %6060 = vst.msk [vmem:[#allocation7 + $0x90] sm:$0x1] %vm14713_vm6, %v6044_v63  ;;  %v6172_v2 = vrot.slane %v6167_v17, 4  ;;  %v6232_v9 = vld [vmem:[#allocation4 + $0x10] sm:$0xf]  ;;  %v6176_v39 = vrot.slane %v6174_v34, 7  ;;  %5986 = vrot.lane.b32.xlu1 %v14715_v47, %s9978_s1  ;;  %9484 = vmatprep.subr.bf16.mxu1 %v9855_v0  ;;  %vm14721_vm6 = vmmov %vm14688_vm1 }
 0x6ac   :  { %6324 = vst.msk [vmem:[#allocation7 + $0xc] sm:$0xf] %vm14714_vm14, %v6296_v43  ;;  %v6300_v27 = vrot.slane %v6298_v54, 4  ;;  %v6303_v56 = vrot.slane %v6301_v62, 4  ;;  %v6185_v50 = vrot.slane %v6183_v61, 7  ;;  %v6171_v5 = vsel %vm12292_vm0, %v6163_v18, %v6170_v8  ;;  %v9856_v13 = vld [vmem:[%s14467_s11 + $0xb0] sm:$0xff]   ;;  %6251 = vrot.lane.b32.xlu0 %v6232_v9, %s9978_s1  ;;  %vm14722_vm14 = vmmov %vm14688_vm1 }
 0x6ad   :  { %v6299_v23 = vsel %vm12284_vm3, %v6297_v45, %v6298_v54  ;;  %v6186_v48 = vshll.u32 %v6137_v53, 16  ;;  %v6192_v11 = vshrl.u32 %v6138_v15, 16  ;;  %v6282_v19 = vld [vmem:[#allocation4 + $0x18] sm:$0xf]  ;;  %v6283_v49 = vld [vmem:[#allocation4 + $0x1c] sm:$0xf]  ;;  %v6179_v18 = vor.u32 %v6177_v41, %v6176_v39  ;;  %9485 = vmatpush3.bf16.msra.mxu1 %v9856_v13 }
 0x6ae   :  { %6223 = vst.msk [vmem:[#allocation7 + $0x30] sm:$0xf] %vm14688_vm1, %v6171_v5  ;;  %v6302_v53 = vsel %vm12284_vm3, %v6300_v27, %v6301_v62  ;;  %v6305_v33 = vsel %vm12284_vm3, %v6303_v56, %v6304_v10  ;;  %v6181_v14 = vrot.slane %v6176_v39, 4  ;;  %v6139_v63 = vld [vmem:[#allocation4 + $0x1c] sm:$0xf]  ;;  %v9859_v40 = vld [vmem:[%s14467_s11 + $0xf8] sm:$0xff]  }
 0x6af   :  { %6325 = vst.msk [vmem:[#allocation7 + $0x20] sm:$0xf] %vm14716_vm15, %v6299_v23  ;;  %v13666_v7 = vld [vmem:[#allocation4 + $0x20] sm:$0x1]  ;;  %v6188_v26 = vor.u32 %v6186_v48, %v6185_v50  ;;  %v6190_v17 = vrot.slane %v6185_v50, 4  ;;  %v6194_v57 = vrot.slane %v6192_v11, 7  ;;  %v6180_v34 = vsel %vm12292_vm0, %v6172_v2, %v6179_v18  ;;  %6423 = vrot.lane.b32.xlu1 %v13521_v20, %s9978_s1  ;;  %9486 = vmatprep.subr.bf16.mxu1 %v9859_v40  ;;  %vm14723_vm15 = vmmov %vm14688_vm1 }
 0x6b0   :  { %6326 = vst.msk [vmem:[#allocation7 + $0x34] sm:$0xf] %vm14717_vm10, %v6302_v53  ;;  %v6195_v54 = vshll.u32 %v6138_v15, 16  ;;  %v6451_v36 = vld [vmem:[#allocation4 + $0x4] sm:$0x8]  ;;  %v6306_v1 = vrot.slane %v6304_v10, 4  ;;  %6425 = vrot.lane.b32.xlu0 %v13537_v3, %s9978_s1  ;;  %vm14724_vm10 = vmmov %vm14688_vm1 }
 0x6b1   :  { %6327 = vst.msk [vmem:[#allocation7 + $0x48] sm:$0xf] %vm14718_vm9, %v6305_v33  ;;  %v6307_v41 = vrot.slane %v6282_v19, 6  ;;  %v6310_v62 = vrot.slane %v6283_v49, 6  ;;  %v6452_v61 = vld [vmem:[#allocation4 + $0x8] sm:$0xf]  ;;  %v6189_v8 = vsel %vm12292_vm0, %v6181_v14, %v6188_v26  ;;  %vm14726_vm9 = vmmov %vm14688_vm1 }
 0x6b2   :  { %6224 = vst.msk [vmem:[#allocation7 + $0x44] sm:$0xf] %vm14719_vm11, %v6180_v34  ;;  %v6197_v43 = vor.u32 %v6195_v54, %v6194_v57  ;;  %v6199_v45 = vrot.slane %v6194_v57, 4  ;;  %v6201_v0 = vshrl.u32 %v6139_v63, 16  ;;  %v6453_v9 = vld [vmem:[#allocation4 + $0xc] sm:$0xf] }
 0x6b3   :  { %v6284_v39 = vld [vmem:[#allocation4 + $0x20] sm:$0x7]  ;;  %v9860_v10 = vld [vmem:[%s14467_s11 + $0xb8] sm:$0xff]   ;;  %6225 = vst.msk [vmem:[#allocation7 + $0x58] sm:$0xf] %vm14720_vm12, %v6189_v8  ;;  %v6308_v15 = vsel %vm12284_vm3, %v6306_v1, %v6307_v41  ;;  %v6309_v2 = vrot.slane %v6307_v41, 4  ;;  %vm14728_vm12 = vmmov %vm14688_vm1 }
 0x6b4   :  { %v6204_v27 = vshll.u32 %v6139_v63, 16  ;;  %v6210_v56 = vshll.u32 %v13666_v7, 16  ;;  %v6233_v50 = vld [vmem:[#allocation4 + $0x14] sm:$0xf]  ;;  %v6198_v20 = vsel %vm12292_vm0, %v6190_v17, %v6197_v43  ;;  %6328 = vst.msk [vmem:[#allocation7 + $0x5c] sm:$0xf] %vm14721_vm6, %v6308_v15  ;;  %9487 = vmatpush3.bf16.msra.mxu1 %v9860_v10 }
 0x6b5   :  { %v6203_v5 = vrot.slane %v6201_v0, 7  ;;  %v9055_v23 = vrot.slane %v6451_v36, 11  ;;  %v6469_v48 = vrot.slane %v6452_v61, 7  ;;  %v6454_v11 = vld [vmem:[#allocation4 + $0x10] sm:$0xf]  ;;  %v6311_v49 = vsel %vm12284_vm3, %v6309_v2, %v6310_v62  ;;  %6253 = vrot.lane.b32.xlu1 %v6233_v50, %s9978_s1 }
 0x6b6   :  { %v6234_v19 = vld [vmem:[#allocation4 + $0x18] sm:$0xf]  ;;  %6226 = vst.msk [vmem:[#allocation7 + $0x6c] sm:$0xf] %vm14722_vm14, %v6198_v20  ;;  %v6472_v47 = vrot.slane %v6453_v9, 7  ;;  %v6312_v18 = vrot.slane %v6310_v62, 4  ;;  %v6397_v0 = vsel %vm12232_vm13, %v6388_v35, %v13482_v42  ;;  %v6407_v9 = vsel %vm12232_vm13, %v6398_v59, %v13571_v24  ;;  %vm14731_vm14 = vmmov %vm14688_vm1 }
 0x6b7   :  { %v6313_v3 = vrot.slane %v6284_v39, 6  ;;  %6329 = vst.msk [vmem:[#allocation7 + $0x70] sm:$0xf] %vm14688_vm1, %v6311_v49  ;;  %v6206_v13 = vor.u32 %v6204_v27, %v6203_v5  ;;  %v6208_v53 = vrot.slane %v6203_v5, 4  ;;  %v6470_v33 = vsel %vm10084_vm2, %v9055_v23, %v6469_v48  ;;  %v6456_v63 = vld [vmem:[#allocation4 + $0x18] sm:$0xf]  ;;  %6255 = vrot.lane.b32.xlu0 %v6234_v19, %s9978_s1 }
 0x6b8   :  { %v6471_v14 = vrot.slane %v6469_v48, 4  ;;  %v6457_v7 = vld [vmem:[#allocation4 + $0x1c] sm:$0xf]  ;;  %v6474_v40 = vrot.slane %v6472_v47, 4  ;;  %6498 = vst.msk [vmem:[#allocation7 + $0x10] sm:$0xf] %vm14723_vm15, %v6470_v33  ;;  %vm14733_vm15 = vmmov %vm14688_vm1 }
 0x6b9   :  { %v6314_v26 = vsel %vm12284_vm3, %v6312_v18, %v6313_v3  ;;  %v6315_v17 = vrot.slane %v6313_v3, 4  ;;  %v6475_v57 = vrot.slane %v6454_v11, 7  ;;  %v6458_v54 = vld [vmem:[#allocation4 + $0x20] sm:$0xf]  ;;  %v6207_v36 = vsel %vm12292_vm0, %v6199_v45, %v6206_v13  ;;  %6427 = vrot.lane.b32.xlu1 %v6397_v0, %s9978_s1 }
 0x6ba   :  { %v6212_v34 = vsel %vm12292_vm0, %v6208_v53, %v6210_v56  ;;  %v6473_v1 = vsel %vm10084_vm2, %v6471_v14, %v6472_v47  ;;  %6330 = vst.msk [vmem:[#allocation7 + $0x84] sm:$0xf] %vm14724_vm10, %v6314_v26  ;;  %v14725_v41 = vrot.slane %v13295_v38, 7  ;;  %vm14727_vm11 = vcmask 516096   ;;  %v6235_v56 = vld [vmem:[#allocation4 + $0x1c] sm:$0xf]  ;;  %vm14734_vm10 = vmmov %vm14688_vm1 }
 0x6bb   :  { %6227 = vst.msk [vmem:[#allocation7 + $0x80] sm:$0xf] %vm14726_vm9, %v6207_v36  ;;  %vm14729_vm6 = vmmov %vm14727_vm11  ;;  %v6476_v61 = vsel %vm10084_vm2, %v6474_v40, %v6475_v57  ;;  %v6477_v8 = vrot.slane %v6475_v57, 4  ;;  %v6481_v43 = vrot.slane %v6456_v63, 7  ;;  %v6484_v45 = vrot.slane %v6457_v7, 7  ;;  %6429 = vrot.lane.b32.xlu0 %v6407_v9, %s9978_s1 }
 0x6bc   :  { %v6480_v62 = vrot.slane %v14725_v41, 4  ;;  %6228 = vst.msk [vmem:[#allocation7 + $0x94] sm:$0x1] %vm14727_vm11, %v6212_v34  ;;  %v14730_v39 = vshll.u32 %v13291_v4, 16  ;;  %v6487_v15 = vrot.slane %v6458_v54, 7  ;;  %v14732_v2 = vmov %v14725_v41  ;;  %vm14735_vm9 = vmmov %vm14688_vm1  ;;  %v9854_v34 = vld [vmem:[%s14467_s11 + $0x108] sm:$0xff]  }
 0x6bd   :  { %6499 = vst.msk [vmem:[#allocation7 + $0x24] sm:$0xf] %vm14728_vm12, %v6473_v1  ;;  %v6479_v29 = vsel %vm10084_vm2, %v6477_v8, %v14732_v2  ;;  %v6483_v42 = vrot.slane %v6481_v43, 4  ;;  %v6486_v27 = vrot.slane %v6484_v45, 4  ;;  %v6408_v50 = vrot.slane %v13571_v24, 4  ;;  %vm14736_vm11 = vmmov %vm14729_vm6  ;;  %6257 = vrot.lane.b32.xlu1 %v6235_v56, %s9978_s1 }
 0x6be   :  { %6331 = vst.msk [vmem:[#allocation7 + $0x98] sm:$0x1] %vm14729_vm6, %v6315_v17  ;;  %v6415_v10 = vrot.slane %v14730_v39, 7  ;;  %v6482_v35 = vsel %vm10084_vm2, %v6480_v62, %v6481_v43  ;;  %v6489_v4 = vrot.slane %v6487_v15, 4  ;;  %v6236_v5 = vld [vmem:[#allocation4 + $0x20] sm:$0x1] }
 0x6bf   :  { %6500 = vst.msk [vmem:[#allocation7 + $0x38] sm:$0xf] %vm14731_vm14, %v6476_v61  ;;  %v6485_v59 = vsel %vm10084_vm2, %v6483_v42, %v6484_v45  ;;  %v6488_v38 = vsel %vm10084_vm2, %v6486_v27, %v6487_v15  ;;  %6259 = vrot.lane.b32.xlu0 %v6236_v5, %s9978_s1  ;;  %vm14737_vm12 = vcmask 1043968   ;;  %v9863_v62 = vld [vmem:[%s14467_s11 + $0x110] sm:$0xff]  }
 0x6c0   :  { %6501 = vst.msk [vmem:[#allocation7 + $0x4c] sm:$0xf] %vm14688_vm1, %v6479_v29  ;;  %v6416_v20 = vor.u32 %v6415_v10, %v13312_v6  ;;  %vm14738_vm6 = vmmov %vm14737_vm12 }
 0x6c1   :  { %6502 = vst.msk [vmem:[#allocation7 + $0x60] sm:$0xf] %vm14733_vm15, %v6482_v35  ;;  %vm14739_vm14 = vmmov %vm14738_vm6 }
 0x6c2   :  { %6503 = vst.msk [vmem:[#allocation7 + $0x74] sm:$0xf] %vm14734_vm10, %v6485_v59  ;;  %v6417_v23 = vsel %vm12232_vm13, %v6408_v50, %v6416_v20  ;;  %v6418_v48 = vrot.slane %v6416_v20, 4  ;;  %vm14740_vm1 = vmmov %vm14738_vm6 }
 0x6c3   :  { %6504 = vst.msk [vmem:[#allocation7 + $0x88] sm:$0xf] %vm14735_vm9, %v6488_v38  ;;  %6431 = vrot.lane.b32.xlu1 %v6417_v23, %s9978_s1  ;;  %vm14741_vm15 = vmmov %vm14740_vm1 }
 0x6c4   :  { %6505 = vst.msk [vmem:[#allocation7 + $0x9c] sm:$0x1] %vm14736_vm11, %v6489_v4  ;;  %6433 = vrot.lane.b32.xlu0 %v6418_v48, %s9978_s1  ;;  %vm14742_vm10 = vmmov %vm14740_vm1 }
 0x6c5   :  { %vm14743_vm9 = vmmov %vm14740_vm1 }
 0x6c6   :  { %vm14744_vm11 = vmmov %vm14740_vm1 }
 0x6f1   :  { %v6248_v6 = vpop.permute.xlu0 %6247 }
 0x6f2   :  { %6270 = vst.msk [vmem:[#allocation7 + $0x1c] sm:$0xf] %vm14737_vm12, %v6248_v6  ;;  %vm14745_vm12 = vmmov %vm14740_vm1 }
 0x6f3   :  { %v6246_v24 = vpop.permute.xlu1 %6245 }
 0x6f4   :  { %6269 = vst.msk [vmem:[#allocation7 + $0x8] sm:$0xf] %vm14738_vm6, %v6246_v24  ;;  %vm14746_vm6 = vcmask 1040896  }
 0x6f7   :  { %v6101_v11 = vpop.permute.xlu1 %6100 }
 0x6f8   :  { %6124 = vst.msk [vmem:[#allocation7 + $0x4] sm:$0xf] %vm14739_vm14, %v6101_v11  ;;  %vm14747_vm14 = vmmov %vm14740_vm1 }
 0x6f9   :  { %v6103_v19 = vpop.permute.xlu0 %6102 }
 0x6fa   :  { %6125 = vst.msk [vmem:[#allocation7 + $0x18] sm:$0xf] %vm14740_vm1, %v6103_v19 }
 0x6fb   :  { %v5975_v49 = vpop.permute.xlu1 %5974 }
 0x6fc   :  { %5998 = vst.msk [vmem:[#allocation7] sm:$0xf] %vm14741_vm15, %v5975_v49  ;;  %vm14748_vm15 = vmmov %vm14740_vm1 }
 0x6fd   :  { %v6107_v47 = vpop.permute.xlu0 %6106 }
 0x6fe   :  { %6127 = vst.msk [vmem:[#allocation7 + $0x40] sm:$0xf] %vm14742_vm10, %v6107_v47  ;;  %vm14749_vm10 = vmmov %vm14746_vm6 }
 0x6ff   :  { %v6105_v18 = vpop.permute.xlu1 %6104 }
 0x700   :  { %6126 = vst.msk [vmem:[#allocation7 + $0x2c] sm:$0xf] %vm14743_vm9, %v6105_v18  ;;  %vm14750_vm9 = vmmov %vm14740_vm1 }
 0x701   :  { %v6111_v3 = vpop.permute.xlu0 %6110  ;;  %v9846_v54 = vld [vmem:[#allocation7 + $0x4] ss:$20 sps:$4 sm:$0xff]  }
 0x702   :  { %6129 = vst.msk [vmem:[#allocation7 + $0x68] sm:$0xf] %vm14744_vm11, %v6111_v3  ;;  %vm14751_vm11 = vmmov %vm14740_vm1  ;;  %6962 = vmatprep.mubr.bf16.mxu0 %v9846_v54  ;;  %v9869_v3 = vld [vmem:[#allocation7 + $0x10] ss:$20 sps:$4 sm:$0xff]  }
 0x703   :  { %v6109_v13 = vpop.permute.xlu1 %6108  ;;  %v6506_v17 = vld [vmem:[#allocation7] sm:$0xff]  ;;  %v9878_v54 = vld [vmem:[#allocation7 + $0x88] ss:$20 sps:$4 sm:$0x1f]  }
 0x704   :  { %6128 = vst.msk [vmem:[#allocation7 + $0x54] sm:$0xf] %vm14745_vm12, %v6109_v13  ;;  %vm14752_vm12 = vmmov %vm14740_vm1 }
 0x705   :  { %v5989_v53 = vpop.permute.xlu0 %5988 }
 0x706   :  { %6005 = vst.msk [vmem:[#allocation7 + $0x8c] sm:$0x1] %vm14746_vm6, %v5989_v53  ;;  %vm14753_vm6 = vmmov %vm14740_vm1 }
 0x707   :  { %v6113_v33 = vpop.permute.xlu1 %6112  ;;  %v9852_v0 = vld [vmem:[#allocation7 + $0x2c] ss:$20 sps:$4 sm:$0xff]  }
 0x708   :  { %6130 = vst.msk [vmem:[#allocation7 + $0x7c] sm:$0xf] %vm14747_vm14, %v6113_v33  ;;  %vm14754_vm14 = vmmov %vm14740_vm1 }
 0x709   :  { %v5977_v14 = vpop.permute.xlu0 %5976 }
 0x70a   :  { %5999 = vst.msk [vmem:[#allocation7 + $0x14] sm:$0xf] %vm14740_vm1, %v5977_v14 }
 0x70b   :  { %v6250_v63 = vpop.permute.xlu1 %6249  ;;  %v9857_v15 = vld [vmem:[#allocation7 + $0x54] ss:$20 sps:$4 sm:$0xff]  }
 0x70c   :  { %6271 = vst.msk [vmem:[#allocation7 + $0x30] sm:$0xf] %vm14748_vm15, %v6250_v63  ;;  %vm14755_vm15 = vmmov %vm14740_vm1 }
 0x70d   :  { %v6115_v7 = vpop.permute.xlu0 %6114 }
 0x70e   :  { %6131 = vst.msk [vmem:[#allocation7 + $0x90] sm:$0x1] %vm14749_vm10, %v6115_v7  ;;  %vm14756_vm10 = vmmov %vm14740_vm1 }
 0x70f   :  { %v5979_v40 = vpop.permute.xlu1 %5978 }
 0x710   :  { %6000 = vst.msk [vmem:[#allocation7 + $0x28] sm:$0xf] %vm14750_vm9, %v5979_v40  ;;  %vm14757_vm9 = vmmov %vm14740_vm1  ;;  %v9873_v40 = vld [vmem:[#allocation7 + $0x38] ss:$20 sps:$4 sm:$0xff]  }
 0x711   :  { %v5981_v26 = vpop.permute.xlu0 %5980  ;;  %v6509_v57 = vld [vmem:[#allocation7 + $0x14] sm:$0xff] }
 0x712   :  { %6001 = vst.msk [vmem:[#allocation7 + $0x3c] sm:$0xf] %vm14751_vm11, %v5981_v26  ;;  %v9056_v36 = vcombine.low %v6506_v17, %v6509_v57  ;;  %vm14758_vm11 = vmmov %vm14740_vm1  ;;  %v9874_v26 = vld [vmem:[#allocation7 + $0x60] ss:$20 sps:$4 sm:$0xff]  }
 0x714   :  { %v5983_v1 = vpop.permute.xlu1 %5982  ;;  %6963 = vmatmul.mubr.bf16.vlgmr.msra.gmra.mrb[68].mxu0 %v9056_v36 }
 0x715   :  { %6002 = vst.msk [vmem:[#allocation7 + $0x50] sm:$0xf] %vm14752_vm12, %v5983_v1  ;;  %v5985_v41 = vpop.permute.xlu0 %5984  ;;  %9641 = vmatpush3.bf16.msra.mxu0 %v13545_v32  ;;  %v9868_v32 = vld [vmem:[%s14467_s11 + $0x118] sm:$0xff]   ;;  %6970 = vmatprep.mubr.bf16.mxu0 %v9852_v0  ;;  %v9864_v20 = vld [vmem:[#allocation7 + $0x7c] ss:$20 sps:$4 sm:$0x1f]   ;;  %vm14759_vm12 = vmmov %vm14740_vm1 }
 0x716   :  { %6003 = vst.msk [vmem:[#allocation7 + $0x64] sm:$0xf] %vm14753_vm6, %v5985_v41  ;;  %9642 = vmatprep.subr.bf16.mxu0 %v9854_v34  ;;  %vm14760_vm6 = vmmov %vm14740_vm1  ;;  %v6527_v24 = vld [vmem:[#allocation7 + $0x8c] sm:$0x11] }
 0x717   :  { %v6512_v8 = vld [vmem:[#allocation7 + $0x28] sm:$0xff] }
 0x719   :  { %v6420_v61 = vpop.permute.xlu1 %6419  ;;  %v6422_v43 = vpop.permute.xlu0 %6421  ;;  %v6515_v45 = vld [vmem:[#allocation7 + $0x3c] sm:$0xff]  ;;  %9643 = vmatpush3.bf16.msra.mxu0 %v9854_v34 }
 0x71a   :  { %6443 = vst.msk [vmem:[#allocation7 + $0xc] sm:$0xf] %vm14754_vm14, %v6420_v61  ;;  %v9061_v9 = vcombine.low %v6512_v8, %v6515_v45  ;;  %9644 = vmatprep.subr.bf16.mxu0 %v9863_v62  ;;  %vm14761_vm14 = vmmov %vm14740_vm1 }
 0x71b   :  { %6444 = vst.msk [vmem:[#allocation7 + $0x20] sm:$0xf] %vm14740_vm1, %v6422_v43 }
 0x71c   :  { %6971 = vmatmul.mubr.bf16.gmra.mrb[72].mxu0 %v9061_v9  ;;  %v6518_v2 = vld [vmem:[#allocation7 + $0x50] sm:$0xff] }
 0x71d   :  { %v5987_v39 = vpop.permute.xlu1 %5986  ;;  %9645 = vmatpush3.bf16.msra.mxu0 %v9863_v62  ;;  %v6521_v29 = vld [vmem:[#allocation7 + $0x64] sm:$0xff]  ;;  %6978 = vmatprep.mubr.bf16.mxu0 %v9857_v15 }
 0x71e   :  { %6004 = vst.msk [vmem:[#allocation7 + $0x78] sm:$0xf] %vm14755_vm15, %v5987_v39  ;;  %v6252_v10 = vpop.permute.xlu0 %6251  ;;  %9646 = vmatprep.subr.bf16.mxu0 %v9868_v32  ;;  %v9066_v38 = vcombine.low %v6518_v2, %v6521_v29  ;;  %vm14762_vm15 = vmmov %vm14740_vm1 }
 0x71f   :  { %6272 = vst.msk [vmem:[#allocation7 + $0x44] sm:$0xf] %vm14756_vm10, %v6252_v10  ;;  %vm14763_vm10 = vcmask 523264  }
 0x721   :  { %v6424_v35 = vpop.permute.xlu1 %6423  ;;  %v6507_v42 = vld [vmem:[#allocation7 + $0x8] sm:$0xff]  ;;  %9647 = vmatpush3.bf16.msra.mxu0 %v9868_v32 }
 0x722   :  { %6445 = vst.msk [vmem:[#allocation7 + $0x34] sm:$0xf] %vm14757_vm9, %v6424_v35  ;;  %v6426_v27 = vpop.permute.xlu0 %6425  ;;  %v6510_v4 = vld [vmem:[#allocation7 + $0x1c] sm:$0xff]  ;;  %vm14764_vm9 = vcmask 1040896  }
 0x723   :  { %v9861_v59 = vld [vmem:[#allocation7 + $0xc] ss:$20 sps:$4 sm:$0xff]   ;;  %6446 = vst.msk [vmem:[#allocation7 + $0x48] sm:$0xf] %vm14758_vm11, %v6426_v27  ;;  %v9058_v56 = vcombine.low %v6507_v42, %v6510_v4  ;;  %vm14765_vm11 = vmmov %vm14740_vm1 }
 0x724   :  { %7027 = vmatprep.mubr.bf16.mxu1 %v9861_v59  ;;  %6979 = vmatmul.mubr.bf16.gmra.mrb[76].mxu0 %v9066_v38 }
 0x725   :  { %7028 = vmatmul.mubr.bf16.vlgmr.msra.gmra.mrb[64].mxu1 %v9058_v56  ;;  %6986 = vmatprep.mubr.bf16.mxu0 %v9864_v20  ;;  %v6524_v23 = vld [vmem:[#allocation7 + $0x78] sm:$0xff] }
 0x726   :  { %v9071_v47 = vcombine.low %v6524_v23, %v6527_v24 }
 0x727   :  { %v6254_v50 = vpop.permute.xlu1 %6253 }
 0x728   :  { %6273 = vst.msk [vmem:[#allocation7 + $0x58] sm:$0xf] %vm14759_vm12, %v6254_v50  ;;  %vm14766_vm12 = vmmov %vm14764_vm9 }
 0x729   :  { %v6256_v5 = vpop.permute.xlu0 %6255  ;;  %v6513_v6 = vld [vmem:[#allocation7 + $0x30] sm:$0xff] }
 0x72a   :  { %6274 = vst.msk [vmem:[#allocation7 + $0x6c] sm:$0xf] %vm14760_vm6, %v6256_v5  ;;  %v6516_v19 = vld [vmem:[#allocation7 + $0x44] sm:$0xff]  ;;  %vm14767_vm6 = vmmov %vm14763_vm10 }
 0x72b   :  { %v6428_v48 = vpop.permute.xlu1 %6427  ;;  %v9866_v49 = vld [vmem:[#allocation7 + $0x34] ss:$20 sps:$4 sm:$0xff]   ;;  %v9063_v18 = vcombine.low %v6513_v6, %v6516_v19 }
 0x72c   :  { %6447 = vst.msk [vmem:[#allocation7 + $0x5c] sm:$0xf] %vm14761_vm14, %v6428_v48  ;;  %7035 = vmatprep.mubr.bf16.mxu1 %v9866_v49  ;;  %6987 = vmatmul.mubr.bf16.gmra.mrb[80].mxu0 %v9071_v47  ;;  %vm14768_vm14 = vmmov %vm14767_vm6 }
 0x72d   :  { %v6430_v11 = vpop.permute.xlu0 %6429  ;;  %7036 = vmatmul.mubr.bf16.gmra.mrb[68].mxu1 %v9063_v18  ;;  %9648 = vmatprep.mubr.msk.bf16.mxu0 %vm14763_vm10, %v9869_v3 }
 0x72e   :  { %6448 = vst.msk [vmem:[#allocation7 + $0x70] sm:$0xf] %vm14740_vm1, %v6430_v11  ;;  %vm14769_vm1 = vmmov %vm14767_vm6 }
 0x72f   :  { %v6258_v13 = vpop.permute.xlu1 %6257  ;;  %vm14771_vm10 = vmmov %vm14769_vm1 }
 0x730   :  { %6275 = vst.msk [vmem:[#allocation7 + $0x80] sm:$0xf] %vm14762_vm15, %v6258_v13  ;;  %vm14770_vm15 = vmmov %vm14769_vm1 }
 0x731   :  { %v6260_v53 = vpop.permute.xlu0 %6259  ;;  %v9872_v7 = vld [vmem:[#allocation7 + $0x58] ss:$20 sps:$4 sm:$0xff]  }
 0x732   :  { %6276 = vst.msk [vmem:[#allocation7 + $0x94] sm:$0x1] %vm14764_vm9, %v6260_v53  ;;  %vm14772_vm9 = vmmov %vm14769_vm1 }
 0x734   :  { %9649 = vmatmul.mubr.msk.bf16.vlgmr.msra.gmra.mrb[84].mxu0 %vm14767_vm6, %v9873_v40  ;;  %vm14775_vm6 = vmmov %vm14769_vm1 }
 0x735   :  { %v6432_v33 = vpop.permute.xlu1 %6431  ;;  %v9870_v63 = vld [vmem:[#allocation7 + $0x5c] ss:$20 sps:$4 sm:$0xff]   ;;  %9652 = vmatprep.mubr.msk.bf16.mxu0 %vm14768_vm14, %v9874_v26  ;;  %vm14776_vm14 = vmmov %vm14769_vm1 }
 0x736   :  { %6449 = vst.msk [vmem:[#allocation7 + $0x84] sm:$0xf] %vm14765_vm11, %v6432_v33  ;;  %v6434_v14 = vpop.permute.xlu0 %6433  ;;  %7043 = vmatprep.mubr.bf16.mxu1 %v9870_v63  ;;  %vm14773_vm11 = vmmov %vm14769_vm1 }
 0x737   :  { %6450 = vst.msk [vmem:[#allocation7 + $0x98] sm:$0x1] %vm14766_vm12, %v6434_v14  ;;  %7044 = vmatmul.mubr.bf16.gmra.mrb[72].mxu1 %v9872_v7  ;;  %vm14774_vm12 = vmmov %vm14769_vm1 }
 0x739   :  { %v9877_v57 = vld [vmem:[#allocation7 + $0x80] ss:$20 sps:$4 sm:$0x1f]  }
 0x73c   :  { %9653 = vmatmul.mubr.msk.bf16.gmra.mrb[88].mxu0 %vm14769_vm1, %v9878_v54 }
 0x73e   :  { %v9875_v17 = vld [vmem:[#allocation7 + $0x84] ss:$20 sps:$4 sm:$0x1f]  }
 0x73f   :  { %7051 = vmatprep.mubr.bf16.mxu1 %v9875_v17 }
 0x740   :  { %7052 = vmatmul.mubr.bf16.gmra.mrb[76].mxu1 %v9877_v57 }
 0x7e7   :  { %v9448_v36 = vpop.f32.mrb[68].mxu0 }
 0x7e8   :  { %v9449_v34 = vpop.f32.mrb[69].mxu0 }
 0x7e9   :  { %v9450_v1 = vadd.f32 %v9449_v34, %v9448_v36  ;;  %v9451_v41 = vpop.f32.mrb[70].mxu0 }
 0x7ea   :  { %v9452_v62 = vpop.f32.mrb[71].mxu0 }
 0x7eb   :  { %v9453_v61 = vadd.f32 %v9452_v62, %v9451_v41 }
 0x7ef   :  { %v9454_v8 = vpop.f32.mrb[72].mxu0 }
 0x7f0   :  { %v9455_v43 = vpop.f32.mrb[73].mxu0 }
 0x7f1   :  { %v9456_v45 = vadd.f32 %v9455_v43, %v9454_v8  ;;  %v9457_v0 = vpop.f32.mrb[74].mxu0 }
 0x7f2   :  { %v9458_v9 = vpop.f32.mrb[75].mxu0 }
 0x7f3   :  { %v9459_v32 = vadd.f32 %v9458_v9, %v9457_v0 }
 0x7f7   :  { %v9460_v39 = vpop.f32.mrb[76].mxu0 }
 0x7f8   :  { %v9488_v10 = vpop.f32.mrb[64].mxu1  ;;  %v9461_v15 = vpop.f32.mrb[77].mxu0 }
 0x7f9   :  { %v9489_v2 = vpop.f32.mrb[65].mxu1  ;;  %v9462_v29 = vadd.f32 %v9461_v15, %v9460_v39  ;;  %v9463_v42 = vpop.f32.mrb[78].mxu0 }
 0x7fa   :  { %v9490_v35 = vadd.f32 %v9489_v2, %v9488_v10  ;;  %v9491_v27 = vpop.f32.mrb[66].mxu1  ;;  %v9464_v4 = vpop.f32.mrb[79].mxu0 }
 0x7fb   :  { %v9492_v59 = vpop.f32.mrb[67].mxu1  ;;  %v9465_v38 = vadd.f32 %v9464_v4, %v9463_v42 }
 0x7fc   :  { %v9493_v56 = vadd.f32 %v9492_v59, %v9491_v27  ;;  %v7030_v50 = vadd.f32 %v9490_v35, %v9450_v1 }
 0x7fe   :  { %v7033_v20 = vadd.f32 %v9493_v56, %v9453_v61 }
 0x7ff   :  { %v9466_v5 = vpop.f32.mrb[80].mxu0 }
 0x800   :  { %v9494_v23 = vpop.f32.mrb[68].mxu1  ;;  %v9467_v48 = vpop.f32.mrb[81].mxu0 }
 0x801   :  { %v9495_v6 = vpop.f32.mrb[69].mxu1  ;;  %v9468_v24 = vadd.f32 %v9467_v48, %v9466_v5  ;;  %v9469_v19 = vpop.f32.mrb[82].mxu0 }
 0x802   :  { %v9496_v11 = vadd.f32 %v9495_v6, %v9494_v23  ;;  %v9497_v49 = vpop.f32.mrb[70].mxu1  ;;  %v9470_v47 = vpop.f32.mrb[83].mxu0 }
 0x803   :  { %v9498_v18 = vpop.f32.mrb[71].mxu1  ;;  %v9471_v3 = vadd.f32 %v9470_v47, %v9469_v19 }
 0x804   :  { %v9499_v13 = vadd.f32 %v9498_v18, %v9497_v49  ;;  %v7038_v53 = vadd.f32 %v9496_v11, %v9456_v45 }
 0x806   :  { %v7041_v33 = vadd.f32 %v9499_v13, %v9459_v32 }
 0x807   :  { %v9650_v63 = vpop.f32.mrb[84].mxu0 }
 0x808   :  { %v13803_v7 = vadd.f32 %v9650_v63, %v7038_v53  ;;  %v7094_v26 = vpop.f32.mrb[85].mxu0 }
 0x809   :  { %v13805_v57 = vadd.f32 %v7094_v26, %v7030_v50  ;;  %v9651_v36 = vpop.f32.mrb[86].mxu0 }
 0x80a   :  { %v9500_v14 = vpop.f32.mrb[72].mxu1  ;;  %v7129_v34 = vmul.f32 %v13803_v7, %v12557_v12  ;;  %v13809_v1 = vadd.f32 %v9651_v36, %v7041_v33  ;;  %v7097_v62 = vpop.f32.mrb[87].mxu0 }
 0x80b   :  { %v9501_v40 = vpop.f32.mrb[73].mxu1  ;;  %v7127_v61 = vmul.f32 %v13805_v57, %v12553_v30  ;;  %v13813_v43 = vadd.f32 %v7097_v62, %v7033_v20 }
 0x80c   :  { %v9502_v17 = vadd.f32 %v9501_v40, %v9500_v14  ;;  %v9503_v54 = vpop.f32.mrb[74].mxu1  ;;  %v7130_v0 = vmul.f32 %v13809_v1, %v12561_v16  ;;  %v7158_v10 = vmul.f32 %v7129_v34, %v13803_v7 }
 0x80d   :  { %v9504_v41 = vpop.f32.mrb[75].mxu1  ;;  %v7156_v9 = vmul.f32 %v7127_v61, %v13805_v57  ;;  %v7128_v32 = vmul.f32 %v13813_v43, %v12555_v21  ;;  %v7135_v15 = vsel %vm14770_vm15, %v7127_v61, 0.0  ;;  %vm14777_vm15 = vmmov %vm14769_vm1 }
 0x80e   :  { %v9505_v8 = vadd.f32 %v9504_v41, %v9503_v54  ;;  %v7046_v45 = vadd.f32 %v9502_v17, %v9462_v29  ;;  %v7138_v29 = vsel %vm14772_vm9, %v7129_v34, 0.0  ;;  %v7159_v4 = vmul.f32 %v7130_v0, %v13809_v1  ;;  %vm14779_vm9 = vmmov %vm14769_vm1 }
 0x80f   :  { %v7136_v2 = vsel %vm14771_vm10, %v7128_v32, 0.0  ;;  %v7157_v35 = vmul.f32 %v7128_v32, %v13813_v43  ;;  %v9654_v27 = vpop.f32.mrb[88].mxu0  ;;  %v7164_v20 = vsel %vm14773_vm11, %v7156_v9, 0.0  ;;  %v7167_v11 = vsel %vm14775_vm6, %v7158_v10, 0.0  ;;  %vm14778_vm10 = vmmov %vm14769_vm1 }
 0x810   :  { %v7049_v39 = vadd.f32 %v9505_v8, %v9465_v38  ;;  %v7137_v59 = vadd.f32 %v7136_v2, %v7135_v15  ;;  %v7110_v50 = vpop.f32.mrb[89].mxu0  ;;  %v7140_v19 = vsel %vm14776_vm14, %v7130_v0, 0.0  ;;  %v7169_v40 = vsel %vm14769_vm1, %v7159_v4, 0.0  ;;  %vm14780_vm11 = vmmov %vm14769_vm1 }
 0x811   :  { %v7165_v38 = vsel %vm14774_vm12, %v7157_v35, 0.0  ;;  %v13828_v23 = vadd.f32 %v7110_v50, %v7046_v45  ;;  %v9655_v6 = vpop.f32.mrb[90].mxu0  ;;  %vm14781_vm12 = vmmov %vm14769_vm1  ;;  %vm14782_vm6 = vcmask 517120  }
 0x812   :  { %v7139_v49 = vadd.f32 %v7138_v29, %v7137_v59  ;;  %v7166_v47 = vadd.f32 %v7165_v38, %v7164_v20  ;;  %v7113_v13 = vpop.f32.mrb[91].mxu0  ;;  %vm14783_vm14 = vmmov %vm14769_vm1  ;;  %v9879_v38 = vld [vmem:[%s14470_s14 + $0x40] sm:$0xff]  }
 0x813   :  { %v9506_v42 = vpop.f32.mrb[76].mxu1  ;;  %v7131_v33 = vmul.f32 %v13828_v23, %v12573_v55  ;;  %v13834_v63 = vadd.f32 %v7113_v13, %v7049_v39  ;;  %vm14784_vm1 = vmmov %vm14782_vm6  ;;  %9520 = vmatprep.subr.bf16.mxu1 %v9879_v38 }
 0x814   :  { %v9507_v56 = vpop.f32.mrb[77].mxu1  ;;  %v7168_v26 = vadd.f32 %v7167_v11, %v7166_v47  ;;  %v7141_v17 = vadd.f32 %v7140_v19, %v7139_v49 }
 0x815   :  { %v9508_v5 = vadd.f32 %v9507_v56, %v9506_v42  ;;  %v9509_v48 = vpop.f32.mrb[78].mxu1  ;;  %v7142_v36 = vsel %vm14777_vm15, %v7131_v33, 0.0  ;;  %v7160_v34 = vmul.f32 %v7131_v33, %v13828_v23  ;;  %vm14785_vm15 = vcmask 519168  }
 0x816   :  { %v9510_v18 = vpop.f32.mrb[79].mxu1  ;;  %v7143_v62 = vadd.f32 %v7142_v36, %v7141_v17  ;;  %v7170_v61 = vadd.f32 %v7169_v40, %v7168_v26 }
 0x817   :  { %v7054_v53 = vadd.f32 %v9508_v5, %v9468_v24  ;;  %v9511_v14 = vadd.f32 %v9510_v18, %v9509_v48  ;;  %v7132_v24 = vmul.f32 %v13834_v63, %v12580_v52  ;;  %v7171_v45 = vsel %vm14778_vm10, %v7160_v34, 0.0  ;;  %vm14786_vm10 = vmmov %vm14785_vm15 }
 0x818   :  { %v7172_v9 = vadd.f32 %v7171_v45, %v7170_v61 }
 0x819   :  { %v13837_v54 = vadd.f32 %v9654_v27, %v7054_v53  ;;  %v7057_v41 = vadd.f32 %v9511_v14, %v9471_v3  ;;  %v7144_v32 = vsel %vm14779_vm9, %v7132_v24, 0.0  ;;  %v7161_v39 = vmul.f32 %v7132_v24, %v13834_v63  ;;  %vm14787_vm9 = vmmov %vm14786_vm10 }
 0x81a   :  { %v7145_v15 = vadd.f32 %v7144_v32, %v7143_v62 }
 0x81b   :  { %v7133_v8 = vmul.f32 %v13837_v54, %v12596_v25  ;;  %v7122_v0 = vadd.f32 %v9655_v6, %v7057_v41  ;;  %v7173_v35 = vsel %vm14781_vm12, %v7161_v39, 0.0  ;;  %vm14789_vm12 = vmmov %vm14787_vm9 }
 0x81c   :  { %v7174_v4 = vadd.f32 %v7173_v35, %v7172_v9 }
 0x81d   :  { %v7162_v10 = vmul.f32 %v7133_v8, %v13837_v54  ;;  %v7134_v3 = vmul.f32 %v7122_v0, %v12606_v58  ;;  %v7146_v2 = vsel %vm14780_vm11, %v7133_v8, 0.0  ;;  %vm14788_vm11 = vmmov %vm14787_vm9 }
 0x81e   :  { %v7147_v29 = vadd.f32 %v7146_v2, %v7145_v15 }
 0x81f   :  { %v7148_v42 = vsel %vm14782_vm6, %v7134_v3, 0.0  ;;  %v7163_v27 = vmul.f32 %v7134_v3, %v7122_v0  ;;  %v7175_v59 = vsel %vm14783_vm14, %v7162_v10, 0.0  ;;  %vm14790_vm6 = vmmov %vm14787_vm9  ;;  %vm14793_vm14 = vcmask 516096  }
 0x820   :  { %v7149_v50 = vadd.f32 %v7148_v42, %v7147_v29  ;;  %v7176_v20 = vadd.f32 %v7175_v59, %v7174_v4 }
 0x821   :  { %v7177_v56 = vsel %vm14784_vm1, %v7163_v27, 0.0 }
 0x822   :  { %v7150_v5 = vrot.slane %v7149_v50, 4  ;;  %v7178_v48 = vadd.f32 %v7177_v56, %v7176_v20 }
 0x824   :  { %v7151_v6 = vadd.f32 %v7150_v5, %v7149_v50  ;;  %v7179_v11 = vrot.slane %v7178_v48, 4 }
 0x826   :  { %v7152_v19 = vrot.slane %v7151_v6, 2  ;;  %v7180_v49 = vadd.f32 %v7179_v11, %v7178_v48 }
 0x828   :  { %v7153_v47 = vadd.f32 %v7152_v19, %v7151_v6  ;;  %v7181_v18 = vrot.slane %v7180_v49, 2 }
 0x82a   :  { %v7154_v13 = vrot.slane %v7153_v47, 1  ;;  %v7182_v53 = vadd.f32 %v7181_v18, %v7180_v49 }
 0x82c   :  { %v7155_v33 = vadd.f32 %v7154_v13, %v7153_v47  ;;  %v7183_v14 = vrot.slane %v7182_v53, 1 }
 0x82e   :  { %v7184_v40 = vadd.f32 %v7183_v14, %v7182_v53  ;;  %v7185_v26 = vmul.f32 0.03125, %v7155_v33 }
 0x830   :  { %v7186_v17 = vmul.f32 0.03125, %v7184_v40  ;;  %v7187_v36 = vmul.f32 %v7185_v26, %v7185_v26  ;;  %v7190_v34 = vsub.f32 %v13805_v57, %v7185_v26  ;;  %v7191_v41 = vsub.f32 %v13813_v43, %v7185_v26  ;;  %v9116_v57 = vld [vmem:[%s14468_s12] ss:$0 sm:$0xff] }
 0x831   :  { %v7192_v62 = vsub.f32 %v13803_v7, %v7185_v26  ;;  %v7193_v61 = vsub.f32 %v13809_v1, %v7185_v26  ;;  %v7194_v24 = vsub.f32 %v13828_v23, %v7185_v26  ;;  %v7195_v8 = vsub.f32 %v13834_v63, %v7185_v26  ;;  %v9117_v23 = vld [vmem:[%s14469_s13] ss:$0 sm:$0xff] }
 0x832   :  { %v7188_v45 = vsub.f32 %v7186_v17, %v7187_v36  ;;  %v7196_v9 = vsub.f32 %v13837_v54, %v7185_v26  ;;  %v7197_v32 = vsub.f32 %v7122_v0, %v7185_v26 }
 0x834   :  { %v7189_v39 = vmax.f32 %v7188_v45, 0.0 }
 0x836   :  { %v7198_v10 = vadd.f32 1e-05, %v7189_v39 }
 0x838   :  { %9945 = vrsqrt.f32 %v7198_v10 }
 0x842   :  { %v9946_v3 = vpop.eup %9945 }
 0x843   :  { %v7200_v43 = vmul.f32 %v9946_v3, %v7190_v34  ;;  %v7201_v7 = vmul.f32 %v9946_v3, %v7191_v41  ;;  %v7202_v15 = vmul.f32 %v9946_v3, %v7192_v62  ;;  %v7203_v1 = vmul.f32 %v9946_v3, %v7193_v61 }
 0x844   :  { %v7204_v63 = vmul.f32 %v9946_v3, %v7194_v24  ;;  %v7205_v2 = vmul.f32 %v9946_v3, %v7195_v8  ;;  %v7206_v54 = vmul.f32 %v9946_v3, %v7196_v9  ;;  %v7207_v0 = vmul.f32 %v9946_v3, %v7197_v32 }
 0x845   :  { %v7214_v35 = vmul.f32 %v9116_v57, %v7200_v43  ;;  %v7215_v42 = vmul.f32 %v9116_v57, %v7201_v7  ;;  %v7216_v27 = vmul.f32 %v9116_v57, %v7202_v15  ;;  %v7217_v29 = vmul.f32 %v9116_v57, %v7203_v1 }
 0x846   :  { %v7218_v4 = vmul.f32 %v9116_v57, %v7204_v63  ;;  %v7219_v59 = vmul.f32 %v9116_v57, %v7205_v2  ;;  %v7220_v56 = vmul.f32 %v9116_v57, %v7206_v54  ;;  %v7221_v50 = vmul.f32 %v9116_v57, %v7207_v0 }
 0x847   :  { %v7228_v20 = vadd.f32 %v9117_v23, %v7214_v35  ;;  %v7229_v38 = vadd.f32 %v9117_v23, %v7215_v42  ;;  %v7230_v5 = vadd.f32 %v9117_v23, %v7216_v27  ;;  %v7231_v48 = vadd.f32 %v9117_v23, %v7217_v29 }
 0x848   :  { %v7232_v6 = vadd.f32 %v9117_v23, %v7218_v4  ;;  %v7233_v11 = vadd.f32 %v9117_v23, %v7219_v59  ;;  %v7234_v19 = vadd.f32 %v9117_v23, %v7220_v56  ;;  %v7235_v49 = vadd.f32 %v9117_v23, %v7221_v50 }
 0x849   :  { %v7236_v47 = vmax.f32 %v7228_v20, 0.0  ;;  %v7237_v18 = vmax.f32 %v7229_v38, 0.0  ;;  %v7238_v13 = vmax.f32 %v7230_v5, 0.0  ;;  %v7239_v53 = vmax.f32 %v7231_v48, 0.0 }
 0x84a   :  { %v7240_v33 = vmax.f32 %v7232_v6, 0.0  ;;  %v7241_v14 = vmax.f32 %v7233_v11, 0.0  ;;  %v7242_v40 = vmax.f32 %v7234_v19, 0.0  ;;  %v7243_v26 = vmax.f32 %v7235_v49, 0.0  ;;  %v9880_v6 = vld [vmem:[%s14470_s14] sm:$0xff]   ;;  %v9881_v11 = vld [vmem:[%s14470_s14 + $0x48] sm:$0xff]  }
 0x84b   :  { %v7244_v17 = vmul.f32 %v7236_v47, %v12553_v30  ;;  %v7245_v36 = vmul.f32 %v7237_v18, %v12555_v21  ;;  %v7246_v34 = vmul.f32 %v7238_v13, %v12557_v12  ;;  %v7247_v41 = vmul.f32 %v7239_v53, %v12561_v16  ;;  %9521 = vmatpush3.bf16.msra.mxu1 %v9880_v6  ;;  %v9885_v6 = vld [vmem:[%s14470_s14 + $0x58] sm:$0xff]  }
 0x84c   :  { %v7248_v62 = vmul.f32 %v7240_v33, %v12573_v55  ;;  %v7249_v61 = vmul.f32 %v7241_v14, %v12580_v52  ;;  %v7250_v24 = vmul.f32 %v7242_v40, %v12596_v25  ;;  %v7251_v8 = vmul.f32 %v7243_v26, %v12606_v58  ;;  %9522 = vmatprep.subr.bf16.mxu1 %v9881_v11 }
 0x84d   :  { %v9218_v45 = vpack.c.bf16 %v7244_v17, %v7244_v17  ;;  %v9219_v9 = vpack.c.bf16 %v7245_v36, %v7245_v36  ;;  %v9220_v32 = vpack.c.bf16 %v7246_v34, %v7246_v34  ;;  %v9221_v39 = vpack.c.bf16 %v7247_v41, %v7247_v41 }
 0x84e   :  { %v9222_v10 = vpack.c.bf16 %v7248_v62, %v7248_v62  ;;  %v9223_v3 = vpack.c.bf16 %v7249_v61, %v7249_v61  ;;  %v9224_v57 = vpack.c.bf16 %v7250_v24, %v7250_v24  ;;  %v13879_v43 = vpack.c.bf16 %v7251_v8, %v7251_v8 }
 0x84f   :  { %v7277_v7 = vshll.u32 %v9218_v45, 16  ;;  %v7280_v15 = vshrl.u32 %v9218_v45, 16  ;;  %v7286_v1 = vshll.u32 %v9219_v9, 16  ;;  %v7290_v23 = vshrl.u32 %v9219_v9, 16 }
 0x850   :  { %v7296_v63 = vshll.u32 %v9220_v32, 16  ;;  %v7300_v2 = vshrl.u32 %v9220_v32, 16  ;;  %v7306_v54 = vshll.u32 %v9221_v39, 16  ;;  %v7310_v0 = vshrl.u32 %v9221_v39, 16  ;;  %v7363_v32 = vld [vmem:[#allocation5] sm:$0x8] }
 0x851   :  { %v7279_v35 = vrot.slane %v7277_v7, 5  ;;  %v7282_v42 = vrot.slane %v7280_v15, 4  ;;  %v7288_v27 = vrot.slane %v7286_v1, 5  ;;  %v7292_v29 = vrot.slane %v7290_v23, 4  ;;  %v9882_v7 = vld [vmem:[%s14470_s14 + $0x8] sm:$0xff]  }
 0x852   :  { %v7298_v4 = vrot.slane %v7296_v63, 5  ;;  %v7302_v59 = vrot.slane %v7300_v2, 4  ;;  %v7308_v56 = vrot.slane %v7306_v54, 5  ;;  %v7312_v50 = vrot.slane %v7310_v0, 4  ;;  %v7373_v2 = vld [vmem:[#allocation5 + $0x20] sm:$0x1]  ;;  %9523 = vmatpush3.bf16.msra.mxu1 %v9882_v7 }
 0x853   :  { %v7283_v20 = vor.u32 %v7282_v42, %v7279_v35  ;;  %v7293_v38 = vor.u32 %v7292_v29, %v7288_v27  ;;  %v7316_v5 = vshll.u32 %v9222_v10, 16  ;;  %v7320_v48 = vshrl.u32 %v9222_v10, 16 }
 0x854   :  { %v7303_v19 = vor.u32 %v7302_v59, %v7298_v4  ;;  %v7313_v49 = vor.u32 %v7312_v50, %v7308_v56  ;;  %v7326_v47 = vshll.u32 %v9223_v3, 16  ;;  %v7330_v18 = vshrl.u32 %v9223_v3, 16 }
 0x855   :  { %v7284_v13 = vrot.slane %v7283_v20, 4  ;;  %v7294_v53 = vrot.slane %v7293_v38, 4  ;;  %v7318_v33 = vrot.slane %v7316_v5, 5  ;;  %v7322_v14 = vrot.slane %v7320_v48, 4  ;;  %v9884_v20 = vld [vmem:[%s14470_s14 + $0x10] sm:$0xff]  }
 0x856   :  { %v7304_v40 = vrot.slane %v7303_v19, 4  ;;  %v7314_v26 = vrot.slane %v7313_v49, 4  ;;  %v7328_v17 = vrot.slane %v7326_v47, 5  ;;  %v7332_v36 = vrot.slane %v7330_v18, 4 }
 0x857   :  { %v7289_v34 = vsel %vm10131_vm8, %v7284_v13, %v7288_v27  ;;  %v7299_v41 = vsel %vm10131_vm8, %v7294_v53, %v7298_v4  ;;  %v7323_v62 = vor.u32 %v7322_v14, %v7318_v33  ;;  %v7336_v61 = vshll.u32 %v9224_v57, 16 }
 0x858   :  { %v7309_v24 = vsel %vm10131_vm8, %v7304_v40, %v7308_v56  ;;  %v7319_v8 = vsel %vm10131_vm8, %v7314_v26, %v7318_v33  ;;  %v7333_v45 = vor.u32 %v7332_v36, %v7328_v17  ;;  %v7340_v9 = vshrl.u32 %v9224_v57, 16  ;;  %7366 = vst.msk [vmem:[#allocation5 + $0x4] sm:$0xf] %vm14785_vm15, %v7289_v34  ;;  %v9883_v57 = vld [vmem:[%s14470_s14 + $0x50] sm:$0xff]  }
 0x859   :  { %7367 = vst.msk [vmem:[#allocation5 + $0x8] sm:$0xf] %vm14786_vm10, %v7299_v41  ;;  %v7324_v39 = vrot.slane %v7323_v62, 4  ;;  %v7338_v10 = vrot.slane %v7336_v61, 5  ;;  %v7350_v3 = vshrl.u32 %v13879_v43, 16  ;;  %v7346_v23 = vshll.u32 %v13879_v43, 16  ;;  %9524 = vmatprep.subr.bf16.mxu1 %v9883_v57 }
 0x85a   :  { %7368 = vst.msk [vmem:[#allocation5 + $0xc] sm:$0xf] %vm14787_vm9, %v7309_v24  ;;  %v7334_v15 = vrot.slane %v7333_v45, 4  ;;  %v7342_v1 = vrot.slane %v7340_v9, 4  ;;  %v7364_v63 = vsel %vm11903_vm5, %v7279_v35, %v7363_v32  ;;  %vm14791_vm5 = vmmov %vm14790_vm6  ;;  %9525 = vmatpush3.bf16.msra.mxu1 %v9884_v20  ;;  %v9886_v41 = vld [vmem:[%s14470_s14 + $0x18] sm:$0xff]   ;;  %v9887_v9 = vld [vmem:[%s14470_s14 + $0x60] sm:$0xff]  }
 0x85b   :  { %7369 = vst.msk [vmem:[#allocation5 + $0x10] sm:$0xf] %vm14788_vm11, %v7319_v8  ;;  %v7329_v54 = vsel %vm10131_vm8, %v7324_v39, %v7328_v17  ;;  %v7374_v0 = vsel %vm11939_vm4, %v7350_v3, %v7373_v2  ;;  %7365 = vst [vmem:[#allocation5] sm:$0x8] %v7364_v63  ;;  %v7348_v43 = vrot.slane %v7346_v23, 5  ;;  %9526 = vmatprep.subr.bf16.mxu1 %v9885_v6  ;;  %v9888_v63 = vld [vmem:[%s14470_s14 + $0x20] sm:$0xff]  }
 0x85c   :  { %v7339_v42 = vsel %vm10131_vm8, %v7334_v15, %v7338_v10  ;;  %v7343_v27 = vor.u32 %v7342_v1, %v7338_v10  ;;  %7370 = vst.msk [vmem:[#allocation5 + $0x14] sm:$0xf] %vm14789_vm12, %v7329_v54  ;;  %7375 = vst [vmem:[#allocation5 + $0x20] sm:$0x1] %v7374_v0 }
 0x85d   :  { %7371 = vst.msk [vmem:[#allocation5 + $0x18] sm:$0xf] %vm14790_vm6, %v7339_v42  ;;  %vm14792_vm4 = vmmov %vm14791_vm5 }
 0x85e   :  { %v7344_v60 = vrot.slane %v7343_v27, 4  ;;  %9527 = vmatpush3.bf16.msra.mxu1 %v9886_v41  ;;  %vm14794_vm1 = vmmov %vm14792_vm4 }
 0x85f   :  { %v7734_v29 = vld [vmem:[#allocation5 + $0x4] sm:$0xf]  ;;  %9528 = vmatprep.subr.bf16.mxu1 %v9887_v9  ;;  %vm14795_vm15 = vmmov %vm14794_vm1 }
 0x860   :  { %v7735_v35 = vld [vmem:[#allocation5 + $0x8] sm:$0xf]  ;;  %v7567_v4 = vld [vmem:[#allocation5 + $0x4] sm:$0xf]  ;;  %v7349_v44 = vsel %vm10131_vm8, %v7344_v60, %v7348_v43  ;;  %7750 = vrot.lane.b32.xlu1 %v7734_v29, %s9978_s1  ;;  %vm14796_vm10 = vmmov %vm14794_vm1 }
 0x861   :  { %7752 = vrot.lane.b32.xlu0 %v7735_v35, %s9978_s1  ;;  %v7584_v59 = vrot.slane %v7567_v4, 7  ;;  %v7568_v56 = vld [vmem:[#allocation5 + $0x8] sm:$0xf]  ;;  %v7393_v50 = vld [vmem:[#allocation5 + $0x4] sm:$0xf]  ;;  %vm14797_vm9 = vmmov %vm14794_vm1 }
 0x862   :  { %7372 = vst.msk [vmem:[#allocation5 + $0x1c] sm:$0xf] %vm14791_vm5, %v7349_v44  ;;  %v7587_v38 = vrot.slane %v7568_v56, 7  ;;  %v7410_v5 = vshll.u32 %v7393_v50, 16  ;;  %v7569_v48 = vld [vmem:[#allocation5 + $0xc] sm:$0xf]  ;;  %9529 = vmatpush3.bf16.msra.mxu1 %v9888_v63  ;;  %vm14798_vm11 = vmmov %vm14794_vm1 }
 0x863   :  { %v7566_v11 = vld [vmem:[#allocation5] sm:$0x8]  ;;  %v7586_v19 = vrot.slane %v7584_v59, 4  ;;  %v7590_v47 = vrot.slane %v7569_v48, 7  ;;  %v7414_v33 = vshrl.u32 %v7393_v50, 16  ;;  %v9889_v44 = vld [vmem:[%s14470_s14 + $0xc0] sm:$0xff]   ;;  %vm14799_vm12 = vmmov %vm14794_vm1 }
 0x864   :  { %v7392_v49 = vld [vmem:[#allocation5] sm:$0xf]  ;;  %v9128_v18 = vrot.slane %v7566_v11, 11  ;;  %v7570_v14 = vld [vmem:[#allocation5 + $0x10] sm:$0xf]  ;;  %v7589_v36 = vrot.slane %v7587_v38, 4  ;;  %9560 = vmatprep.subr.bf16.mxu0 %v9889_v44  ;;  %vm14800_vm6 = vmmov %vm14794_vm1 }
 0x865   :  { %v7401_v13 = vshrl.u32 %v7392_v49, 16  ;;  %v7404_v53 = vshll.u32 %v7392_v49, 16  ;;  %v7588_v40 = vsel %vm10084_vm2, %v7586_v19, %v7587_v38  ;;  %v7592_v26 = vrot.slane %v7590_v47, 4  ;;  %v7571_v34 = vld [vmem:[#allocation5 + $0x14] sm:$0xf]  ;;  %v9896_v44 = vld [vmem:[%s14470_s14 + $0x30] sm:$0xff]   ;;  %vm14801_vm5 = vmmov %vm14794_vm1 }
 0x866   :  { %v7593_v17 = vrot.slane %v7570_v14, 7  ;;  %v7585_v62 = vsel %vm10084_vm2, %v9128_v18, %v7584_v59  ;;  %7607 = vrot.lane.b32.xlu0 %v7588_v40, %s9978_s1  ;;  %v7572_v8 = vld [vmem:[#allocation5 + $0x18] sm:$0xf]  ;;  %v7596_v45 = vrot.slane %v7571_v34, 7  ;;  %v7412_v32 = vrot.slane %v7410_v5, 5  ;;  %v9890_v5 = vld [vmem:[%s14470_s14 + $0x80] sm:$0xff]  }
 0x867   :  { %v7403_v61 = vrot.slane %v7401_v13, 4  ;;  %v7406_v24 = vrot.slane %v7404_v53, 5  ;;  %7605 = vrot.lane.b32.xlu1 %v7585_v62, %s9978_s1  ;;  %v7599_v39 = vrot.slane %v7572_v8, 7  ;;  %v7394_v3 = vld [vmem:[#allocation5 + $0x8] sm:$0xf]  ;;  %v7416_v15 = vrot.slane %v7414_v33, 4  ;;  %9561 = vmatpush3.bf16.msra.mxu0 %v9890_v5 }
 0x868   :  { %v7595_v10 = vrot.slane %v7593_v17, 4  ;;  %v7598_v57 = vrot.slane %v7596_v45, 4  ;;  %v7420_v1 = vshll.u32 %v7394_v3, 16  ;;  %v7395_v23 = vld [vmem:[#allocation5 + $0xc] sm:$0xf]  ;;  %v7594_v2 = vsel %vm10084_vm2, %v7592_v26, %v7593_v17  ;;  %v9892_v34 = vld [vmem:[%s14470_s14 + $0x28] sm:$0xff]  }
 0x869   :  { %v7407_v7 = vor.u32 %v7406_v24, %v7403_v61  ;;  %v7591_v54 = vsel %vm10084_vm2, %v7589_v36, %v7590_v47  ;;  %v7399_v0 = vld [vmem:[#allocation5 + $0x1c] sm:$0x3]  ;;  %v7601_v27 = vrot.slane %v7599_v39, 4  ;;  %v7424_v60 = vshrl.u32 %v7394_v3, 16  ;;  %v7396_v38 = vld [vmem:[#allocation5 + $0x10] sm:$0xf] }
 0x86a   :  { %v7573_v42 = vld [vmem:[#allocation5 + $0x1c] sm:$0xf]  ;;  %7611 = vrot.lane.b32.xlu0 %v7594_v2, %s9978_s1  ;;  %v13950_v35 = vsel %vm10084_vm2, %v7595_v10, %v7596_v45  ;;  %v7470_v29 = vshll.u32 %v7399_v0, 16  ;;  %v7474_v4 = vshrl.u32 %v7399_v0, 16  ;;  %v7417_v56 = vor.u32 %v7416_v15, %v7412_v32  ;;  %v7397_v49 = vld [vmem:[#allocation5 + $0x14] sm:$0xf] }
 0x86b   :  { %v7408_v43 = vrot.slane %v7407_v7, 4  ;;  %v7602_v59 = vrot.slane %v7573_v42, 7  ;;  %v13955_v50 = vrot.slane %v7420_v1, 5  ;;  %v7426_v20 = vrot.slane %v7424_v60, 4  ;;  %v9891_v47 = vld [vmem:[%s14470_s14 + $0x68] sm:$0xff]  }
 0x86c   :  { %v13962_v6 = vrot.slane %v7470_v29, 5  ;;  %v7476_v11 = vrot.slane %v7474_v4, 4  ;;  %v7430_v19 = vshll.u32 %v7395_v23, 16  ;;  %v7600_v18 = vsel %vm10084_vm2, %v7598_v57, %v7599_v39  ;;  %v7398_v36 = vld [vmem:[#allocation5 + $0x18] sm:$0xf]  ;;  %9530 = vmatprep.subr.bf16.mxu1 %v9891_v47 }
 0x86d   :  { %v7413_v48 = vsel %vm10131_vm8, %v7408_v43, %v7412_v32  ;;  %v13972_v13 = vsel %vm10084_vm2, %v7601_v27, %v7602_v59  ;;  %v7418_v53 = vrot.slane %v7417_v56, 4  ;;  %v7427_v33 = vor.u32 %v7426_v20, %v13955_v50  ;;  %v7837_v8 = vld [vmem:[#allocation5 + $0x4] sm:$0xc]  ;;  %v9893_v45 = vld [vmem:[%s14470_s14 + $0xc8] sm:$0xff]   ;;  %v7838_v3 = vld [vmem:[#allocation5 + $0x8] sm:$0xf]  ;;  %9531 = vmatpush3.bf16.msra.mxu1 %v9892_v34 }
 0x86e   :  { %7479 = vrot.lane.b32.xlu1 %v7413_v48, %s9978_s1  ;;  %7615 = vrot.lane.b32.xlu0 %v7600_v18, %s9978_s1  ;;  %v7477_v14 = vor.u32 %v7476_v11, %v13962_v6  ;;  %v13977_v40 = vrot.slane %v7430_v19, 5  ;;  %v7434_v26 = vshrl.u32 %v7395_v23, 16  ;;  %v7440_v17 = vshll.u32 %v7396_v38, 16  ;;  %v9894_v23 = vld [vmem:[%s14470_s14 + $0x88] sm:$0xff]   ;;  %v7839_v27 = vld [vmem:[#allocation5 + $0xc] sm:$0xf] }
 0x86f   :  { %v7423_v41 = vsel %vm10131_vm8, %v7418_v53, %v13955_v50  ;;  %v13985_v62 = vrot.slane %v7602_v59, 4  ;;  %v7444_v61 = vshrl.u32 %v7396_v38, 16  ;;  %v7450_v24 = vshll.u32 %v7397_v49, 16  ;;  %9562 = vmatprep.subr.bf16.mxu0 %v9893_v45  ;;  %v9897_v38 = vld [vmem:[%s14470_s14 + $0xd0] sm:$0xff]  }
 0x870   :  { %v7478_v9 = vrot.slane %v7477_v14, 4  ;;  %v7436_v32 = vrot.slane %v7434_v26, 4  ;;  %v13990_v39 = vrot.slane %v7440_v17, 5  ;;  %v7454_v10 = vshrl.u32 %v7397_v49, 16  ;;  %9563 = vmatpush3.bf16.msra.mxu0 %v9894_v23  ;;  %v7840_v49 = vld [vmem:[#allocation5 + $0x10] sm:$0xf] }
 0x871   :  { %v13993_v7 = vrot.slane %v7427_v33, 4  ;;  %v7446_v57 = vrot.slane %v7444_v61, 4  ;;  %v13995_v15 = vrot.slane %v7450_v24, 5  ;;  %v7460_v1 = vshll.u32 %v7398_v36, 16  ;;  %v7841_v33 = vld [vmem:[#allocation5 + $0x14] sm:$0xf]  ;;  %9564 = vmatprep.subr.bf16.mxu0 %v9897_v38 }
 0x872   :  { %7609 = vrot.lane.b32.xlu1 %v7591_v54, %s9978_s1  ;;  %7493 = vrot.lane.b32.xlu0 %v7478_v9, %s9978_s1  ;;  %v7437_v63 = vor.u32 %v7436_v32, %v13977_v40  ;;  %v7456_v2 = vrot.slane %v7454_v10, 4  ;;  %v7464_v0 = vshrl.u32 %v7398_v36, 16  ;;  %v7846_v42 = vshrl.u32 %v7837_v8, 16  ;;  %v9895_v54 = vld [vmem:[%s14470_s14 + $0x70] sm:$0xff]   ;;  %v7842_v10 = vld [vmem:[#allocation5 + $0x18] sm:$0xf] }
 0x873   :  { %v7447_v60 = vor.u32 %v7446_v57, %v13990_v39  ;;  %v14006_v43 = vrot.slane %v7460_v1, 5  ;;  %v7849_v29 = vshll.u32 %v7837_v8, 16  ;;  %v7855_v4 = vshrl.u32 %v7838_v3, 16  ;;  %9532 = vmatprep.subr.bf16.mxu1 %v9895_v54  ;;  %v9898_v14 = vld [vmem:[%s14470_s14 + $0x90] sm:$0xff]   ;;  %v7736_v57 = vld [vmem:[#allocation5 + $0xc] sm:$0xf] }
 0x874   :  { %v14011_v59 = vrot.slane %v7437_v63, 4  ;;  %v7457_v56 = vor.u32 %v7456_v2, %v13995_v15  ;;  %v7848_v50 = vrot.slane %v7846_v42, 6  ;;  %v7858_v20 = vshll.u32 %v7838_v3, 16  ;;  %9533 = vmatpush3.bf16.msra.mxu1 %v9896_v44  ;;  %9565 = vmatpush3.bf16.msra.mxu0 %v9898_v14  ;;  %v9899_v3 = vld [vmem:[%s14470_s14 + $0x78] sm:$0xff]   ;;  %v7843_v2 = vld [vmem:[#allocation5 + $0x1c] sm:$0xf] }
 0x875   :  { %v14019_v5 = vrot.slane %v7447_v60, 4  ;;  %v7851_v48 = vrot.slane %v7849_v29, 7  ;;  %v7857_v11 = vrot.slane %v7855_v4, 6  ;;  %v7865_v19 = vshrl.u32 %v7839_v27, 16  ;;  %9534 = vmatprep.subr.bf16.mxu1 %v9899_v3  ;;  %v9901_v29 = vld [vmem:[%s14470_s14 + $0xd8] sm:$0xff]  }
 0x876   :  { %7613 = vrot.lane.b32.xlu1 %v13950_v35, %s9978_s1  ;;  %7481 = vrot.lane.b32.xlu0 %v7423_v41, %s9978_s1  ;;  %v7433_v47 = vsel %vm10131_vm8, %v13993_v7, %v13977_v40  ;;  %v7443_v18 = vsel %vm10131_vm8, %v14011_v59, %v13990_v39  ;;  %v7860_v35 = vrot.slane %v7858_v20, 7  ;;  %v7868_v53 = vshll.u32 %v7839_v27, 16  ;;  %v7639_v14 = vld [vmem:[#allocation5 + $0x8] sm:$0xf] }
 0x877   :  { %v14033_v26 = vrot.slane %v7457_v56, 4  ;;  %v7852_v17 = vor.u32 %v7851_v48, %v7848_v50  ;;  %v7867_v36 = vrot.slane %v7865_v19, 6  ;;  %v7466_v34 = vrot.slane %v7464_v0, 4  ;;  %v9900_v0 = vld [vmem:[%s14470_s14 + $0x38] sm:$0xff]   ;;  %v14072_v56 = vld [vmem:[#allocation5 + $0x4] sm:$0xf]  ;;  %9566 = vmatprep.subr.bf16.mxu0 %v9901_v29 }
 0x878   :  { %v7453_v41 = vsel %vm10131_vm8, %v14019_v5, %v13995_v15  ;;  %v14039_v61 = vor.u32 %v7860_v35, %v7857_v11  ;;  %v7870_v24 = vrot.slane %v7868_v53, 7  ;;  %v7875_v8 = vshrl.u32 %v7840_v49, 16  ;;  %9535 = vmatpush3.bf16.msra.mxu1 %v9900_v0  ;;  %v9902_v50 = vld [vmem:[%s14470_s14 + $0x98] sm:$0xff]   ;;  %v7376_v19 = vld [vmem:[#allocation5] sm:$0xf] }
 0x879   :  { %v14043_v45 = vrot.slane %v7852_v17, 4  ;;  %v7467_v9 = vor.u32 %v7466_v34, %v14006_v43  ;;  %v7878_v32 = vshll.u32 %v7840_v49, 16  ;;  %v7885_v39 = vshrl.u32 %v7841_v33, 16  ;;  %7384 = vst.msk [vmem:[#allocation7] sm:$0xf] %vm14792_vm4, %v7376_v19  ;;  %9567 = vmatpush3.bf16.msra.mxu0 %v9902_v50  ;;  %vm14802_vm4 = vmmov %vm14794_vm1 }
 0x87a   :  { %7617 = vrot.lane.b32.xlu1 %v13972_v13, %s9978_s1  ;;  %7619 = vrot.lane.b32.xlu0 %v13985_v62, %s9978_s1  ;;  %v7863_v1 = vrot.slane %v14039_v61, 4  ;;  %v7871_v23 = vor.u32 %v7870_v24, %v7867_v36  ;;  %v7877_v63 = vrot.slane %v7875_v8, 6  ;;  %v7888_v13 = vshll.u32 %v7841_v33, 16  ;;  %v7844_v62 = vld [vmem:[#allocation5 + $0x20] sm:$0xf]  ;;  %v9907_v8 = vld [vmem:[%s14470_s14 + $0xe0] sm:$0xff]  }
 0x87b   :  { %v7463_v42 = vsel %vm10131_vm8, %v14033_v26, %v14006_v43  ;;  %v14059_v27 = vrot.slane %v7467_v9, 4  ;;  %v7880_v54 = vrot.slane %v7878_v32, 7  ;;  %v7887_v60 = vrot.slane %v7885_v39, 6  ;;  %v14083_v26 = vld [vmem:[%s14470_s14 + $0x100] sm:$0xff]   ;;  %v7637_v24 = vld [vmem:[#allocation5] sm:$0x8]  ;;  %9568 = vmatprep.subr.bf16.mxu0 %v9907_v8 }
 0x87c   :  { %v7862_v4 = vsel %vm12232_vm13, %v14043_v45, %v14039_v61  ;;  %v14070_v44 = vsel %vm12232_vm13, %v7863_v1, %v7871_v23  ;;  %v7890_v43 = vrot.slane %v7888_v13, 7  ;;  %v7895_v59 = vshrl.u32 %v7842_v10, 16  ;;  %9656 = vmatprep.subr.bf16.mxu1 %v14083_v26  ;;  %v7512_v13 = vld [vmem:[#allocation5 + $0x4] sm:$0xf]  ;;  %v7379_v8 = vld [vmem:[#allocation5 + $0xc] sm:$0xf] }
 0x87d   :  { %v7873_v20 = vrot.slane %v7871_v23, 4  ;;  %v7881_v38 = vor.u32 %v7880_v54, %v7877_v63  ;;  %v7898_v48 = vshll.u32 %v7842_v10, 16  ;;  %v7905_v11 = vshrl.u32 %v7843_v2, 16  ;;  %v7511_v63 = vld [vmem:[#allocation5] sm:$0xe] }
 0x87e   :  { %7754 = vrot.lane.b32.xlu1 %v7736_v57, %s9978_s1  ;;  %7485 = vrot.lane.b32.xlu0 %v7443_v18, %s9978_s1  ;;  %v7891_v49 = vor.u32 %v7890_v43, %v7887_v60  ;;  %v7897_v35 = vrot.slane %v7895_v59, 6  ;;  %v7908_v53 = vshll.u32 %v7843_v2, 16  ;;  %v7915_v33 = vshrl.u32 %v7844_v62, 16  ;;  %v7383_v2 = vld [vmem:[#allocation5 + $0x1c] sm:$0x1]  ;;  %v9915_v61 = vld [vmem:[%s14470_s14 + $0xb0] sm:$0xff]  }
 0x87f   :  { %v7473_v17 = vsel %vm10131_vm8, %v14059_v27, %v13962_v6  ;;  %v7883_v36 = vrot.slane %v7881_v38, 4  ;;  %v7900_v18 = vrot.slane %v7898_v48, 7  ;;  %v7907_v34 = vrot.slane %v7905_v11, 6  ;;  %v14111_v54 = vld [vmem:[#allocation5 + $0x8] sm:$0xf]  ;;  %v9909_v48 = vld [vmem:[%s14470_s14 + $0xe8] sm:$0xff]   ;;  %vm14809_vm8 = vmmov %vm14794_vm1 }
 0x880   :  { %v7893_v9 = vrot.slane %v7891_v49, 4  ;;  %v7910_v32 = vrot.slane %v7908_v53, 7  ;;  %v7917_v39 = vrot.slane %v7915_v33, 6  ;;  %v7918_v10 = vshll.u32 %v7844_v62, 16  ;;  %v14113_v60 = vld [vmem:[#allocation5 + $0xc] sm:$0xf] }
 0x881   :  { %v14101_v3 = vsel %vm12232_vm13, %v7873_v20, %v7881_v38  ;;  %v7901_v57 = vor.u32 %v7900_v18, %v7897_v35  ;;  %v7652_v1 = vshrl.u32 %v14072_v56, 16  ;;  %v7661_v23 = vshrl.u32 %v7639_v14, 16  ;;  %v14115_v62 = vld [vmem:[#allocation5 + $0x10] sm:$0xf]  ;;  %7391 = vst.msk [vmem:[#allocation7 + $0x8c] sm:$0x1] %vm14793_vm14, %v7383_v2  ;;  %vm14803_vm14 = vmmov %vm14794_vm1 }
 0x882   :  { %7483 = vrot.lane.b32.xlu1 %v7433_v47, %s9978_s1  ;;  %7489 = vrot.lane.b32.xlu0 %v7463_v42, %s9978_s1  ;;  %v14107_v0 = vsel %vm12232_vm13, %v7883_v36, %v7891_v49  ;;  %v14109_v40 = vor.u32 %v7910_v32, %v7907_v34  ;;  %v7920_v7 = vrot.slane %v7918_v10, 7  ;;  %v7647_v47 = vshrl.u32 %v7637_v24, 16  ;;  %v7377_v29 = vld [vmem:[#allocation5 + $0x4] sm:$0xf]  ;;  %v9908_v42 = vld [vmem:[%s14470_s14 + $0xa0] sm:$0xff]  }
 0x883   :  { %v7903_v43 = vrot.slane %v7901_v57, 4  ;;  %v7654_v59 = vrot.slane %v7652_v1, 7  ;;  %v14121_v50 = vrot.slane %v7661_v23, 7  ;;  %v7664_v20 = vshll.u32 %v7639_v14, 16  ;;  %v14123_v38 = vld [vmem:[#allocation5 + $0x14] sm:$0xf]  ;;  %9569 = vmatpush3.bf16.msra.mxu0 %v9908_v42 }
 0x884   :  { %7385 = vst.msk [vmem:[#allocation7 + $0x14] sm:$0xf] %vm14794_vm1, %v7377_v29  ;;  %v14131_v11 = vsel %vm12232_vm13, %v7893_v9, %v7901_v57  ;;  %v7913_v19 = vrot.slane %v14109_v40, 4  ;;  %v14134_v49 = vor.u32 %v7920_v7, %v7917_v39  ;;  %v7655_v35 = vshll.u32 %v14072_v56, 16  ;;  %v14137_v53 = vld [vmem:[#allocation5 + $0x18] sm:$0xf]  ;;  %9570 = vmatprep.subr.bf16.mxu0 %v9909_v48 }
 0x885   :  { %v7378_v33 = vld [vmem:[#allocation5 + $0x8] sm:$0xf]  ;;  %v9910_v14 = vld [vmem:[%s14470_s14 + $0xa8] sm:$0xff]   ;;  %v14151_v36 = vsel %vm12232_vm13, %v7903_v43, %v14109_v40  ;;  %v7659_v56 = vrot.slane %v7654_v59, 4  ;;  %v7666_v18 = vor.u32 %v7664_v20, %v14121_v50  ;;  %v9129_v34 = vrot.slane %v7647_v47, 11  ;;  %v9914_v20 = vld [vmem:[%s14470_s14 + $0xf0] sm:$0xff]  }
 0x886   :  { %7487 = vrot.lane.b32.xlu1 %v7453_v41, %s9978_s1  ;;  %v14154_v24 = vld [vmem:[#allocation5 + $0x1c] sm:$0x3]  ;;  %7386 = vst.msk [vmem:[#allocation7 + $0x28] sm:$0xf] %vm14795_vm15, %v7378_v33  ;;  %v7380_v9 = vld [vmem:[#allocation5 + $0x10] sm:$0xf]  ;;  %7926 = vrot.lane.b32.xlu0 %v14070_v44, %s9978_s1  ;;  %v7657_v5 = vor.u32 %v7655_v35, %v7654_v59  ;;  %vm14804_vm15 = vmmov %vm14794_vm1 }
 0x887   :  { %v7923_v15 = vrot.slane %v14134_v49, 4  ;;  %v9127_v41 = vrot.slane %v7511_v63, 9  ;;  %v7529_v32 = vrot.slane %v7512_v13, 5  ;;  %7387 = vst.msk [vmem:[#allocation7 + $0x3c] sm:$0xf] %vm14796_vm10, %v7379_v8  ;;  %v7667_v57 = vsel %vm12292_vm0, %v7659_v56, %v7666_v18  ;;  %9571 = vmatpush3.bf16.msra.mxu0 %v9910_v14  ;;  %vm14805_vm10 = vmmov %vm14794_vm1 }
 0x888   :  { %7388 = vst.msk [vmem:[#allocation7 + $0x50] sm:$0xf] %vm14797_vm9, %v7380_v9  ;;  %v7381_v39 = vld [vmem:[#allocation5 + $0x14] sm:$0xf]  ;;  %v7737_v10 = vld [vmem:[#allocation5 + $0x10] sm:$0xf]  ;;  %v7658_v63 = vsel %vm12292_vm0, %v9129_v34, %v7657_v5  ;;  %9572 = vmatprep.subr.bf16.mxu0 %v9914_v20  ;;  %vm14806_vm9 = vmmov %vm14794_vm1 }
 0x889   :  { %v7532_v1 = vrot.slane %v14111_v54, 5  ;;  %v7535_v23 = vrot.slane %v14113_v60, 5  ;;  %v7538_v44 = vrot.slane %v14115_v62, 5  ;;  %v14167_v2 = vld [vmem:[#allocation5 + $0xc] sm:$0xf]  ;;  %v7530_v13 = vsel %vm12109_vm7, %v9127_v41, %v7529_v32 }
 0x88a   :  { %7389 = vst.msk [vmem:[#allocation7 + $0x64] sm:$0xf] %vm14798_vm11, %v7381_v39  ;;  %v7531_v7 = vrot.slane %v7529_v32, 4  ;;  %v7541_v47 = vrot.slane %v14123_v38, 5  ;;  %v7782_v54 = vld [vmem:[#allocation5 + $0x4] sm:$0xc]  ;;  %7924 = vrot.lane.b32.xlu1 %v7862_v4, %s9978_s1  ;;  %7756 = vrot.lane.b32.xlu0 %v7737_v10, %s9978_s1  ;;  %vm14807_vm11 = vmmov %vm14794_vm1 }
 0x88b   :  { %7727 = vst.msk [vmem:[#allocation7 + $0x1c] sm:$0xf] %vm14799_vm12, %v7667_v57  ;;  %v7783_v29 = vld [vmem:[#allocation5 + $0x8] sm:$0xf]  ;;  %v7382_v60 = vld [vmem:[#allocation5 + $0x18] sm:$0xf]  ;;  %9573 = vmatpush3.bf16.msra.mxu0 %v9915_v61 }
 0x88c   :  { %7726 = vst.msk [vmem:[#allocation7 + $0x8] sm:$0xf] %vm14800_vm6, %v7658_v63  ;;  %v7537_v62 = vrot.slane %v7535_v23, 4  ;;  %v7534_v42 = vrot.slane %v7532_v1, 4  ;;  %v7544_v43 = vrot.slane %v14137_v53, 5  ;;  %v7540_v59 = vrot.slane %v7538_v44, 4  ;;  %vm14811_vm6 = vmmov %vm14794_vm1 }
 0x88d   :  { %7558 = vst.msk [vmem:[#allocation7 + $0x4] sm:$0xf] %vm14801_vm5, %v7530_v13  ;;  %v7533_v45 = vsel %vm12109_vm7, %v7531_v7, %v7532_v1  ;;  %v7543_v4 = vrot.slane %v7541_v47, 4  ;;  %v7547_v38 = vrot.slane %v14154_v24, 5  ;;  %v7668_v48 = vrot.slane %v14121_v50, 4  ;;  %v9918_v53 = vld [vmem:[%s14470_s14 + $0xf8] sm:$0xff]   ;;  %vm14812_vm5 = vmmov %vm14794_vm1 }
 0x88e   :  { %7390 = vst.msk [vmem:[#allocation7 + $0x78] sm:$0xf] %vm14802_vm4, %v7382_v60  ;;  %v7784_v35 = vld [vmem:[#allocation5 + $0xc] sm:$0xf]  ;;  %v7539_v33 = vsel %vm12109_vm7, %v7537_v62, %v7538_v44  ;;  %v7536_v14 = vsel %vm12109_vm7, %v7534_v42, %v7535_v23  ;;  %v7542_v56 = vsel %vm12109_vm7, %v7540_v59, %v7541_v47  ;;  %v7546_v18 = vrot.slane %v7544_v43, 4  ;;  %7491 = vrot.lane.b32.xlu1 %v7473_v17, %s9978_s1  ;;  %vm14813_vm4 = vmmov %vm14794_vm1 }
 0x88f   :  { %7559 = vst.msk [vmem:[#allocation7 + $0x18] sm:$0xf] %vm14803_vm14, %v7533_v45  ;;  %v7641_v34 = vld [vmem:[#allocation5 + $0x10] sm:$0xf]  ;;  %v7545_v24 = vsel %vm12109_vm7, %v7543_v4, %v7544_v43  ;;  %v7549_v8 = vrot.slane %v7547_v38, 4  ;;  %v7670_v9 = vshrl.u32 %v14167_v2, 16  ;;  %9574 = vmatprep.subr.bf16.mxu0 %v9918_v53  ;;  %7930 = vrot.lane.b32.xlu0 %v14107_v0, %s9978_s1  ;;  %vm14814_vm14 = vmmov %vm14794_vm1 }
 0x890   :  { %v7785_v50 = vld [vmem:[#allocation5 + $0x10] sm:$0xf]  ;;  %7561 = vst.msk [vmem:[#allocation7 + $0x40] sm:$0xf] %vm14794_vm1, %v7539_v33  ;;  %v7673_v5 = vshll.u32 %v14167_v2, 16  ;;  %v9919_v32 = vld [vmem:[%s14470_s14 + $0xb8] sm:$0xff]   ;;  %v7548_v39 = vsel %vm12109_vm7, %v7546_v18, %v7547_v38  ;;  %vm14810_vm7 = vmmov %vm14794_vm1 }
 0x891   :  { %7560 = vst.msk [vmem:[#allocation7 + $0x2c] sm:$0xf] %vm14804_vm15, %v7536_v14  ;;  %v7786_v41 = vld [vmem:[#allocation5 + $0x14] sm:$0xf]  ;;  %v9130_v10 = vrot.slane %v7782_v54, 10  ;;  %v7800_v57 = vrot.slane %v7783_v29, 6  ;;  %9575 = vmatpush3.bf16.msra.mxu0 %v9919_v32  ;;  %vm14815_vm15 = vmmov %vm14794_vm1 }
 0x892   :  { %7562 = vst.msk [vmem:[#allocation7 + $0x54] sm:$0xf] %vm14805_vm10, %v7542_v56  ;;  %v7803_v1 = vrot.slane %v7784_v35, 6  ;;  %vm14808_vm12 = vcmask 516096   ;;  %v7672_v46 = vrot.slane %v7670_v9, 7  ;;  %v7679_v23 = vshrl.u32 %v7641_v34, 16  ;;  %7928 = vrot.lane.b32.xlu1 %v14101_v3, %s9978_s1  ;;  %vm14816_vm10 = vmmov %vm14794_vm1 }
 0x893   :  { %7563 = vst.msk [vmem:[#allocation7 + $0x68] sm:$0xf] %vm14806_vm9, %v7545_v24  ;;  %v7682_v6 = vshll.u32 %v7641_v34, 16  ;;  %v7806_v27 = vrot.slane %v7785_v50, 6  ;;  %v7642_v17 = vld [vmem:[#allocation5 + $0x14] sm:$0xf]  ;;  %v7801_v31 = vsel %vm12284_vm3, %v9130_v10, %v7800_v57  ;;  %vm14817_vm9 = vmmov %vm14794_vm1 }
 0x894   :  { %7564 = vst.msk [vmem:[#allocation7 + $0x7c] sm:$0xf] %vm14807_vm11, %v7548_v39  ;;  %v7739_v44 = vld [vmem:[#allocation5 + $0x18] sm:$0xf]  ;;  %v7802_v2 = vrot.slane %v7800_v57, 4  ;;  %v7805_v63 = vrot.slane %v7803_v1, 4  ;;  %v7675_v47 = vor.u32 %v7673_v5, %v7672_v46  ;;  %vm14818_vm11 = vmmov %vm14794_vm1 }
 0x895   :  { %7565 = vst.msk [vmem:[#allocation7 + $0x90] sm:$0x1] %vm14808_vm12, %v7549_v8  ;;  %v7809_v13 = vrot.slane %v7786_v41, 6  ;;  %v7643_v7 = vld [vmem:[#allocation5 + $0x18] sm:$0xf]  ;;  %v7677_v0 = vrot.slane %v7672_v46, 4  ;;  %7760 = vrot.lane.b32.xlu0 %v7739_v44, %s9978_s1 }
 0x896   :  { %7829 = vst.msk [vmem:[#allocation7 + $0xc] sm:$0xf] %vm14809_vm8, %v7801_v31  ;;  %v7681_v54 = vrot.slane %v7679_v23, 7  ;;  %v7808_v29 = vrot.slane %v7806_v27, 4  ;;  %v7787_v60 = vld [vmem:[#allocation5 + $0x18] sm:$0xf]  ;;  %v7804_v62 = vsel %vm12284_vm3, %v7802_v2, %v7803_v1  ;;  %v7807_v42 = vsel %vm12284_vm3, %v7805_v63, %v7806_v27  ;;  %vm14819_vm8 = vmmov %vm14794_vm1 }
 0x897   :  { %v7688_v43 = vshrl.u32 %v7642_v17, 16  ;;  %v7691_v59 = vshll.u32 %v7642_v17, 16  ;;  %v7788_v20 = vld [vmem:[#allocation5 + $0x1c] sm:$0xf]  ;;  %v7738_v45 = vld [vmem:[#allocation5 + $0x14] sm:$0xf]  ;;  %v7676_v4 = vsel %vm12292_vm0, %v7668_v48, %v7675_v47 }
 0x898   :  { %v7644_v61 = vld [vmem:[#allocation5 + $0x1c] sm:$0xf]  ;;  %7830 = vst.msk [vmem:[#allocation7 + $0x20] sm:$0xf] %vm14810_vm7, %v7804_v62  ;;  %v7684_v38 = vor.u32 %v7682_v6, %v7681_v54  ;;  %v7810_v3 = vsel %vm12284_vm3, %v7808_v29, %v7809_v13  ;;  %v7686_v35 = vrot.slane %v7681_v54, 4  ;;  %v7697_v14 = vshrl.u32 %v7643_v7, 16  ;;  %7758 = vrot.lane.b32.xlu1 %v7738_v45, %s9978_s1 }
 0x899   :  { %7831 = vst.msk [vmem:[#allocation7 + $0x34] sm:$0xf] %vm14811_vm6, %v7807_v42  ;;  %v7645_v53 = vld [vmem:[#allocation5 + $0x20] sm:$0x1]  ;;  %v7690_v33 = vrot.slane %v7688_v43, 7  ;;  %v7700_v56 = vshll.u32 %v7643_v7, 16  ;;  %7934 = vrot.lane.b32.xlu0 %v14151_v36, %s9978_s1  ;;  %vm14822_vm6 = vmmov %vm14808_vm12 }
 0x89a   :  { %7728 = vst.msk [vmem:[#allocation7 + $0x30] sm:$0xf] %vm14812_vm5, %v7676_v4  ;;  %v7811_v18 = vrot.slane %v7809_v13, 4  ;;  %v7956_v34 = vld [vmem:[#allocation5 + $0x4] sm:$0x8]  ;;  %v7685_v48 = vsel %vm12292_vm0, %v7677_v0, %v7684_v38  ;;  %v7812_v50 = vrot.slane %v7787_v60, 6 }
 0x89b   :  { %7832 = vst.msk [vmem:[#allocation7 + $0x48] sm:$0xf] %vm14813_vm4, %v7810_v3  ;;  %v7815_v24 = vrot.slane %v7788_v20, 6  ;;  %v7706_v8 = vshrl.u32 %v7644_v61, 16  ;;  %v7957_v9 = vld [vmem:[#allocation5 + $0x8] sm:$0xf]  ;;  %v7693_v5 = vor.u32 %v7691_v59, %v7690_v33 }
 0x89c   :  { %7729 = vst.msk [vmem:[#allocation7 + $0x44] sm:$0xf] %vm14814_vm14, %v7685_v48  ;;  %v7695_v41 = vrot.slane %v7690_v33, 4  ;;  %v7699_v32 = vrot.slane %v7697_v14, 7  ;;  %v7709_v39 = vshll.u32 %v7644_v61, 16  ;;  %v7813_v57 = vsel %vm12284_vm3, %v7811_v18, %v7812_v50  ;;  %7932 = vrot.lane.b32.xlu1 %v14131_v11, %s9978_s1 }
 0x89d   :  { %v7958_v10 = vld [vmem:[#allocation5 + $0xc] sm:$0xf]  ;;  %v7814_v1 = vrot.slane %v7812_v50, 4  ;;  %v7708_v46 = vrot.slane %v7706_v8, 7  ;;  %v7715_v23 = vshll.u32 %v7645_v53, 16  ;;  %v7694_v17 = vsel %vm12292_vm0, %v7686_v35, %v7693_v5 }
 0x89e   :  { %v7789_v6 = vld [vmem:[#allocation5 + $0x20] sm:$0x7]  ;;  %v7702_v44 = vor.u32 %v7700_v56, %v7699_v32  ;;  %7833 = vst.msk [vmem:[#allocation7 + $0x5c] sm:$0xf] %vm14794_vm1, %v7813_v57  ;;  %v7704_v31 = vrot.slane %v7699_v32, 4  ;;  %v9131_v2 = vrot.slane %v7956_v34, 11  ;;  %v7922_v5 = vsel %vm12232_vm13, %v7913_v19, %v14134_v49  ;;  %vm14828_vm13 = vmmov %vm14822_vm6 }
 0x89f   :  { %v7741_v27 = vld [vmem:[#allocation5 + $0x20] sm:$0x1]  ;;  %v7959_v63 = vld [vmem:[#allocation5 + $0x10] sm:$0xf]  ;;  %7730 = vst.msk [vmem:[#allocation7 + $0x58] sm:$0xf] %vm14815_vm15, %v7694_v17  ;;  %v7816_v36 = vsel %vm12284_vm3, %v7814_v1, %v7815_v24  ;;  %v7711_v13 = vor.u32 %v7709_v39, %v7708_v46 }
 0x8a0   :  { %v7713_v7 = vrot.slane %v7708_v46, 4  ;;  %v7974_v47 = vrot.slane %v7957_v9, 7  ;;  %v7960_v0 = vld [vmem:[#allocation5 + $0x14] sm:$0xf]  ;;  %v7961_v54 = vld [vmem:[#allocation5 + $0x18] sm:$0xf]  ;;  %v7703_v29 = vsel %vm12292_vm0, %v7695_v41, %v7702_v44  ;;  %7764 = vrot.lane.b32.xlu0 %v7741_v27, %s9978_s1 }
 0x8a1   :  { %7834 = vst.msk [vmem:[#allocation7 + $0x70] sm:$0xf] %vm14816_vm10, %v7816_v36  ;;  %v7977_v60 = vrot.slane %v7958_v10, 7  ;;  %v7817_v62 = vrot.slane %v7815_v24, 4  ;;  %v7818_v42 = vrot.slane %v7789_v6, 6  ;;  %v7712_v59 = vsel %vm12292_vm0, %v7704_v31, %v7711_v13 }
 0x8a2   :  { %v7962_v43 = vld [vmem:[#allocation5 + $0x1c] sm:$0xf]  ;;  %7731 = vst.msk [vmem:[#allocation7 + $0x6c] sm:$0xf] %vm14817_vm9, %v7703_v29  ;;  %v7717_v20 = vsel %vm12292_vm0, %v7713_v7, %v7715_v23  ;;  %v7975_v11 = vsel %vm10084_vm2, %v9131_v2, %v7974_v47  ;;  %v7976_v61 = vrot.slane %v7974_v47, 4  ;;  %v7980_v35 = vrot.slane %v7959_v63, 7  ;;  %vm14820_vm0 = vmmov %vm14794_vm1 }
 0x8a3   :  { %v7963_v45 = vld [vmem:[#allocation5 + $0x20] sm:$0xf]  ;;  %7732 = vst.msk [vmem:[#allocation7 + $0x80] sm:$0xf] %vm14818_vm11, %v7712_v59  ;;  %v7979_v4 = vrot.slane %v7977_v60, 4  ;;  %v7819_v38 = vsel %vm12284_vm3, %v7817_v62, %v7818_v42  ;;  %v7820_v3 = vrot.slane %v7818_v42, 4  ;;  %vm14821_vm7 = vmmov %vm14820_vm0 }
 0x8a4   :  { %7733 = vst.msk [vmem:[#allocation7 + $0x94] sm:$0x1] %vm14808_vm12, %v7717_v20  ;;  %v7740_v53 = vld [vmem:[#allocation5 + $0x1c] sm:$0xf]  ;;  %v7978_v37 = vsel %vm10084_vm2, %v7976_v61, %v7977_v60  ;;  %v7983_v33 = vrot.slane %v7960_v0, 7  ;;  %v7986_v14 = vrot.slane %v7961_v54, 7  ;;  %7938 = vrot.lane.b32.xlu0 %v7923_v15, %s9978_s1  ;;  %vm14823_vm3 = vmmov %vm14820_vm0 }
 0x8a5   :  { %8003 = vst.msk [vmem:[#allocation7 + $0x10] sm:$0xf] %vm14819_vm8, %v7975_v11  ;;  %v7989_v56 = vrot.slane %v7962_v43, 7  ;;  %7762 = vrot.lane.b32.xlu1 %v7740_v53, %s9978_s1  ;;  %v7981_v28 = vsel %vm10084_vm2, %v7979_v4, %v7980_v35  ;;  %v7982_v18 = vrot.slane %v7980_v35, 4  ;;  %v7992_v34 = vrot.slane %v7963_v45, 7  ;;  %vm14824_vm5 = vmmov %vm14820_vm0  ;;  %v9913_v63 = vld [vmem:[%s14470_s14 + $0x108] sm:$0xff]  }
 0x8a6   :  { %7835 = vst.msk [vmem:[#allocation7 + $0x84] sm:$0xf] %vm14820_vm0, %v7819_v38  ;;  %v7985_v48 = vrot.slane %v7983_v33, 4  ;;  %v7988_v50 = vrot.slane %v7986_v14, 4  ;;  %vm14825_vm4 = vmmov %vm14820_vm0  ;;  %vm14829_vm15 = vcmask 1043968   ;;  %v9923_v7 = vld [vmem:[%s14470_s14 + $0x110] sm:$0xff]  }
 0x8a7   :  { %8004 = vst.msk [vmem:[#allocation7 + $0x24] sm:$0xf] %vm14821_vm7, %v7978_v37  ;;  %v7991_v24 = vrot.slane %v7989_v56, 4  ;;  %v7984_v8 = vsel %vm10084_vm2, %v7982_v18, %v7983_v33  ;;  %v7994_v9 = vrot.slane %v7992_v34, 4  ;;  %vm14826_vm14 = vmmov %vm14820_vm0  ;;  %vm14837_vm7 = vcmask 1040896  }
 0x8a8   :  { %7836 = vst.msk [vmem:[#allocation7 + $0x98] sm:$0x1] %vm14822_vm6, %v7820_v3  ;;  %v7987_v15 = vsel %vm10084_vm2, %v7985_v48, %v7986_v14  ;;  %v7990_v41 = vsel %vm10084_vm2, %v7988_v50, %v7989_v56  ;;  %vm14827_vm1 = vmmov %vm14820_vm0 }
 0x8a9   :  { %8005 = vst.msk [vmem:[#allocation7 + $0x38] sm:$0xf] %vm14823_vm3, %v7981_v28  ;;  %v7993_v32 = vsel %vm10084_vm2, %v7991_v24, %v7992_v34  ;;  %7936 = vrot.lane.b32.xlu1 %v7922_v5, %s9978_s1  ;;  %vm14830_vm10 = vmmov %vm14829_vm15 }
 0x8aa   :  { %8006 = vst.msk [vmem:[#allocation7 + $0x4c] sm:$0xf] %vm14824_vm5, %v7984_v8  ;;  %vm14831_vm9 = vmmov %vm14830_vm10 }
 0x8ab   :  { %8007 = vst.msk [vmem:[#allocation7 + $0x60] sm:$0xf] %vm14825_vm4, %v7987_v15  ;;  %vm14832_vm2 = vmmov %vm14831_vm9 }
 0x8ac   :  { %8008 = vst.msk [vmem:[#allocation7 + $0x74] sm:$0xf] %vm14826_vm14, %v7990_v41  ;;  %vm14833_vm11 = vmmov %vm14832_vm2 }
 0x8ad   :  { %8009 = vst.msk [vmem:[#allocation7 + $0x88] sm:$0xf] %vm14827_vm1, %v7993_v32  ;;  %vm14834_vm12 = vmmov %vm14832_vm2 }
 0x8ae   :  { %8010 = vst.msk [vmem:[#allocation7 + $0x9c] sm:$0x1] %vm14828_vm13, %v7994_v9  ;;  %vm14835_vm8 = vmmov %vm14832_vm2  ;;  %v9929_v5 = vld [vmem:[#allocation7 + $0x10] ss:$20 sps:$4 sm:$0xff]  }
 0x8af   :  { %vm14836_vm0 = vmmov %vm14832_vm2 }
 0x8b0   :  { %vm14838_vm6 = vmmov %vm14836_vm0 }
 0x8b1   :  { %vm14839_vm3 = vmmov %vm14836_vm0 }
 0x8b2   :  { %vm14840_vm5 = vmmov %vm14836_vm0 }
 0x8b3   :  { %vm14841_vm4 = vmmov %vm14837_vm7 }
 0x8b4   :  { %vm14842_vm14 = vmmov %vm14836_vm0 }
 0x8b5   :  { %vm14843_vm1 = vmmov %vm14836_vm0 }
 0x8b6   :  { %vm14844_vm13 = vmmov %vm14836_vm0 }
 0x8d2   :  { %v7751_v40 = vpop.permute.xlu1 %7750 }
 0x8d3   :  { %v7753_v51 = vpop.permute.xlu0 %7752  ;;  %7774 = vst.msk [vmem:[#allocation7 + $0x8] sm:$0xf] %vm14830_vm10, %v7751_v40  ;;  %vm14846_vm10 = vmmov %vm14836_vm0 }
 0x8d4   :  { %7775 = vst.msk [vmem:[#allocation7 + $0x1c] sm:$0xf] %vm14829_vm15, %v7753_v51  ;;  %vm14845_vm15 = vmmov %vm14836_vm0 }
 0x8d8   :  { %v7608_v19 = vpop.permute.xlu0 %7607 }
 0x8d9   :  { %v7606_v49 = vpop.permute.xlu1 %7605  ;;  %7630 = vst.msk [vmem:[#allocation7 + $0x18] sm:$0xf] %vm14831_vm9, %v7608_v19  ;;  %vm14847_vm9 = vmmov %vm14836_vm0  ;;  %v9933_v19 = vld [vmem:[#allocation7 + $0x38] ss:$20 sps:$4 sm:$0xff]  }
 0x8da   :  { %7629 = vst.msk [vmem:[#allocation7 + $0x4] sm:$0xf] %vm14832_vm2, %v7606_v49  ;;  %vm14848_vm2 = vmmov %vm14836_vm0  ;;  %v9934_v49 = vld [vmem:[#allocation7 + $0x60] ss:$20 sps:$4 sm:$0xff]  }
 0x8db   :  { %v9920_v38 = vld [vmem:[#allocation7 + $0x8] ss:$20 sps:$4 sm:$0xff]  }
 0x8dc   :  { %v7612_v22 = vpop.permute.xlu0 %7611 }
 0x8dd   :  { %7632 = vst.msk [vmem:[#allocation7 + $0x40] sm:$0xf] %vm14833_vm11, %v7612_v22  ;;  %vm14849_vm11 = vmmov %vm14836_vm0 }
 0x8e0   :  { %v7480_v39 = vpop.permute.xlu1 %7479  ;;  %v7616_v10 = vpop.permute.xlu0 %7615 }
 0x8e1   :  { %7503 = vst.msk [vmem:[#allocation7] sm:$0xf] %vm14834_vm12, %v7480_v39  ;;  %v9906_v2 = vld [vmem:[#allocation7 + $0x4] ss:$20 sps:$4 sm:$0xff]   ;;  %vm14850_vm12 = vmmov %vm14836_vm0 }
 0x8e2   :  { %7634 = vst.msk [vmem:[#allocation7 + $0x68] sm:$0xf] %vm14835_vm8, %v7616_v10  ;;  %8467 = vmatprep.mubr.bf16.mxu1 %v9906_v2  ;;  %vm14851_vm8 = vmmov %vm14836_vm0  ;;  %v9938_v10 = vld [vmem:[#allocation7 + $0x88] ss:$20 sps:$4 sm:$0x1f]  }
 0x8e4   :  { %v7610_v57 = vpop.permute.xlu1 %7609  ;;  %v7494_v1 = vpop.permute.xlu0 %7493 }
 0x8e5   :  { %7631 = vst.msk [vmem:[#allocation7 + $0x2c] sm:$0xf] %vm14836_vm0, %v7610_v57 }
 0x8e6   :  { %7510 = vst.msk [vmem:[#allocation7 + $0x8c] sm:$0x1] %vm14837_vm7, %v7494_v1  ;;  %vm14852_vm7 = vmmov %vm14836_vm0 }
 0x8e8   :  { %v7614_v46 = vpop.permute.xlu1 %7613  ;;  %v7482_v23 = vpop.permute.xlu0 %7481 }
 0x8e9   :  { %7633 = vst.msk [vmem:[#allocation7 + $0x54] sm:$0xf] %vm14838_vm6, %v7614_v46  ;;  %vm14853_vm6 = vmmov %vm14836_vm0 }
 0x8ea   :  { %7504 = vst.msk [vmem:[#allocation7 + $0x14] sm:$0xf] %vm14839_vm3, %v7482_v23  ;;  %vm14854_vm3 = vmmov %vm14836_vm0 }
 0x8ec   :  { %v7618_v6 = vpop.permute.xlu1 %7617  ;;  %v7620_v27 = vpop.permute.xlu0 %7619  ;;  %v9911_v62 = vld [vmem:[#allocation7 + $0x2c] ss:$20 sps:$4 sm:$0xff]  }
 0x8ed   :  { %7635 = vst.msk [vmem:[#allocation7 + $0x7c] sm:$0xf] %vm14840_vm5, %v7618_v6  ;;  %vm14855_vm5 = vmmov %vm14836_vm0 }
 0x8ee   :  { %7636 = vst.msk [vmem:[#allocation7 + $0x90] sm:$0x1] %vm14841_vm4, %v7620_v27 }
 0x8f0   :  { %v7755_v17 = vpop.permute.xlu1 %7754  ;;  %v7486_v44 = vpop.permute.xlu0 %7485  ;;  %v9916_v20 = vld [vmem:[#allocation7 + $0x54] ss:$20 sps:$4 sm:$0xff]  }
 0x8f1   :  { %7776 = vst.msk [vmem:[#allocation7 + $0x30] sm:$0xf] %vm14842_vm14, %v7755_v17  ;;  %v9904_v31 = vld [vmem:[#allocation7] ss:$20 sps:$4 sm:$0xff]   ;;  %vm14856_vm14 = vcmask 523264  }
 0x8f2   :  { %7506 = vst.msk [vmem:[#allocation7 + $0x3c] sm:$0xf] %vm14843_vm1, %v7486_v44  ;;  %8468 = vmatmul.mubr.bf16.vlgmr.msra.gmra.mrb[80].mxu1 %v9904_v31  ;;  %vm14857_vm1 = vmmov %vm14836_vm0 }
 0x8f3   :  { %9657 = vmatpush3.bf16.msra.mxu1 %v14083_v26  ;;  %v9928_v26 = vld [vmem:[%s14470_s14 + $0x118] sm:$0xff]   ;;  %8475 = vmatprep.mubr.bf16.mxu1 %v9911_v62 }
 0x8f4   :  { %v7484_v36 = vpop.permute.xlu1 %7483  ;;  %v7490_v13 = vpop.permute.xlu0 %7489  ;;  %9658 = vmatprep.subr.bf16.mxu1 %v9913_v63 }
 0x8f5   :  { %7505 = vst.msk [vmem:[#allocation7 + $0x28] sm:$0xf] %vm14844_vm13, %v7484_v36  ;;  %v9924_v33 = vld [vmem:[#allocation7 + $0x7c] ss:$20 sps:$4 sm:$0x1f]   ;;  %vm14858_vm13 = vmmov %vm14841_vm4 }
 0x8f6   :  { %7508 = vst.msk [vmem:[#allocation7 + $0x64] sm:$0xf] %vm14845_vm15, %v7490_v13  ;;  %v8032_v18 = vld [vmem:[#allocation7 + $0x8c] sm:$0x11]  ;;  %vm14859_vm15 = vmmov %vm14836_vm0 }
 0x8f7   :  { %9659 = vmatpush3.bf16.msra.mxu1 %v9913_v63 }
 0x8f8   :  { %v7488_v47 = vpop.permute.xlu1 %7487  ;;  %v7927_v0 = vpop.permute.xlu0 %7926  ;;  %9660 = vmatprep.subr.bf16.mxu1 %v9923_v7 }
 0x8f9   :  { %7507 = vst.msk [vmem:[#allocation7 + $0x50] sm:$0xf] %vm14846_vm10, %v7488_v47  ;;  %v8020_v54 = vld [vmem:[#allocation7 + $0x3c] sm:$0xff]  ;;  %vm14860_vm10 = vmmov %vm14856_vm14 }
 0x8fa   :  { %7949 = vst.msk [vmem:[#allocation7 + $0x20] sm:$0xf] %vm14847_vm9, %v7927_v0  ;;  %vm14861_vm9 = vmmov %vm14860_vm10 }
 0x8fb   :  { %9661 = vmatpush3.bf16.msra.mxu1 %v9923_v7 }
 0x8fc   :  { %v7925_v29 = vpop.permute.xlu1 %7924  ;;  %v8017_v60 = vld [vmem:[#allocation7 + $0x28] sm:$0xff]  ;;  %v7757_v42 = vpop.permute.xlu0 %7756  ;;  %9662 = vmatprep.subr.bf16.mxu1 %v9928_v26 }
 0x8fd   :  { %7948 = vst.msk [vmem:[#allocation7 + $0xc] sm:$0xf] %vm14848_vm2, %v7925_v29  ;;  %v9137_v43 = vcombine.low %v8017_v60, %v8020_v54  ;;  %v8026_v45 = vld [vmem:[#allocation7 + $0x64] sm:$0xff]  ;;  %vm14862_vm2 = vmmov %vm14861_vm9 }
 0x8fe   :  { %7777 = vst.msk [vmem:[#allocation7 + $0x44] sm:$0xf] %vm14849_vm11, %v7757_v42  ;;  %vm14863_vm11 = vmmov %vm14862_vm2 }
 0x8ff   :  { %8476 = vmatmul.mubr.bf16.gmra.mrb[84].mxu1 %v9137_v43 }
 0x900   :  { %v7492_v59 = vpop.permute.xlu1 %7491  ;;  %9663 = vmatpush3.bf16.msra.mxu1 %v9928_v26  ;;  %v8023_v61 = vld [vmem:[#allocation7 + $0x50] sm:$0xff]  ;;  %8483 = vmatprep.mubr.bf16.mxu1 %v9916_v20 }
 0x901   :  { %7509 = vst.msk [vmem:[#allocation7 + $0x78] sm:$0xf] %vm14850_vm12, %v7492_v59  ;;  %v7931_v11 = vpop.permute.xlu0 %7930  ;;  %v9142_v53 = vcombine.low %v8023_v61, %v8026_v45  ;;  %vm14864_vm12 = vmmov %vm14862_vm2 }
 0x902   :  { %7951 = vst.msk [vmem:[#allocation7 + $0x48] sm:$0xf] %vm14851_vm8, %v7931_v11  ;;  %vm14865_vm8 = vmmov %vm14862_vm2 }
 0x904   :  { %v7929_v4 = vpop.permute.xlu1 %7928  ;;  %v9922_v3 = vld [vmem:[#allocation7 + $0xc] ss:$20 sps:$4 sm:$0xff]  }
 0x905   :  { %7950 = vst.msk [vmem:[#allocation7 + $0x34] sm:$0xf] %vm14836_vm0, %v7929_v4  ;;  %8532 = vmatprep.mubr.bf16.mxu0 %v9922_v3  ;;  %vm14866_vm0 = vmmov %vm14862_vm2 }
 0x906   :  { %8533 = vmatmul.mubr.bf16.vlgmr.msra.gmra.mrb[92].mxu0 %v9920_v38 }
 0x907   :  { %v7761_v35 = vpop.permute.xlu0 %7760  ;;  %8484 = vmatmul.mubr.bf16.gmra.mrb[88].mxu1 %v9142_v53 }
 0x908   :  { %7779 = vst.msk [vmem:[#allocation7 + $0x6c] sm:$0xf] %vm14852_vm7, %v7761_v35  ;;  %v8029_v56 = vld [vmem:[#allocation7 + $0x78] sm:$0xff]  ;;  %8491 = vmatprep.mubr.bf16.mxu1 %v9924_v33  ;;  %vm14867_vm7 = vmmov %vm14866_vm0 }
 0x909   :  { %v8021_v28 = vld [vmem:[#allocation7 + $0x44] sm:$0xff]  ;;  %v9147_v8 = vcombine.low %v8029_v56, %v8032_v18 }
 0x90a   :  { %v7759_v37 = vpop.permute.xlu1 %7758 }
 0x90b   :  { %7778 = vst.msk [vmem:[#allocation7 + $0x58] sm:$0xf] %vm14853_vm6, %v7759_v37  ;;  %v7935_v14 = vpop.permute.xlu0 %7934  ;;  %vm14868_vm6 = vmmov %vm14866_vm0 }
 0x90c   :  { %7953 = vst.msk [vmem:[#allocation7 + $0x70] sm:$0xf] %vm14854_vm3, %v7935_v14  ;;  %v8018_v48 = vld [vmem:[#allocation7 + $0x30] sm:$0xff]  ;;  %vm14869_vm3 = vmmov %vm14866_vm0 }
 0x90d   :  { %v9926_v50 = vld [vmem:[#allocation7 + $0x34] ss:$20 sps:$4 sm:$0xff]   ;;  %v9139_v9 = vcombine.low %v8018_v48, %v8021_v28 }
 0x90e   :  { %v7933_v34 = vpop.permute.xlu1 %7932  ;;  %8540 = vmatprep.mubr.bf16.mxu0 %v9926_v50 }
 0x90f   :  { %7952 = vst.msk [vmem:[#allocation7 + $0x5c] sm:$0xf] %vm14855_vm5, %v7933_v34  ;;  %8492 = vmatmul.mubr.bf16.gmra.mrb[92].mxu1 %v9147_v8  ;;  %8541 = vmatmul.mubr.bf16.gmra.mrb[96].mxu0 %v9139_v9  ;;  %vm14870_vm5 = vmmov %vm14866_vm0 }
 0x910   :  { %9664 = vmatprep.mubr.msk.bf16.mxu1 %vm14856_vm14, %v9929_v5  ;;  %vm14872_vm14 = vmmov %vm14866_vm0 }
 0x912   :  { %v7765_v24 = vpop.permute.xlu0 %7764  ;;  %v9932_v40 = vld [vmem:[#allocation7 + $0x58] ss:$20 sps:$4 sm:$0xff]  }
 0x913   :  { %7781 = vst.msk [vmem:[#allocation7 + $0x94] sm:$0x1] %vm14841_vm4, %v7765_v24  ;;  %vm14871_vm4 = vmmov %vm14866_vm0 }
 0x916   :  { %v7939_v41 = vpop.permute.xlu0 %7938  ;;  %v9930_v51 = vld [vmem:[#allocation7 + $0x5c] ss:$20 sps:$4 sm:$0xff]  }
 0x917   :  { %v7763_v15 = vpop.permute.xlu1 %7762  ;;  %7955 = vst.msk [vmem:[#allocation7 + $0x98] sm:$0x1] %vm14858_vm13, %v7939_v41  ;;  %8548 = vmatprep.mubr.bf16.mxu0 %v9930_v51  ;;  %9665 = vmatmul.mubr.msk.bf16.vlgmr.msra.gmra.mrb[96].mxu1 %vm14860_vm10, %v9933_v19  ;;  %vm14874_vm13 = vmmov %vm14866_vm0  ;;  %vm14876_vm10 = vcmask 517120  }
 0x918   :  { %7780 = vst.msk [vmem:[#allocation7 + $0x80] sm:$0xf] %vm14857_vm1, %v7763_v15  ;;  %8549 = vmatmul.mubr.bf16.gmra.mrb[100].mxu0 %v9932_v40  ;;  %9668 = vmatprep.mubr.msk.bf16.mxu1 %vm14861_vm9, %v9934_v49  ;;  %vm14873_vm1 = vmmov %vm14866_vm0 }
 0x919   :  { %vm14877_vm9 = vmmov %vm14866_vm0 }
 0x91b   :  { %v7937_v32 = vpop.permute.xlu1 %7936 }
 0x91c   :  { %7954 = vst.msk [vmem:[#allocation7 + $0x84] sm:$0xf] %vm14859_vm15, %v7937_v32  ;;  %vm14875_vm15 = vmmov %vm14866_vm0 }
 0x91f   :  { %v9937_v39 = vld [vmem:[#allocation7 + $0x80] ss:$20 sps:$4 sm:$0x1f]   ;;  %9669 = vmatmul.mubr.msk.bf16.gmra.mrb[100].mxu1 %vm14862_vm2, %v9938_v10  ;;  %vm14878_vm2 = vmmov %vm14876_vm10 }
 0x923   :  { %v9935_v22 = vld [vmem:[#allocation7 + $0x84] ss:$20 sps:$4 sm:$0x1f]  }
 0x924   :  { %8556 = vmatprep.mubr.bf16.mxu0 %v9935_v22 }
 0x925   :  { %8557 = vmatmul.mubr.bf16.gmra.mrb[104].mxu0 %v9937_v39 }
 0x9c5   :  { %v9536_v57 = vpop.f32.mrb[80].mxu1 }
 0x9c6   :  { %v9537_v1 = vpop.f32.mrb[81].mxu1 }
 0x9c7   :  { %v9538_v46 = vadd.f32 %v9537_v1, %v9536_v57  ;;  %v9539_v23 = vpop.f32.mrb[82].mxu1 }
 0x9c8   :  { %v9540_v6 = vpop.f32.mrb[83].mxu1 }
 0x9c9   :  { %v9541_v27 = vadd.f32 %v9540_v6, %v9539_v23 }
 0x9d2   :  { %v9542_v17 = vpop.f32.mrb[84].mxu1 }
 0x9d3   :  { %v9543_v44 = vpop.f32.mrb[85].mxu1 }
 0x9d4   :  { %v9544_v31 = vadd.f32 %v9543_v44, %v9542_v17  ;;  %v9545_v2 = vpop.f32.mrb[86].mxu1 }
 0x9d5   :  { %v9546_v63 = vpop.f32.mrb[87].mxu1 }
 0x9d6   :  { %v9547_v36 = vadd.f32 %v9546_v63, %v9545_v2 }
 0x9d9   :  { %v9576_v7 = vpop.f32.mrb[92].mxu0 }
 0x9da   :  { %v9548_v13 = vpop.f32.mrb[88].mxu1  ;;  %v9577_v0 = vpop.f32.mrb[93].mxu0 }
 0x9db   :  { %v9549_v47 = vpop.f32.mrb[89].mxu1  ;;  %v9578_v26 = vadd.f32 %v9577_v0, %v9576_v7  ;;  %v9579_v60 = vpop.f32.mrb[94].mxu0 }
 0x9dc   :  { %v9550_v54 = vadd.f32 %v9549_v47, %v9548_v13  ;;  %v9551_v29 = vpop.f32.mrb[90].mxu1  ;;  %v9580_v42 = vpop.f32.mrb[95].mxu0 }
 0x9dd   :  { %v9552_v62 = vpop.f32.mrb[91].mxu1  ;;  %v9581_v59 = vadd.f32 %v9580_v42, %v9579_v60  ;;  %v8535_v20 = vadd.f32 %v9578_v26, %v9538_v46 }
 0x9de   :  { %v9553_v43 = vadd.f32 %v9552_v62, %v9551_v29 }
 0x9df   :  { %v8538_v11 = vadd.f32 %v9581_v59, %v9541_v27 }
 0x9e2   :  { %v9554_v61 = vpop.f32.mrb[92].mxu1  ;;  %v9582_v45 = vpop.f32.mrb[96].mxu0 }
 0x9e3   :  { %v9555_v4 = vpop.f32.mrb[93].mxu1  ;;  %v9583_v38 = vpop.f32.mrb[97].mxu0 }
 0x9e4   :  { %v9556_v3 = vadd.f32 %v9555_v4, %v9554_v61  ;;  %v9584_v35 = vadd.f32 %v9583_v38, %v9582_v45  ;;  %v9557_v53 = vpop.f32.mrb[94].mxu1  ;;  %v9585_v37 = vpop.f32.mrb[98].mxu0 }
 0x9e5   :  { %v9558_v33 = vpop.f32.mrb[95].mxu1  ;;  %v9586_v14 = vpop.f32.mrb[99].mxu0 }
 0x9e6   :  { %v9559_v56 = vadd.f32 %v9558_v33, %v9557_v53  ;;  %v9587_v28 = vadd.f32 %v9586_v14, %v9585_v37  ;;  %v8543_v18 = vadd.f32 %v9584_v35, %v9544_v31 }
 0x9e8   :  { %v8546_v34 = vadd.f32 %v9587_v28, %v9547_v36 }
 0x9ea   :  { %v9666_v50 = vpop.f32.mrb[96].mxu1 }
 0x9eb   :  { %v9588_v48 = vpop.f32.mrb[100].mxu0  ;;  %v14357_v24 = vadd.f32 %v9666_v50, %v8543_v18  ;;  %v8599_v9 = vpop.f32.mrb[97].mxu1 }
 0x9ec   :  { %v9589_v8 = vpop.f32.mrb[101].mxu0  ;;  %v14359_v15 = vadd.f32 %v8599_v9, %v8535_v20  ;;  %v9667_v32 = vpop.f32.mrb[98].mxu1 }
 0x9ed   :  { %v9590_v5 = vadd.f32 %v9589_v8, %v9588_v48  ;;  %v9591_v41 = vpop.f32.mrb[102].mxu0  ;;  %v8652_v51 = vmul.f32 %v14357_v24, %v12557_v12  ;;  %v8611_v40 = vadd.f32 %v9667_v32, %v8546_v34  ;;  %v8602_v49 = vpop.f32.mrb[99].mxu1 }
 0x9ee   :  { %v9592_v19 = vpop.f32.mrb[103].mxu0  ;;  %v8650_v22 = vmul.f32 %v14359_v15, %v12553_v30  ;;  %v14365_v10 = vadd.f32 %v8602_v49, %v8538_v11 }
 0x9ef   :  { %v9593_v39 = vadd.f32 %v9592_v19, %v9591_v41  ;;  %v8551_v57 = vadd.f32 %v9590_v5, %v9550_v54  ;;  %v8653_v1 = vmul.f32 %v8611_v40, %v12561_v16  ;;  %v8681_v27 = vmul.f32 %v8652_v51, %v14357_v24 }
 0x9f0   :  { %v8679_v46 = vmul.f32 %v8650_v22, %v14359_v15  ;;  %v8651_v23 = vmul.f32 %v14365_v10, %v12555_v21  ;;  %v8658_v17 = vsel %vm14863_vm11, %v8650_v22, 0.0  ;;  %v8661_v36 = vsel %vm14865_vm8, %v8652_v51, 0.0 }
 0x9f1   :  { %v8554_v6 = vadd.f32 %v9593_v39, %v9553_v43  ;;  %v8682_v13 = vmul.f32 %v8653_v1, %v8611_v40  ;;  %v8690_v42 = vsel %vm14868_vm6, %v8681_v27, 0.0  ;;  %v8663_v43 = vsel %vm14869_vm3, %v8653_v1, 0.0 }
 0x9f2   :  { %v8659_v44 = vsel %vm14864_vm12, %v8651_v23, 0.0  ;;  %v8680_v31 = vmul.f32 %v8651_v23, %v14365_v10  ;;  %v9670_v63 = vpop.f32.mrb[100].mxu1  ;;  %v8687_v0 = vsel %vm14866_vm0, %v8679_v46, 0.0  ;;  %vm14879_vm11 = vcmask 1040384  }
 0x9f3   :  { %v8660_v16 = vadd.f32 %v8659_v44, %v8658_v17  ;;  %v8615_v47 = vpop.f32.mrb[101].mxu1  ;;  %v8692_v53 = vsel %vm14870_vm5, %v8682_v13, 0.0  ;;  %vm14880_vm12 = vmmov %vm14879_vm11  ;;  %vm8809_vm5 = vcmask 523270  }
 0x9f4   :  { %v8688_v54 = vsel %vm14867_vm7, %v8680_v31, 0.0  ;;  %v14378_v29 = vadd.f32 %v8615_v47, %v8551_v57  ;;  %v9671_v62 = vpop.f32.mrb[102].mxu1  ;;  %vm14881_vm8 = vmmov %vm14879_vm11 }
 0x9f5   :  { %v8662_v59 = vadd.f32 %v8661_v36, %v8660_v16  ;;  %v8689_v20 = vadd.f32 %v8688_v54, %v8687_v0  ;;  %v8618_v61 = vpop.f32.mrb[103].mxu1  ;;  %vm14882_vm0 = vmmov %vm14881_vm8 }
 0x9f6   :  { %v8654_v4 = vmul.f32 %v14378_v29, %v12573_v55  ;;  %v14384_v35 = vadd.f32 %v8618_v61, %v8554_v6  ;;  %vm14883_vm7 = vmmov %vm14882_vm0 }
 0x9f7   :  { %v8691_v37 = vadd.f32 %v8690_v42, %v8689_v20  ;;  %v8664_v33 = vadd.f32 %v8663_v43, %v8662_v59  ;;  %vm14884_vm6 = vmmov %vm14882_vm0 }
 0x9f8   :  { %v9594_v2 = vpop.f32.mrb[104].mxu0  ;;  %v8665_v28 = vsel %vm14871_vm4, %v8654_v4, 0.0  ;;  %v8683_v18 = vmul.f32 %v8654_v4, %v14378_v29  ;;  %vm14885_vm3 = vmmov %vm14882_vm0  ;;  %vm8812_vm4 = vcmask 523268  }
 0x9f9   :  { %v9595_v7 = vpop.f32.mrb[105].mxu0  ;;  %v8666_v48 = vadd.f32 %v8665_v28, %v8664_v33  ;;  %v8693_v50 = vadd.f32 %v8692_v53, %v8691_v37  ;;  %v9253_v33 = vld [vmem:[#allocation4 + $0x8] sm:$0xff]  }
 0x9fa   :  { %v9596_v26 = vadd.f32 %v9595_v7, %v9594_v2  ;;  %v9597_v60 = vpop.f32.mrb[106].mxu0  ;;  %v8694_v9 = vsel %vm14872_vm14, %v8683_v18, 0.0  ;;  %v8631_v18 = vld [vmem:[#allocation4 + $0x4] sm:$0xf]  ;;  %vm8814_vm14 = vcmask 521218  }
 0x9fb   :  { %v9598_v11 = vpop.f32.mrb[107].mxu0  ;;  %v8695_v41 = vadd.f32 %v8694_v9, %v8693_v50  ;;  %v9241_v50 = vunpack.c.h.bf16 %v9253_v33 }
 0x9fc   :  { %v8559_v45 = vadd.f32 %v9596_v26, %v9556_v3  ;;  %v9599_v38 = vadd.f32 %v9598_v11, %v9597_v60  ;;  %v8655_v3 = vmul.f32 %v14384_v35, %v12580_v52 }
 0x9fe   :  { %v14387_v14 = vadd.f32 %v9670_v63, %v8559_v45  ;;  %v8562_v34 = vadd.f32 %v9599_v38, %v9559_v56  ;;  %v8667_v32 = vsel %vm14873_vm1, %v8655_v3, 0.0  ;;  %v8684_v51 = vmul.f32 %v8655_v3, %v14384_v35 }
 0x9ff   :  { %v8668_v19 = vadd.f32 %v8667_v32, %v8666_v48  ;;  %v9255_v48 = vld [vmem:[#allocation4 + $0x18] sm:$0xff]   ;;  %vm14886_vm1 = vcmask 519168  }
 0xa00   :  { %v8656_v8 = vmul.f32 %v14387_v14, %v12596_v25  ;;  %v14396_v5 = vadd.f32 %v9671_v62, %v8562_v34  ;;  %v8696_v22 = vsel %vm14875_vm15, %v8684_v51, 0.0  ;;  %v9254_v34 = vld [vmem:[#allocation4 + $0x10] sm:$0xff]   ;;  %v9249_v9 = vunpack.c.h.bf16 %v9255_v48  ;;  %vm14888_vm15 = vmmov %vm14886_vm1 }
 0xa01   :  { %v8697_v46 = vadd.f32 %v8696_v22, %v8695_v41  ;;  %v9245_v3 = vunpack.c.h.bf16 %v9254_v34 }
 0xa02   :  { %v8685_v40 = vmul.f32 %v8656_v8, %v14387_v14  ;;  %v8657_v56 = vmul.f32 %v14396_v5, %v12606_v58  ;;  %v8669_v49 = vsel %vm14874_vm13, %v8656_v8, 0.0  ;;  %v8638_v8 = vld [vmem:[#allocation4 + $0x20] sm:$0x1]  ;;  %v8776_v22 = vrot.slane %v9249_v9, 7  ;;  %vm14887_vm13 = vmmov %vm14878_vm2 }
 0xa03   :  { %v8670_v1 = vadd.f32 %v8669_v49, %v8668_v19  ;;  %v8647_v41 = vunpack.c.l.bf16 %v8638_v8 }
 0xa04   :  { %v8671_v39 = vsel %vm14876_vm10, %v8657_v56, 0.0  ;;  %v8686_v57 = vmul.f32 %v8657_v56, %v14396_v5  ;;  %v8698_v23 = vsel %vm14877_vm9, %v8685_v40, 0.0  ;;  %v8772_v56 = vrot.slane %v9245_v3, 7  ;;  %vm14889_vm10 = vmmov %vm14878_vm2 }
 0xa05   :  { %v8672_v27 = vadd.f32 %v8671_v39, %v8670_v1  ;;  %v8699_v17 = vadd.f32 %v8698_v23, %v8697_v46  ;;  %v9192_v46 = vld [vmem:[%s14471_s15] ss:$0 sm:$0xff]  ;;  %s9979_s15 = smov [#allocation8]  }
 0xa06   :  { %v8700_v6 = vsel %vm14878_vm2, %v8686_v57, 0.0  ;;  %v8778_v57 = vrot.slane %v8647_v41, 7 }
 0xa07   :  { %v8673_v44 = vrot.slane %v8672_v27, 4  ;;  %v8701_v31 = vadd.f32 %v8700_v6, %v8699_v17 }
 0xa09   :  { %v8674_v2 = vadd.f32 %v8673_v44, %v8672_v27  ;;  %v8702_v63 = vrot.slane %v8701_v31, 4 }
 0xa0b   :  { %v8675_v36 = vrot.slane %v8674_v2, 2  ;;  %v8703_v13 = vadd.f32 %v8702_v63, %v8701_v31 }
 0xa0d   :  { %v8676_v16 = vadd.f32 %v8675_v36, %v8674_v2  ;;  %v8704_v7 = vrot.slane %v8703_v13, 2  ;;  %v9193_v36 = vld [vmem:[%s14472_s16] ss:$0 sm:$0xff]  ;;  %s8826_s16 = sshll.u32 %s9979_s15, 4  ;;  %s8827_s16 = int_to_ptr.vmem [resolvable:$true] %s8826_s16 }
 0xa0e   :  { %s9949_s11 = scalar_lea.vmem %s8827_s16, 512  ;;  %p9954_p1 = scmp.lt.s32.totalorder %s8827_s16, %s8827_s16 }
 0xa0f   :  { %v8677_v47 = vrot.slane %v8676_v16, 1  ;;  %v8705_v0 = vadd.f32 %v8704_v7, %v8703_v13  ;;  %p9950_p0 = scmp.ne.s32.totalorder %s8827_s16, %s9949_s11  ;;  %p9955_p2 = scmp.lt.s32.totalorder %s9949_s11, %s9949_s11 }
 0xa11   :  { %v8678_v54 = vadd.f32 %v8677_v47, %v8676_v16  ;;  %v8706_v26 = vrot.slane %v8705_v0, 1  ;;  %p9956_p3 = por %p9955_p2, %p9954_p1 }
 0xa13   :  { %v8707_v60 = vadd.f32 %v8706_v26, %v8705_v0  ;;  %v8708_v62 = vmul.f32 0.03125, %v8678_v54  ;;  %p9957_p4 = pnand %p9956_p3, %p9950_p0 }
 0xa15   :  { %v8709_v42 = vmul.f32 0.03125, %v8707_v60  ;;  %v8710_v43 = vmul.f32 %v8708_v62, %v8708_v62  ;;  %v8713_v59 = vsub.f32 %v14359_v15, %v8708_v62  ;;  %v8714_v20 = vsub.f32 %v14365_v10, %v8708_v62  ;;  %v8630_v15 = vld [vmem:[#allocation4] sm:$0x8] }
 0xa16   :  { %v8715_v11 = vsub.f32 %v14357_v24, %v8708_v62  ;;  %v8716_v61 = vsub.f32 %v14378_v29, %v8708_v62  ;;  %v8717_v45 = vsub.f32 %v14384_v35, %v8708_v62  ;;  %v8718_v4 = vsub.f32 %v14387_v14, %v8708_v62 }
 0xa17   :  { %v8711_v38 = vsub.f32 %v8709_v42, %v8710_v43  ;;  %v8719_v53 = vsub.f32 %v14396_v5, %v8708_v62  ;;  %v9240_v10 = vunpack.c.l.bf16 %v9253_v33  ;;  %v9244_v24 = vunpack.c.l.bf16 %v9254_v34 }
 0xa18   :  { %v9248_v29 = vunpack.c.l.bf16 %v9255_v48  ;;  %v8640_v35 = vunpack.c.l.bf16 %v8631_v18  ;;  %v8639_v14 = vunpack.c.l.bf16 %v8630_v15  ;;  %v8769_v5 = vrot.slane %v9241_v50, 7 }
 0xa19   :  { %v8712_v37 = vmax.f32 %v8711_v38, 0.0  ;;  %v8767_v32 = vrot.slane %v9240_v10, 7  ;;  %v8771_v40 = vrot.slane %v9244_v24, 7 }
 0xa1a   :  { %v8765_v51 = vrot.slane %v8640_v35, 7  ;;  %v8774_v19 = vrot.slane %v9248_v29, 7  ;;  %v8764_v49 = vrot.slane %v8639_v14, 7 }
 0xa1b   :  { %v8720_v28 = vadd.f32 1e-05, %v8712_v37  ;;  %v8770_v39 = vsel %vm14879_vm11, %v8767_v32, %v8769_v5  ;;  %v8773_v27 = vsel %vm14882_vm0, %v8771_v40, %v8772_v56 }
 0xa1c   :  { %v8766_v23 = vsel %vm14880_vm12, %v8764_v49, %v8765_v51  ;;  %v8768_v6 = vsel %vm14881_vm8, %v8765_v51, %v8767_v32  ;;  %v8775_v17 = vsel %vm14883_vm7, %v8772_v56, %v8774_v19  ;;  %v8777_v47 = vsel %vm14884_vm6, %v8774_v19, %v8776_v22 }
 0xa1d   :  { %9947 = vrsqrt.f32 %v8720_v28 }
 0xa27   :  { %v9948_v1 = vpop.eup %9947 }
 0xa28   :  { %v8722_v44 = vmul.f32 %v9948_v1, %v8713_v59  ;;  %v8723_v31 = vmul.f32 %v9948_v1, %v8714_v20  ;;  %v8724_v2 = vmul.f32 %v9948_v1, %v8715_v11  ;;  %v8725_v63 = vmul.f32 %v9948_v1, %v8716_v61 }
 0xa29   :  { %v8726_v13 = vmul.f32 %v9948_v1, %v8717_v45  ;;  %v8727_v16 = vmul.f32 %v9948_v1, %v8718_v4  ;;  %v8728_v7 = vmul.f32 %v9948_v1, %v8719_v53  ;;  %v8779_v59 = vsel %vm14885_vm3, %v8776_v22, %v8778_v57 }
 0xa2a   :  { %v8735_v0 = vmul.f32 %v9192_v46, %v8722_v44  ;;  %v8736_v54 = vmul.f32 %v9192_v46, %v8723_v31  ;;  %v8737_v26 = vmul.f32 %v9192_v46, %v8724_v2  ;;  %v8738_v60 = vmul.f32 %v9192_v46, %v8725_v63 }
 0xa2b   :  { %v8739_v62 = vmul.f32 %v9192_v46, %v8726_v13  ;;  %v8740_v42 = vmul.f32 %v9192_v46, %v8727_v16  ;;  %v8741_v43 = vmul.f32 %v9192_v46, %v8728_v7 }
 0xa2c   :  { %v8748_v20 = vadd.f32 %v9193_v36, %v8735_v0  ;;  %v8749_v11 = vadd.f32 %v9193_v36, %v8736_v54  ;;  %v8750_v61 = vadd.f32 %v9193_v36, %v8737_v26  ;;  %v8751_v38 = vadd.f32 %v9193_v36, %v8738_v60 }
 0xa2d   :  { %v8752_v37 = vadd.f32 %v9193_v36, %v8739_v62  ;;  %v8753_v33 = vadd.f32 %v9193_v36, %v8740_v42  ;;  %v8754_v45 = vadd.f32 %v9193_v36, %v8741_v43 }
 0xa2e   :  { %v8787_v4 = vadd.f32 %v8766_v23, %v8748_v20  ;;  %v8788_v53 = vadd.f32 %v8768_v6, %v8749_v11  ;;  %v8789_v28 = vadd.f32 %v8770_v39, %v8750_v61  ;;  %v8790_v18 = vadd.f32 %v8773_v27, %v8751_v38 }
 0xa2f   :  { %v8791_v34 = vadd.f32 %v8775_v17, %v8752_v37  ;;  %v8792_v48 = vadd.f32 %v8777_v47, %v8753_v33  ;;  %v8793_v15 = vadd.f32 %v8779_v59, %v8754_v45 }
 0xa30   :  { %v8794_v10 = vmax.f32 %v8787_v4, 0.0  ;;  %v8795_v50 = vmax.f32 %v8788_v53, 0.0  ;;  %v8796_v24 = vmax.f32 %v8789_v28, 0.0  ;;  %v8797_v3 = vmax.f32 %v8790_v18, 0.0 }
 0xa31   :  { %v8798_v29 = vmax.f32 %v8791_v34, 0.0  ;;  %v8799_v8 = vmax.f32 %v8792_v48, 0.0  ;;  %v8800_v35 = vmax.f32 %v8793_v15, 0.0 }
 0xa32   :  { %v8801_v9 = vmul.f32 %v8794_v10, %v12553_v30  ;;  %v8802_v14 = vmul.f32 %v8795_v50, %v12555_v21  ;;  %v8803_v41 = vmul.f32 %v8796_v24, %v12557_v12  ;;  %v8804_v32 = vmul.f32 %v8797_v3, %v12573_v55 }
 0xa33   :  { %v8805_v5 = vmul.f32 %v8798_v29, %v12580_v52  ;;  %v8806_v51 = vmul.f32 %v8799_v8, %v12596_v25  ;;  %v8807_v40 = vmul.f32 %v8800_v35, %v12606_v58 }
 0xa34   :  { %8808 = vst.msk [vmem:[#allocation8] sm:$0xf] %vm14886_vm1, %v8801_v9 }
 0xa35   :  { %8810 = vst.msk [vmem:[#allocation8 - $0x2] sm:$0xc0] %vm8809_vm5, %v8801_v9  ;;  %8819 = vst.msk [vmem:[#allocation8 + $0x16] sm:$0xc0] %vm8809_vm5, %v8806_v51 }
 0xa36   :  { %8811 = vst.msk [vmem:[#allocation8 + $0x6] sm:$0x3] %vm14887_vm13, %v8802_v14 }
 0xa37   :  { %8813 = vst.msk [vmem:[#allocation8 + $0x4] sm:$0xf0] %vm8812_vm4, %v8802_v14  ;;  %8816 = vst.msk [vmem:[#allocation8 + $0xc] sm:$0xf0] %vm8812_vm4, %v8804_v32 }
 0xa38   :  { %8815 = vst.msk [vmem:[#allocation8 + $0xa] sm:$0x3c] %vm8814_vm14, %v8803_v41  ;;  %8817 = vst.msk [vmem:[#allocation8 + $0x12] sm:$0x3c] %vm8814_vm14, %v8805_v5 }
 0xa39   :  { %8818 = vst.msk [vmem:[#allocation8 + $0x18] sm:$0xf] %vm14888_vm15, %v8806_v51 }
 0xa3a   :  { %8820 = vst.msk [vmem:[#allocation8 + $0x1e] sm:$0x3] %vm14889_vm10, %v8807_v40 }
 0xa3b   :  { %9960 = shalt.err (!%p9957_p4)
}
 0xa3c   :  { %s9961_s25 = scalar_lea.hbm %s14474_s18, 512 }
 0xa3d   :  { %p9962_p5 = scmp.ne.s32.totalorder %s14474_s18, %s9961_s25  ;;  %p9965_p6 = scmp.lt.u32.totalorder %s9961_s25, %s14474_s18 }
 0xa3f   :  { %p9967_p7 = pnand %p9965_p6, %p9962_p5 }
 0xa41   :  { %9970 = shalt.err (!%p9967_p7)
}
 0xa42   :  { %s9980_s4 = smov 128   ;;  %s9981_s6 = smov 8  }
 0xa43   :  { %8832 = dma.vmem_to_hbm [thread:$0]  %s8827_s16, 512, %s14474_s18, [#allocation9], %s9980_s4, %s9980_s4, %s9981_s6  }
 0xa44   :  { %9971 = dma.done.wait [#allocation9], 512  }
 0xa45   :  { %9972 = vsyncadd [#allocation9], 4294966784 }
 0xa46   :  { %8836 = vsyncpa [#allocation9], 1 }

</bundles_post_ra>
